<compile_context>
chip_gen: v5e
topology: v5e:2x2
jax: 0.10.0
libtpu: 0.0.40
codegen_flags: <defaults>
</compile_context>

<pallas_src>
import math

import jax
import jax.numpy as jnp
from jax.experimental import pallas as pl
from jax.experimental.pallas import tpu as pltpu


# --------------------------------------------------------------------------- kernel
def fused_bp_kernel(x_ref, m1t_ref, m2t_ref, wvn_ref, wout_ref, sbs_ref,
                    llr_ref, xcur):
    """grid = (num_batch_tiles [parallel], num_iterations [arbitrary]).

    x_ref   [TB, Np]       channel LLRs for this batch tile (resident across iters)
    m1t_ref [2, Np, Hp]    first-CN binary masks (set1/set2), transposed, resident
    m2t_ref [2, Hp, Hp]    second-CN binary masks (set1/set2), transposed, resident
    wvn_ref [Hp, Hp]       per-iteration VnUpdate weight (pre-transposed), streamed
    wout_ref[Hp, Np]       per-iteration output VnUpdate weight (pre-transposed)
    sbs_ref [Np, Hp+Np]    per-iteration [s @ bias_matrix | s]  (shared-LHS fusion)
    llr_ref [TB, Np]       this iteration's sigmoid output (slice of [n_it,B,Np] slab)
    xcur    [TB, Np] VMEM  running LLR state carried across iterations
    """
    f32 = jnp.float32
    it = pl.program_id(1)
    sel = it % 2                         # even iterations -> mask set 1, odd -> set 2
    hp = wvn_ref.shape[0]

    @pl.when(it == 0)
    def _():
        xcur[...] = x_ref[...].astype(f32)

    chan = xcur[...]                     # Channel_LLR for this iteration

    def cn_update(v, mask_t):
        # PyTorch CnUpdateLayer: out[b,i] = prod_{j: mask[i,j]!=0 and v[b,j]!=0} v[b,j],
        # and 0 if the included set is empty. Log-domain MXU formulation; the three
        # dots share the mask RHS -> one fused [3*TB, K] matmul.
        nz = v != 0.0
        nzf = nz.astype(f32)                                   # inclusion indicator
        negf = (v < 0.0).astype(f32)                           # sign indicator
        logmag = jnp.log(jnp.where(nz, jnp.abs(v), 1.0))       # 0 where excluded
        lhs3 = jnp.concatenate([nzf, logmag, negf], axis=0)    # [3*TB, K]
        res = jnp.dot(lhs3, mask_t, preferred_element_type=f32,
                      precision=jax.lax.Precision.HIGHEST)     # f32 passes (atanh path)
        n = v.shape[0]
        cnt, logprod, negcnt = res[:n], res[n:2 * n], res[2 * n:]
        parity = negcnt - 2.0 * jnp.floor(0.5 * negcnt)        # negcnt mod 2 (VPU only)
        sign = 1.0 - 2.0 * parity
        return jnp.where(cnt > 0.5, sign * jnp.exp(logprod), 0.0)

    def two_atanh_clamped(c):
        c = jnp.clip(c, -0.999999, 0.999999)
        return jnp.log(1.0 + c) - jnp.log(1.0 - c)             # divide-free 2*atanh

    m1 = m1t_ref[sel]                                          # [Np, Hp]
    m2 = m2t_ref[sel]                                          # [Hp, Hp]

    # --- first CN update + 2*atanh --------------------------------------------
    c = two_atanh_clamped(cn_update(jnp.tanh(0.5 * chan), m1))             # [TB, Hp]

    # --- shared-LHS fused bias matmul: chan @ [s@bias | s] ---------------------
    bs = jnp.dot(chan, sbs_ref[...], preferred_element_type=f32)           # [TB, Hp+Np]
    bias1 = bs[:, :hp]                                                     # channel bias
    chan_s = bs[:, hp:]                                                    # chan @ s

    # --- VN update --------------------------------------------------------------
    v = jnp.tanh(0.5 * (jnp.dot(c, wvn_ref[...], preferred_element_type=f32) + bias1))

    # --- second CN update + 2*atanh ---------------------------------------------
    c2 = two_atanh_clamped(cn_update(v, m2))                               # [TB, Hp]

    # --- output VN update + channel term ----------------------------------------
    out = jnp.dot(c2, wout_ref[...], preferred_element_type=f32) + chan_s  # [TB, Np]

    # stable branch-free sigmoid; divide on the EUP approx-reciprocal path
    pos = out >= 0.0
    e = jnp.exp(jnp.where(pos, -out, out))
    inv = pl.reciprocal(1.0 + e, approx=True)
    llr_ref[...] = jnp.where(pos, inv, e * inv)

    xcur[...] = out                       # carry LLR state to the next iteration


# --------------------------------------------------------------------------- wrapper
def _round_up(x, m):
    return ((x + m - 1) // m) * m


def _pad_to(a, shape):
    return jnp.pad(a, [(0, s - d) for d, s in zip(a.shape, shape)])


def _pick_vmem_limit_bytes():
    try:
        kind = jax.devices()[0].device_kind.lower()
    except Exception:
        return None
    if "v7" in kind:
        return 48 * 1024 * 1024          # v7x: 64 MiB physical VMEM -> leave headroom
    if "v6" in kind or "v5" in kind or "v4" in kind:
        return 96 * 1024 * 1024          # 128 MiB physical VMEM
    return None


def _stack_params(layer_params, n_pad, h_pad):
    """Pad to lane-dense shapes; masks as resident [2,...]; per-iteration weights stacked."""
    # The module alternates exactly two parity-check structures (set1 on even
    # iterations, set2 on odd) -> keep only the 2 distinct CN masks, resident.
    nm = min(2, len(layer_params))
    m1t = jnp.stack([_pad_to(layer_params[j]["mask_first"], (h_pad, n_pad)).T
                     for j in range(nm)])                                  # [2, Np, Hp]
    m2t = jnp.stack([_pad_to(layer_params[j]["mask_cn2"], (h_pad, h_pad)).T
                     for j in range(nm)])                                  # [2, Hp, Hp]
    if nm == 1:
        m1t = jnp.concatenate([m1t, m1t], axis=0)
        m2t = jnp.concatenate([m2t, m2t], axis=0)
    wvn = jnp.stack([_pad_to(lp["w_vn_t"], (h_pad, h_pad)) for lp in layer_params])
    wout = jnp.stack([_pad_to(lp["w_out_t"], (h_pad, n_pad)) for lp in layer_params])
    sbs = []
    for lp in layer_params:
        s_p = _pad_to(lp["s"], (n_pad, n_pad))
        sb_p = s_p @ _pad_to(lp["bias_mat"], (n_pad, h_pad))   # bias pre-fold: s @ B
        sbs.append(jnp.concatenate([sb_p, s_p], axis=-1))      # shared-LHS fusion
    sbs = jnp.stack(sbs)                                       # [n_it, Np, Hp+Np]
    return m1t, m2t, wvn, wout, sbs


def sparse_bp_forward(x, layer_params, *, batch_tile=None):
    """Runs the 10 fused BP iterations. Returns (totalLLR10, ..., totalLLR1) like PyTorch."""
    B, N = x.shape
    n_it = len(layer_params)
    h_max = max(lp["w_vn_t"].shape[0] for lp in layer_params)

    # Lane-dense padding (multiples of 128 on the last dims, 8 on batch).
    n_pad = _round_up(max(N, 128), 128)
    h_pad = _round_up(max(h_max, 128), 128)
    b_pad = _round_up(B, 8)
    if batch_tile is None:
        batch_tile = next((t for t in (128, 256, 64, 32, 16, 8) if b_pad % t == 0),
                          b_pad)
    tb = batch_tile
    b_pad = _round_up(b_pad, tb)

    x_p = _pad_to(x.astype(jnp.float32), (b_pad, n_pad))
    m1t, m2t, wvn, wout, sbs = _stack_params(layer_params, n_pad, h_pad)

    llr_slab = pl.pallas_call(
        fused_bp_kernel,
        out_shape=jax.ShapeDtypeStruct((n_it, b_pad, n_pad), jnp.float32),
        grid_spec=pltpu.PrefetchScalarGridSpec(
            num_scalar_prefetch=0,
            grid=(b_pad // tb, n_it),
            in_specs=[
                pl.BlockSpec((tb, n_pad), lambda b, i: (b, 0)),            # x (per tile)
                pl.BlockSpec((2, n_pad, h_pad), lambda b, i: (0, 0, 0)),   # m1t resident
                pl.BlockSpec((2, h_pad, h_pad), lambda b, i: (0, 0, 0)),   # m2t resident
                pl.BlockSpec((None, h_pad, h_pad), lambda b, i: (i, 0, 0)),        # wvn
                pl.BlockSpec((None, h_pad, n_pad), lambda b, i: (i, 0, 0)),        # wout
                pl.BlockSpec((None, n_pad, h_pad + n_pad), lambda b, i: (i, 0, 0)),  # sbs
            ],
            out_specs=pl.BlockSpec((None, tb, n_pad), lambda b, i: (i, b, 0)),
            scratch_shapes=[pltpu.VMEM((tb, n_pad), jnp.float32)],         # running LLR
        ),
        compiler_params=pltpu.CompilerParams(
            dimension_semantics=("parallel", "arbitrary"),   # batch across TCs, iters seq
            vmem_limit_bytes=_pick_vmem_limit_bytes(),
        ),
    )(x_p, m1t, m2t, wvn, wout, sbs)

    llr_slab = llr_slab[:, :B, :N]
    return tuple(llr_slab[i] for i in range(n_it - 1, -1, -1))


# --------------------------------------------------------------------------- reference (plain JAX, faithful to PyTorch)
def _cn_update_ref(x, mask):
    xm = x[:, None, :] * mask[None, :, :]
    nz = xm != 0.0
    prod = jnp.prod(jnp.where(nz, xm, 1.0), axis=-1)
    return jnp.where(jnp.any(nz, axis=-1), prod, 0.0)


def _bp_iteration_ref(x, lp):
    chan = x
    t = jnp.tanh(0.5 * x)
    c = jnp.clip(_cn_update_ref(t, lp["mask_first"]), -0.999999, 0.999999)
    c = 2.0 * jnp.arctanh(c)
    chan_s = chan @ lp["s"]
    v = jnp.tanh(0.5 * (c @ lp["w_vn_t"] + chan_s @ lp["bias_mat"]))
    c2 = jnp.clip(_cn_update_ref(v, lp["mask_cn2"]), -0.999999, 0.999999)
    c2 = 2.0 * jnp.arctanh(c2)
    out = c2 @ lp["w_out_t"] + chan_s
    return jax.nn.sigmoid(out), out


def sparse_bp_forward_ref(x, layer_params):
    llrs = []
    cur = x
    for lp in layer_params:
        llr, cur = _bp_iteration_ref(cur, lp)
        llrs.append(llr)
    return tuple(reversed(llrs))


# --------------------------------------------------------------------------- param construction
def _xavier_uniform(key, out_f, in_f):
    bound = math.sqrt(6.0 / (in_f + out_f))
    return jax.random.uniform(key, (out_f, in_f), jnp.float32, -bound, bound)


def make_mask_set(key, n, h):
    ks = jax.random.split(key, 5)
    return dict(
        first_mask=jax.random.bernoulli(ks[0], 0.5, (h, n)).astype(jnp.float32),
        vn_mask=jax.random.bernoulli(ks[1], 0.5, (h, h)).astype(jnp.float32),
        cn_mask=jax.random.bernoulli(ks[2], 0.5, (h, h)).astype(jnp.float32),
        out_mask=jax.random.bernoulli(ks[3], 0.5, (n, h)).astype(jnp.float32),
        bias_mat=jax.random.normal(ks[4], (n, h), jnp.float32) * 0.1,
    )


def build_layer_params(key, n, h1, h2):
    """10 BP iterations alternating mask set 1 / set 2 (fc0..3 / fc4..7 structure)."""
    k1, k2, kw, ks = jax.random.split(key, 4)
    set1 = make_mask_set(k1, n, h1)
    set2 = make_mask_set(k2, n, h2)
    wkeys = jax.random.split(kw, 20)
    skeys = jax.random.split(ks, 10)
    eye = jnp.eye(n, dtype=jnp.float32)
    layers = []
    for it in range(10):
        ms, h = (set1, h1) if it % 2 == 0 else (set2, h2)
        w_vn = _xavier_uniform(wkeys[2 * it], h, h) * ms["vn_mask"]        # VnUpdateLayer weight
        w_out = _xavier_uniform(wkeys[2 * it + 1], n, h) * ms["out_mask"]
        # bias_scaling_vectors init is eye(N) in torch; perturb slightly to exercise the general path
        s = eye + 0.02 * jax.random.normal(skeys[it], (n, n), jnp.float32)
        layers.append(dict(
            mask_first=ms["first_mask"],    # CnUpdateLayer layer_mask (first CN update)  [H, N]
            w_vn_t=w_vn.T,                  # pre-transposed for x @ W.T                  [H, H]
            mask_cn2=ms["cn_mask"],         # CnUpdateLayer layer_mask (second CN update) [H, H]
            w_out_t=w_out.T,                #                                             [H, N]
            s=s,                            # bias_scaling_vectors[it]                    [N, N]
            bias_mat=ms["bias_mat"],        # Dot_bias_matrix                             [N, H]
        ))
    return layers


# --------------------------------------------------------------------------- main
if __name__ == "__main__":
    key = jax.random.PRNGKey(0)
    k_x, k_p = jax.random.split(key)

    # B raised so each batch tile fills the MXU (TB=128 rows -> 2 parallel tiles);
    # input_size == output_size == N.
    B, N, H1, H2 = 256, 16, 32, 24
    x = jax.random.normal(k_x, (B, N), jnp.float32)
    layer_params = build_layer_params(k_p, N, H1, H2)

    outs = sparse_bp_forward(x, layer_params)
    outs = jax.block_until_ready(outs)

    refs = sparse_bp_forward_ref(x, layer_params)
    for o, r in zip(outs, refs):
        assert o.shape == (B, N)
        assert bool(jnp.all(jnp.isfinite(o)))
        # loose tolerance: 2*atanh near the clamp boundary amplifies fp noise
        assert bool(jnp.allclose(o, r, atol=5e-2, rtol=5e-2))

    print("KERNEL_OK")
</pallas_src>

<mosaic_0001>
module attributes {stable_mosaic.version = 11 : i64} {
  func.func @fused_bp_kernel(%arg0: i32, %arg1: i32, %arg2: memref<128x128xf32, #tpu.memory_space<vmem>>, %arg3: memref<2x128x128xf32, #tpu.memory_space<vmem>>, %arg4: memref<2x128x128xf32, #tpu.memory_space<vmem>>, %arg5: memref<1x128x128xf32, #tpu.memory_space<vmem>>, %arg6: memref<1x128x128xf32, #tpu.memory_space<vmem>>, %arg7: memref<1x128x256xf32, #tpu.memory_space<vmem>>, %arg8: memref<1x128x128xf32, #tpu.memory_space<vmem>>, %arg9: memref<128x128xf32, #tpu.memory_space<vmem>>) attributes {dimension_semantics = [#tpu.dimension_semantics<parallel>, #tpu.dimension_semantics<arbitrary>], iteration_bounds = array<i64: 2, 10>, scalar_prefetch = 0 : i64, scratch_operands = 1 : i64, tpu.core_type = #tpu.core_type<tc>, window_params = [{transform_indices = @transform_0, window_bounds = array<i64: 128, 128>}, {pipeline_mode = #tpu.pipeline_mode<synchronous>, transform_indices = @transform_1, window_bounds = array<i64: 2, 128, 128>}, {pipeline_mode = #tpu.pipeline_mode<synchronous>, transform_indices = @transform_2, window_bounds = array<i64: 2, 128, 128>}, {transform_indices = @transform_3, window_bounds = array<i64: 1, 128, 128>}, {transform_indices = @transform_4, window_bounds = array<i64: 1, 128, 128>}, {transform_indices = @transform_5, window_bounds = array<i64: 1, 128, 256>}, {transform_indices = @transform_6, window_bounds = array<i64: 1, 128, 128>}]} {
    %c2_i32 = arith.constant 2 : i32
    %c0_i32 = arith.constant 0 : i32
    %0 = arith.cmpi eq, %c2_i32, %c0_i32 : i32
    %c1_i32 = arith.constant 1 : i32
    %1 = arith.select %0, %c1_i32, %c2_i32 : i32
    %2 = arith.remsi %arg1, %1 : i32
    %c0_i32_0 = arith.constant 0 : i32
    %3 = arith.cmpi ne, %2, %c0_i32_0 : i32
    %c0_i32_1 = arith.constant 0 : i32
    %4 = arith.cmpi slt, %2, %c0_i32_1 : i32
    %c0_i32_2 = arith.constant 0 : i32
    %5 = arith.cmpi slt, %1, %c0_i32_2 : i32
    %6 = arith.xori %4, %5 : i1
    %7 = arith.andi %6, %3 : i1
    %8 = arith.addi %2, %1 : i32
    %9 = arith.select %7, %8, %2 : i32
    %c0_i32_3 = arith.constant 0 : i32
    %10 = arith.cmpi eq, %arg1, %c0_i32_3 : i32
    %11 = arith.extui %10 : i1 to i32
    %c0_i32_4 = arith.constant 0 : i32
    %12 = arith.cmpi ne, %11, %c0_i32_4 : i32
    scf.if %12 {
      %c0_59 = arith.constant 0 : index
      %c0_60 = arith.constant 0 : index
      %142 = vector.load %arg2[%c0_59, %c0_60] : memref<128x128xf32, #tpu.memory_space<vmem>>, vector<128x128xf32>
      %c0_61 = arith.constant 0 : index
      %c0_62 = arith.constant 0 : index
      %143 = vector.load %arg9[%c0_61, %c0_62] : memref<128x128xf32, #tpu.memory_space<vmem>>, vector<128x128xf32>
      tpu.vector_store %arg9[%c0_61, %c0_62], %142 {strides = array<i32>} : memref<128x128xf32, #tpu.memory_space<vmem>>, vector<128x128xf32>,
    } else {
    }
    %c0 = arith.constant 0 : index
    %c0_5 = arith.constant 0 : index
    %13 = vector.load %arg9[%c0, %c0_5] : memref<128x128xf32, #tpu.memory_space<vmem>>, vector<128x128xf32>
    %14 = arith.index_cast %9 : i32 to index
    %c0_6 = arith.constant 0 : index
    %c0_7 = arith.constant 0 : index
    %15 = vector.load %arg3[%14, %c0_6, %c0_7] : memref<2x128x128xf32, #tpu.memory_space<vmem>>, vector<1x128x128xf32>
    %16 = vector.shape_cast %15 : vector<1x128x128xf32> to vector<128x128xf32>
    %17 = arith.index_cast %9 : i32 to index
    %c0_8 = arith.constant 0 : index
    %c0_9 = arith.constant 0 : index
    %18 = vector.load %arg4[%17, %c0_8, %c0_9] : memref<2x128x128xf32, #tpu.memory_space<vmem>>, vector<1x128x128xf32>
    %19 = vector.shape_cast %18 : vector<1x128x128xf32> to vector<128x128xf32>
    %cst = arith.constant 5.000000e-01 : f32
    %20 = vector.broadcast %cst : f32 to vector<128x128xf32>
    %21 = arith.mulf %20, %13 : vector<128x128xf32>
    %22 = math.tanh %21 : vector<128x128xf32>
    %cst_10 = arith.constant 0.000000e+00 : f32
    %23 = vector.broadcast %cst_10 : f32 to vector<128x128xf32>
    %24 = arith.cmpf one, %22, %23 : vector<128x128xf32>
    %25 = arith.extui %24 : vector<128x128xi1> to vector<128x128xi32>
    %26 = arith.sitofp %25 : vector<128x128xi32> to vector<128x128xf32>
    %cst_11 = arith.constant 0.000000e+00 : f32
    %27 = vector.broadcast %cst_11 : f32 to vector<128x128xf32>
    %28 = arith.cmpf olt, %22, %27 : vector<128x128xf32>
    %29 = arith.extui %28 : vector<128x128xi1> to vector<128x128xi32>
    %30 = arith.sitofp %29 : vector<128x128xi32> to vector<128x128xf32>
    %31 = math.absf %22 : vector<128x128xf32>
    %cst_12 = arith.constant 1.000000e+00 : f32
    %32 = vector.broadcast %cst_12 : f32 to vector<128x128xf32>
    %33 = arith.select %24, %31, %32 : vector<128x128xi1>, vector<128x128xf32>
    %34 = math.log %33 : vector<128x128xf32>
    %35 = tpu.concatenate %26, %34, %30 in 0 : vector<128x128xf32>, vector<128x128xf32>, vector<128x128xf32> -> vector<384x128xf32>
    %cst_13 = arith.constant dense<0.000000e+00> : vector<384x128xf32>
    %36 = tpu.matmul %35, %16, %cst_13 {dimension_numbers = #tpu.dot_dimension_numbers<[1], [0], [0], [1], [0, 0, 1, 1], [], []>, precision = #tpu.contract_precision<fp32>} : vector<384x128xf32>, vector<128x128xf32>, vector<384x128xf32> -> vector<384x128xf32>
    %37 = vector.extract_strided_slice %36 {offsets = [0, 0], sizes = [128, 128], strides = [1, 1]} : vector<384x128xf32> to vector<128x128xf32>
    %38 = vector.extract_strided_slice %36 {offsets = [128, 0], sizes = [128, 128], strides = [1, 1]} : vector<384x128xf32> to vector<128x128xf32>
    %39 = vector.extract_strided_slice %36 {offsets = [256, 0], sizes = [128, 128], strides = [1, 1]} : vector<384x128xf32> to vector<128x128xf32>
    %cst_14 = arith.constant 5.000000e-01 : f32
    %40 = vector.broadcast %cst_14 : f32 to vector<128x128xf32>
    %41 = arith.mulf %40, %39 : vector<128x128xf32>
    %42 = math.floor %41 : vector<128x128xf32>
    %cst_15 = arith.constant 2.000000e+00 : f32
    %43 = vector.broadcast %cst_15 : f32 to vector<128x128xf32>
    %44 = arith.mulf %43, %42 : vector<128x128xf32>
    %45 = arith.subf %39, %44 : vector<128x128xf32>
    %cst_16 = arith.constant 2.000000e+00 : f32
    %46 = vector.broadcast %cst_16 : f32 to vector<128x128xf32>
    %47 = arith.mulf %46, %45 : vector<128x128xf32>
    %cst_17 = arith.constant 1.000000e+00 : f32
    %48 = vector.broadcast %cst_17 : f32 to vector<128x128xf32>
    %49 = arith.subf %48, %47 : vector<128x128xf32>
    %cst_18 = arith.constant 5.000000e-01 : f32
    %50 = vector.broadcast %cst_18 : f32 to vector<128x128xf32>
    %51 = arith.cmpf ogt, %37, %50 : vector<128x128xf32>
    %52 = math.exp %38 : vector<128x128xf32>
    %53 = arith.mulf %49, %52 : vector<128x128xf32>
    %cst_19 = arith.constant 0.000000e+00 : f32
    %54 = vector.broadcast %cst_19 : f32 to vector<128x128xf32>
    %55 = arith.select %51, %53, %54 : vector<128x128xi1>, vector<128x128xf32>
    %cst_20 = arith.constant -0.999998986 : f32
    %cst_21 = arith.constant 0.999998986 : f32
    %56 = vector.broadcast %cst_20 : f32 to vector<128x128xf32>
    %57 = arith.maximumf %56, %55 : vector<128x128xf32>
    %58 = vector.broadcast %cst_21 : f32 to vector<128x128xf32>
    %59 = arith.minimumf %58, %57 : vector<128x128xf32>
    %cst_22 = arith.constant 1.000000e+00 : f32
    %60 = vector.broadcast %cst_22 : f32 to vector<128x128xf32>
    %61 = arith.addf %60, %59 : vector<128x128xf32>
    %62 = math.log %61 : vector<128x128xf32>
    %cst_23 = arith.constant 1.000000e+00 : f32
    %63 = vector.broadcast %cst_23 : f32 to vector<128x128xf32>
    %64 = arith.subf %63, %59 : vector<128x128xf32>
    %65 = math.log %64 : vector<128x128xf32>
    %66 = arith.subf %62, %65 : vector<128x128xf32>
    %c0_24 = arith.constant 0 : index
    %c0_25 = arith.constant 0 : index
    %c0_26 = arith.constant 0 : index
    %67 = vector.load %arg7[%c0_24, %c0_25, %c0_26] : memref<1x128x256xf32, #tpu.memory_space<vmem>>, vector<1x128x256xf32>
    %68 = vector.shape_cast %67 : vector<1x128x256xf32> to vector<128x256xf32>
    %cst_27 = arith.constant dense<0.000000e+00> : vector<128x256xf32>
    %69 = tpu.matmul %13, %68, %cst_27 {dimension_numbers = #tpu.dot_dimension_numbers<[1], [0], [0], [1], [0, 0, 1, 1], [], []>} : vector<128x128xf32>, vector<128x256xf32>, vector<128x256xf32> -> vector<128x256xf32>
    %70 = vector.extract_strided_slice %69 {offsets = [0, 0], sizes = [128, 128], strides = [1, 1]} : vector<128x256xf32> to vector<128x128xf32>
    %71 = vector.extract_strided_slice %69 {offsets = [0, 128], sizes = [128, 128], strides = [1, 1]} : vector<128x256xf32> to vector<128x128xf32>
    %c0_28 = arith.constant 0 : index
    %c0_29 = arith.constant 0 : index
    %c0_30 = arith.constant 0 : index
    %72 = vector.load %arg5[%c0_28, %c0_29, %c0_30] : memref<1x128x128xf32, #tpu.memory_space<vmem>>, vector<1x128x128xf32>
    %73 = vector.shape_cast %72 : vector<1x128x128xf32> to vector<128x128xf32>
    %cst_31 = arith.constant dense<0.000000e+00> : vector<128x128xf32>
    %74 = tpu.matmul %66, %73, %cst_31 {dimension_numbers = #tpu.dot_dimension_numbers<[1], [0], [0], [1], [0, 0, 1, 1], [], []>} : vector<128x128xf32>, vector<128x128xf32>, vector<128x128xf32> -> vector<128x128xf32>
    %75 = arith.addf %74, %70 : vector<128x128xf32>
    %cst_32 = arith.constant 5.000000e-01 : f32
    %76 = vector.broadcast %cst_32 : f32 to vector<128x128xf32>
    %77 = arith.mulf %76, %75 : vector<128x128xf32>
    %78 = math.tanh %77 : vector<128x128xf32>
    %cst_33 = arith.constant 0.000000e+00 : f32
    %79 = vector.broadcast %cst_33 : f32 to vector<128x128xf32>
    %80 = arith.cmpf one, %78, %79 : vector<128x128xf32>
    %81 = arith.extui %80 : vector<128x128xi1> to vector<128x128xi32>
    %82 = arith.sitofp %81 : vector<128x128xi32> to vector<128x128xf32>
    %cst_34 = arith.constant 0.000000e+00 : f32
    %83 = vector.broadcast %cst_34 : f32 to vector<128x128xf32>
    %84 = arith.cmpf olt, %78, %83 : vector<128x128xf32>
    %85 = arith.extui %84 : vector<128x128xi1> to vector<128x128xi32>
    %86 = arith.sitofp %85 : vector<128x128xi32> to vector<128x128xf32>
    %87 = math.absf %78 : vector<128x128xf32>
    %cst_35 = arith.constant 1.000000e+00 : f32
    %88 = vector.broadcast %cst_35 : f32 to vector<128x128xf32>
    %89 = arith.select %80, %87, %88 : vector<128x128xi1>, vector<128x128xf32>
    %90 = math.log %89 : vector<128x128xf32>
    %91 = tpu.concatenate %82, %90, %86 in 0 : vector<128x128xf32>, vector<128x128xf32>, vector<128x128xf32> -> vector<384x128xf32>
    %cst_36 = arith.constant dense<0.000000e+00> : vector<384x128xf32>
    %92 = tpu.matmul %91, %19, %cst_36 {dimension_numbers = #tpu.dot_dimension_numbers<[1], [0], [0], [1], [0, 0, 1, 1], [], []>, precision = #tpu.contract_precision<fp32>} : vector<384x128xf32>, vector<128x128xf32>, vector<384x128xf32> -> vector<384x128xf32>
    %93 = vector.extract_strided_slice %92 {offsets = [0, 0], sizes = [128, 128], strides = [1, 1]} : vector<384x128xf32> to vector<128x128xf32>
    %94 = vector.extract_strided_slice %92 {offsets = [128, 0], sizes = [128, 128], strides = [1, 1]} : vector<384x128xf32> to vector<128x128xf32>
    %95 = vector.extract_strided_slice %92 {offsets = [256, 0], sizes = [128, 128], strides = [1, 1]} : vector<384x128xf32> to vector<128x128xf32>
    %cst_37 = arith.constant 5.000000e-01 : f32
    %96 = vector.broadcast %cst_37 : f32 to vector<128x128xf32>
    %97 = arith.mulf %96, %95 : vector<128x128xf32>
    %98 = math.floor %97 : vector<128x128xf32>
    %cst_38 = arith.constant 2.000000e+00 : f32
    %99 = vector.broadcast %cst_38 : f32 to vector<128x128xf32>
    %100 = arith.mulf %99, %98 : vector<128x128xf32>
    %101 = arith.subf %95, %100 : vector<128x128xf32>
    %cst_39 = arith.constant 2.000000e+00 : f32
    %102 = vector.broadcast %cst_39 : f32 to vector<128x128xf32>
    %103 = arith.mulf %102, %101 : vector<128x128xf32>
    %cst_40 = arith.constant 1.000000e+00 : f32
    %104 = vector.broadcast %cst_40 : f32 to vector<128x128xf32>
    %105 = arith.subf %104, %103 : vector<128x128xf32>
    %cst_41 = arith.constant 5.000000e-01 : f32
    %106 = vector.broadcast %cst_41 : f32 to vector<128x128xf32>
    %107 = arith.cmpf ogt, %93, %106 : vector<128x128xf32>
    %108 = math.exp %94 : vector<128x128xf32>
    %109 = arith.mulf %105, %108 : vector<128x128xf32>
    %cst_42 = arith.constant 0.000000e+00 : f32
    %110 = vector.broadcast %cst_42 : f32 to vector<128x128xf32>
    %111 = arith.select %107, %109, %110 : vector<128x128xi1>, vector<128x128xf32>
    %cst_43 = arith.constant -0.999998986 : f32
    %cst_44 = arith.constant 0.999998986 : f32
    %112 = vector.broadcast %cst_43 : f32 to vector<128x128xf32>
    %113 = arith.maximumf %112, %111 : vector<128x128xf32>
    %114 = vector.broadcast %cst_44 : f32 to vector<128x128xf32>
    %115 = arith.minimumf %114, %113 : vector<128x128xf32>
    %cst_45 = arith.constant 1.000000e+00 : f32
    %116 = vector.broadcast %cst_45 : f32 to vector<128x128xf32>
    %117 = arith.addf %116, %115 : vector<128x128xf32>
    %118 = math.log %117 : vector<128x128xf32>
    %cst_46 = arith.constant 1.000000e+00 : f32
    %119 = vector.broadcast %cst_46 : f32 to vector<128x128xf32>
    %120 = arith.subf %119, %115 : vector<128x128xf32>
    %121 = math.log %120 : vector<128x128xf32>
    %122 = arith.subf %118, %121 : vector<128x128xf32>
    %c0_47 = arith.constant 0 : index
    %c0_48 = arith.constant 0 : index
    %c0_49 = arith.constant 0 : index
    %123 = vector.load %arg6[%c0_47, %c0_48, %c0_49] : memref<1x128x128xf32, #tpu.memory_space<vmem>>, vector<1x128x128xf32>
    %124 = vector.shape_cast %123 : vector<1x128x128xf32> to vector<128x128xf32>
    %cst_50 = arith.constant dense<0.000000e+00> : vector<128x128xf32>
    %125 = tpu.matmul %122, %124, %cst_50 {dimension_numbers = #tpu.dot_dimension_numbers<[1], [0], [0], [1], [0, 0, 1, 1], [], []>} : vector<128x128xf32>, vector<128x128xf32>, vector<128x128xf32> -> vector<128x128xf32>
    %126 = arith.addf %125, %71 : vector<128x128xf32>
    %cst_51 = arith.constant 0.000000e+00 : f32
    %127 = vector.broadcast %cst_51 : f32 to vector<128x128xf32>
    %128 = arith.cmpf oge, %126, %127 : vector<128x128xf32>
    %cst_52 = arith.constant 0.000000e+00 : f32
    %129 = vector.broadcast %cst_52 : f32 to vector<128x128xf32>
    %130 = arith.subf %129, %126 : vector<128x128xf32>
    %131 = arith.select %128, %130, %126 : vector<128x128xi1>, vector<128x128xf32>
    %132 = math.exp %131 : vector<128x128xf32>
    %cst_53 = arith.constant 1.000000e+00 : f32
    %133 = vector.broadcast %cst_53 : f32 to vector<128x128xf32>
    %134 = arith.addf %133, %132 : vector<128x128xf32>
    %135 = tpu.reciprocal %134 {approx = true} : vector<128x128xf32> -> vector<128x128xf32>
    %136 = arith.mulf %132, %135 : vector<128x128xf32>
    %137 = arith.select %128, %135, %136 : vector<128x128xi1>, vector<128x128xf32>
    %c0_54 = arith.constant 0 : index
    %c0_55 = arith.constant 0 : index
    %c0_56 = arith.constant 0 : index
    %138 = vector.load %arg8[%c0_54, %c0_55, %c0_56] : memref<1x128x128xf32, #tpu.memory_space<vmem>>, vector<1x128x128xf32>
    %139 = vector.shape_cast %138 : vector<1x128x128xf32> to vector<128x128xf32>
    %140 = vector.shape_cast %137 : vector<128x128xf32> to vector<1x128x128xf32>
    tpu.vector_store %arg8[%c0_54, %c0_55, %c0_56], %140 {strides = array<i32>} : memref<1x128x128xf32, #tpu.memory_space<vmem>>, vector<1x128x128xf32>,
    %c0_57 = arith.constant 0 : index
    %c0_58 = arith.constant 0 : index
    %141 = vector.load %arg9[%c0_57, %c0_58] : memref<128x128xf32, #tpu.memory_space<vmem>>, vector<128x128xf32>
    tpu.vector_store %arg9[%c0_57, %c0_58], %126 {strides = array<i32>} : memref<128x128xf32, #tpu.memory_space<vmem>>, vector<128x128xf32>,
    return
  }
  func.func @transform_0(%arg0: i32, %arg1: i32) -> (i32, i32) {
    %c0_i32 = arith.constant 0 : i32
    %c0_i32_0 = arith.constant 0 : i32
    return %arg0, %c0_i32 : i32, i32
  }
  func.func @transform_1(%arg0: i32, %arg1: i32) -> (i32, i32, i32) {
    %c0_i32 = arith.constant 0 : i32
    %c0_i32_0 = arith.constant 0 : i32
    %c0_i32_1 = arith.constant 0 : i32
    %c0_i32_2 = arith.constant 0 : i32
    return %c0_i32, %c0_i32_0, %c0_i32_1 : i32, i32, i32
  }
  func.func @transform_2(%arg0: i32, %arg1: i32) -> (i32, i32, i32) {
    %c0_i32 = arith.constant 0 : i32
    %c0_i32_0 = arith.constant 0 : i32
    %c0_i32_1 = arith.constant 0 : i32
    %c0_i32_2 = arith.constant 0 : i32
    return %c0_i32, %c0_i32_0, %c0_i32_1 : i32, i32, i32
  }
  func.func @transform_3(%arg0: i32, %arg1: i32) -> (i32, i32, i32) {
    %c0_i32 = arith.constant 0 : i32
    %c0_i32_0 = arith.constant 0 : i32
    %c0_i32_1 = arith.constant 0 : i32
    return %arg1, %c0_i32, %c0_i32_0 : i32, i32, i32
  }
  func.func @transform_4(%arg0: i32, %arg1: i32) -> (i32, i32, i32) {
    %c0_i32 = arith.constant 0 : i32
    %c0_i32_0 = arith.constant 0 : i32
    %c0_i32_1 = arith.constant 0 : i32
    return %arg1, %c0_i32, %c0_i32_0 : i32, i32, i32
  }
  func.func @transform_5(%arg0: i32, %arg1: i32) -> (i32, i32, i32) {
    %c0_i32 = arith.constant 0 : i32
    %c0_i32_0 = arith.constant 0 : i32
    %c0_i32_1 = arith.constant 0 : i32
    return %arg1, %c0_i32, %c0_i32_0 : i32, i32, i32
  }
  func.func @transform_6(%arg0: i32, %arg1: i32) -> (i32, i32, i32) {
    %c0_i32 = arith.constant 0 : i32
    %c0_i32_0 = arith.constant 0 : i32
    return %arg1, %arg0, %c0_i32 : i32, i32, i32
  }
}

</mosaic_0001>

<bundles_post_ra>
// kernel: tpu_custom_call.1
= control target key start
LH: loop header
LB: loop body
LE: loop exit
PB: predicated region body
PF: predicated region fallthrough
CT: control target
= control target key end

     0   :  { %s10708_s0 = inlined_call_operand.hbm [shape: f32[256,128], index: 0, kind: input, shape index: {}]   ;;  %s10709_s1 = inlined_call_operand.hbm [shape: f32[2,128,128], index: 1, kind: input, shape index: {}]   ;;  %s10710_s2 = inlined_call_operand.hbm [shape: f32[2,128,128], index: 2, kind: input, shape index: {}]   ;;  %s10711_s3 = inlined_call_operand.hbm [shape: f32[10,128,128], index: 3, kind: input, shape index: {}]   ;;  %s10712_s4 = inlined_call_operand.hbm [shape: f32[10,128,128], index: 4, kind: input, shape index: {}]   ;;  %s10713_s5 = inlined_call_operand.hbm [shape: f32[10,128,256], index: 5, kind: input, shape index: {}]   ;;  %s10714_s6 = inlined_call_operand.hbm [shape: f32[10,256,128], index: 6, kind: output, shape index: {}]  }
   0x1   :  { %10835 = sst [smem:[#allocation152_spill]] %s10708_s0 }
   0x2   :  { %10836 = sst [smem:[#allocation153_spill]] %s10709_s1 }
   0x3   :  { %10837 = sst [smem:[#allocation154_spill]] %s10710_s2 }
   0x4   :  { %10838 = sst [smem:[#allocation155_spill]] %s10711_s3 }
   0x5   :  { %10839 = sst [smem:[#allocation156_spill]] %s10712_s4 }
   0x6   :  { %10840 = sst [smem:[#allocation157_spill]] %s10713_s5 }
   0x7   :  { %10841 = sst [smem:[#allocation158_spill]] %s10714_s6 }
   0x8   :  { %11 = vsyncpa [#allocation4], 0 }
   0x9   :  { %13 = vsyncpa [#allocation4 + $0x1], 0 }
   0xa   :  { %14 = vsyncpa [#allocation7], 0 }
   0xb   :  { %15 = vsyncpa [#allocation10], 0 }
   0xc   :  { %17 = vsyncpa [#allocation10 + $0x1], 0 }
   0xd   :  { %18 = vsyncpa [#allocation13], 0 }
   0xe   :  { %20 = vsyncpa [#allocation13 + $0x1], 0 }
   0xf   :  { %21 = vsyncpa [#allocation5], 0 }
  0x10   :  { %23 = vsyncpa [#allocation5 + $0x1], 0  ;;  %s7164_s21 = smov 0   ;;  %s7166_s22 = smov 0  }
  0x11   :  { %s7168_s23 = smov 0   ;;  %s7170_s24 = smov 0  }
  0x12   :  { %s7172_s25 = smov 0   ;;  %s7174_s26 = smov 0  }
  0x13   :  { %s7176_s27 = smov 0   ;;  %s7178_s28 = smov 0  }
  0x14   :  { %s7180_s29 = smov 0   ;;  %s7182_s30 = smov 0  }
  0x15   :  { %s7184_s7 = smov 0   ;;  %s7186_s8 = smov 0  }
  0x16   :  { %s7188_s9 = smov 0   ;;  %s7190_s10 = smov 0  }
  0x17 LB: > { %10842 = sst [smem:[#allocation20_spill]] %s7065_s21  ;;  %s7233_s11 = sadd.s32 4294967295, %s7117_s10   ;;  %s7117_s10 = sphi %s7190_s10, %s29_s10   ;;  %s7113_s9 = sphi %s7188_s9, %s11420_s9   ;;  %s7109_s8 = sphi %s7186_s8, %s11419_s8   ;;  %s7105_s7 = sphi %s7184_s7, %s11418_s7   ;;  %s7101_s30 = sphi %s7182_s30, %s11417_s30   ;;  %s7097_s29 = sphi %s7180_s29, %s11416_s29   ;;  %s7093_s28 = sphi %s7178_s28, %s11415_s28   ;;  %s7089_s27 = sphi %s7176_s27, %s11409_s27   ;;  %s7085_s26 = sphi %s7174_s26, %s11414_s26   ;;  %s7081_s25 = sphi %s7172_s25, %s11407_s25   ;;  %s7077_s24 = sphi %s7170_s24, %s11406_s24   ;;  %s7073_s23 = sphi %s7168_s23, %s11413_s23   ;;  %s7069_s22 = sphi %s7166_s22, %s11412_s22   ;;  %s7065_s21 = sphi %s7164_s21, %s11405_s21  }
  0x18   : > { %10843 = sst [smem:[#allocation21_spill]] %s7069_s22  ;;  %s5858_s12 = sadd.s32 4294967294, %s7117_s10  }
  0x19   : > { %10844 = sst [smem:[#allocation22_spill]] %s7081_s25  ;;  %p62_p0 = scmp.eq.s32.totalorder %s7233_s11, 0 }
  0x1a   : > { %10845 = sst [smem:[#allocation23_spill]] %s7085_s26  ;;  %p129_p1 = scmp.ne.s32.totalorder %s7081_s25, %s7077_s24 }
  0x1b   : > { %10846 = sst [smem:[#allocation24_spill]] %s7093_s28  ;;  %p206_p2 = scmp.ne.s32.totalorder %s7073_s23, %s7069_s22 }
  0x1c   : > { %10847 = sst [smem:[#allocation25_spill]] %s7101_s30  ;;  %p207_p3 = scmp.eq.s32.totalorder %s7233_s11, 19 }
  0x1d   : > { %10848 = sst [smem:[#allocation26_spill]] %s7105_s7  ;;  %p7243_p4 = por %p129_p1, %p62_p0 }
  0x1e   : > { %10849 = sst [smem:[#allocation27_spill]] %s7233_s11  ;;  %p212_p5 = scmp.ne.s32.totalorder %s7069_s22, %s7065_s21 }
  0x1f   : > { %s10850_s13 = scalar_select %p7243_p4, 1, 0 }
  0x20   : > { %p7249_p6 = por %p207_p3, %p206_p2  ;;  %p213_p7 = scmp.eq.s32.totalorder %s5858_s12, 19 }
  0x21   : > { %10851 = sst [smem:[#allocation28_spill]] %s10850_s13  ;;  %p5859_p8 = scmp.ge.s32.totalorder %s7117_s10, 1 }
  0x22   : > { %s10852_s14 = scalar_select %p7249_p6, 1, 0 }
  0x23   : > { %p220_p9 = scmp.lt.s32.totalorder %s7117_s10, 21  ;;  %p7255_p10 = por %p213_p7, %p212_p5 }
  0x24   : > { %10853 = sst [smem:[#allocation29_spill]] %s10852_s14  ;;  %s7119_s20 = smov [#allocation6]  }
  0x25   : > { %s10854_s15 = scalar_select %p7255_p10, 1, 0 }
  0x26   : > { %p7259_p11 = pnand %p5859_p8, %p220_p9  ;;  %s10858_s1 = sld [smem:[#allocation153_spill]] }
  0x27   : > { %10855 = sst [smem:[#allocation30_spill]] %s10854_s15  ;;  %s233_s24 = sshll.u32 %s7119_s20, 4  ;;  %s234_s24 = int_to_ptr.vmem [resolvable:$true] %s233_s24 }
  0x28   : > { %s10856_s16 = scalar_select %p7259_p11, 1, 0 }
  0x29   : > { %p6220_p12 = pneg %p7259_p11  ;;  %s10717_s17 = smov 128  }
  0x2a   : > { %10857 = sst [smem:[#allocation31_spill]] %s10856_s16  ;;  %s10719_s18 = smov 8  }
  0x2b   : > { %p7270_p13 = pnand %p6220_p12, %p62_p0  ;;  %p56_p1 = scmp.eq.s32.totalorder %s7117_s10, 0 }
  0x2c   : > { %s231_s19 = sshll.u32 %s10858_s1, 4  ;;  %s38_s1 = sadd.s32 1, %s7109_s8  ;;  %s232_s19 = int_to_ptr.hbm [resolvable:$true] %s231_s19 }
  0x2d   : > { %6223 = dma.hbm_to_vmem [thread:$0]  (!%p7270_p13), %s232_s19, 4096, %s234_s24, [#allocation7], %s10717_s17, %s10717_s17, %s10719_s18  }
  0x2e   : > { %p7281_p2 = scmp.ge.s32.totalorder %s38_s1, 10  ;;  %s116_s15 = sadd.s32 1, %s7085_s26 }
  0x2f   : > { %p123_p3 = scmp.ne.s32.totalorder %s7085_s26, %s7081_s25  ;;  %p6246_p5 = scmp.lt.s32.totalorder %s7117_s10, 20 }
  0x30   : > { %s11422_s1 = smov (%p7281_p2, %s38_s1), 0  ;;  %s283_s19 = sand.u32 1, %s7117_s10  }
  0x31   : > { %10861 = sst [smem:[#allocation32_spill]] %s11422_s1  ;;  %p7295_p7 = por %p123_p3, %p56_p1 }
  0x32   : > { %s7302_s24 = ssub.s32 %s7109_s8, %s11422_s1  ;;  %s7306_s17 = sand.u32 1, %s7085_s26  }
  0x33   : > { %p114_p8 = scmp.eq.s32.totalorder %s7302_s24, 0  ;;  %s5866_s18 = sshll.u32 %s7306_s17, 7 }
  0x34   : > { %s6183_s14 = sshll.u32 %s7109_s8, 7  ;;  %s10864_s3 = sld [smem:[#allocation155_spill]] }
  0x35   : > { %s7311_s6 = scalar_select %p114_p8, %s7085_s26, %s116_s15  }
  0x36   : > { %s287_s25 = scalar_lea.vmem [#allocation9], %s5866_s18  ;;  %p7320_p9 = pnand %p6246_p5, %p7295_p7 }
  0x37   : > { %10863 = sst [smem:[#allocation33_spill]] %s7311_s6  ;;  %s295_s16 = sshll.u32 %s287_s25, 4  ;;  %s296_s16 = int_to_ptr.vmem [resolvable:$true] %s295_s16 }
  0x38   : > { %s10866_s4 = sld [smem:[#allocation156_spill]]  ;;  %s7327_s21 = scalar_lea.sflag [#allocation10], %s283_s19 }
  0x39   : > { %s10868_s6 = smov 128   ;;  %s10869_s2 = sld [smem:[#allocation154_spill]] }
  0x3a   : > { %s292_s22 = scalar_lea.hbm %s10864_s3, %s6183_s14  ;;  %s10867_s3 = smov 8  }
  0x3b   : > { %s293_s13 = sshll.u32 %s292_s22, 4  ;;  %s309_s22 = scalar_lea.vmem [#allocation11], %s5866_s18  ;;  %s294_s13 = int_to_ptr.hbm [resolvable:$true] %s293_s13 }
  0x3c   : > { %s317_s25 = sshll.u32 %s309_s22, 4  ;;  %s7122_s19 = smov [#allocation8]   ;;  %s7337_s25 = int_to_ptr.vmem [resolvable:$true] %s317_s25 }
  0x3d   : > { %6233 = dma.hbm_to_vmem [thread:$0]  (!%p7320_p9), %s294_s13, 2048, %s296_s16, %s7327_s21, %s10868_s6, %s10868_s6, %s10867_s3  }
  0x3e   : > { %s314_s30 = scalar_lea.hbm %s10866_s4, %s6183_s14  ;;  %s247_s15 = sshll.u32 %s7122_s19, 4  ;;  %s248_s15 = int_to_ptr.vmem [resolvable:$true] %s247_s15 }
  0x3f   : > { %s315_s7 = sshll.u32 %s314_s30, 4  ;;  %s245_s18 = sshll.u32 %s10869_s2, 4  ;;  %s7335_s7 = int_to_ptr.hbm [resolvable:$true] %s315_s7  ;;  %s246_s18 = int_to_ptr.hbm [resolvable:$true] %s245_s18 }
  0x40   : > { %6226 = dma.hbm_to_vmem [thread:$0]  (!%p7270_p13), %s246_s18, 4096, %s248_s15, [#allocation7], %s10868_s6, %s10868_s6, %s10867_s3  }
  0x41   : > { %s41_s13 = sadd.s32 1, %s7113_s9  ;;  %s48_s16 = sadd.s32 1, %s7097_s29 }
  0x42   : > { %s11424_s13 = smov (!%p7281_p2, %s41_s13), %s7113_s9  ;;  %p55_p12 = scmp.ne.s32.totalorder %s7097_s29, %s7093_s28 }
  0x43   : > { %p43_p3 = scmp.ge.s32.totalorder %s11424_s13, 2  ;;  %p61_p7 = scmp.ne.s32.totalorder %s7093_s28, %s7089_s27 }
  0x44   : > { %p7358_p8 = por %p56_p1, %p55_p12  ;;  %s196_s12 = sadd.s32 1, %s7073_s23 }
  0x45   : > { %s11426_s13 = smov (%p43_p3, %s11424_s13), 0  ;;  %p7367_p13 = por %p62_p0, %p61_p7 }
  0x46   : > { %s261_s22 = sand.u32 1, %s7097_s29   ;;  %s45_s27 = ssub.s32 %s7113_s9, %s11426_s13 }
  0x47   : > { %s10871_s20 = scalar_select %p7367_p13, 1, 0 }
  0x48   : > { %p46_p1 = scmp.eq.s32.totalorder %s45_s27, 0  ;;  %s193_s5 = sor.u32 %s7302_s24, %s45_s27 }
  0x49   : > { %10872 = sst [smem:[#allocation34_spill]] %s10871_s20  ;;  %p194_p2 = scmp.eq.s32.totalorder %s193_s5, 0 }
  0x4a   : > { %s5863_s14 = sshll.u32 %s261_s22, 7  ;;  %s6182_s15 = sshll.u32 %s7113_s9, 7 }
  0x4b   : > { %s7376_s18 = scalar_select %p46_p1, %s7097_s29, %s48_s16  }
  0x4c   : > { %s7379_s19 = scalar_select %p194_p2, %s7073_s23, %s196_s12  }
  0x4d   : > { %s10873_s0 = sld [smem:[#allocation152_spill]]  ;;  %s265_s11 = scalar_lea.vmem [#allocation3], %s5863_s14 }
  0x4e   : > { %s273_s20 = sshll.u32 %s265_s11, 4  ;;  %p6228_p12 = pnand %p6246_p5, %p7358_p8  ;;  %s274_s20 = int_to_ptr.vmem [resolvable:$true] %s273_s20 }
  0x4f   : > { %6236 = dma.hbm_to_vmem [thread:$0]  (!%p7320_p9), %s7335_s7, 2048, %s7337_s25, %s7327_s21, %s10868_s6, %s10868_s6, %s10867_s3  }
  0x50   : > { %s262_s24 = scalar_lea.sflag [#allocation4], %s261_s22  ;;  %s5872_s2 = sshll.u32 %s7306_s17, 8 }
  0x51   : > { %s6185_s4 = sshll.u32 %s7109_s8, 8  ;;  %s10874_s16 = sld [smem:[#allocation157_spill]] }
  0x52   : > { %s331_s27 = scalar_lea.vmem [#allocation12], %s5872_s2  ;;  %s328_s14 = scalar_lea.sflag [#allocation13], %s7306_s17 }
  0x53   : > { %s270_s26 = scalar_lea.hbm %s10873_s0, %s6182_s15  ;;  %s339_s5 = sshll.u32 %s331_s27, 4  ;;  %s340_s5 = int_to_ptr.vmem [resolvable:$true] %s339_s5 }
  0x54   : > { %s271_s28 = sshll.u32 %s270_s26, 4  ;;  %s7123_s15 = smov 256   ;;  %s272_s28 = int_to_ptr.hbm [resolvable:$true] %s271_s28 }
  0x55   : > { %6230 = dma.hbm_to_vmem [thread:$0]  (!%p6228_p12), %s272_s28, 2048, %s274_s20, %s262_s24, %s10868_s6, %s10868_s6, %s10867_s3  }
  0x56   : > { %s7124_s0 = smov 16   ;;  %351 = sbr.rel (%p7259_p11) target bundleno = 2356 (0x934), region = 44 }
  0x57   : > { %s336_s12 = scalar_lea.hbm %s10874_s16, %s6185_s4 }
  0x58   : > { %s337_s30 = sshll.u32 %s336_s12, 4  ;;  %s338_s30 = int_to_ptr.hbm [resolvable:$true] %s337_s30 }
  0x59   : > { %6239 = dma.hbm_to_vmem [thread:$0]  (!%p7320_p9), %s338_s30, 4096, %s340_s5, %s328_s14, %s7123_s15, %s7123_s15, %s7124_s0  }
  0x5b   : > { %s10876_s3 = sld [smem:[#allocation24_spill]] }
  0x61   : > { %s353_s28 = sand.u32 1, %s10876_s3  }
  0x62   : > { %s5876_s7 = sshll.u32 %s353_s28, 7  ;;  %s354_s21 = scalar_lea.sflag [#allocation4], %s353_s28 }
  0x63   : > { %s7411_s20 = scalar_lea.vmem [#allocation3], %s5876_s7 }
  0x64   : > { %7044 = dma.done.wait (%p7367_p13), %s354_s21, 2048  }
  0x65   : > { %7046 = vsyncadd (%p7367_p13), %s354_s21, 4294965248  ;;  %s10878_s17 = sld [smem:[#allocation27_spill]] }
  0x66   : > { %7048 = dma.done.wait (%p62_p0), [#allocation7], 8192  }
  0x67   : > { %7050 = vsyncadd (%p62_p0), [#allocation7], 4294959104  ;;  %s10879_s0 = sld [smem:[#allocation22_spill]] }
  0x6b   : > { %s373_s22 = sand.u32 1, %s10878_s17  }
  0x6c   : > { %s374_s4 = scalar_lea.sflag [#allocation10], %s373_s22 }
  0x6d   : > { %s375_s24 = sand.u32 1, %s10879_s0  }
  0x6e   : > { %s5879_s2 = sshll.u32 %s375_s24, 7 }
  0x6f   : > { %s7423_s11 = scalar_lea.vmem [#allocation9], %s5879_s2 }
  0x70   : > { %7052 = dma.done.wait (%p7243_p4), %s374_s4, 4096  }
  0x71   : > { %7054 = vsyncadd (%p7243_p4), %s374_s4, 4294963200  ;;  %s5881_s26 = sshll.u32 %s375_s24, 8  ;;  %s7429_s16 = scalar_lea.vmem [#allocation11], %s5879_s2 }
  0x72   : > { %s394_s12 = scalar_lea.sflag [#allocation13], %s375_s24  ;;  %s7431_s30 = scalar_lea.vmem [#allocation12], %s5881_s26 }
  0x73   : > { %7056 = dma.done.wait (%p7243_p4), %s394_s12, 4096  }
  0x74   : > { %7058 = vsyncadd (%p7243_p4), %s394_s12, 4294963200  ;;  %s10881_s27 = sld [smem:[#allocation21_spill]] }
  0x75   : > { %s10882_s5 = sld [smem:[#allocation25_spill]] }
  0x7a   : > { %s439_s14 = sand.u32 1, %s10881_s27  }
  0x7b   : > { %p444_p0 = scmp.lt.s32.totalorder %s10882_s5, 0  ;;  %s5882_s15 = sshll.u32 %s439_s14, 7 }
  0x7c   : > { %s445_s25 = ssub.s32 0, %s10882_s5  ;;  %s7445_s21 = scalar_lea.vmem [#allocation14], %s5882_s15 }
  0x7d   : > { %s5883_s3 = smin.u32 %s10882_s5, %s445_s25  ;;  %p5886_p4 = scmp.ne.s32.totalorder %s10882_s5, 0 }
  0x7e   : > { %s447_s6 = sand.u32 1, %s5883_s3  }
  0x7f   : > { %s448_s28 = ssub.s32 0, %s447_s6  ;;  %459 = sbr.rel (%p5886_p4) target bundleno = 149 (0x95), region = 72 }
  0x80   : > { %s11428_s28 = smov (!%p444_p0, %s448_s28), %s447_s6 }
  0x81   : > { %p5885_p11 = scmp.lt.s32.totalorder %s11428_s28, 0  ;;  %s454_s7 = sadd.s32 2, %s11428_s28 }
  0x83   : > { %s11430_s7 = smov (!%p5885_p11, %s454_s7), %s11428_s28 }
  0x84   : > { %v460_v0 = vld [vmem:[%s7411_s20] sm:$0xff]  ;;  %v461_v1 = vld [vmem:[%s7411_s20 + $0x8] sm:$0xff]  ;;  %v462_v2 = vld [vmem:[%s7411_s20 + $0x10] sm:$0xff] }
  0x85   : > { %476 = vst [vmem:[#allocation2 + $0x30] sm:$0xff] %v460_v0  ;;  %v463_v3 = vld [vmem:[%s7411_s20 + $0x18] sm:$0xff]  ;;  %v464_v4 = vld [vmem:[%s7411_s20 + $0x20] sm:$0xff]  ;;  %v465_v5 = vld [vmem:[%s7411_s20 + $0x28] sm:$0xff] }
  0x86   : > { %477 = vst [vmem:[#allocation2] sm:$0xff] %v461_v1  ;;  %v466_v6 = vld [vmem:[%s7411_s20 + $0x30] sm:$0xff]  ;;  %v467_v7 = vld [vmem:[%s7411_s20 + $0x38] sm:$0xff]  ;;  %v468_v8 = vld [vmem:[%s7411_s20 + $0x40] sm:$0xff] }
  0x87   : > { %478 = vst [vmem:[#allocation2 + $0x58] sm:$0xff] %v462_v2  ;;  %v469_v9 = vld [vmem:[%s7411_s20 + $0x48] sm:$0xff]  ;;  %v470_v10 = vld [vmem:[%s7411_s20 + $0x50] sm:$0xff]  ;;  %v471_v11 = vld [vmem:[%s7411_s20 + $0x58] sm:$0xff] }
  0x88   : > { %479 = vst [vmem:[#allocation2 + $0x18] sm:$0xff] %v463_v3  ;;  %v472_v12 = vld [vmem:[%s7411_s20 + $0x60] sm:$0xff]  ;;  %v473_v13 = vld [vmem:[%s7411_s20 + $0x68] sm:$0xff]  ;;  %v474_v14 = vld [vmem:[%s7411_s20 + $0x70] sm:$0xff] }
  0x89   : > { %480 = vst [vmem:[#allocation2 + $0x50] sm:$0xff] %v464_v4  ;;  %v475_v15 = vld [vmem:[%s7411_s20 + $0x78] sm:$0xff] }
  0x8a   : > { %481 = vst [vmem:[#allocation2 + $0x68] sm:$0xff] %v465_v5 }
  0x8b   : > { %482 = vst [vmem:[#allocation2 + $0x8] sm:$0xff] %v466_v6 }
  0x8c   : > { %483 = vst [vmem:[#allocation2 + $0x48] sm:$0xff] %v467_v7 }
  0x8d   : > { %484 = vst [vmem:[#allocation2 + $0x40] sm:$0xff] %v468_v8 }
  0x8e   : > { %485 = vst [vmem:[#allocation2 + $0x20] sm:$0xff] %v469_v9 }
  0x8f   : > { %486 = vst [vmem:[#allocation2 + $0x10] sm:$0xff] %v470_v10 }
  0x90   : > { %487 = vst [vmem:[#allocation2 + $0x38] sm:$0xff] %v471_v11 }
  0x91   : > { %488 = vst [vmem:[#allocation2 + $0x60] sm:$0xff] %v472_v12 }
  0x92   : > { %489 = vst [vmem:[#allocation2 + $0x70] sm:$0xff] %v473_v13 }
  0x93   : > { %490 = vst [vmem:[#allocation2 + $0x78] sm:$0xff] %v474_v14 }
  0x94   : > { %491 = vst [vmem:[#allocation2 + $0x28] sm:$0xff] %v475_v15 }
  0x95 PF: > { %s5887_s17 = sshll.u32 %s11430_s7, 7  ;;  %v492_v16 = vld [vmem:[#allocation2 + $0x30] sm:$0xff]  ;;  %v493_v37 = vld [vmem:[#allocation2] sm:$0xff]  ;;  %s11395_s1 = sld [smem:[#allocation26_spill]] }
  0x96   : > { %s7467_s0 = scalar_lea.vmem [#allocation6], %s5887_s17  ;;  %v543_v31 = vmul.f32 0.5, %v492_v16  ;;  %v544_v49 = vmul.f32 0.5, %v493_v37  ;;  %s9241_s20 = scalar_lea.vmem [#allocation8], %s5887_s17 }
  0x97   : > { %v525_v17 = vld [vmem:[%s7467_s0 + $0x78] sm:$0xff]  ;;  %v524_v18 = vld [vmem:[%s7467_s0 + $0x70] sm:$0xff]  ;;  %v523_v19 = vld [vmem:[%s7467_s0 + $0x68] sm:$0xff]  ;;  %s11397_s22 = sld [smem:[#allocation25_spill]]  ;;  %s5678_s25 = sshll.u32 %s7445_s21, 4  ;;  %s5679_s25 = int_to_ptr.vmem [resolvable:$true] %s5678_s25 }
  0x98   : > { %v7472_v20 = vand.u32 4294901760, %v525_v17  ;;  %v7474_v21 = vand.u32 4294901760, %v524_v18  ;;  %v7476_v22 = vand.u32 4294901760, %v523_v19  ;;  %v522_v23 = vld [vmem:[%s7467_s0 + $0x60] sm:$0xff]  ;;  %v521_v24 = vld [vmem:[%s7467_s0 + $0x58] sm:$0xff]  ;;  %v520_v25 = vld [vmem:[%s7467_s0 + $0x50] sm:$0xff]  ;;  %6372 = vtanh.f32 %v543_v31 }
  0x99   : > { %v7481_v26 = vand.u32 4294901760, %v522_v23  ;;  %v7483_v27 = vand.u32 4294901760, %v521_v24  ;;  %v7485_v28 = vand.u32 4294901760, %v520_v25  ;;  %v519_v29 = vld [vmem:[%s7467_s0 + $0x48] sm:$0xff]  ;;  %v518_v30 = vld [vmem:[%s7467_s0 + $0x40] sm:$0xff]  ;;  %v517_v36 = vld [vmem:[%s7467_s0 + $0x38] sm:$0xff]  ;;  %6374 = vtanh.f32 %v544_v49 }
  0x9a   : > { %736 = vmatpush.msra.mxu0 %v7472_v20  ;;  %v7491_v32 = vsub.f32 %v524_v18, %v7474_v21  ;;  %v7494_v33 = vsub.f32 %v523_v19, %v7476_v22  ;;  %1731 = vmatpush.msra.mxu3 %v7472_v20  ;;  %v7498_v34 = vsub.f32 %v525_v17, %v7472_v20  ;;  %v7500_v35 = vand.u32 4294901760, %v519_v29  ;;  %v516_v48 = vld [vmem:[%s7467_s0 + $0x30] sm:$0xff]  ;;  %v515_v54 = vld [vmem:[%s7467_s0 + $0x28] sm:$0xff]  ;;  %v514_v63 = vld [vmem:[%s7467_s0 + $0x20] sm:$0xff]  ;;  %s5664_s6 = scalar_lea.sflag [#allocation5], %s439_s14 }
  0x9b   : > { %v7504_v38 = vsub.f32 %v522_v23, %v7481_v26  ;;  %v7507_v39 = vsub.f32 %v521_v24, %v7483_v27  ;;  %v7510_v40 = vsub.f32 %v520_v25, %v7485_v28  ;;  %v7512_v41 = vand.u32 4294901760, %v518_v30  ;;  %v513_v4 = vld [vmem:[%s7467_s0 + $0x18] sm:$0xff]  ;;  %v512_v9 = vld [vmem:[%s7467_s0 + $0x10] sm:$0xff]  ;;  %v511_v16 = vld [vmem:[%s7467_s0 + $0x8] sm:$0xff]  ;;  %s6177_s24 = sshll.u32 %s11395_s1, 4 }
  0x9c   : > { %738 = vmatpush.msra.mxu0 %v7474_v21  ;;  %v1154_v42 = vand.u32 4294901760, %v7498_v34  ;;  %1733 = vmatpush.msra.mxu3 %v7474_v21  ;;  %v1160_v43 = vand.u32 4294901760, %v7491_v32  ;;  %v1166_v44 = vand.u32 4294901760, %v7494_v33  ;;  %v7520_v45 = vsub.f32 %v519_v29, %v7500_v35  ;;  %v494_v19 = vld [vmem:[#allocation2 + $0x58] sm:$0xff]  ;;  %v510_v37 = vld [vmem:[%s7467_s0] sm:$0xff] }
  0x9d   : > { %v1172_v46 = vand.u32 4294901760, %v7504_v38  ;;  %v7523_v47 = vand.u32 4294901760, %v517_v36  ;;  %6186 = vmatpush.msra.mxu2 %v7498_v34  ;;  %v1178_v53 = vand.u32 4294901760, %v7507_v39  ;;  %v7541_v55 = vsub.f32 %v518_v30, %v7512_v41  ;;  %s6178_s2 = sshll.u32 %s11397_s22, 5 }
  0x9e   : > { %740 = vmatpush.msra.mxu0 %v7476_v22  ;;  %v1155_v50 = vsub.f32 %v7498_v34, %v1154_v42  ;;  %v1161_v51 = vsub.f32 %v7491_v32, %v1160_v43  ;;  %1735 = vmatpush.msra.mxu3 %v7476_v22  ;;  %v1167_v52 = vsub.f32 %v7494_v33, %v1166_v44  ;;  %v1184_v56 = vand.u32 4294901760, %v7510_v40  ;;  %v7578_v10 = vpop.eup %6372  ;;  %s5675_s4 = sadd.s32 %s6178_s2, %s6177_s24 }
  0x9f   : > { %6187 = vmatpush.msra.mxu2 %v7491_v32  ;;  %v1173_v59 = vsub.f32 %v7504_v38, %v1172_v46  ;;  %v7550_v60 = vand.u32 4294901760, %v516_v48  ;;  %v7553_v61 = vsub.f32 %v517_v36, %v7523_v47  ;;  %v7555_v62 = vand.u32 4294901760, %v515_v54  ;;  %v7597_v23 = vpop.eup %6374  ;;  %s6179_s26 = sshll.u32 %s5675_s4, 3 }
  0xa0   : > { %742 = vmatpush.msra.mxu0 %v7481_v26  ;;  %v1156_v57 = vand.u32 4294901760, %v1155_v50  ;;  %v1162_v58 = vand.u32 4294901760, %v1161_v51  ;;  %1737 = vmatpush.msra.mxu3 %v7481_v26  ;;  %v1168_v0 = vand.u32 4294901760, %v1167_v52  ;;  %v1179_v1 = vsub.f32 %v7507_v39, %v1178_v53 }
  0xa1   : > { %6188 = vmatpush.msra.mxu2 %v7494_v33  ;;  %v1190_v2 = vand.u32 4294901760, %v7520_v45  ;;  %v1185_v3 = vsub.f32 %v7510_v40, %v1184_v56  ;;  %v1174_v5 = vand.u32 4294901760, %v1173_v59  ;;  %v7572_v6 = vsub.f32 %v516_v48, %v7550_v60 }
  0xa2   : > { %744 = vmatpush.msra.mxu0 %v7483_v27  ;;  %1157 = vmatpush.msra.mxu1 %v1156_v57  ;;  %v7574_v7 = vand.u32 4294901760, %v514_v63  ;;  %v1196_v8 = vand.u32 4294901760, %v7541_v55  ;;  %v7582_v11 = vsub.f32 %v515_v54, %v7555_v62  ;;  %v1202_v12 = vand.u32 4294901760, %v7553_v61 }
  0xa3   : > { %1739 = vmatpush.msra.mxu3 %v7483_v27  ;;  %6189 = vmatpush.msra.mxu2 %v7504_v38  ;;  %v1180_v13 = vand.u32 4294901760, %v1179_v1  ;;  %v1191_v14 = vsub.f32 %v7520_v45, %v1190_v2  ;;  %v7590_v15 = vand.u32 4294901760, %v513_v4  ;;  %v1186_v17 = vand.u32 4294901760, %v1185_v3 }
  0xa4   : > { %746 = vmatpush.msra.mxu0 %v7485_v28  ;;  %1163 = vmatpush.msra.mxu1 %v1162_v58  ;;  %v7594_v18 = vand.u32 4294901760, %v512_v9  ;;  %v7601_v24 = vsub.f32 %v514_v63, %v7574_v7  ;;  %v1197_v25 = vsub.f32 %v7541_v55, %v1196_v8  ;;  %v10743_v29 = vand.u32 4294901760, %v7572_v6  ;;  %v495_v58 = vld [vmem:[#allocation2 + $0x18] sm:$0xff] }
  0xa5   : > { %1741 = vmatpush.msra.mxu3 %v7485_v28  ;;  %6190 = vmatpush.msra.mxu2 %v7507_v39  ;;  %vm575_vm0 = vcmp.ne.f32.partialorder %v7578_v10, 0.0  ;;  %v1203_v30 = vsub.f32 %v7553_v61, %v1202_v12  ;;  %v7612_v31 = vand.u32 4294901760, %v511_v16  ;;  %v10742_v36 = vand.u32 4294901760, %v7582_v11 }
  0xa6   : > { %748 = vmatpush.msra.mxu0 %v7500_v35  ;;  %1169 = vmatpush.msra.mxu1 %v1168_v0  ;;  %v10746_v48 = vmov 0.0   ;;  %v1192_v50 = vand.u32 4294901760, %v1191_v14  ;;  %v7622_v51 = vsub.f32 %v513_v4, %v7590_v15  ;;  %v545_v54 = vmul.f32 0.5, %v494_v19 }
  0xa7   : > { %1743 = vmatpush.msra.mxu3 %v7500_v35  ;;  %6191 = vmatpush.msra.mxu2 %v7510_v40  ;;  %v5888_v49 = vsel %vm575_vm0, 1.0, %v10746_v48  ;;  %v7628_v57 = vsub.f32 %v512_v9, %v7594_v18  ;;  %vm576_vm1 = vcmp.ne.f32.partialorder %v7597_v23, 0.0  ;;  %v1198_v59 = vand.u32 4294901760, %v1197_v25 }
  0xa8   : > { %750 = vmatpush.msra.mxu0 %v7512_v41  ;;  %1175 = vmatpush.msra.mxu1 %v1174_v5  ;;  %v7624_v52 = vsub.f32 %v5888_v49, %v5888_v49  ;;  %v1209_v63 = vsub.f32 %v7572_v6, %v10743_v29  ;;  %v7636_v0 = vand.u32 4294901760, %v510_v37  ;;  %v10740_v1 = vand.u32 4294901760, %v7601_v24  ;;  %v497_v29 = vld [vmem:[#allocation2 + $0x68] sm:$0xff] }
  0xa9   : > { %1745 = vmatpush.msra.mxu3 %v7512_v41  ;;  %6192 = vmatpush.msra.mxu2 %v7520_v45  ;;  %v1204_v3 = vand.u32 4294901760, %v1203_v30  ;;  %v7641_v4 = vsub.f32 %v511_v16, %v7612_v31  ;;  %v1215_v5 = vsub.f32 %v7582_v11, %v10742_v36  ;;  %v5889_v14 = vsel %vm576_vm1, 1.0, %v10746_v48 }
  0xaa   : > { %752 = vmatpush.msra.mxu0 %v7523_v47  ;;  %1181 = vmatpush.msra.mxu1 %v1180_v13  ;;  %v769_v9 = vand.u32 4294901760, %v7624_v52  ;;  %v10738_v13 = vand.u32 4294901760, %v7622_v51  ;;  %6376 = vtanh.f32 %v545_v54  ;;  %v546_v16 = vmul.f32 0.5, %v495_v58 }
  0xab   : > { %1747 = vmatpush.msra.mxu3 %v7523_v47  ;;  %6193 = vmatpush.msra.mxu2 %v7541_v55  ;;  %v7657_v19 = vsub.f32 %v510_v37, %v7636_v0  ;;  %v1221_v25 = vsub.f32 %v7601_v24, %v10740_v1  ;;  %v10739_v30 = vand.u32 4294901760, %v7628_v57  ;;  %v1216_v54 = vand.u32 4294901760, %v1215_v5 }
  0xac   : > { %754 = vmatpush.msra.mxu0 %v7550_v60  ;;  %1187 = vmatpush.msra.mxu1 %v1186_v17  ;;  %v1210_v17 = vand.u32 4294901760, %v1209_v63  ;;  %v770_v49 = vsub.f32 %v7624_v52, %v769_v9  ;;  %v1227_v37 = vsub.f32 %v7622_v51, %v10738_v13  ;;  %v10741_v58 = vand.u32 4294901760, %v7641_v4 }
  0xad   : > { %1749 = vmatpush.msra.mxu3 %v7550_v60  ;;  %6194 = vmatpush.msra.mxu2 %v7553_v61  ;;  %6378 = vtanh.f32 %v546_v16  ;;  %v1244_v5 = vand.u32 4294901760, %v7657_v19 }
  0xae   : > { %756 = vmatpush.msra.mxu0 %v7555_v62  ;;  %1193 = vmatpush.msra.mxu1 %v1192_v50  ;;  %v7665_v50 = vsub.f32 %v5889_v14, %v5889_v14  ;;  %v1222_v14 = vand.u32 4294901760, %v1221_v25  ;;  %v771_v13 = vand.u32 4294901760, %v770_v49  ;;  %v1239_v25 = vsub.f32 %v7641_v4, %v10741_v58 }
  0xaf   : > { %1751 = vmatpush.msra.mxu3 %v7555_v62  ;;  %6195 = vmatpush.msra.mxu2 %v7572_v6 }
  0xb0   : > { %758 = vmatpush.msra.mxu0 %v7574_v7  ;;  %1199 = vmatpush.msra.mxu1 %v1198_v59  ;;  %v496_v59 = vld [vmem:[#allocation2 + $0x50] sm:$0xff]  ;;  %v7675_v63 = vpop.eup %6376  ;;  %v777_v16 = vand.u32 4294901760, %v7665_v50  ;;  %v1240_v36 = vand.u32 4294901760, %v1239_v25 }
  0xb1   : > { %1753 = vmatpush.msra.mxu3 %v7574_v7  ;;  %6196 = vmatpush.msra.mxu2 %v7582_v11  ;;  %vm577_vm2 = vcmp.ne.f32.partialorder %v7675_v63, 0.0 }
  0xb2   : > { %760 = vmatpush.msra.mxu0 %v7590_v15  ;;  %1205 = vmatpush.msra.mxu1 %v1204_v3  ;;  %v1233_v3 = vsub.f32 %v7628_v57, %v10739_v30  ;;  %v5890_v49 = vsel %vm577_vm2, 1.0, %v10746_v48  ;;  %v547_v30 = vmul.f32 0.5, %v496_v59  ;;  %v778_v58 = vsub.f32 %v7665_v50, %v777_v16 }
  0xb3   : > { %1755 = vmatpush.msra.mxu3 %v7590_v15  ;;  %6197 = vmatpush.msra.mxu2 %v7601_v24  ;;  %v7695_v1 = vpop.eup %6378  ;;  %v7703_v59 = vsub.f32 %v5890_v49, %v5890_v49 }
  0xb4   : > { %762 = vmatpush.msra.mxu0 %v7594_v18  ;;  %1211 = vmatpush.msra.mxu1 %v1210_v17  ;;  %v1228_v17 = vand.u32 4294901760, %v1227_v37  ;;  %v1245_v37 = vsub.f32 %v7657_v19, %v1244_v5  ;;  %6380 = vtanh.f32 %v547_v30  ;;  %vm578_vm3 = vcmp.ne.f32.partialorder %v7695_v1, 0.0 }
  0xb5   : > { %1757 = vmatpush.msra.mxu3 %v7594_v18  ;;  %6198 = vmatpush.msra.mxu2 %v7622_v51  ;;  %v548_v30 = vmul.f32 0.5, %v497_v29 }
  0xb6   : > { %764 = vmatpush.msra.mxu0 %v7612_v31  ;;  %1217 = vmatpush.msra.mxu1 %v1216_v54  ;;  %v1234_v54 = vand.u32 4294901760, %v1233_v3  ;;  %v785_v3 = vand.u32 4294901760, %v7703_v59 }
  0xb7   : > { %1759 = vmatpush.msra.mxu3 %v7612_v31  ;;  %6199 = vmatpush.msra.mxu2 %v7628_v57  ;;  %6382 = vtanh.f32 %v548_v30 }
  0xb8   : > { %766 = vmatpush.msra.mxu0 %v7636_v0  ;;  %1223 = vmatpush.msra.mxu1 %v1222_v14  ;;  %v779_v14 = vand.u32 4294901760, %v778_v58  ;;  %v10744_v58 = vmov 1.0  }
  0xb9   : > { %772 = vmatmul.f32.vlgmr.msra.gmra.mxu0 %v771_v13  ;;  %1761 = vmatpush.msra.mxu3 %v7636_v0  ;;  %v1246_v13 = vand.u32 4294901760, %v1245_v37 }
  0xba   : > { %1229 = vmatpush.msra.mxu1 %v1228_v17  ;;  %1765 = vmatmul.f32.vlgmr.msra.gmra.mxu3 %v769_v9  ;;  %v5891_v9 = vsel %vm578_vm3, 1.0, %v10746_v48 }
  0xbb   : > { %6200 = vmatpush.msra.mxu2 %v7641_v4  ;;  %2054 = vmatpush.msrb.mxu0 %v1154_v42  ;;  %v7718_v42 = vpop.eup %6380 }
  0xbc   : > { %1235 = vmatpush.msra.mxu1 %v1234_v54  ;;  %vm579_vm4 = vcmp.ne.f32.partialorder %v7718_v42, 0.0  ;;  %v10884_v54 = vand.u32 4294901760, %v7582_v11 }
  0xbd   : > { %6201 = vmatpush.msra.mxu2 %v7657_v19  ;;  %2058 = vmatpush.msrb.mxu0 %v1160_v43  ;;  %v786_v43 = vsub.f32 %v7703_v59, %v785_v3  ;;  %v7740_v25 = vpop.eup %6382 }
  0xbe   : > { %1241 = vmatpush.msra.mxu1 %v1240_v36  ;;  %v7724_v36 = vsub.f32 %v5891_v9, %v5891_v9  ;;  %vm580_vm5 = vcmp.ne.f32.partialorder %v7740_v25, 0.0  ;;  %v10886_v9 = vand.u32 4294901760, %v7622_v51 }
  0xbf   : > { %2062 = vmatpush.msrb.mxu0 %v1166_v44  ;;  %v498_v44 = vld [vmem:[#allocation2 + $0x8] sm:$0xff]  ;;  %v787_v29 = vand.u32 4294901760, %v786_v43  ;;  %v10887_v43 = vand.u32 4294901760, %v7628_v57 }
  0xc0   : > { %1247 = vmatpush.msra.mxu1 %v1246_v13  ;;  %v793_v17 = vand.u32 4294901760, %v7724_v36 }
  0xc1   : > { %780 = vmatmul.f32.gmra.mxu0 %v779_v14  ;;  %5920 = vmatmul.msk.f32.vlgmr.msra.gmra.mxu1 %vm575_vm0, %v10744_v58 }
  0xc2   : > { %1443 = vmatpush.msrb.mxu1 %v7498_v34  ;;  %1771 = vmatmul.f32.gmra.mxu3 %v777_v16  ;;  %v5892_v34 = vsel %vm579_vm4, 1.0, %v10746_v48  ;;  %v549_v16 = vmul.f32 0.5, %v498_v44 }
  0xc3   : > { %2066 = vmatpush.msrb.mxu0 %v1172_v46  ;;  %v7747_v46 = vsub.f32 %v5892_v34, %v5892_v34 }
  0xc4   : > { %1446 = vmatpush.msrb.mxu1 %v7491_v32  ;;  %v794_v32 = vsub.f32 %v7724_v36, %v793_v17  ;;  %6384 = vtanh.f32 %v549_v16 }
  0xc5   : > { %2070 = vmatpush.msrb.mxu0 %v1178_v53  ;;  %v801_v53 = vand.u32 4294901760, %v7747_v46 }
  0xc6   : > { %1449 = vmatpush.msrb.mxu1 %v7494_v33  ;;  %v499_v33 = vld [vmem:[#allocation2 + $0x48] sm:$0xff] }
  0xc7   : > { %2074 = vmatpush.msrb.mxu0 %v1184_v56  ;;  %v5893_v56 = vsel %vm580_vm5, 1.0, %v10746_v48  ;;  %v550_v49 = vmul.f32 0.5, %v499_v33 }
  0xc8   : > { %1452 = vmatpush.msrb.mxu1 %v7504_v38  ;;  %v795_v38 = vand.u32 4294901760, %v794_v32 }
  0xc9   : > { %788 = vmatmul.f32.gmra.mxu0 %v787_v29  ;;  %5921 = vmatmul.msk.f32.gmra.mxu1 %vm576_vm1, %v10744_v58  ;;  %6386 = vtanh.f32 %v550_v49 }
  0xca   : > { %1777 = vmatmul.f32.gmra.mxu3 %v785_v3  ;;  %1455 = vmatpush.msrb.mxu1 %v7507_v39  ;;  %v7763_v39 = vpop.eup %6384 }
  0xcb   : > { %2078 = vmatpush.msrb.mxu0 %v1190_v2  ;;  %v7770_v2 = vsub.f32 %v5893_v56, %v5893_v56  ;;  %vm581_vm6 = vcmp.ne.f32.partialorder %v7763_v39, 0.0 }
  0xcc   : > { %1458 = vmatpush.msrb.mxu1 %v7510_v40  ;;  %v802_v40 = vsub.f32 %v7747_v46, %v801_v53  ;;  %v5894_v37 = vsel %vm581_vm6, 1.0, %v10746_v48 }
  0xcd   : > { %2082 = vmatpush.msrb.mxu0 %v1196_v8  ;;  %v10883_v8 = vand.u32 4294901760, %v7572_v6  ;;  %v7793_v3 = vsub.f32 %v5894_v37, %v5894_v37 }
  0xce   : > { %1461 = vmatpush.msrb.mxu1 %v7520_v45  ;;  %v500_v45 = vld [vmem:[#allocation2 + $0x40] sm:$0xff] }
  0xcf   : > { %2086 = vmatpush.msrb.mxu0 %v1202_v12  ;;  %v809_v12 = vand.u32 4294901760, %v7770_v2  ;;  %v551_v13 = vmul.f32 0.5, %v500_v45  ;;  %v7786_v14 = vpop.eup %6386  ;;  %v817_v30 = vand.u32 4294901760, %v7793_v3 }
  0xd0   : > { %1464 = vmatpush.msrb.mxu1 %v7541_v55  ;;  %v803_v55 = vand.u32 4294901760, %v802_v40  ;;  %vm582_vm7 = vcmp.ne.f32.partialorder %v7786_v14, 0.0 }
  0xd1   : > { %796 = vmatmul.f32.gmra.mxu0 %v795_v38  ;;  %5922 = vmatmul.msk.f32.gmra.mxu1 %vm577_vm2, %v10744_v58  ;;  %6388 = vtanh.f32 %v551_v13  ;;  %v5895_v44 = vsel %vm582_vm7, 1.0, %v10746_v48 }
  0xd2   : > { %1783 = vmatmul.f32.gmra.mxu3 %v793_v17  ;;  %1467 = vmatpush.msrb.mxu1 %v7553_v61  ;;  %v10885_v61 = vand.u32 4294901760, %v7601_v24  ;;  %v10888_v17 = vand.u32 4294901760, %v7641_v4  ;;  %v7816_v34 = vsub.f32 %v5895_v44, %v5895_v44 }
  0xd3   : > { %2090 = vmatpush.msrb.mxu0 %v10883_v8 }
  0xd4   : > { %1470 = vmatpush.msrb.mxu1 %v7572_v6  ;;  %v810_v6 = vsub.f32 %v7770_v2, %v809_v12  ;;  %v825_v32 = vand.u32 4294901760, %v7816_v34 }
  0xd5   : > { %2094 = vmatpush.msrb.mxu0 %v10884_v54 }
  0xd6   : > { %1473 = vmatpush.msrb.mxu1 %v7582_v11  ;;  %v501_v11 = vld [vmem:[#allocation2 + $0x20] sm:$0xff] }
  0xd7   : > { %2098 = vmatpush.msrb.mxu0 %v10885_v61  ;;  %v552_v29 = vmul.f32 0.5, %v501_v11 }
  0xd8   : > { %1476 = vmatpush.msrb.mxu1 %v7601_v24  ;;  %v811_v24 = vand.u32 4294901760, %v810_v6  ;;  %v671_v6 = vand.u32 2147483647, %v7578_v10 }
  0xd9   : > { %804 = vmatmul.f32.gmra.mxu0 %v803_v55  ;;  %5923 = vmatmul.msk.f32.gmra.mxu1 %vm578_vm3, %v10744_v58  ;;  %6390 = vtanh.f32 %v552_v29  ;;  %v507_v29 = vld [vmem:[#allocation2 + $0x28] sm:$0xff] }
  0xda   : > { %1789 = vmatmul.f32.gmra.mxu3 %v801_v53  ;;  %1479 = vmatpush.msrb.mxu1 %v7622_v51  ;;  %v7809_v51 = vpop.eup %6388 }
  0xdb   : > { %2102 = vmatpush.msrb.mxu0 %v10886_v9  ;;  %vm10781_vm8 = vcmp.ne.f32.partialorder %v7809_v51, 0.0  ;;  %v687_v9 = vsel %vm575_vm0, %v671_v6, 1.0 }
  0xdc   : > { %1482 = vmatpush.msrb.mxu1 %v7628_v57  ;;  %v818_v57 = vsub.f32 %v7793_v3, %v817_v30  ;;  %v5896_v33 = vsel %vm10781_vm8, 1.0, %v10746_v48 }
  0xdd   : > { %2106 = vmatpush.msrb.mxu0 %v10887_v43 }
  0xde   : > { %1485 = vmatpush.msrb.mxu1 %v7641_v4  ;;  %v502_v4 = vld [vmem:[#allocation2 + $0x10] sm:$0xff]  ;;  %v819_v16 = vand.u32 4294901760, %v818_v57 }
  0xdf   : > { %2110 = vmatpush.msrb.mxu0 %v10888_v17  ;;  %v553_v38 = vmul.f32 0.5, %v502_v4  ;;  %v7828_v53 = vpop.eup %6390  ;;  %v672_v17 = vand.u32 2147483647, %v7597_v23 }
  0xe0   : > { %1488 = vmatpush.msrb.mxu1 %v7657_v19  ;;  %v7834_v19 = vsub.f32 %v5896_v33, %v5896_v33  ;;  %vm10774_vm9 = vcmp.ne.f32.partialorder %v7828_v53, 0.0 }
  0xe1   : > { %812 = vmatmul.f32.gmra.mxu0 %v811_v24  ;;  %5924 = vmatmul.msk.f32.gmra.mxu1 %vm579_vm4, %v10744_v58  ;;  %6392 = vtanh.f32 %v553_v38  ;;  %v5897_v56 = vsel %vm10774_vm9, 1.0, %v10746_v48  ;;  %v688_v33 = vsel %vm576_vm1, %v672_v17, 1.0 }
  0xe2   : > { %1795 = vmatmul.f32.gmra.mxu3 %v809_v12  ;;  %2114 = vmatpush.msrb.mxu0 %v1244_v5  ;;  %v833_v5 = vand.u32 4294901760, %v7834_v19 }
  0xe3   : > { %2309 = vmatpush.msra.mxu1 %v7472_v20  ;;  %v826_v20 = vsub.f32 %v7816_v34, %v825_v32 }
  0xe5   : > { %2311 = vmatpush.msra.mxu1 %v7474_v21  ;;  %v503_v21 = vld [vmem:[#allocation2 + $0x38] sm:$0xff] }
  0xe6   : > { %v554_v49 = vmul.f32 0.5, %v503_v21 }
  0xe7   : > { %2313 = vmatpush.msra.mxu1 %v7476_v22  ;;  %v827_v22 = vand.u32 4294901760, %v826_v20  ;;  %v7844_v40 = vpop.eup %6392  ;;  %v558_v20 = vmul.f32 0.5, %v507_v29 }
  0xe8   : > { %6394 = vtanh.f32 %v554_v49  ;;  %vm10767_vm10 = vcmp.ne.f32.partialorder %v7844_v40, 0.0 }
  0xe9   : > { %820 = vmatmul.f32.gmra.mxu0 %v819_v16  ;;  %5925 = vmatmul.msk.f32.gmra.mxu1 %vm580_vm5, %v10744_v58  ;;  %v5898_v8 = vsel %vm10767_vm10, 1.0, %v10746_v48 }
  0xea   : > { %1801 = vmatmul.f32.gmra.mxu3 %v817_v30  ;;  %2315 = vmatpush.msra.mxu1 %v7481_v26  ;;  %v834_v26 = vsub.f32 %v7834_v19, %v833_v5 }
  0xec   : > { %2317 = vmatpush.msra.mxu1 %v7483_v27  ;;  %v7851_v27 = vsub.f32 %v5897_v56, %v5897_v56  ;;  %v835_v45 = vand.u32 4294901760, %v834_v26  ;;  %v673_v26 = vand.u32 2147483647, %v7675_v63 }
  0xee   : > { %2319 = vmatpush.msra.mxu1 %v7485_v28  ;;  %v504_v28 = vld [vmem:[#allocation2 + $0x60] sm:$0xff]  ;;  %v7861_v12 = vpop.eup %6394 }
  0xef   : > { %v555_v55 = vmul.f32 0.5, %v504_v28  ;;  %vm10766_vm11 = vcmp.ne.f32.partialorder %v7861_v12, 0.0 }
  0xf0   : > { %2321 = vmatpush.msra.mxu1 %v7500_v35  ;;  %v841_v35 = vand.u32 4294901760, %v7851_v27  ;;  %v5899_v37 = vsel %vm10766_vm11, 1.0, %v10746_v48 }
  0xf1   : > { %828 = vmatmul.f32.gmra.mxu0 %v827_v22  ;;  %5926 = vmatmul.msk.f32.gmra.mxu1 %vm581_vm6, %v10744_v58  ;;  %6396 = vtanh.f32 %v555_v55  ;;  %v689_v55 = vsel %vm577_vm2, %v673_v26, 1.0 }
  0xf2   : > { %1807 = vmatmul.f32.gmra.mxu3 %v825_v32  ;;  %2323 = vmatpush.msra.mxu1 %v7512_v41  ;;  %v842_v41 = vsub.f32 %v7851_v27, %v841_v35 }
  0xf4   : > { %2325 = vmatpush.msra.mxu1 %v7523_v47  ;;  %v7868_v47 = vsub.f32 %v5898_v8, %v5898_v8  ;;  %v843_v54 = vand.u32 4294901760, %v842_v41 }
  0xf6   : > { %2327 = vmatpush.msra.mxu1 %v7550_v60  ;;  %v505_v60 = vld [vmem:[#allocation2 + $0x70] sm:$0xff] }
  0xf7   : > { %v556_v13 = vmul.f32 0.5, %v505_v60  ;;  %v7878_v61 = vpop.eup %6396 }
  0xf8   : > { %2329 = vmatpush.msra.mxu1 %v7555_v62  ;;  %v849_v62 = vand.u32 4294901760, %v7868_v47  ;;  %vm10763_vm12 = vcmp.ne.f32.partialorder %v7878_v61, 0.0 }
  0xf9   : > { %836 = vmatmul.f32.gmra.mxu0 %v835_v45  ;;  %5927 = vmatmul.msk.f32.gmra.mxu1 %vm582_vm7, %v10744_v58  ;;  %6398 = vtanh.f32 %v556_v13  ;;  %v5900_v24 = vsel %vm10763_vm12, 1.0, %v10746_v48 }
  0xfa   : > { %1813 = vmatmul.f32.gmra.mxu3 %v833_v5  ;;  %2331 = vmatpush.msra.mxu1 %v7574_v7  ;;  %v850_v7 = vsub.f32 %v7868_v47, %v849_v62  ;;  %6400 = vlog2.f32 %v687_v9  ;;  %v7902_v44 = vsub.f32 %v5900_v24, %v5900_v24 }
  0xfc   : > { %2333 = vmatpush.msra.mxu1 %v7590_v15  ;;  %v7885_v15 = vsub.f32 %v5899_v37, %v5899_v37  ;;  %v851_v11 = vand.u32 4294901760, %v850_v7  ;;  %v865_v16 = vand.u32 4294901760, %v7902_v44  ;;  %v674_v7 = vand.u32 2147483647, %v7695_v1 }
  0xfe   : > { %2335 = vmatpush.msra.mxu1 %v7594_v18  ;;  %v506_v18 = vld [vmem:[#allocation2 + $0x78] sm:$0xff]  ;;  %v866_v5 = vsub.f32 %v7902_v44, %v865_v16  ;;  %v690_v9 = vsel %vm578_vm3, %v674_v7, 1.0 }
  0xff   : > { %v557_v30 = vmul.f32 0.5, %v506_v18  ;;  %v7896_v43 = vpop.eup %6398 }
 0x100   : > { %2337 = vmatpush.msra.mxu1 %v7612_v31  ;;  %v857_v31 = vand.u32 4294901760, %v7885_v15  ;;  %vm10762_vm13 = vcmp.ne.f32.partialorder %v7896_v43, 0.0  ;;  %v6401_v57 = vpop.eup %6400  ;;  %v867_v45 = vand.u32 4294901760, %v866_v5 }
 0x101   : > { %844 = vmatmul.f32.gmra.mxu0 %v843_v54  ;;  %5928 = vmatmul.msk.f32.gmra.mxu1 %vm10781_vm8, %v10744_v58  ;;  %6402 = vtanh.f32 %v557_v30  ;;  %v704_v32 = vmul.f32 0.6931472, %v6401_v57  ;;  %v5901_v38 = vsel %vm10762_vm13, 1.0, %v10746_v48  ;;  %v675_v57 = vand.u32 2147483647, %v7718_v42 }
 0x102   : > { %1819 = vmatmul.f32.gmra.mxu3 %v841_v35  ;;  %2339 = vmatpush.msra.mxu1 %v7636_v0  ;;  %v858_v0 = vsub.f32 %v7885_v15, %v857_v31  ;;  %6404 = vlog2.f32 %v688_v33  ;;  %v7920_v56 = vsub.f32 %v5901_v38, %v5901_v38 }
 0x103   : > { %v7912_v21 = vand.u32 4294901760, %v704_v32  ;;  %6406 = vtanh.f32 %v558_v20  ;;  %v691_v38 = vsel %vm579_vm4, %v675_v57, 1.0 }
 0x104   : > { %v859_v4 = vand.u32 4294901760, %v858_v0  ;;  %v873_v35 = vand.u32 4294901760, %v7920_v56  ;;  %6408 = vlog2.f32 %v689_v55 }
 0x105   : > { %v7923_v49 = vsub.f32 %v704_v32, %v7912_v21  ;;  %6410 = vlog2.f32 %v690_v9 }
 0x106   : > { %6412 = vlog2.f32 %v691_v38 }
 0x107   : > { %v7914_v22 = vpop.eup %6402  ;;  %1571 = vmatmul.f32.vlgmr.msra.gmra.mxu2 %v7923_v49 }
 0x108   : > { %vm10761_vm14 = vcmp.ne.f32.partialorder %v7914_v22, 0.0  ;;  %v6405_v28 = vpop.eup %6404 }
 0x109   : > { %852 = vmatmul.f32.gmra.mxu0 %v851_v11  ;;  %5929 = vmatmul.msk.f32.gmra.mxu1 %vm10774_vm9, %v10744_v58  ;;  %v706_v8 = vmul.f32 0.6931472, %v6405_v28  ;;  %v5902_v41 = vsel %vm10761_vm14, 1.0, %v10746_v48  ;;  %v7936_v54 = vpop.eup %6406  ;;  %v676_v28 = vand.u32 2147483647, %v7740_v25 }
 0x10a   : > { %1825 = vmatmul.f32.gmra.mxu3 %v849_v62  ;;  %v874_v62 = vsub.f32 %v7920_v56, %v873_v35  ;;  %v7942_v37 = vsub.f32 %v5902_v41, %v5902_v41  ;;  %vm10760_vm15 = vcmp.ne.f32.partialorder %v7936_v54, 0.0  ;;  %v6409_v18 = vpop.eup %6408 }
 0x10b   : > { %v7934_v60 = vand.u32 4294901760, %v706_v8  ;;  %v5903_v24 = vsel %vm10760_vm15, 1.0, %v10746_v48  ;;  %v692_v41 = vsel %vm580_vm5, %v676_v28, 1.0 }
 0x10c   : > { %v875_v6 = vand.u32 4294901760, %v874_v62  ;;  %v881_v11 = vand.u32 4294901760, %v7942_v37  ;;  %v7962_v29 = vsub.f32 %v5903_v24, %v5903_v24  ;;  %6414 = vlog2.f32 %v692_v41 }
 0x10d   : > { %v7945_v13 = vsub.f32 %v706_v8, %v7934_v60  ;;  %v897_v8 = vand.u32 4294901760, %v7923_v49 }
 0x10e   : > { %v882_v0 = vsub.f32 %v7942_v37, %v881_v11  ;;  %v889_v32 = vand.u32 4294901760, %v7962_v29 }
 0x10f   : > { %1576 = vmatmul.f32.gmra.mxu2 %v7945_v13  ;;  %v898_v7 = vsub.f32 %v7923_v49, %v897_v8  ;;  %v905_v9 = vand.u32 4294901760, %v7945_v13 }
 0x110   : > { %v890_v5 = vsub.f32 %v7962_v29, %v889_v32 }
 0x111   : > { %860 = vmatmul.f32.gmra.mxu0 %v859_v4  ;;  %5930 = vmatmul.msk.f32.gmra.mxu1 %vm10767_vm10, %v10744_v58  ;;  %v6411_v4 = vpop.eup %6410 }
 0x112   : > { %1831 = vmatmul.f32.gmra.mxu3 %v857_v31  ;;  %v708_v31 = vmul.f32 0.6931472, %v6409_v18  ;;  %v710_v33 = vmul.f32 0.6931472, %v6411_v4  ;;  %v906_v4 = vsub.f32 %v7945_v13, %v905_v9 }
 0x114   : > { %v7956_v30 = vand.u32 4294901760, %v708_v31  ;;  %v7972_v20 = vand.u32 4294901760, %v710_v33  ;;  %v907_v38 = vand.u32 4294901760, %v906_v4 }
 0x116   : > { %v7965_v17 = vsub.f32 %v708_v31, %v7956_v30  ;;  %10889 = vst [vmem:[#allocation35_spill] sm:$0xff] %v7972_v20  ;;  %v7979_v26 = vsub.f32 %v710_v33, %v7972_v20  ;;  %v899_v31 = vand.u32 4294901760, %v898_v7 }
 0x118   : > { %1581 = vmatmul.f32.gmra.mxu2 %v7965_v17  ;;  %v913_v28 = vand.u32 4294901760, %v7965_v17 }
 0x119   : > { %868 = vmatmul.f32.gmra.mxu0 %v867_v45  ;;  %5931 = vmatmul.msk.f32.gmra.mxu1 %vm10766_vm11, %v10744_v58  ;;  %v6413_v45 = vpop.eup %6412 }
 0x11a   : > { %1837 = vmatmul.f32.gmra.mxu3 %v865_v16  ;;  %v883_v16 = vand.u32 4294901760, %v882_v0  ;;  %v712_v55 = vmul.f32 0.6931472, %v6413_v45  ;;  %v914_v41 = vsub.f32 %v7965_v17, %v913_v28 }
 0x11c   : > { %v7986_v62 = vand.u32 4294901760, %v712_v55 }
 0x11e   : > { %10890 = vst [vmem:[#allocation36_spill] sm:$0xff] %v7986_v62  ;;  %v7993_v18 = vsub.f32 %v712_v55, %v7986_v62 }
 0x120   : > { %1586 = vmatmul.f32.gmra.mxu2 %v7979_v26 }
 0x121   : > { %876 = vmatmul.f32.gmra.mxu0 %v875_v6  ;;  %5932 = vmatmul.msk.f32.gmra.mxu1 %vm10763_vm12, %v10744_v58  ;;  %v677_v6 = vand.u32 2147483647, %v7763_v39 }
 0x122   : > { %1843 = vmatmul.f32.gmra.mxu3 %v873_v35  ;;  %v891_v35 = vand.u32 4294901760, %v890_v5 }
 0x123   : > { %v693_v0 = vsel %vm581_vm6, %v677_v6, 1.0  ;;  %v679_v6 = vand.u32 2147483647, %v7809_v51 }
 0x124   : > { %6416 = vlog2.f32 %v693_v0  ;;  %v921_v0 = vand.u32 4294901760, %v7979_v26 }
 0x128   : > { %1591 = vmatmul.f32.gmra.mxu2 %v7993_v18 }
 0x129   : > { %884 = vmatmul.f32.gmra.mxu0 %v883_v16  ;;  %5933 = vmatmul.msk.f32.gmra.mxu1 %vm10762_vm13, %v10744_v58 }
 0x12a   : > { %1849 = vmatmul.f32.gmra.mxu3 %v881_v11  ;;  %v6415_v11 = vpop.eup %6414 }
 0x12b   : > { %v714_v24 = vmul.f32 0.6931472, %v6415_v11  ;;  %v6417_v33 = vpop.eup %6416 }
 0x12c   : > { %v716_v45 = vmul.f32 0.6931472, %v6417_v33 }
 0x12d   : > { %v8002_v49 = vand.u32 4294901760, %v714_v24 }
 0x12f   : > { %10891 = vst [vmem:[#allocation37_spill] sm:$0xff] %v8002_v49  ;;  %v8009_v16 = vsub.f32 %v714_v24, %v8002_v49 }
 0x131   : > { %892 = vmatmul.f32.gmra.mxu0 %v891_v35  ;;  %5934 = vmatmul.msk.f32.gmra.mxu1 %vm10761_vm14, %v10744_v58 }
 0x132   : > { %1855 = vmatmul.f32.gmra.mxu3 %v889_v32  ;;  %1596 = vmatmul.f32.gmra.mxu2 %v8009_v16  ;;  %v678_v32 = vand.u32 2147483647, %v7786_v14 }
 0x134   : > { %v694_v35 = vsel %vm582_vm7, %v678_v32, 1.0  ;;  %v695_v32 = vsel %vm10781_vm8, %v679_v6, 1.0  ;;  %vm10789_vm8 = vcmp.lt.f32.partialorder %v7786_v14, 0.0 }
 0x135   : > { %6418 = vlog2.f32 %v694_v35  ;;  %v680_v35 = vand.u32 2147483647, %v7828_v53 }
 0x136   : > { %v8000_v57 = vpop.f32.mrf.mxu0  ;;  %6420 = vlog2.f32 %v695_v32  ;;  %v929_v32 = vand.u32 4294901760, %v7993_v18 }
 0x139   : > { %900 = vmatmul.f32.gmra.mxu0 %v899_v31  ;;  %5935 = vmatmul.msk.f32.gmra.mxu1 %vm10760_vm15, %v10744_v58  ;;  %v915_v31 = vand.u32 4294901760, %v914_v41 }
 0x13a   : > { %1861 = vmatmul.f32.gmra.mxu3 %v897_v8  ;;  %v8022_v8 = vand.u32 4294901760, %v716_v45 }
 0x13b   : > { %v6419_v11 = vpop.eup %6418 }
 0x13c   : > { %10892 = vst [vmem:[#allocation38_spill] sm:$0xff] %v8022_v8  ;;  %v8027_v7 = vsub.f32 %v716_v45, %v8022_v8  ;;  %v718_v4 = vmul.f32 0.6931472, %v6419_v11  ;;  %v6421_v41 = vpop.eup %6420 }
 0x13d   : > { %v8013_v5 = vpop.f32.mrf.mxu3  ;;  %v720_v58 = vmul.f32 0.6931472, %v6421_v41 }
 0x13e   : > { %v8018_v55 = vpop.f32.mrf.mxu0  ;;  %v8020_v13 = vpop.f32.mrf.mxu1  ;;  %1601 = vmatmul.f32.gmra.mxu2 %v8027_v7 }
 0x141   : > { %908 = vmatmul.f32.gmra.mxu0 %v907_v38  ;;  %1313 = vmatmul.f32.gmra.mxu1 %v7912_v21  ;;  %v922_v38 = vsub.f32 %v7979_v26, %v921_v0 }
 0x142   : > { %1867 = vmatmul.f32.gmra.mxu3 %v905_v9  ;;  %v8040_v9 = vand.u32 4294901760, %v718_v4 }
 0x143   : > { %v923_v6 = vand.u32 4294901760, %v922_v38 }
 0x144   : > { %10894 = vst [vmem:[#allocation40_spill] sm:$0xff] %v8040_v9  ;;  %v8045_v45 = vsub.f32 %v718_v4, %v8040_v9  ;;  %v930_v4 = vsub.f32 %v7993_v18, %v929_v32 }
 0x145   : > { %v8031_v24 = vpop.f32.mrf.mxu3 }
 0x146   : > { %v8036_v33 = vpop.f32.mrf.mxu0  ;;  %v8038_v17 = vpop.f32.mrf.mxu1  ;;  %1606 = vmatmul.f32.gmra.mxu2 %v8045_v45 }
 0x147   : > { %10893 = vst [vmem:[#allocation39_spill] sm:$0xff] %v8036_v33 }
 0x149   : > { %916 = vmatmul.f32.gmra.mxu0 %v915_v31  ;;  %1317 = vmatmul.f32.gmra.mxu1 %v7934_v60  ;;  %v696_v31 = vsel %vm10774_vm9, %v680_v35, 1.0  ;;  %v681_v35 = vand.u32 2147483647, %v7844_v40  ;;  %vm10788_vm9 = vcmp.lt.f32.partialorder %v7763_v39, 0.0 }
 0x14a   : > { %1873 = vmatmul.f32.gmra.mxu3 %v913_v28  ;;  %6422 = vlog2.f32 %v696_v31  ;;  %v8058_v28 = vand.u32 4294901760, %v720_v58  ;;  %v937_v31 = vand.u32 4294901760, %v8009_v16 }
 0x14c   : > { %10898 = vst [vmem:[#allocation44_spill] sm:$0xff] %v8058_v28  ;;  %v8063_v38 = vsub.f32 %v720_v58, %v8058_v28 }
 0x14d   : > { %v8049_v11 = vpop.f32.mrf.mxu3 }
 0x14e   : > { %10895 = vst [vmem:[#allocation41_spill] sm:$0xff] %v8049_v11  ;;  %v8054_v48 = vpop.f32.mrf.mxu0  ;;  %v8056_v26 = vpop.f32.mrf.mxu1  ;;  %1611 = vmatmul.f32.gmra.mxu2 %v8063_v38 }
 0x14f   : > { %10896 = vst [vmem:[#allocation42_spill] sm:$0xff] %v8054_v48  ;;  %v931_v48 = vand.u32 4294901760, %v930_v4 }
 0x150   : > { %10897 = vst [vmem:[#allocation43_spill] sm:$0xff] %v8056_v26  ;;  %v6423_v41 = vpop.eup %6422 }
 0x151   : > { %924 = vmatmul.f32.gmra.mxu0 %v923_v6  ;;  %1321 = vmatmul.f32.gmra.mxu1 %v7956_v30  ;;  %v722_v26 = vmul.f32 0.6931472, %v6423_v41  ;;  %v697_v6 = vsel %vm10767_vm10, %v681_v35, 1.0  ;;  %v682_v35 = vand.u32 2147483647, %v7861_v12  ;;  %vm10787_vm10 = vcmp.lt.f32.partialorder %v7740_v25, 0.0 }
 0x152   : > { %1879 = vmatmul.f32.gmra.mxu3 %v921_v0  ;;  %6424 = vlog2.f32 %v697_v6  ;;  %v938_v0 = vsub.f32 %v8009_v16, %v937_v31  ;;  %v945_v6 = vand.u32 4294901760, %v8027_v7 }
 0x153   : > { %v8076_v58 = vand.u32 4294901760, %v722_v26 }
 0x155   : > { %v8067_v11 = vpop.f32.mrf.mxu3  ;;  %10902 = vst [vmem:[#allocation48_spill] sm:$0xff] %v8076_v58  ;;  %v8081_v4 = vsub.f32 %v722_v26, %v8076_v58  ;;  %v946_v26 = vsub.f32 %v8027_v7, %v945_v6 }
 0x156   : > { %10899 = vst [vmem:[#allocation45_spill] sm:$0xff] %v8067_v11  ;;  %v8072_v33 = vpop.f32.mrf.mxu0  ;;  %v8074_v18 = vpop.f32.mrf.mxu1 }
 0x157   : > { %10900 = vst [vmem:[#allocation46_spill] sm:$0xff] %v8072_v33  ;;  %1616 = vmatmul.f32.gmra.mxu2 %v8081_v4  ;;  %v939_v33 = vand.u32 4294901760, %v938_v0 }
 0x158   : > { %10901 = vst [vmem:[#allocation47_spill] sm:$0xff] %v8074_v18  ;;  %v6425_v41 = vpop.eup %6424 }
 0x159   : > { %932 = vmatmul.f32.gmra.mxu0 %v931_v48  ;;  %1325 = vmatmul.f32.gmra.mxu1 %v7972_v20  ;;  %v724_v18 = vmul.f32 0.6931472, %v6425_v41  ;;  %v698_v48 = vsel %vm10766_vm11, %v682_v35, 1.0  ;;  %v683_v35 = vand.u32 2147483647, %v7878_v61  ;;  %vm10786_vm11 = vcmp.lt.f32.partialorder %v7718_v42, 0.0 }
 0x15a   : > { %1885 = vmatmul.f32.gmra.mxu3 %v929_v32  ;;  %6426 = vlog2.f32 %v698_v48  ;;  %v953_v48 = vand.u32 4294901760, %v8045_v45 }
 0x15b   : > { %v8094_v32 = vand.u32 4294901760, %v724_v18 }
 0x15d   : > { %v8085_v11 = vpop.f32.mrf.mxu3  ;;  %10906 = vst [vmem:[#allocation52_spill] sm:$0xff] %v8094_v32  ;;  %v8099_v0 = vsub.f32 %v724_v18, %v8094_v32  ;;  %v954_v18 = vsub.f32 %v8045_v45, %v953_v48 }
 0x15e   : > { %10903 = vst [vmem:[#allocation49_spill] sm:$0xff] %v8085_v11  ;;  %v8090_v20 = vpop.f32.mrf.mxu0  ;;  %v8092_v16 = vpop.f32.mrf.mxu1 }
 0x15f   : > { %10904 = vst [vmem:[#allocation50_spill] sm:$0xff] %v8090_v20  ;;  %1621 = vmatmul.f32.gmra.mxu2 %v8099_v0  ;;  %v947_v20 = vand.u32 4294901760, %v946_v26 }
 0x160   : > { %10905 = vst [vmem:[#allocation51_spill] sm:$0xff] %v8092_v16  ;;  %v6427_v41 = vpop.eup %6426 }
 0x161   : > { %940 = vmatmul.f32.gmra.mxu0 %v939_v33  ;;  %1329 = vmatmul.f32.gmra.mxu1 %v7986_v62  ;;  %v726_v16 = vmul.f32 0.6931472, %v6427_v41  ;;  %v699_v33 = vsel %vm10763_vm12, %v683_v35, 1.0  ;;  %v684_v35 = vand.u32 2147483647, %v7896_v43  ;;  %vm10785_vm12 = vcmp.lt.f32.partialorder %v7695_v1, 0.0 }
 0x162   : > { %1891 = vmatmul.f32.gmra.mxu3 %v937_v31  ;;  %6428 = vlog2.f32 %v699_v33  ;;  %v961_v33 = vand.u32 4294901760, %v8063_v38 }
 0x163   : > { %v8112_v31 = vand.u32 4294901760, %v726_v16 }
 0x165   : > { %v8103_v11 = vpop.f32.mrf.mxu3  ;;  %10910 = vst [vmem:[#allocation56_spill] sm:$0xff] %v8112_v31  ;;  %v8117_v26 = vsub.f32 %v726_v16, %v8112_v31  ;;  %v962_v16 = vsub.f32 %v8063_v38, %v961_v33 }
 0x166   : > { %10907 = vst [vmem:[#allocation53_spill] sm:$0xff] %v8103_v11  ;;  %v8108_v62 = vpop.f32.mrf.mxu0  ;;  %v8110_v7 = vpop.f32.mrf.mxu1 }
 0x167   : > { %10908 = vst [vmem:[#allocation54_spill] sm:$0xff] %v8108_v62  ;;  %1626 = vmatmul.f32.gmra.mxu2 %v8117_v26  ;;  %v955_v62 = vand.u32 4294901760, %v954_v18 }
 0x168   : > { %10909 = vst [vmem:[#allocation55_spill] sm:$0xff] %v8110_v7  ;;  %v6429_v41 = vpop.eup %6428 }
 0x169   : > { %948 = vmatmul.f32.gmra.mxu0 %v947_v20  ;;  %1333 = vmatmul.f32.gmra.mxu1 %v8002_v49  ;;  %v728_v7 = vmul.f32 0.6931472, %v6429_v41  ;;  %v700_v20 = vsel %vm10762_vm13, %v684_v35, 1.0  ;;  %v685_v35 = vand.u32 2147483647, %v7914_v22  ;;  %vm10784_vm13 = vcmp.lt.f32.partialorder %v7675_v63, 0.0 }
 0x16a   : > { %1897 = vmatmul.f32.gmra.mxu3 %v945_v6  ;;  %6430 = vlog2.f32 %v700_v20  ;;  %v969_v20 = vand.u32 4294901760, %v8081_v4 }
 0x16b   : > { %v8130_v6 = vand.u32 4294901760, %v728_v7 }
 0x16d   : > { %v8121_v11 = vpop.f32.mrf.mxu3  ;;  %10914 = vst [vmem:[#allocation60_spill] sm:$0xff] %v8130_v6  ;;  %v8135_v18 = vsub.f32 %v728_v7, %v8130_v6  ;;  %v970_v7 = vsub.f32 %v8081_v4, %v969_v20 }
 0x16e   : > { %10911 = vst [vmem:[#allocation57_spill] sm:$0xff] %v8121_v11  ;;  %v8126_v49 = vpop.f32.mrf.mxu0  ;;  %v8128_v45 = vpop.f32.mrf.mxu1 }
 0x16f   : > { %10912 = vst [vmem:[#allocation58_spill] sm:$0xff] %v8126_v49  ;;  %1631 = vmatmul.f32.gmra.mxu2 %v8135_v18  ;;  %v963_v49 = vand.u32 4294901760, %v962_v16 }
 0x170   : > { %10913 = vst [vmem:[#allocation59_spill] sm:$0xff] %v8128_v45  ;;  %v6431_v41 = vpop.eup %6430 }
 0x171   : > { %956 = vmatmul.f32.gmra.mxu0 %v955_v62  ;;  %1337 = vmatmul.f32.gmra.mxu1 %v8022_v8  ;;  %v730_v45 = vmul.f32 0.6931472, %v6431_v41  ;;  %v701_v62 = vsel %vm10761_vm14, %v685_v35, 1.0  ;;  %v686_v35 = vand.u32 2147483647, %v7936_v54  ;;  %vm10783_vm14 = vcmp.lt.f32.partialorder %v7597_v23, 0.0 }
 0x172   : > { %1903 = vmatmul.f32.gmra.mxu3 %v953_v48  ;;  %6432 = vlog2.f32 %v701_v62  ;;  %v977_v62 = vand.u32 4294901760, %v8099_v0 }
 0x173   : > { %v8148_v48 = vand.u32 4294901760, %v730_v45 }
 0x175   : > { %v8139_v11 = vpop.f32.mrf.mxu3  ;;  %10918 = vst [vmem:[#allocation64_spill] sm:$0xff] %v8148_v48  ;;  %v8153_v16 = vsub.f32 %v730_v45, %v8148_v48  ;;  %v978_v45 = vsub.f32 %v8099_v0, %v977_v62 }
 0x176   : > { %10915 = vst [vmem:[#allocation61_spill] sm:$0xff] %v8139_v11  ;;  %v8144_v8 = vpop.f32.mrf.mxu0  ;;  %v8146_v38 = vpop.f32.mrf.mxu1 }
 0x177   : > { %10916 = vst [vmem:[#allocation62_spill] sm:$0xff] %v8144_v8  ;;  %1636 = vmatmul.f32.gmra.mxu2 %v8153_v16  ;;  %v971_v8 = vand.u32 4294901760, %v970_v7 }
 0x178   : > { %10917 = vst [vmem:[#allocation63_spill] sm:$0xff] %v8146_v38  ;;  %v6433_v41 = vpop.eup %6432 }
 0x179   : > { %964 = vmatmul.f32.gmra.mxu0 %v963_v49  ;;  %1341 = vmatmul.f32.gmra.mxu1 %v8040_v9  ;;  %v732_v38 = vmul.f32 0.6931472, %v6433_v41  ;;  %v702_v49 = vsel %vm10760_vm15, %v686_v35, 1.0  ;;  %v979_v35 = vand.u32 4294901760, %v978_v45  ;;  %vm10782_vm15 = vcmp.lt.f32.partialorder %v7578_v10, 0.0 }
 0x17a   : > { %1909 = vmatmul.f32.gmra.mxu3 %v961_v33  ;;  %6434 = vlog2.f32 %v702_v49 }
 0x17b   : > { %v8166_v33 = vand.u32 4294901760, %v732_v38 }
 0x17d   : > { %v8157_v11 = vpop.f32.mrf.mxu3  ;;  %10922 = vst [vmem:[#allocation68_spill] sm:$0xff] %v8166_v33  ;;  %v8171_v7 = vsub.f32 %v732_v38, %v8166_v33 }
 0x17e   : > { %10919 = vst [vmem:[#allocation65_spill] sm:$0xff] %v8157_v11  ;;  %v8162_v9 = vpop.f32.mrf.mxu0  ;;  %v8164_v4 = vpop.f32.mrf.mxu1 }
 0x17f   : > { %10920 = vst [vmem:[#allocation66_spill] sm:$0xff] %v8162_v9  ;;  %1641 = vmatmul.f32.gmra.mxu2 %v8171_v7  ;;  %v985_v9 = vand.u32 4294901760, %v8117_v26 }
 0x180   : > { %10921 = vst [vmem:[#allocation67_spill] sm:$0xff] %v8164_v4  ;;  %v6435_v41 = vpop.eup %6434 }
 0x181   : > { %972 = vmatmul.f32.gmra.mxu0 %v971_v8  ;;  %1345 = vmatmul.f32.gmra.mxu1 %v8058_v28  ;;  %v734_v49 = vmul.f32 0.6931472, %v6435_v41  ;;  %v986_v0 = vsub.f32 %v8117_v26, %v985_v9  ;;  %v993_v41 = vand.u32 4294901760, %v8135_v18 }
 0x182   : > { %1915 = vmatmul.f32.gmra.mxu3 %v969_v20 }
 0x183   : > { %v8181_v28 = vand.u32 4294901760, %v734_v49  ;;  %v987_v38 = vand.u32 4294901760, %v986_v0 }
 0x185   : > { %v8174_v11 = vpop.f32.mrf.mxu3  ;;  %10926 = vst [vmem:[#allocation72_spill] sm:$0xff] %v8181_v28  ;;  %v8186_v20 = vsub.f32 %v734_v49, %v8181_v28 }
 0x186   : > { %10923 = vst [vmem:[#allocation69_spill] sm:$0xff] %v8174_v11  ;;  %v8177_v4 = vpop.f32.mrf.mxu0  ;;  %v8179_v8 = vpop.f32.mrf.mxu1 }
 0x187   : > { %10924 = vst [vmem:[#allocation70_spill] sm:$0xff] %v8177_v4  ;;  %1646 = vmatmul.f32.gmra.mxu2 %v8186_v20 }
 0x188   : > { %10925 = vst [vmem:[#allocation71_spill] sm:$0xff] %v8179_v8 }
 0x189   : > { %980 = vmatmul.f32.gmra.mxu0 %v979_v35  ;;  %1349 = vmatmul.f32.gmra.mxu1 %v8076_v58  ;;  %v10930_v35 = vmov 0.0  }
 0x18a   : > { %1921 = vmatmul.f32.gmra.mxu3 %v977_v62  ;;  %v5904_v26 = vsel %vm10782_vm15, 1.0, %v10930_v35  ;;  %v994_v62 = vsub.f32 %v8135_v18, %v993_v41  ;;  %v5905_v18 = vsel %vm10783_vm14, 1.0, %v10930_v35 }
 0x18b   : > { %v8202_v49 = vsub.f32 %v5904_v26, %v5904_v26 }
 0x18c   : > { %v995_v0 = vand.u32 4294901760, %v994_v62 }
 0x18d   : > { %v8189_v45 = vpop.f32.mrf.mxu3 }
 0x18e   : > { %10927 = vst [vmem:[#allocation73_spill] sm:$0xff] %v8189_v45  ;;  %v8192_v4 = vpop.f32.mrf.mxu0  ;;  %v8194_v11 = vpop.f32.mrf.mxu1  ;;  %v1001_v45 = vand.u32 4294901760, %v8153_v16 }
 0x18f   : > { %10928 = vst [vmem:[#allocation74_spill] sm:$0xff] %v8192_v4  ;;  %1651 = vmatmul.f32.gmra.mxu2 %v8202_v49 }
 0x190   : > { %10929 = vst [vmem:[#allocation75_spill] sm:$0xff] %v8194_v11 }
 0x191   : > { %988 = vmatmul.f32.gmra.mxu0 %v987_v38  ;;  %1353 = vmatmul.f32.gmra.mxu1 %v8094_v32  ;;  %v8218_v38 = vsub.f32 %v5905_v18, %v5905_v18 }
 0x192   : > { %1927 = vmatmul.f32.gmra.mxu3 %v985_v9  ;;  %v1002_v9 = vsub.f32 %v8153_v16, %v1001_v45  ;;  %v5906_v16 = vsel %vm10784_vm13, 1.0, %v10930_v35 }
 0x194   : > { %v1003_v26 = vand.u32 4294901760, %v1002_v9 }
 0x195   : > { %v8205_v4 = vpop.f32.mrf.mxu3 }
 0x196   : > { %10931 = vst [vmem:[#allocation76_spill] sm:$0xff] %v8205_v4  ;;  %v8208_v11 = vpop.f32.mrf.mxu0  ;;  %v8210_v8 = vpop.f32.mrf.mxu1 }
 0x197   : > { %10932 = vst [vmem:[#allocation77_spill] sm:$0xff] %v8208_v11  ;;  %1656 = vmatmul.f32.gmra.mxu2 %v8218_v38  ;;  %v1009_v11 = vand.u32 4294901760, %v8171_v7 }
 0x198   : > { %10933 = vst [vmem:[#allocation78_spill] sm:$0xff] %v8210_v8 }
 0x199   : > { %996 = vmatmul.f32.gmra.mxu0 %v995_v0  ;;  %1357 = vmatmul.f32.gmra.mxu1 %v8112_v31  ;;  %v8234_v0 = vsub.f32 %v5906_v16, %v5906_v16 }
 0x19a   : > { %1933 = vmatmul.f32.gmra.mxu3 %v993_v41  ;;  %v1010_v41 = vsub.f32 %v8171_v7, %v1009_v11  ;;  %v5907_v7 = vsel %vm10785_vm12, 1.0, %v10930_v35 }
 0x19c   : > { %v1011_v18 = vand.u32 4294901760, %v1010_v41 }
 0x19d   : > { %v8221_v62 = vpop.f32.mrf.mxu3 }
 0x19e   : > { %10934 = vst [vmem:[#allocation79_spill] sm:$0xff] %v8221_v62  ;;  %v8224_v4 = vpop.f32.mrf.mxu0  ;;  %v8226_v8 = vpop.f32.mrf.mxu1 }
 0x19f   : > { %10935 = vst [vmem:[#allocation80_spill] sm:$0xff] %v8224_v4  ;;  %1661 = vmatmul.f32.gmra.mxu2 %v8234_v0  ;;  %v1017_v4 = vand.u32 4294901760, %v8186_v20 }
 0x1a0   : > { %10936 = vst [vmem:[#allocation81_spill] sm:$0xff] %v8226_v8 }
 0x1a1   : > { %1004 = vmatmul.f32.gmra.mxu0 %v1003_v26  ;;  %1361 = vmatmul.f32.gmra.mxu1 %v8130_v6  ;;  %v8250_v26 = vsub.f32 %v5907_v7, %v5907_v7  ;;  %v1572_v6 = vpop.f32.mrf.mxu2 }
 0x1a2   : > { %1939 = vmatmul.f32.gmra.mxu3 %v1001_v45  ;;  %v1018_v45 = vsub.f32 %v8186_v20, %v1017_v4  ;;  %v5908_v20 = vsel %vm10786_vm11, 1.0, %v10930_v35 }
 0x1a3   : > { %v1049_v58 = vand.u32 4294901760, %v8250_v26 }
 0x1a4   : > { %v1019_v16 = vand.u32 4294901760, %v1018_v45 }
 0x1a5   : > { %v8237_v9 = vpop.f32.mrf.mxu3 }
 0x1a6   : > { %10937 = vst [vmem:[#allocation82_spill] sm:$0xff] %v8237_v9  ;;  %v8240_v62 = vpop.f32.mrf.mxu0  ;;  %v8242_v8 = vpop.f32.mrf.mxu1 }
 0x1a7   : > { %10938 = vst [vmem:[#allocation83_spill] sm:$0xff] %v8240_v62  ;;  %1666 = vmatmul.f32.gmra.mxu2 %v8250_v26  ;;  %v1025_v62 = vand.u32 4294901760, %v8202_v49 }
 0x1a8   : > { %10939 = vst [vmem:[#allocation84_spill] sm:$0xff] %v8242_v8 }
 0x1a9   : > { %1012 = vmatmul.f32.gmra.mxu0 %v1011_v18  ;;  %1365 = vmatmul.f32.gmra.mxu1 %v8148_v48  ;;  %v8266_v18 = vsub.f32 %v5908_v20, %v5908_v20 }
 0x1aa   : > { %1945 = vmatmul.f32.gmra.mxu3 %v1009_v11  ;;  %v1026_v11 = vsub.f32 %v8202_v49, %v1025_v62  ;;  %v1577_v49 = vpop.f32.mrf.mxu2 }
 0x1ac   : > { %v1027_v7 = vand.u32 4294901760, %v1026_v11 }
 0x1ad   : > { %v8253_v41 = vpop.f32.mrf.mxu3 }
 0x1ae   : > { %10940 = vst [vmem:[#allocation85_spill] sm:$0xff] %v8253_v41  ;;  %v8256_v9 = vpop.f32.mrf.mxu0  ;;  %v8258_v8 = vpop.f32.mrf.mxu1 }
 0x1af   : > { %10941 = vst [vmem:[#allocation86_spill] sm:$0xff] %v8256_v9  ;;  %1671 = vmatmul.f32.gmra.mxu2 %v8266_v18  ;;  %v1033_v9 = vand.u32 4294901760, %v8218_v38 }
 0x1b0   : > { %10942 = vst [vmem:[#allocation87_spill] sm:$0xff] %v8258_v8 }
 0x1b1   : > { %1020 = vmatmul.f32.gmra.mxu0 %v1019_v16  ;;  %1369 = vmatmul.f32.gmra.mxu1 %v8166_v33  ;;  %v5909_v16 = vsel %vm10787_vm10, 1.0, %v10930_v35 }
 0x1b2   : > { %1951 = vmatmul.f32.gmra.mxu3 %v1017_v4  ;;  %v1034_v4 = vsub.f32 %v8218_v38, %v1033_v9  ;;  %v8280_v20 = vsub.f32 %v5909_v16, %v5909_v16  ;;  %v10945_v16 = vmov 1.0  }
 0x1b4   : > { %v1035_v11 = vand.u32 4294901760, %v1034_v4 }
 0x1b5   : > { %v8269_v45 = vpop.f32.mrf.mxu3 }
 0x1b6   : > { %10943 = vst [vmem:[#allocation88_spill] sm:$0xff] %v8269_v45  ;;  %v901_v41 = vpop.f32.mrf.mxu0  ;;  %v8272_v8 = vpop.f32.mrf.mxu1 }
 0x1b7   : > { %10944 = vst [vmem:[#allocation89_spill] sm:$0xff] %v8272_v8  ;;  %1676 = vmatmul.f32.gmra.mxu2 %v8280_v20  ;;  %v1041_v8 = vand.u32 4294901760, %v8234_v0 }
 0x1b9   : > { %1028 = vmatmul.f32.gmra.mxu0 %v1027_v7  ;;  %1373 = vmatmul.f32.gmra.mxu1 %v8181_v28  ;;  %v5910_v7 = vsel %vm10788_vm9, 1.0, %v10930_v35 }
 0x1ba   : > { %1957 = vmatmul.f32.gmra.mxu3 %v1025_v62  ;;  %v1042_v62 = vsub.f32 %v8234_v0, %v1041_v8  ;;  %v8292_v4 = vsub.f32 %v5910_v7, %v5910_v7  ;;  %v5911_v0 = vsel %vm10789_vm8, 1.0, %v10930_v35 }
 0x1bd   : > { %v1862_v45 = vpop.f32.mrf.mxu3 }
 0x1be   : > { %v909_v33 = vpop.f32.mrf.mxu0  ;;  %v1314_v48 = vpop.f32.mrf.mxu1 }
 0x1bf   : > { %v1315_v31 = vadd.f32 %v1314_v48, %v901_v41  ;;  %v1582_v48 = vpop.f32.mrf.mxu2  ;;  %1681 = vmatmul.f32.gmra.mxu2 %v8292_v4  ;;  %v1043_v41 = vand.u32 4294901760, %v1042_v62 }
 0x1c1   : > { %v1573_v38 = vadd.f32 %v1572_v6, %v1315_v31  ;;  %1036 = vmatmul.f32.gmra.mxu0 %v1035_v11  ;;  %5936 = vmatmul.msk.f32.gmra.mxu1 %vm10782_vm15, %v10945_v16  ;;  %vm631_vm15 = vcmp.lt.f32.partialorder %v7809_v51, 0.0 }
 0x1c2   : > { %1963 = vmatmul.f32.gmra.mxu3 %v1033_v9  ;;  %v1050_v9 = vsub.f32 %v8250_v26, %v1049_v58  ;;  %v5912_v26 = vsel %vm631_vm15, 1.0, %v10930_v35 }
 0x1c3   : > { %v8294_v28 = vadd.f32 %v1862_v45, %v1573_v38  ;;  %v8306_v45 = vsub.f32 %v5911_v0, %v5911_v0 }
 0x1c5   : > { %10946 = vst [vmem:[#allocation90_spill] sm:$0xff] %v8294_v28  ;;  %v1868_v32 = vpop.f32.mrf.mxu3  ;;  %v1057_v28 = vand.u32 4294901760, %v8266_v18 }
 0x1c6   : > { %v917_v31 = vpop.f32.mrf.mxu0  ;;  %v1318_v6 = vpop.f32.mrf.mxu1 }
 0x1c7   : > { %v1319_v11 = vadd.f32 %v1318_v6, %v909_v33  ;;  %1686 = vmatmul.f32.gmra.mxu2 %v8306_v45  ;;  %v1051_v33 = vand.u32 4294901760, %v1050_v9  ;;  %v1587_v6 = vpop.f32.mrf.mxu2 }
 0x1c9   : > { %v1578_v7 = vadd.f32 %v1577_v49, %v1319_v11  ;;  %1044 = vmatmul.f32.gmra.mxu0 %v1043_v41  ;;  %5937 = vmatmul.msk.f32.gmra.mxu1 %vm10783_vm14, %v10945_v16  ;;  %vm632_vm14 = vcmp.lt.f32.partialorder %v7828_v53, 0.0 }
 0x1ca   : > { %1969 = vmatmul.f32.gmra.mxu3 %v1041_v8  ;;  %v8320_v8 = vsub.f32 %v5912_v26, %v5912_v26 }
 0x1cb   : > { %v8308_v38 = vadd.f32 %v1868_v32, %v1578_v7  ;;  %v1058_v32 = vsub.f32 %v8266_v18, %v1057_v28  ;;  %v5913_v18 = vsel %vm632_vm14, 1.0, %v10930_v35 }
 0x1cd   : > { %10947 = vst [vmem:[#allocation91_spill] sm:$0xff] %v8308_v38  ;;  %v1874_v62 = vpop.f32.mrf.mxu3 }
 0x1ce   : > { %v925_v49 = vpop.f32.mrf.mxu0  ;;  %v1322_v41 = vpop.f32.mrf.mxu1 }
 0x1cf   : > { %v1323_v11 = vadd.f32 %v1322_v41, %v917_v31  ;;  %1691 = vmatmul.f32.gmra.mxu2 %v8320_v8  ;;  %v1059_v31 = vand.u32 4294901760, %v1058_v32  ;;  %v1065_v41 = vand.u32 4294901760, %v8280_v20 }
 0x1d1   : > { %v1583_v0 = vadd.f32 %v1582_v48, %v1323_v11  ;;  %1052 = vmatmul.f32.gmra.mxu0 %v1051_v33  ;;  %5938 = vmatmul.msk.f32.gmra.mxu1 %vm10784_vm13, %v10945_v16  ;;  %v1592_v11 = vpop.f32.mrf.mxu2  ;;  %vm633_vm13 = vcmp.lt.f32.partialorder %v7844_v40, 0.0 }
 0x1d2   : > { %1975 = vmatmul.f32.gmra.mxu3 %v1049_v58  ;;  %v1066_v58 = vsub.f32 %v8280_v20, %v1065_v41  ;;  %v5914_v20 = vsel %vm633_vm13, 1.0, %v10930_v35 }
 0x1d3   : > { %v8322_v7 = vadd.f32 %v1874_v62, %v1583_v0  ;;  %v8334_v62 = vsub.f32 %v5913_v18, %v5913_v18  ;;  %v8348_v18 = vsub.f32 %v5914_v20, %v5914_v20 }
 0x1d5   : > { %10948 = vst [vmem:[#allocation92_spill] sm:$0xff] %v8322_v7  ;;  %v1880_v9 = vpop.f32.mrf.mxu3 }
 0x1d6   : > { %v933_v38 = vpop.f32.mrf.mxu0  ;;  %v1326_v48 = vpop.f32.mrf.mxu1 }
 0x1d7   : > { %v1327_v33 = vadd.f32 %v1326_v48, %v925_v49  ;;  %1696 = vmatmul.f32.gmra.mxu2 %v8334_v62  ;;  %v1067_v49 = vand.u32 4294901760, %v1066_v58  ;;  %v1073_v48 = vand.u32 4294901760, %v8292_v4 }
 0x1d9   : > { %v1588_v26 = vadd.f32 %v1587_v6, %v1327_v33  ;;  %1060 = vmatmul.f32.gmra.mxu0 %v1059_v31  ;;  %5939 = vmatmul.msk.f32.gmra.mxu1 %vm10785_vm12, %v10945_v16  ;;  %vm634_vm12 = vcmp.lt.f32.partialorder %v7861_v12, 0.0 }
 0x1da   : > { %1981 = vmatmul.f32.gmra.mxu3 %v1057_v28  ;;  %v1597_v28 = vpop.f32.mrf.mxu2 }
 0x1db   : > { %v8336_v0 = vadd.f32 %v1880_v9, %v1588_v26  ;;  %v1074_v9 = vsub.f32 %v8292_v4, %v1073_v48  ;;  %v5915_v4 = vsel %vm634_vm12, 1.0, %v10930_v35 }
 0x1dd   : > { %10949 = vst [vmem:[#allocation93_spill] sm:$0xff] %v8336_v0  ;;  %v1886_v32 = vpop.f32.mrf.mxu3 }
 0x1de   : > { %v941_v7 = vpop.f32.mrf.mxu0  ;;  %v1330_v6 = vpop.f32.mrf.mxu1 }
 0x1df   : > { %v1331_v31 = vadd.f32 %v1330_v6, %v933_v38  ;;  %1701 = vmatmul.f32.gmra.mxu2 %v8348_v18  ;;  %v1075_v38 = vand.u32 4294901760, %v1074_v9  ;;  %v1081_v6 = vand.u32 4294901760, %v8306_v45 }
 0x1e1   : > { %v1593_v33 = vadd.f32 %v1592_v11, %v1331_v31  ;;  %1068 = vmatmul.f32.gmra.mxu0 %v1067_v49  ;;  %5940 = vmatmul.msk.f32.gmra.mxu1 %vm10786_vm11, %v10945_v16  ;;  %vm635_vm11 = vcmp.lt.f32.partialorder %v7878_v61, 0.0 }
 0x1e2   : > { %1987 = vmatmul.f32.gmra.mxu3 %v1065_v41  ;;  %v1082_v41 = vsub.f32 %v8306_v45, %v1081_v6  ;;  %v5916_v45 = vsel %vm635_vm11, 1.0, %v10930_v35 }
 0x1e3   : > { %v8350_v26 = vadd.f32 %v1886_v32, %v1593_v33  ;;  %v8362_v32 = vsub.f32 %v5915_v4, %v5915_v4 }
 0x1e4   : > { %v1083_v9 = vand.u32 4294901760, %v1082_v41 }
 0x1e5   : > { %10950 = vst [vmem:[#allocation94_spill] sm:$0xff] %v8350_v26  ;;  %v1892_v58 = vpop.f32.mrf.mxu3  ;;  %v1089_v26 = vand.u32 4294901760, %v8320_v8 }
 0x1e6   : > { %v949_v11 = vpop.f32.mrf.mxu0  ;;  %v1334_v49 = vpop.f32.mrf.mxu1 }
 0x1e7   : > { %v1335_v31 = vadd.f32 %v1334_v49, %v941_v7  ;;  %v1602_v7 = vpop.f32.mrf.mxu2  ;;  %1706 = vmatmul.f32.gmra.mxu2 %v8362_v32 }
 0x1e9   : > { %v1598_v20 = vadd.f32 %v1597_v28, %v1335_v31  ;;  %1076 = vmatmul.f32.gmra.mxu0 %v1075_v38  ;;  %5941 = vmatmul.msk.f32.gmra.mxu1 %vm10787_vm10, %v10945_v16  ;;  %vm10793_vm10 = vcmp.lt.f32.partialorder %v7896_v43, 0.0 }
 0x1ea   : > { %1993 = vmatmul.f32.gmra.mxu3 %v1073_v48  ;;  %v1090_v48 = vsub.f32 %v8320_v8, %v1089_v26  ;;  %v5917_v8 = vsel %vm10793_vm10, 1.0, %v10930_v35 }
 0x1eb   : > { %v8364_v33 = vadd.f32 %v1892_v58, %v1598_v20  ;;  %v1120_v58 = vsub.f32 %v5916_v45, %v5916_v45 }
 0x1ec   : > { %v1091_v41 = vand.u32 4294901760, %v1090_v48 }
 0x1ed   : > { %10951 = vst [vmem:[#allocation95_spill] sm:$0xff] %v8364_v33  ;;  %v1898_v49 = vpop.f32.mrf.mxu3 }
 0x1ee   : > { %v957_v28 = vpop.f32.mrf.mxu0  ;;  %v1338_v38 = vpop.f32.mrf.mxu1 }
 0x1ef   : > { %v1339_v31 = vadd.f32 %v1338_v38, %v949_v11  ;;  %1711 = vmatmul.f32.gmra.mxu2 %v1120_v58  ;;  %v1607_v11 = vpop.f32.mrf.mxu2  ;;  %v1097_v38 = vand.u32 4294901760, %v8334_v62 }
 0x1f1   : > { %v1603_v4 = vadd.f32 %v1602_v7, %v1339_v31  ;;  %1084 = vmatmul.f32.gmra.mxu0 %v1083_v9  ;;  %5942 = vmatmul.msk.f32.gmra.mxu1 %vm10788_vm9, %v10945_v16  ;;  %vm10792_vm9 = vcmp.lt.f32.partialorder %v7914_v22, 0.0 }
 0x1f2   : > { %1999 = vmatmul.f32.gmra.mxu3 %v1081_v6  ;;  %v1098_v6 = vsub.f32 %v8334_v62, %v1097_v38 }
 0x1f3   : > { %v8376_v20 = vadd.f32 %v1898_v49, %v1603_v4  ;;  %v1128_v49 = vsub.f32 %v5917_v8, %v5917_v8 }
 0x1f5   : > { %10952 = vst [vmem:[#allocation96_spill] sm:$0xff] %v8376_v20  ;;  %v1904_v9 = vpop.f32.mrf.mxu3 }
 0x1f6   : > { %v8379_v33 = vpop.f32.mrf.mxu0  ;;  %v1342_v0 = vpop.f32.mrf.mxu1 }
 0x1f7   : > { %v1343_v7 = vadd.f32 %v1342_v0, %v957_v28  ;;  %1716 = vmatmul.f32.gmra.mxu2 %v1128_v49  ;;  %v1099_v0 = vand.u32 4294901760, %v1098_v6  ;;  %v1105_v28 = vand.u32 4294901760, %v8348_v18 }
 0x1f9   : > { %v1608_v31 = vadd.f32 %v1607_v11, %v1343_v7  ;;  %1092 = vmatmul.f32.gmra.mxu0 %v1091_v41  ;;  %5943 = vmatmul.msk.f32.gmra.mxu1 %vm10789_vm8, %v10945_v16  ;;  %v5918_v11 = vsel %vm10792_vm9, 1.0, %v10930_v35  ;;  %v1106_v62 = vsub.f32 %v8348_v18, %v1105_v28  ;;  %v1113_v7 = vand.u32 4294901760, %v8362_v32 }
 0x1fa   : > { %2005 = vmatmul.f32.gmra.mxu3 %v1089_v26  ;;  %v1136_v26 = vsub.f32 %v5918_v11, %v5918_v11  ;;  %vm10791_vm8 = vcmp.lt.f32.partialorder %v7936_v54, 0.0 }
 0x1fb   : > { %v8389_v45 = vadd.f32 %v1904_v9, %v1608_v31  ;;  %v1107_v41 = vand.u32 4294901760, %v1106_v62  ;;  %v5919_v31 = vsel %vm10791_vm8, 1.0, %v10930_v35  ;;  %v1114_v18 = vsub.f32 %v8362_v32, %v1113_v7 }
 0x1fd   : > { %10953 = vst [vmem:[#allocation97_spill] sm:$0xff] %v8389_v45  ;;  %v1115_v6 = vand.u32 4294901760, %v1114_v18  ;;  %v1129_v45 = vand.u32 4294901760, %v1128_v49  ;;  %v1137_v18 = vand.u32 4294901760, %v1136_v26 }
 0x1fe   : > { %v8392_v4 = vpop.f32.mrf.mxu0  ;;  %v8394_v48 = vpop.f32.mrf.mxu1 }
 0x1ff   : > { %1721 = vmatmul.f32.gmra.mxu2 %v1136_v26 }
 0x201   : > { %1100 = vmatmul.f32.gmra.mxu0 %v1099_v0  ;;  %5944 = vmatmul.msk.f32.gmra.mxu1 %vm631_vm15, %v10945_v16  ;;  %v1121_v0 = vand.u32 4294901760, %v1120_v58 }
 0x202   : > { %2011 = vmatmul.f32.gmra.mxu3 %v1097_v38  ;;  %v1144_v38 = vsub.f32 %v5919_v31, %v5919_v31 }
 0x206   : > { %v8405_v9 = vpop.f32.mrf.mxu0  ;;  %v8407_v8 = vpop.f32.mrf.mxu1 }
 0x207   : > { %1726 = vmatmul.f32.gmra.mxu2 %v1144_v38 }
 0x209   : > { %1108 = vmatmul.f32.gmra.mxu0 %v1107_v41  ;;  %5945 = vmatmul.msk.f32.gmra.mxu1 %vm632_vm14, %v10945_v16  ;;  %v1122_v41 = vsub.f32 %v1120_v58, %v1121_v0  ;;  %v1138_v58 = vsub.f32 %v1136_v26, %v1137_v18 }
 0x20a   : > { %2017 = vmatmul.f32.gmra.mxu3 %v1105_v28  ;;  %v1130_v28 = vsub.f32 %v1128_v49, %v1129_v45 }
 0x20b   : > { %v1123_v35 = vand.u32 4294901760, %v1122_v41 }
 0x20c   : > { %v1131_v31 = vand.u32 4294901760, %v1130_v28 }
 0x20e   : > { %v8417_v11 = vpop.f32.mrf.mxu0  ;;  %v8419_v62 = vpop.f32.mrf.mxu1 }
 0x20f   : > { %10954 = vst [vmem:[#allocation98_spill] sm:$0xff] %v8417_v11 }
 0x211   : > { %1116 = vmatmul.f32.gmra.mxu0 %v1115_v6  ;;  %5946 = vmatmul.msk.f32.gmra.mxu1 %vm633_vm13, %v10945_v16 }
 0x212   : > { %2023 = vmatmul.f32.gmra.mxu3 %v1113_v7  ;;  %v1145_v7 = vand.u32 4294901760, %v1144_v38 }
 0x214   : > { %v1146_v49 = vsub.f32 %v1144_v38, %v1145_v7 }
 0x216   : > { %v8424_v20 = vpop.f32.mrf.mxu0  ;;  %v8426_v32 = vpop.f32.mrf.mxu1 }
 0x217   : > { %10955 = vst [vmem:[#allocation99_spill] sm:$0xff] %v8424_v20 }
 0x219   : > { %1124 = vmatmul.f32.gmra.mxu0 %v1123_v35  ;;  %5947 = vmatmul.msk.f32.gmra.mxu1 %vm634_vm12, %v10945_v16  ;;  %v1139_v35 = vand.u32 4294901760, %v1138_v58 }
 0x21a   : > { %2029 = vmatmul.f32.gmra.mxu3 %v1121_v0  ;;  %v1147_v0 = vand.u32 4294901760, %v1146_v49 }
 0x21e   : > { %v8431_v6 = vpop.f32.mrf.mxu0  ;;  %v8433_v11 = vpop.f32.mrf.mxu1 }
 0x21f   : > { %10956 = vst [vmem:[#allocation100_spill] sm:$0xff] %v8431_v6 }
 0x221   : > { %1132 = vmatmul.f32.gmra.mxu0 %v1131_v31  ;;  %5948 = vmatmul.msk.f32.gmra.mxu1 %vm635_vm11, %v10945_v16 }
 0x222   : > { %2035 = vmatmul.f32.gmra.mxu3 %v1129_v45 }
 0x226   : > { %v8438_v41 = vpop.f32.mrf.mxu0  ;;  %v8440_v20 = vpop.f32.mrf.mxu1 }
 0x227   : > { %10957 = vst [vmem:[#allocation101_spill] sm:$0xff] %v8438_v41 }
 0x228   : > { %10958 = vst [vmem:[#allocation102_spill] sm:$0xff] %v8440_v20  ;;  %v11051_v20 = vld [vmem:[#allocation79_spill] sm:$0xff] }
 0x229   : > { %1140 = vmatmul.f32.gmra.mxu0 %v1139_v35  ;;  %5949 = vmatmul.msk.f32.gmra.mxu1 %vm10793_vm10, %v10945_v16  ;;  %vm10977_vm10 = vcmp.ne.f32.partialorder %v7844_v40, 0.0 }
 0x22a   : > { %2041 = vmatmul.f32.gmra.mxu3 %v1137_v18 }
 0x22e   : > { %v8445_v28 = vpop.f32.mrf.mxu0  ;;  %v8447_v31 = vpop.f32.mrf.mxu1 }
 0x22f   : > { %10959 = vst [vmem:[#allocation103_spill] sm:$0xff] %v8445_v28 }
 0x230   : > { %10960 = vst [vmem:[#allocation104_spill] sm:$0xff] %v8447_v31  ;;  %v11049_v31 = vld [vmem:[#allocation77_spill] sm:$0xff] }
 0x231   : > { %1148 = vmatmul.f32.gmra.mxu0 %v1147_v0  ;;  %5950 = vmatmul.msk.f32.gmra.mxu1 %vm10792_vm9, %v10945_v16  ;;  %vm10974_vm9 = vcmp.ne.f32.partialorder %v7828_v53, 0.0 }
 0x232   : > { %2047 = vmatmul.f32.gmra.mxu3 %v1145_v7 }
 0x236   : > { %v8452_v45 = vpop.f32.mrf.mxu0  ;;  %v8454_v26 = vpop.f32.mrf.mxu1 }
 0x237   : > { %10961 = vst [vmem:[#allocation105_spill] sm:$0xff] %v8454_v26 }
 0x239   : > { %5951 = vmatmul.msk.f32.gmra.mxu1 %vm10791_vm8, %v10945_v16  ;;  %5952 = vmatmul.msk.f32.vlgmr.msrb.gmra.mxu0 %vm575_vm0, %v10945_v16  ;;  %vm10971_vm8 = vcmp.ne.f32.partialorder %v7809_v51, 0.0 }
 0x23e   : > { %v8462_v38 = vpop.f32.mrf.mxu0  ;;  %v8464_v18 = vpop.f32.mrf.mxu1 }
 0x241   : > { %1491 = vmatmul.f32.vlgmr.msrb.gmra.mxu1 %v7624_v52  ;;  %5953 = vmatmul.msk.f32.gmra.mxu0 %vm576_vm1, %v10945_v16 }
 0x246   : > { %v8470_v58 = vpop.f32.mrf.mxu0  ;;  %v8472_v35 = vpop.f32.mrf.mxu1 }
 0x249   : > { %1496 = vmatmul.f32.gmra.mxu1 %v7665_v50  ;;  %5954 = vmatmul.msk.f32.gmra.mxu0 %vm577_vm2, %v10945_v16 }
 0x24e   : > { %v8478_v7 = vpop.f32.mrf.mxu0  ;;  %v8480_v49 = vpop.f32.mrf.mxu1 }
 0x251   : > { %1501 = vmatmul.f32.gmra.mxu1 %v7703_v59  ;;  %5955 = vmatmul.msk.f32.gmra.mxu0 %vm578_vm3, %v10945_v16 }
 0x256   : > { %v8486_v52 = vpop.f32.mrf.mxu0  ;;  %v8488_v0 = vpop.f32.mrf.mxu1 }
 0x257   : > { %10962 = vst [vmem:[#allocation106_spill] sm:$0xff] %v8486_v52  ;;  %v11039_v52 = vld [vmem:[#allocation73_spill] sm:$0xff] }
 0x259   : > { %1506 = vmatmul.f32.gmra.mxu1 %v7724_v36  ;;  %5956 = vmatmul.msk.f32.gmra.mxu0 %vm579_vm4, %v10945_v16 }
 0x25e   : > { %v8494_v50 = vpop.f32.mrf.mxu0  ;;  %v8496_v26 = vpop.f32.mrf.mxu1 }
 0x25f   : > { %10963 = vst [vmem:[#allocation107_spill] sm:$0xff] %v8494_v50 }
 0x260   : > { %10964 = vst [vmem:[#allocation108_spill] sm:$0xff] %v8496_v26 }
 0x261   : > { %1511 = vmatmul.f32.gmra.mxu1 %v7747_v46  ;;  %5957 = vmatmul.msk.f32.gmra.mxu0 %vm580_vm5, %v10945_v16 }
 0x266   : > { %v8502_v59 = vpop.f32.mrf.mxu0  ;;  %v8504_v28 = vpop.f32.mrf.mxu1 }
 0x267   : > { %10965 = vst [vmem:[#allocation109_spill] sm:$0xff] %v8502_v59 }
 0x268   : > { %10966 = vst [vmem:[#allocation110_spill] sm:$0xff] %v8504_v28 }
 0x269   : > { %1516 = vmatmul.f32.gmra.mxu1 %v7770_v2  ;;  %5958 = vmatmul.msk.f32.gmra.mxu0 %vm581_vm6, %v10945_v16 }
 0x26e   : > { %v8510_v36 = vpop.f32.mrf.mxu0  ;;  %v8512_v50 = vpop.f32.mrf.mxu1 }
 0x26f   : > { %10967 = vst [vmem:[#allocation111_spill] sm:$0xff] %v8510_v36 }
 0x270   : > { %10968 = vst [vmem:[#allocation112_spill] sm:$0xff] %v8512_v50  ;;  %v11007_v50 = vld [vmem:[#allocation49_spill] sm:$0xff] }
 0x271   : > { %1521 = vmatmul.f32.gmra.mxu1 %v7793_v3  ;;  %5959 = vmatmul.msk.f32.gmra.mxu0 %vm582_vm7, %v10945_v16 }
 0x276   : > { %v8518_v46 = vpop.f32.mrf.mxu0  ;;  %v8520_v59 = vpop.f32.mrf.mxu1 }
 0x277   : > { %10969 = vst [vmem:[#allocation113_spill] sm:$0xff] %v8518_v46 }
 0x278   : > { %10970 = vst [vmem:[#allocation114_spill] sm:$0xff] %v8520_v59 }
 0x279   : > { %1526 = vmatmul.f32.gmra.mxu1 %v7816_v34  ;;  %5960 = vmatmul.msk.f32.gmra.mxu0 %vm10971_vm8, %v10945_v16  ;;  %vm10980_vm8 = vcmp.ne.f32.partialorder %v7861_v12, 0.0 }
 0x27e   : > { %v8526_v2 = vpop.f32.mrf.mxu0  ;;  %v8528_v36 = vpop.f32.mrf.mxu1 }
 0x27f   : > { %10972 = vst [vmem:[#allocation115_spill] sm:$0xff] %v8526_v2 }
 0x280   : > { %10973 = vst [vmem:[#allocation116_spill] sm:$0xff] %v8528_v36 }
 0x281   : > { %1531 = vmatmul.f32.gmra.mxu1 %v7834_v19  ;;  %5961 = vmatmul.msk.f32.gmra.mxu0 %vm10974_vm9, %v10945_v16  ;;  %vm10983_vm9 = vcmp.ne.f32.partialorder %v7878_v61, 0.0 }
 0x286   : > { %v8534_v3 = vpop.f32.mrf.mxu0  ;;  %v8536_v46 = vpop.f32.mrf.mxu1 }
 0x287   : > { %10975 = vst [vmem:[#allocation117_spill] sm:$0xff] %v8534_v3 }
 0x288   : > { %10976 = vst [vmem:[#allocation118_spill] sm:$0xff] %v8536_v46 }
 0x289   : > { %1536 = vmatmul.f32.gmra.mxu1 %v7851_v27  ;;  %5962 = vmatmul.msk.f32.gmra.mxu0 %vm10977_vm10, %v10945_v16  ;;  %vm10986_vm10 = vcmp.ne.f32.partialorder %v7896_v43, 0.0 }
 0x28e   : > { %v8542_v34 = vpop.f32.mrf.mxu0  ;;  %v8544_v2 = vpop.f32.mrf.mxu1 }
 0x28f   : > { %10978 = vst [vmem:[#allocation119_spill] sm:$0xff] %v8542_v34 }
 0x290   : > { %10979 = vst [vmem:[#allocation120_spill] sm:$0xff] %v8544_v2 }
 0x291   : > { %1541 = vmatmul.f32.gmra.mxu1 %v7868_v47  ;;  %5963 = vmatmul.msk.f32.gmra.mxu0 %vm10980_vm8, %v10945_v16  ;;  %vm10989_vm8 = vcmp.ne.f32.partialorder %v7914_v22, 0.0 }
 0x296   : > { %v8550_v19 = vpop.f32.mrf.mxu0  ;;  %v8552_v3 = vpop.f32.mrf.mxu1 }
 0x297   : > { %10981 = vst [vmem:[#allocation121_spill] sm:$0xff] %v8550_v19 }
 0x298   : > { %10982 = vst [vmem:[#allocation122_spill] sm:$0xff] %v8552_v3 }
 0x299   : > { %1546 = vmatmul.f32.gmra.mxu1 %v7885_v15  ;;  %5964 = vmatmul.msk.f32.gmra.mxu0 %vm10983_vm9, %v10945_v16  ;;  %vm10992_vm9 = vcmp.ne.f32.partialorder %v7936_v54, 0.0 }
 0x29e   : > { %v8558_v27 = vpop.f32.mrf.mxu0  ;;  %v8560_v34 = vpop.f32.mrf.mxu1 }
 0x29f   : > { %10984 = vst [vmem:[#allocation123_spill] sm:$0xff] %v8558_v27 }
 0x2a0   : > { %10985 = vst [vmem:[#allocation124_spill] sm:$0xff] %v8560_v34 }
 0x2a1   : > { %1551 = vmatmul.f32.gmra.mxu1 %v7902_v44  ;;  %5965 = vmatmul.msk.f32.gmra.mxu0 %vm10986_vm10, %v10945_v16 }
 0x2a6   : > { %v8566_v47 = vpop.f32.mrf.mxu0  ;;  %v8568_v19 = vpop.f32.mrf.mxu1 }
 0x2a7   : > { %10987 = vst [vmem:[#allocation125_spill] sm:$0xff] %v8566_v47 }
 0x2a8   : > { %10988 = vst [vmem:[#allocation126_spill] sm:$0xff] %v8568_v19 }
 0x2a9   : > { %1556 = vmatmul.f32.gmra.mxu1 %v7920_v56  ;;  %5966 = vmatmul.msk.f32.gmra.mxu0 %vm10989_vm8, %v10945_v16  ;;  %v1251_v56 = vadd.f32 %v8020_v13, %v8000_v57 }
 0x2ae   : > { %v8574_v15 = vpop.f32.mrf.mxu0  ;;  %v8576_v27 = vpop.f32.mrf.mxu1 }
 0x2af   : > { %10990 = vst [vmem:[#allocation127_spill] sm:$0xff] %v8574_v15 }
 0x2b0   : > { %10991 = vst [vmem:[#allocation128_spill] sm:$0xff] %v8576_v27 }
 0x2b1   : > { %1561 = vmatmul.f32.gmra.mxu1 %v7942_v37  ;;  %5967 = vmatmul.msk.f32.gmra.mxu0 %vm10992_vm9, %v10945_v16  ;;  %v2883_v37 = vld [vmem:[%s7431_s30 + $0xf0] sm:$0xff] }
 0x2b2   : > { %2885 = vmatpush.msrb.mxu2 %v2883_v37 }
 0x2b6   : > { %v8582_v44 = vpop.f32.mrf.mxu1  ;;  %v2117_v47 = vpop.f32.mrf.mxu0 }
 0x2b7   : > { %10993 = vst [vmem:[#allocation129_spill] sm:$0xff] %v8582_v44 }
 0x2b9   : > { %1566 = vmatmul.f32.gmra.mxu1 %v7962_v29  ;;  %2180 = vmatmul.f32.gmra.mxu0 %v7912_v21  ;;  %v1255_v29 = vadd.f32 %v8038_v17, %v8018_v55  ;;  %v10997_v17 = vld [vmem:[#allocation41_spill] sm:$0xff] }
 0x2be   : > { %v1492_v19 = vpop.f32.mrf.mxu1  ;;  %v2121_v15 = vpop.f32.mrf.mxu0 }
 0x2bf   : > { %v1493_v34 = vadd.f32 %v1492_v19, %v1251_v56 }
 0x2c1   : > { %v1767_v27 = vadd.f32 %v8013_v5, %v1493_v34  ;;  %2184 = vmatmul.f32.gmra.mxu0 %v7934_v60  ;;  %5984 = vmatmul.msk.f32.vlgmr.msra.gmra.mxu1 %vm575_vm0, %v10945_v16  ;;  %v10995_v34 = vld [vmem:[#allocation39_spill] sm:$0xff]  ;;  %vm11029_vm0 = vcmp.ne.f32.partialorder %v7809_v51, 0.0  ;;  %v3021_v51 = vld [vmem:[%s7423_s11 + $0x30] sm:$0xff] }
 0x2c3   : > { %v8594_v44 = vadd.f32 %v2117_v47, %v1767_v27  ;;  %v10996_v27 = vld [vmem:[#allocation43_spill] sm:$0xff] }
 0x2c4   : > { %v1259_v47 = vadd.f32 %v10996_v27, %v10995_v34 }
 0x2c6   : > { %v1497_v57 = vpop.f32.mrf.mxu1  ;;  %v2125_v13 = vpop.f32.mrf.mxu0 }
 0x2c7   : > { %v1498_v3 = vadd.f32 %v1497_v57, %v1255_v29  ;;  %v10998_v29 = vld [vmem:[#allocation35_spill] sm:$0xff] }
 0x2c8   : > { %v11001_v57 = vld [vmem:[#allocation47_spill] sm:$0xff] }
 0x2c9   : > { %v1773_v19 = vadd.f32 %v8031_v24, %v1498_v3  ;;  %2188 = vmatmul.f32.gmra.mxu0 %v7956_v30  ;;  %5985 = vmatmul.msk.f32.gmra.mxu1 %vm576_vm1, %v10945_v16  ;;  %v2881_v24 = vld [vmem:[%s7431_s30 + $0xe0] sm:$0xff]  ;;  %vm11035_vm1 = vcmp.ne.f32.partialorder %v7828_v53, 0.0  ;;  %v2858_v53 = vld [vmem:[%s7431_s30 + $0x28] sm:$0xff] }
 0x2ca   : > { %2886 = vmatpush.msrb.mxu2 %v2881_v24 }
 0x2cb   : > { %v8603_v5 = vadd.f32 %v2121_v15, %v1773_v19  ;;  %v11000_v15 = vld [vmem:[#allocation42_spill] sm:$0xff] }
 0x2cc   : > { %v1263_v19 = vadd.f32 %v11001_v57, %v11000_v15 }
 0x2cd   : > { %10994 = vst [vmem:[#allocation130_spill] sm:$0xff] %v8603_v5  ;;  %v11018_v5 = vld [vmem:[#allocation40_spill] sm:$0xff] }
 0x2ce   : > { %v1502_v56 = vpop.f32.mrf.mxu1  ;;  %v2129_v37 = vpop.f32.mrf.mxu0 }
 0x2cf   : > { %v1503_v55 = vadd.f32 %v1502_v56, %v1259_v47  ;;  %v11002_v47 = vld [vmem:[#allocation45_spill] sm:$0xff] }
 0x2d1   : > { %v1779_v2 = vadd.f32 %v10997_v17, %v1503_v55  ;;  %2192 = vmatmul.f32.gmra.mxu0 %v10998_v29  ;;  %5986 = vmatmul.msk.f32.gmra.mxu1 %vm577_vm2, %v10945_v16  ;;  %v11003_v55 = vld [vmem:[#allocation36_spill] sm:$0xff]  ;;  %v2884_v17 = vld [vmem:[%s7431_s30 + $0xf8] sm:$0xff]  ;;  %vm11041_vm2 = vcmp.ne.f32.partialorder %v7844_v40, 0.0 }
 0x2d2   : > { %2950 = vmatpush.msrb.mxu3 %v2884_v17 }
 0x2d3   : > { %v8613_v3 = vadd.f32 %v2125_v13, %v1779_v2  ;;  %v11005_v2 = vld [vmem:[#allocation46_spill] sm:$0xff]  ;;  %v11006_v13 = vld [vmem:[#allocation51_spill] sm:$0xff] }
 0x2d4   : > { %v1267_v36 = vadd.f32 %v11006_v13, %v11005_v2 }
 0x2d5   : > { %10999 = vst [vmem:[#allocation39_spill] sm:$0xff] %v8613_v3 }
 0x2d6   : > { %v1507_v34 = vpop.f32.mrf.mxu1  ;;  %v2133_v27 = vpop.f32.mrf.mxu0 }
 0x2d7   : > { %v1508_v46 = vadd.f32 %v1507_v34, %v1263_v19  ;;  %v11008_v34 = vld [vmem:[#allocation37_spill] sm:$0xff] }
 0x2d9   : > { %v1785_v56 = vadd.f32 %v11002_v47, %v1508_v46  ;;  %2196 = vmatmul.f32.gmra.mxu0 %v11003_v55  ;;  %5987 = vmatmul.msk.f32.gmra.mxu1 %vm578_vm3, %v10945_v16  ;;  %v2879_v46 = vld [vmem:[%s7431_s30 + $0xd0] sm:$0xff]  ;;  %vm11047_vm3 = vcmp.ne.f32.partialorder %v7861_v12, 0.0 }
 0x2da   : > { %2887 = vmatpush.msrb.mxu2 %v2879_v46 }
 0x2db   : > { %v8623_v24 = vadd.f32 %v2129_v37, %v1785_v56  ;;  %v11010_v37 = vld [vmem:[#allocation50_spill] sm:$0xff]  ;;  %v11011_v56 = vld [vmem:[#allocation55_spill] sm:$0xff] }
 0x2dc   : > { %v1271_v17 = vadd.f32 %v11011_v56, %v11010_v37  ;;  %v11017_v56 = vld [vmem:[#allocation57_spill] sm:$0xff] }
 0x2dd   : > { %11004 = vst [vmem:[#allocation43_spill] sm:$0xff] %v8623_v24 }
 0x2de   : > { %v1512_v15 = vpop.f32.mrf.mxu1  ;;  %v2137_v57 = vpop.f32.mrf.mxu0 }
 0x2df   : > { %v1513_v59 = vadd.f32 %v1512_v15, %v1267_v36  ;;  %v11012_v15 = vld [vmem:[#allocation53_spill] sm:$0xff] }
 0x2e1   : > { %v1791_v19 = vadd.f32 %v11007_v50, %v1513_v59  ;;  %2200 = vmatmul.f32.gmra.mxu0 %v11008_v34  ;;  %5988 = vmatmul.msk.f32.gmra.mxu1 %vm579_vm4, %v10945_v16  ;;  %v11013_v59 = vld [vmem:[#allocation38_spill] sm:$0xff]  ;;  %vm11053_vm4 = vcmp.ne.f32.partialorder %v7878_v61, 0.0 }
 0x2e3   : > { %v8633_v47 = vadd.f32 %v2133_v27, %v1791_v19  ;;  %v11015_v27 = vld [vmem:[#allocation54_spill] sm:$0xff]  ;;  %v11016_v19 = vld [vmem:[#allocation59_spill] sm:$0xff] }
 0x2e4   : > { %v1275_v46 = vadd.f32 %v11016_v19, %v11015_v27 }
 0x2e5   : > { %11009 = vst [vmem:[#allocation41_spill] sm:$0xff] %v8633_v47 }
 0x2e6   : > { %v1517_v2 = vpop.f32.mrf.mxu1  ;;  %v2141_v13 = vpop.f32.mrf.mxu0 }
 0x2e7   : > { %v1518_v36 = vadd.f32 %v1517_v2, %v1271_v17  ;;  %v2877_v17 = vld [vmem:[%s7431_s30 + $0xc0] sm:$0xff]  ;;  %v2882_v2 = vld [vmem:[%s7431_s30 + $0xe8] sm:$0xff] }
 0x2e8   : > { %2888 = vmatpush.msrb.mxu2 %v2877_v17  ;;  %2951 = vmatpush.msrb.mxu3 %v2882_v2  ;;  %v11025_v17 = vld [vmem:[#allocation62_spill] sm:$0xff] }
 0x2e9   : > { %v1797_v50 = vadd.f32 %v11012_v15, %v1518_v36  ;;  %2204 = vmatmul.f32.gmra.mxu0 %v11013_v59  ;;  %5989 = vmatmul.msk.f32.gmra.mxu1 %vm580_vm5, %v10945_v16  ;;  %v11020_v36 = vld [vmem:[#allocation58_spill] sm:$0xff]  ;;  %v11021_v15 = vld [vmem:[#allocation63_spill] sm:$0xff]  ;;  %vm11059_vm5 = vmmov %vm10986_vm10 }
 0x2ea   : > { %vm11071_vm10 = vmmov %vm10992_vm9  ;;  %vm11074_vm9 = vcmp.lt.f32.partialorder %v7675_v63, 0.0  ;;  %v3027_v63 = vld [vmem:[%s7423_s11 + $0x60] sm:$0xff] }
 0x2eb   : > { %v8642_v24 = vadd.f32 %v2137_v57, %v1797_v50  ;;  %v1279_v50 = vadd.f32 %v11021_v15, %v11020_v36  ;;  %v11027_v15 = vld [vmem:[#allocation65_spill] sm:$0xff] }
 0x2ed   : > { %11014 = vst [vmem:[#allocation35_spill] sm:$0xff] %v8642_v24 }
 0x2ee   : > { %v1522_v47 = vpop.f32.mrf.mxu1  ;;  %v2145_v3 = vpop.f32.mrf.mxu0 }
 0x2ef   : > { %v1523_v37 = vadd.f32 %v1522_v47, %v1275_v46  ;;  %v11022_v46 = vld [vmem:[#allocation61_spill] sm:$0xff] }
 0x2f1   : > { %v1803_v28 = vadd.f32 %v11017_v56, %v1523_v37  ;;  %2208 = vmatmul.f32.gmra.mxu0 %v11018_v5  ;;  %5990 = vmatmul.msk.f32.gmra.mxu1 %vm581_vm6, %v10945_v16  ;;  %v11023_v56 = vld [vmem:[#allocation44_spill] sm:$0xff]  ;;  %vm11065_vm6 = vmmov %vm10989_vm8  ;;  %vm11073_vm8 = vcmp.lt.f32.partialorder %v7597_v23, 0.0 }
 0x2f3   : > { %v8653_v57 = vadd.f32 %v2141_v13, %v1803_v28  ;;  %v11026_v28 = vld [vmem:[#allocation67_spill] sm:$0xff] }
 0x2f4   : > { %v1283_v13 = vadd.f32 %v11026_v28, %v11025_v17 }
 0x2f5   : > { %11019 = vst [vmem:[#allocation42_spill] sm:$0xff] %v8653_v57 }
 0x2f6   : > { %v1527_v27 = vpop.f32.mrf.mxu1  ;;  %v2149_v47 = vpop.f32.mrf.mxu0 }
 0x2f7   : > { %v1528_v19 = vadd.f32 %v1527_v27, %v1279_v50  ;;  %v11028_v50 = vld [vmem:[#allocation48_spill] sm:$0xff]  ;;  %v2875_v27 = vld [vmem:[%s7431_s30 + $0xb0] sm:$0xff] }
 0x2f8   : > { %2889 = vmatpush.msrb.mxu2 %v2875_v27 }
 0x2f9   : > { %v1809_v37 = vadd.f32 %v11022_v46, %v1528_v19  ;;  %2212 = vmatmul.f32.gmra.mxu0 %v11023_v56  ;;  %5991 = vmatmul.msk.f32.gmra.mxu1 %vm582_vm7, %v10945_v16  ;;  %v11032_v46 = vld [vmem:[#allocation71_spill] sm:$0xff]  ;;  %vm11070_vm7 = vcmp.lt.f32.partialorder %v7578_v10, 0.0 }
 0x2fb   : > { %v8662_v24 = vadd.f32 %v2145_v3, %v1809_v37  ;;  %v11031_v3 = vld [vmem:[#allocation66_spill] sm:$0xff] }
 0x2fc   : > { %v1287_v37 = vadd.f32 %v11032_v46, %v11031_v3 }
 0x2fd   : > { %11024 = vst [vmem:[#allocation47_spill] sm:$0xff] %v8662_v24 }
 0x2fe   : > { %v1532_v2 = vpop.f32.mrf.mxu1  ;;  %v2153_v57 = vpop.f32.mrf.mxu0 }
 0x2ff   : > { %v1533_v36 = vadd.f32 %v1532_v2, %v1283_v13  ;;  %v11033_v13 = vld [vmem:[#allocation69_spill] sm:$0xff] }
 0x301   : > { %v1815_v26 = vadd.f32 %v11027_v15, %v1533_v36  ;;  %2216 = vmatmul.f32.gmra.mxu0 %v11028_v50  ;;  %5992 = vmatmul.msk.f32.gmra.mxu1 %vm11029_vm0, %v10945_v16  ;;  %v11034_v36 = vld [vmem:[#allocation52_spill] sm:$0xff]  ;;  %v2880_v15 = vld [vmem:[%s7431_s30 + $0xd8] sm:$0xff]  ;;  %vm11076_vm0 = vcmp.lt.f32.partialorder %v7695_v1, 0.0 }
 0x302   : > { %2952 = vmatpush.msrb.mxu3 %v2880_v15  ;;  %v3026_v1 = vld [vmem:[%s7423_s11 + $0x58] sm:$0xff] }
 0x303   : > { %v8672_v19 = vadd.f32 %v2149_v47, %v1815_v26  ;;  %v11037_v26 = vld [vmem:[#allocation70_spill] sm:$0xff]  ;;  %v11038_v47 = vld [vmem:[#allocation75_spill] sm:$0xff] }
 0x305   : > { %11030 = vst [vmem:[#allocation45_spill] sm:$0xff] %v8672_v19  ;;  %v1291_v19 = vadd.f32 %v11038_v47, %v11037_v26 }
 0x306   : > { %v1537_v17 = vpop.f32.mrf.mxu1  ;;  %v2157_v24 = vpop.f32.mrf.mxu0 }
 0x307   : > { %v1538_v28 = vadd.f32 %v1537_v17, %v1287_v37  ;;  %v11040_v17 = vld [vmem:[#allocation56_spill] sm:$0xff] }
 0x309   : > { %v1821_v2 = vadd.f32 %v11033_v13, %v1538_v28  ;;  %2220 = vmatmul.f32.gmra.mxu0 %v11034_v36  ;;  %5993 = vmatmul.msk.f32.gmra.mxu1 %vm11035_vm1, %v10945_v16  ;;  %v2873_v28 = vld [vmem:[%s7431_s30 + $0xa0] sm:$0xff]  ;;  %vm11078_vm1 = vcmp.lt.f32.partialorder %v7718_v42, 0.0 }
 0x30a   : > { %2890 = vmatpush.msrb.mxu2 %v2873_v28 }
 0x30b   : > { %v8682_v27 = vadd.f32 %v2153_v57, %v1821_v2  ;;  %v11043_v57 = vld [vmem:[#allocation74_spill] sm:$0xff] }
 0x30c   : > { %v11044_v2 = vld [vmem:[#allocation78_spill] sm:$0xff] }
 0x30d   : > { %11036 = vst [vmem:[#allocation36_spill] sm:$0xff] %v8682_v27  ;;  %v1295_v26 = vadd.f32 %v11044_v2, %v11043_v57  ;;  %v11052_v2 = vld [vmem:[#allocation64_spill] sm:$0xff] }
 0x30e   : > { %v1542_v3 = vpop.f32.mrf.mxu1  ;;  %v2161_v13 = vpop.f32.mrf.mxu0 }
 0x30f   : > { %v1543_v46 = vadd.f32 %v1542_v3, %v1291_v19  ;;  %v11045_v3 = vld [vmem:[#allocation76_spill] sm:$0xff] }
 0x311   : > { %v1827_v37 = vadd.f32 %v11039_v52, %v1543_v46  ;;  %2224 = vmatmul.f32.gmra.mxu0 %v11040_v17  ;;  %5994 = vmatmul.msk.f32.gmra.mxu1 %vm11041_vm2, %v10945_v16  ;;  %v11046_v46 = vld [vmem:[#allocation60_spill] sm:$0xff]  ;;  %vm11080_vm2 = vcmp.lt.f32.partialorder %v7740_v25, 0.0 }
 0x312   : > { %v3024_v25 = vld [vmem:[%s7423_s11 + $0x48] sm:$0xff] }
 0x313   : > { %v8692_v15 = vadd.f32 %v2157_v24, %v1827_v37  ;;  %v11050_v24 = vld [vmem:[#allocation81_spill] sm:$0xff] }
 0x314   : > { %v1299_v37 = vadd.f32 %v11050_v24, %v11049_v31 }
 0x315   : > { %11042 = vst [vmem:[#allocation46_spill] sm:$0xff] %v8692_v15 }
 0x316   : > { %v1547_v47 = vpop.f32.mrf.mxu1  ;;  %v2165_v28 = vpop.f32.mrf.mxu0 }
 0x317   : > { %v1548_v19 = vadd.f32 %v1547_v47, %v1295_v26  ;;  %v2871_v26 = vld [vmem:[%s7431_s30 + $0x90] sm:$0xff]  ;;  %v2878_v47 = vld [vmem:[%s7431_s30 + $0xc8] sm:$0xff] }
 0x318   : > { %2891 = vmatpush.msrb.mxu2 %v2871_v26  ;;  %2953 = vmatpush.msrb.mxu3 %v2878_v47  ;;  %v11061_v26 = vld [vmem:[#allocation83_spill] sm:$0xff] }
 0x319   : > { %v1833_v52 = vadd.f32 %v11045_v3, %v1548_v19  ;;  %2228 = vmatmul.f32.gmra.mxu0 %v11046_v46  ;;  %5995 = vmatmul.msk.f32.gmra.mxu1 %vm11047_vm3, %v10945_v16  ;;  %v11055_v19 = vld [vmem:[#allocation80_spill] sm:$0xff]  ;;  %vm11082_vm3 = vcmp.lt.f32.partialorder %v7763_v39, 0.0  ;;  %v3023_v39 = vld [vmem:[%s7423_s11 + $0x40] sm:$0xff] }
 0x31a   : > { %v11056_v3 = vld [vmem:[#allocation84_spill] sm:$0xff] }
 0x31b   : > { %v8701_v27 = vadd.f32 %v2161_v13, %v1833_v52  ;;  %v1303_v31 = vadd.f32 %v11056_v3, %v11055_v19  ;;  %v11063_v3 = vld [vmem:[#allocation85_spill] sm:$0xff] }
 0x31d   : > { %11048 = vst [vmem:[#allocation51_spill] sm:$0xff] %v8701_v27 }
 0x31e   : > { %v1552_v15 = vpop.f32.mrf.mxu1  ;;  %v2169_v52 = vpop.f32.mrf.mxu0 }
 0x31f   : > { %v1553_v41 = vadd.f32 %v1552_v15, %v1299_v37  ;;  %v11058_v37 = vld [vmem:[#allocation68_spill] sm:$0xff] }
 0x321   : > { %v1839_v57 = vadd.f32 %v11051_v20, %v1553_v41  ;;  %2232 = vmatmul.f32.gmra.mxu0 %v11052_v2  ;;  %5996 = vmatmul.msk.f32.gmra.mxu1 %vm11053_vm4, %v10945_v16  ;;  %v11057_v20 = vld [vmem:[#allocation82_spill] sm:$0xff]  ;;  %vm11084_vm4 = vcmp.lt.f32.partialorder %v7786_v14, 0.0 }
 0x322   : > { %v3022_v14 = vld [vmem:[%s7423_s11 + $0x38] sm:$0xff] }
 0x323   : > { %v8712_v13 = vadd.f32 %v2165_v28, %v1839_v57  ;;  %v11062_v28 = vld [vmem:[#allocation87_spill] sm:$0xff] }
 0x324   : > { %v1307_v57 = vadd.f32 %v11062_v28, %v11061_v26 }
 0x325   : > { %11054 = vst [vmem:[#allocation49_spill] sm:$0xff] %v8712_v13 }
 0x326   : > { %v1557_v15 = vpop.f32.mrf.mxu1  ;;  %v2173_v19 = vpop.f32.mrf.mxu0 }
 0x327   : > { %v1558_v24 = vadd.f32 %v1557_v15, %v1303_v31  ;;  %v11064_v31 = vld [vmem:[#allocation72_spill] sm:$0xff]  ;;  %v2869_v15 = vld [vmem:[%s7431_s30 + $0x80] sm:$0xff] }
 0x328   : > { %2892 = vmatpush.msrb.mxu2 %v2869_v15  ;;  %v2867_v15 = vld [vmem:[%s7431_s30 + $0x70] sm:$0xff] }
 0x329   : > { %v1845_v41 = vadd.f32 %v11057_v20, %v1558_v24  ;;  %2236 = vmatmul.f32.gmra.mxu0 %v11058_v37  ;;  %5997 = vmatmul.msk.f32.gmra.mxu1 %vm11059_vm5, %v10945_v16  ;;  %v11067_v24 = vld [vmem:[#allocation86_spill] sm:$0xff]  ;;  %v11068_v20 = vld [vmem:[#allocation89_spill] sm:$0xff]  ;;  %vm11094_vm5 = vcmp.lt.f32.partialorder %v7896_v43, 0.0  ;;  %v1379_v43 = vadd.f32 %v8464_v18, %v8452_v45 }
 0x32a   : > { %2893 = vmatpush.msrb.mxu2 %v2867_v15  ;;  %v11149_v18 = vld [vmem:[#allocation90_spill] sm:$0xff] }
 0x32b   : > { %v8721_v27 = vadd.f32 %v2169_v52, %v1845_v41  ;;  %v1311_v41 = vadd.f32 %v11068_v20, %v11067_v24 }
 0x32d   : > { %11060 = vst [vmem:[#allocation37_spill] sm:$0xff] %v8721_v27 }
 0x32e   : > { %v1562_v47 = vpop.f32.mrf.mxu1 }
 0x32f   : > { %v1563_v13 = vadd.f32 %v1562_v47, %v1307_v57  ;;  %v11069_v57 = vld [vmem:[#allocation88_spill] sm:$0xff] }
 0x331   : > { %v1851_v6 = vadd.f32 %v11063_v3, %v1563_v13  ;;  %2240 = vmatmul.f32.gmra.mxu0 %v11064_v31  ;;  %5998 = vmatmul.msk.f32.gmra.mxu1 %vm11065_vm6, %v10945_v16  ;;  %v2876_v13 = vld [vmem:[%s7431_s30 + $0xb8] sm:$0xff]  ;;  %vm11097_vm6 = vcmp.lt.f32.partialorder %v7914_v22, 0.0  ;;  %v3017_v22 = vld [vmem:[%s7423_s11 + $0x10] sm:$0xff] }
 0x332   : > { %2954 = vmatpush.msrb.mxu3 %v2876_v13 }
 0x333   : > { %v8731_v52 = vadd.f32 %v2173_v19, %v1851_v6  ;;  %v2177_v6 = vpop.f32.mrf.mxu0 }
 0x335   : > { %11066 = vst [vmem:[#allocation50_spill] sm:$0xff] %v8731_v52 }
 0x336   : > { %v1567_v26 = vpop.f32.mrf.mxu1 }
 0x337   : > { %v1568_v28 = vadd.f32 %v1567_v26, %v1311_v41  ;;  %v2874_v41 = vld [vmem:[%s7431_s30 + $0xa8] sm:$0xff]  ;;  %v8766_v26 = vpop.f32.mrf.mxu2 }
 0x338   : > { %2955 = vmatpush.msrb.mxu3 %v2874_v41 }
 0x339   : > { %v1857_v47 = vadd.f32 %v11069_v57, %v1568_v28  ;;  %5968 = vmatmul.msk.f32.gmra.mxu0 %vm11070_vm7, %v10945_v16  ;;  %5999 = vmatmul.msk.f32.gmra.mxu1 %vm11071_vm10, %v10945_v16  ;;  %vm11100_vm7 = vcmp.lt.f32.partialorder %v7936_v54, 0.0  ;;  %vm11103_vm10 = vcmp.lt.f32.partialorder %v7578_v10, 0.0  ;;  %v3029_v10 = vld [vmem:[%s7423_s11 + $0x70] sm:$0xff] }
 0x33b   : > { %v8743_v19 = vadd.f32 %v2177_v6, %v1857_v47  ;;  %v8792_v6 = vpop.f32.mrf.mxu0 }
 0x33d   : > { %11072 = vst [vmem:[#allocation55_spill] sm:$0xff] %v8743_v19 }
 0x33e   : > { %v8745_v3 = vpop.f32.mrf.mxu1 }
 0x33f   : > { %v8776_v57 = vpop.f32.mrf.mxu2 }
 0x341   : > { %5969 = vmatmul.msk.f32.gmra.mxu0 %vm11073_vm8, %v10945_v16  ;;  %2405 = vmatmul.f32.gmra.mxu1 %v7912_v21  ;;  %v2865_v21 = vld [vmem:[%s7431_s30 + $0x60] sm:$0xff] }
 0x342   : > { %2894 = vmatpush.msrb.mxu2 %v2865_v21 }
 0x343   : > { %v8803_v41 = vpop.f32.mrf.mxu0 }
 0x346   : > { %v8752_v24 = vpop.f32.mrf.mxu1 }
 0x347   : > { %v8785_v13 = vpop.f32.mrf.mxu2 }
 0x349   : > { %5970 = vmatmul.msk.f32.gmra.mxu0 %vm11074_vm9, %v10945_v16  ;;  %2409 = vmatmul.f32.gmra.mxu1 %v7934_v60 }
 0x34b   : > { %v8815_v19 = vpop.f32.mrf.mxu0 }
 0x34e   : > { %v8758_v20 = vpop.f32.mrf.mxu1 }
 0x34f   : > { %11075 = vst [vmem:[#allocation53_spill] sm:$0xff] %v8758_v20  ;;  %v8801_v21 = vpop.f32.mrf.mxu2 }
 0x351   : > { %5971 = vmatmul.msk.f32.gmra.mxu0 %vm11076_vm0, %v10945_v16  ;;  %2413 = vmatmul.f32.gmra.mxu1 %v7956_v30  ;;  %v2863_v30 = vld [vmem:[%s7431_s30 + $0x50] sm:$0xff] }
 0x352   : > { %2895 = vmatpush.msrb.mxu2 %v2863_v30 }
 0x353   : > { %v8827_v27 = vpop.f32.mrf.mxu0 }
 0x356   : > { %v8768_v28 = vpop.f32.mrf.mxu1 }
 0x357   : > { %11077 = vst [vmem:[#allocation38_spill] sm:$0xff] %v8768_v28  ;;  %v8811_v30 = vpop.f32.mrf.mxu2 }
 0x359   : > { %5972 = vmatmul.msk.f32.gmra.mxu0 %vm11078_vm1, %v10945_v16  ;;  %2417 = vmatmul.f32.gmra.mxu1 %v10998_v29  ;;  %v2872_v29 = vld [vmem:[%s7431_s30 + $0x98] sm:$0xff] }
 0x35a   : > { %2956 = vmatpush.msrb.mxu3 %v2872_v29 }
 0x35e   : > { %v8774_v60 = vpop.f32.mrf.mxu1 }
 0x35f   : > { %11079 = vst [vmem:[#allocation54_spill] sm:$0xff] %v8774_v60  ;;  %v3030_v60 = vld [vmem:[%s7423_s11 + $0x78] sm:$0xff] }
 0x361   : > { %5973 = vmatmul.msk.f32.gmra.mxu0 %vm11080_vm2, %v10945_v16  ;;  %2421 = vmatmul.f32.gmra.mxu1 %v11003_v55  ;;  %v2861_v55 = vld [vmem:[%s7431_s30 + $0x40] sm:$0xff] }
 0x362   : > { %2896 = vmatpush.msrb.mxu2 %v2861_v55  ;;  %v2870_v55 = vld [vmem:[%s7431_s30 + $0x88] sm:$0xff] }
 0x363   : > { %2957 = vmatpush.msrb.mxu3 %v2870_v55  ;;  %v8842_v55 = vpop.f32.mrf.mxu0 }
 0x364   : > { %11089 = vst [vmem:[#allocation44_spill] sm:$0xff] %v8842_v55 }
 0x366   : > { %v8783_v47 = vpop.f32.mrf.mxu1 }
 0x367   : > { %11081 = vst [vmem:[#allocation59_spill] sm:$0xff] %v8783_v47 }
 0x369   : > { %5974 = vmatmul.msk.f32.gmra.mxu0 %vm11082_vm3, %v10945_v16  ;;  %2425 = vmatmul.f32.gmra.mxu1 %v11008_v34 }
 0x36e   : > { %v8794_v15 = vpop.f32.mrf.mxu1 }
 0x36f   : > { %11083 = vst [vmem:[#allocation57_spill] sm:$0xff] %v8794_v15 }
 0x371   : > { %5975 = vmatmul.msk.f32.gmra.mxu0 %vm11084_vm4, %v10945_v16  ;;  %2429 = vmatmul.f32.gmra.mxu1 %v11013_v59  ;;  %v2859_v59 = vld [vmem:[%s7431_s30 + $0x30] sm:$0xff] }
 0x372   : > { %2897 = vmatpush.msrb.mxu2 %v2859_v59  ;;  %v2857_v59 = vld [vmem:[%s7431_s30 + $0x20] sm:$0xff] }
 0x374   : > { %2898 = vmatpush.msrb.mxu2 %v2857_v59 }
 0x376   : > { %v8805_v34 = vpop.f32.mrf.mxu1 }
 0x377   : > { %11085 = vst [vmem:[#allocation40_spill] sm:$0xff] %v8805_v34  ;;  %v8853_v34 = vpop.f32.mrf.mxu0 }
 0x378   : > { %11092 = vst [vmem:[#allocation65_spill] sm:$0xff] %v8853_v34  ;;  %v8909_v34 = vld [vmem:[#allocation2 + $0x58] sm:$0xff] }
 0x379   : > { %5976 = vmatmul.msk.f32.gmra.mxu0 %vm631_vm15, %v10945_v16  ;;  %2433 = vmatmul.f32.gmra.mxu1 %v11018_v5  ;;  %v8825_v5 = vpop.f32.mrf.mxu2  ;;  %11104 = vst [vmem:[#allocation73_spill] sm:$0xff] %v8909_v34 }
 0x37e   : > { %v8813_v29 = vpop.f32.mrf.mxu1 }
 0x37f   : > { %11086 = vst [vmem:[#allocation58_spill] sm:$0xff] %v8813_v29 }
 0x381   : > { %5977 = vmatmul.msk.f32.gmra.mxu0 %vm632_vm14, %v10945_v16  ;;  %2437 = vmatmul.f32.gmra.mxu1 %v11023_v56  ;;  %v8835_v56 = vpop.f32.mrf.mxu2 }
 0x386   : > { %v8823_v52 = vpop.f32.mrf.mxu1 }
 0x387   : > { %11087 = vst [vmem:[#allocation63_spill] sm:$0xff] %v8823_v52 }
 0x389   : > { %5978 = vmatmul.msk.f32.gmra.mxu0 %vm633_vm13, %v10945_v16  ;;  %2441 = vmatmul.f32.gmra.mxu1 %v11028_v50  ;;  %v2868_v50 = vld [vmem:[%s7431_s30 + $0x78] sm:$0xff] }
 0x38a   : > { %2958 = vmatpush.msrb.mxu3 %v2868_v50  ;;  %v8866_v50 = vpop.f32.mrf.mxu0 }
 0x38b   : > { %11096 = vst [vmem:[#allocation71_spill] sm:$0xff] %v8866_v50 }
 0x38e   : > { %v8833_v29 = vpop.f32.mrf.mxu1 }
 0x38f   : > { %11088 = vst [vmem:[#allocation61_spill] sm:$0xff] %v8833_v29  ;;  %v8851_v29 = vpop.f32.mrf.mxu2 }
 0x390   : > { %11091 = vst [vmem:[#allocation67_spill] sm:$0xff] %v8851_v29  ;;  %v2864_v29 = vld [vmem:[%s7431_s30 + $0x58] sm:$0xff] }
 0x391   : > { %5979 = vmatmul.msk.f32.gmra.mxu0 %vm634_vm12, %v10945_v16  ;;  %2445 = vmatmul.f32.gmra.mxu1 %v11034_v36  ;;  %v2855_v36 = vld [vmem:[%s7431_s30 + $0x10] sm:$0xff] }
 0x392   : > { %2899 = vmatpush.msrb.mxu2 %v2855_v36  ;;  %v2853_v36 = vld [vmem:[%s7431_s30] sm:$0xff] }
 0x394   : > { %2900 = vmatpush.msrb.mxu2 %v2853_v36 }
 0x396   : > { %v8844_v52 = vpop.f32.mrf.mxu1  ;;  %3031 = vmatpush.msra.mxu2 %v3030_v60 }
 0x397   : > { %11090 = vst [vmem:[#allocation62_spill] sm:$0xff] %v8844_v52  ;;  %v8862_v59 = vpop.f32.mrf.mxu2  ;;  %v8874_v52 = vpop.f32.mrf.mxu3 }
 0x398   : > { %3032 = vmatpush.msra.mxu2 %v3029_v10 }
 0x399   : > { %5980 = vmatmul.msk.f32.gmra.mxu0 %vm635_vm11, %v10945_v16  ;;  %2449 = vmatmul.f32.gmra.mxu1 %v11040_v17 }
 0x39e   : > { %v8855_v15 = vpop.f32.mrf.mxu1 }
 0x39f   : > { %11093 = vst [vmem:[#allocation48_spill] sm:$0xff] %v8855_v15  ;;  %v8876_v47 = vpop.f32.mrf.mxu2  ;;  %v8891_v50 = vpop.f32.mrf.mxu3 }
 0x3a1   : > { %5981 = vmatmul.msk.f32.gmra.mxu0 %vm11094_vm5, %v10945_v16  ;;  %2453 = vmatmul.f32.gmra.mxu1 %v11046_v46  ;;  %v8878_v46 = vpop.f32.mrf.mxu0 }
 0x3a2   : > { %11099 = vst [vmem:[#allocation52_spill] sm:$0xff] %v8878_v46 }
 0x3a6   : > { %v8864_v17 = vpop.f32.mrf.mxu1 }
 0x3a7   : > { %11095 = vst [vmem:[#allocation66_spill] sm:$0xff] %v8864_v17  ;;  %v2866_v17 = vld [vmem:[%s7431_s30 + $0x68] sm:$0xff]  ;;  %v8893_v46 = vpop.f32.mrf.mxu2 }
 0x3a8   : > { %2959 = vmatpush.msrb.mxu3 %v2866_v17  ;;  %v8904_v17 = vpop.f32.mrf.mxu3 }
 0x3a9   : > { %5982 = vmatmul.msk.f32.gmra.mxu0 %vm11097_vm6, %v10945_v16  ;;  %2457 = vmatmul.f32.gmra.mxu1 %v11052_v2  ;;  %v8886_v2 = vld [vmem:[#allocation2 + $0x30] sm:$0xff]  ;;  %v8914_v28 = vpop.f32.mrf.mxu0 }
 0x3aa   : > { %2901 = vmatmul.f32.vlgmr.msrb.gmra.mxu2 %v8886_v2  ;;  %11105 = vst [vmem:[#allocation56_spill] sm:$0xff] %v8914_v28  ;;  %2960 = vmatpush.msrb.mxu3 %v2864_v29  ;;  %v3028_v28 = vld [vmem:[%s7423_s11 + $0x68] sm:$0xff]  ;;  %v8936_v29 = vld [vmem:[#allocation2 + $0x50] sm:$0xff] }
 0x3ab   : > { %3033 = vmatpush.msra.mxu2 %v3028_v28  ;;  %11108 = vst [vmem:[#allocation76_spill] sm:$0xff] %v8936_v29  ;;  %v8951_v28 = vld [vmem:[#allocation2 + $0x68] sm:$0xff] }
 0x3ac   : > { %11113 = vst [vmem:[#allocation64_spill] sm:$0xff] %v8951_v28 }
 0x3ad   : > { %3034 = vmatpush.msra.mxu2 %v3027_v63  ;;  %v8965_v63 = vld [vmem:[#allocation2 + $0x8] sm:$0xff] }
 0x3ae   : > { %v8872_v15 = vpop.f32.mrf.mxu1  ;;  %11116 = vst [vmem:[#allocation82_spill] sm:$0xff] %v8965_v63 }
 0x3af   : > { %11098 = vst [vmem:[#allocation69_spill] sm:$0xff] %v8872_v15  ;;  %3035 = vmatpush.msra.mxu2 %v3026_v1 }
 0x3b0   : > { %v8921_v55 = vpop.f32.mrf.mxu3 }
 0x3b1   : > { %5983 = vmatmul.msk.f32.gmra.mxu0 %vm11100_vm7, %v10945_v16  ;;  %2461 = vmatmul.f32.gmra.mxu1 %v11058_v37  ;;  %v8896_v37 = vld [vmem:[#allocation2] sm:$0xff]  ;;  %v8933_v23 = vpop.f32.mrf.mxu0 }
 0x3b2   : > { %11102 = vst [vmem:[#allocation75_spill] sm:$0xff] %v8896_v37  ;;  %2904 = vmatmul.f32.gmra.mxu2 %v8896_v37  ;;  %v8925_v37 = vld [vmem:[#allocation2 + $0x18] sm:$0xff] }
 0x3b3   : > { %11106 = vst [vmem:[#allocation74_spill] sm:$0xff] %v8925_v37 }
 0x3b4   : > { %11107 = vst [vmem:[#allocation78_spill] sm:$0xff] %v8933_v23 }
 0x3b6   : > { %v8889_v15 = vpop.f32.mrf.mxu1 }
 0x3b7   : > { %11101 = vst [vmem:[#allocation70_spill] sm:$0xff] %v8889_v15  ;;  %v8906_v15 = vpop.f32.mrf.mxu2 }
 0x3b8   : > { %v8941_v20 = vpop.f32.mrf.mxu3 }
 0x3b9   : > { %2465 = vmatmul.f32.gmra.mxu1 %v11064_v31  ;;  %11110 = vst [vmem:[#allocation77_spill] sm:$0xff] %v8941_v20  ;;  %v8949_v23 = vpop.f32.mrf.mxu0 }
 0x3ba   : > { %2907 = vmatmul.f32.gmra.mxu2 %v8909_v34  ;;  %11112 = vst [vmem:[#allocation79_spill] sm:$0xff] %v8949_v23 }
 0x3be   : > { %v8899_v36 = vpop.f32.mrf.mxu1 }
 0x3bf   : > { %v8923_v60 = vpop.f32.mrf.mxu2 }
 0x3c1   : > { %6000 = vmatmul.msk.f32.gmra.mxu1 %vm11103_vm10, %v10945_v16 }
 0x3c2   : > { %2910 = vmatmul.f32.gmra.mxu2 %v8925_v37 }
 0x3c6   : > { %v8912_v31 = vpop.f32.mrf.mxu1 }
 0x3c7   : > { %v8943_v37 = vpop.f32.mrf.mxu2 }
 0x3c8   : > { %11111 = vst [vmem:[#allocation81_spill] sm:$0xff] %v8943_v37  ;;  %v2862_v37 = vld [vmem:[%s7431_s30 + $0x48] sm:$0xff] }
 0x3c9   : > { %6001 = vmatmul.msk.f32.gmra.mxu1 %vm11073_vm8, %v10945_v16  ;;  %2961 = vmatpush.msrb.mxu3 %v2862_v37  ;;  %v8980_v37 = vld [vmem:[#allocation2 + $0x48] sm:$0xff] }
 0x3ca   : > { %2913 = vmatmul.f32.gmra.mxu2 %v8936_v29  ;;  %11120 = vst [vmem:[#allocation85_spill] sm:$0xff] %v8980_v37 }
 0x3ce   : > { %v8928_v34 = vpop.f32.mrf.mxu1 }
 0x3cf   : > { %v8958_v20 = vpop.f32.mrf.mxu2 }
 0x3d0   : > { %11115 = vst [vmem:[#allocation84_spill] sm:$0xff] %v8958_v20 }
 0x3d1   : > { %6002 = vmatmul.msk.f32.gmra.mxu1 %vm11074_vm9, %v10945_v16 }
 0x3d2   : > { %2916 = vmatmul.f32.gmra.mxu2 %v8951_v28  ;;  %v8970_v28 = vpop.f32.mrf.mxu0 }
 0x3d3   : > { %11118 = vst [vmem:[#allocation83_spill] sm:$0xff] %v8970_v28 }
 0x3d6   : > { %v8939_v10 = vpop.f32.mrf.mxu1 }
 0x3d7   : > { %11109 = vst [vmem:[#allocation60_spill] sm:$0xff] %v8939_v10  ;;  %v8956_v10 = vpop.f32.mrf.mxu3  ;;  %v8977_v42 = vpop.f32.mrf.mxu2 }
 0x3d8   : > { %11119 = vst [vmem:[#allocation87_spill] sm:$0xff] %v8977_v42 }
 0x3d9   : > { %6003 = vmatmul.msk.f32.gmra.mxu1 %vm11076_vm0, %v10945_v16 }
 0x3da   : > { %2919 = vmatmul.f32.gmra.mxu2 %v8965_v63  ;;  %v8985_v63 = vpop.f32.mrf.mxu0 }
 0x3db   : > { %11122 = vst [vmem:[#allocation86_spill] sm:$0xff] %v8985_v63 }
 0x3de   : > { %v8954_v29 = vpop.f32.mrf.mxu1 }
 0x3df   : > { %11114 = vst [vmem:[#allocation80_spill] sm:$0xff] %v8954_v29  ;;  %v8975_v20 = vpop.f32.mrf.mxu3  ;;  %v3025_v29 = vld [vmem:[%s7423_s11 + $0x50] sm:$0xff] }
 0x3e0   : > { %3036 = vmatpush.msra.mxu2 %v3025_v29  ;;  %v8995_v29 = vld [vmem:[#allocation2 + $0x40] sm:$0xff] }
 0x3e1   : > { %6004 = vmatmul.msk.f32.gmra.mxu1 %vm11078_vm1, %v10945_v16  ;;  %11125 = vst [vmem:[#allocation131_spill] sm:$0xff] %v8995_v29 }
 0x3e2   : > { %2922 = vmatmul.f32.gmra.mxu2 %v8980_v37  ;;  %v9003_v63 = vpop.f32.mrf.mxu0 }
 0x3e3   : > { %3037 = vmatpush.msra.mxu2 %v3024_v25  ;;  %11127 = vst [vmem:[#allocation133_spill] sm:$0xff] %v9003_v63  ;;  %v6765_v25 = vld [vmem:[#allocation2 + $0x20] sm:$0xff]  ;;  %v6766_v63 = vld [vmem:[#allocation2 + $0x10] sm:$0xff] }
 0x3e5   : > { %3038 = vmatpush.msra.mxu2 %v3023_v39 }
 0x3e6   : > { %v8968_v23 = vpop.f32.mrf.mxu1 }
 0x3e7   : > { %11117 = vst [vmem:[#allocation68_spill] sm:$0xff] %v8968_v23  ;;  %v8991_v28 = vpop.f32.mrf.mxu3  ;;  %v8993_v23 = vpop.f32.mrf.mxu2  ;;  %3039 = vmatpush.msra.mxu2 %v3022_v14 }
 0x3e8   : > { %11123 = vst [vmem:[#allocation89_spill] sm:$0xff] %v8991_v28 }
 0x3e9   : > { %6005 = vmatmul.msk.f32.gmra.mxu1 %vm11080_vm2, %v10945_v16  ;;  %11124 = vst [vmem:[#allocation88_spill] sm:$0xff] %v8993_v23  ;;  %3040 = vmatpush.msra.mxu2 %v3021_v51  ;;  %v6768_v51 = vld [vmem:[#allocation2 + $0x60] sm:$0xff] }
 0x3ea   : > { %2925 = vmatmul.f32.gmra.mxu2 %v8995_v29  ;;  %v9015_v29 = vpop.f32.mrf.mxu0 }
 0x3eb   : > { %11130 = vst [vmem:[#allocation136_spill] sm:$0xff] %v9015_v29 }
 0x3ee   : > { %v8983_v1 = vpop.f32.mrf.mxu1 }
 0x3ef   : > { %11121 = vst [vmem:[#allocation72_spill] sm:$0xff] %v8983_v1  ;;  %v2860_v1 = vld [vmem:[%s7431_s30 + $0x38] sm:$0xff]  ;;  %v1958_v23 = vpop.f32.mrf.mxu3  ;;  %v9009_v42 = vpop.f32.mrf.mxu2 }
 0x3f0   : > { %2962 = vmatpush.msrb.mxu3 %v2860_v1  ;;  %11129 = vst [vmem:[#allocation135_spill] sm:$0xff] %v9009_v42 }
 0x3f1   : > { %6006 = vmatmul.msk.f32.gmra.mxu1 %vm11082_vm3, %v10945_v16 }
 0x3f2   : > { %2928 = vmatmul.f32.gmra.mxu2 %v6765_v25  ;;  %v9029_v29 = vpop.f32.mrf.mxu0  ;;  %2963 = vmatpush.msrb.mxu3 %v2858_v53  ;;  %v6770_v53 = vld [vmem:[#allocation2 + $0x78] sm:$0xff] }
 0x3f3   : > { %11134 = vst [vmem:[#allocation140_spill] sm:$0xff] %v9029_v29  ;;  %v3019_v29 = vld [vmem:[%s7423_s11 + $0x20] sm:$0xff] }
 0x3f6   : > { %v8998_v37 = vpop.f32.mrf.mxu1 }
 0x3f7   : > { %11126 = vst [vmem:[#allocation132_spill] sm:$0xff] %v8998_v37  ;;  %v9019_v39 = vpop.f32.mrf.mxu3  ;;  %v9021_v25 = vpop.f32.mrf.mxu2 }
 0x3f8   : > { %11132 = vst [vmem:[#allocation138_spill] sm:$0xff] %v9021_v25  ;;  %v3020_v25 = vld [vmem:[%s7423_s11 + $0x28] sm:$0xff] }
 0x3f9   : > { %6007 = vmatmul.msk.f32.gmra.mxu1 %vm11084_vm4, %v10945_v16  ;;  %3041 = vmatpush.msra.mxu2 %v3020_v25 }
 0x3fa   : > { %2931 = vmatmul.f32.gmra.mxu2 %v6766_v63 }
 0x3fb   : > { %3042 = vmatpush.msra.mxu2 %v3019_v29 }
 0x3fe   : > { %v9007_v28 = vpop.f32.mrf.mxu1 }
 0x3ff   : > { %11128 = vst [vmem:[#allocation134_spill] sm:$0xff] %v9007_v28  ;;  %v6767_v28 = vld [vmem:[#allocation2 + $0x38] sm:$0xff]  ;;  %v9034_v63 = vpop.f32.mrf.mxu3 }
 0x401   : > { %6008 = vmatmul.msk.f32.gmra.mxu1 %vm631_vm15, %v10945_v16 }
 0x402   : > { %2934 = vmatmul.f32.gmra.mxu2 %v6767_v28  ;;  %v2245_v28 = vpop.f32.mrf.mxu0 }
 0x406   : > { %v9017_v1 = vpop.f32.mrf.mxu1 }
 0x407   : > { %11131 = vst [vmem:[#allocation137_spill] sm:$0xff] %v9017_v1  ;;  %v9036_v1 = vpop.f32.mrf.mxu2  ;;  %v9046_v40 = vpop.f32.mrf.mxu3 }
 0x408   : > { %11135 = vst [vmem:[#allocation141_spill] sm:$0xff] %v9036_v1  ;;  %v6769_v1 = vld [vmem:[#allocation2 + $0x70] sm:$0xff] }
 0x409   : > { %6009 = vmatmul.msk.f32.gmra.mxu1 %vm632_vm14, %v10945_v16 }
 0x40a   : > { %2937 = vmatmul.f32.gmra.mxu2 %v6768_v51  ;;  %v2249_v25 = vpop.f32.mrf.mxu0 }
 0x40e   : > { %v9027_v14 = vpop.f32.mrf.mxu1 }
 0x40f   : > { %11133 = vst [vmem:[#allocation139_spill] sm:$0xff] %v9027_v14  ;;  %v9048_v14 = vpop.f32.mrf.mxu2  ;;  %v9057_v51 = vpop.f32.mrf.mxu3 }
 0x410   : > { %11137 = vst [vmem:[#allocation143_spill] sm:$0xff] %v9048_v14  ;;  %v1383_v14 = vadd.f32 %v8472_v35, %v8462_v38 }
 0x411   : > { %6010 = vmatmul.msk.f32.gmra.mxu1 %vm633_vm13, %v10945_v16  ;;  %11140 = vst [vmem:[#allocation146_spill] sm:$0xff] %v9057_v51  ;;  %vm11148_vm13 = vmmov %vm11100_vm7 }
 0x412   : > { %2940 = vmatmul.f32.gmra.mxu2 %v6769_v1  ;;  %v9064_v1 = vpop.f32.mrf.mxu0 }
 0x416   : > { %v9040_v37 = vpop.f32.mrf.mxu1 }
 0x417   : > { %11136 = vst [vmem:[#allocation142_spill] sm:$0xff] %v9040_v37  ;;  %v9059_v29 = vpop.f32.mrf.mxu2  ;;  %v9068_v37 = vpop.f32.mrf.mxu3 }
 0x418   : > { %11141 = vst [vmem:[#allocation147_spill] sm:$0xff] %v9059_v29  ;;  %v1653_v29 = vadd.f32 %v8862_v59, %v1379_v43  ;;  %v2182_v59 = vadd.f32 %v8792_v6, %v11149_v18  ;;  %v2856_v43 = vld [vmem:[%s7431_s30 + $0x18] sm:$0xff]  ;;  %v1351_v6 = vadd.f32 %v8407_v8, %v8392_v4 }
 0x419   : > { %6011 = vmatmul.msk.f32.gmra.mxu1 %vm634_vm12, %v10945_v16  ;;  %vm11142_vm12 = vmmov %vm11094_vm5  ;;  %11144 = vst [vmem:[#allocation149_spill] sm:$0xff] %v9068_v37  ;;  %2964 = vmatpush.msrb.mxu3 %v2856_v43 }
 0x41a   : > { %2943 = vmatmul.f32.gmra.mxu2 %v6770_v53  ;;  %v2407_v54 = vadd.f32 %v8899_v36, %v2182_v59  ;;  %v1387_v36 = vadd.f32 %v8480_v49, %v8470_v58  ;;  %v1618_v4 = vadd.f32 %v8776_v57, %v1351_v6  ;;  %v2343_v57 = vadd.f32 %v8745_v3, %v8594_v44  ;;  %v11153_v44 = vld [vmem:[#allocation92_spill] sm:$0xff] }
 0x41b   : > { %v2190_v3 = vadd.f32 %v8815_v19, %v11153_v44 }
 0x41c   : > { %v1663_v58 = vadd.f32 %v8893_v46, %v1387_v36  ;;  %v1391_v46 = vadd.f32 %v8488_v0, %v8478_v7  ;;  %vm2629_vm14 = vcmp.gt.f32.partialorder %v2343_v57, 0.5 }
 0x41e   : > { %v9050_v42 = vpop.f32.mrf.mxu1  ;;  %v1668_v19 = vadd.f32 %v8906_v15, %v1391_v46 }
 0x41f   : > { %11138 = vst [vmem:[#allocation144_spill] sm:$0xff] %v9050_v42  ;;  %v6771_v42 = vld [vmem:[#allocation2 + $0x28] sm:$0xff]  ;;  %v9070_v53 = vpop.f32.mrf.mxu2  ;;  %v9089_v37 = vpop.f32.mrf.mxu3 }
 0x420   : > { %11145 = vst [vmem:[#allocation150_spill] sm:$0xff] %v9070_v53  ;;  %v1959_v53 = vadd.f32 %v1958_v23, %v1653_v29  ;;  %v3015_v23 = vld [vmem:[%s7423_s11] sm:$0xff]  ;;  %v1658_v29 = vadd.f32 %v8876_v47, %v1383_v14 }
 0x421   : > { %6012 = vmatmul.msk.f32.gmra.mxu1 %vm635_vm11, %v10945_v16  ;;  %vm11146_vm11 = vmmov %vm11097_vm6  ;;  %v11150_v47 = vld [vmem:[#allocation91_spill] sm:$0xff] }
 0x422   : > { %2946 = vmatmul.f32.gmra.mxu2 %v6771_v42  ;;  %v9080_v42 = vpop.f32.mrf.mxu0  ;;  %v2246_v51 = vadd.f32 %v2245_v28, %v1959_v53  ;;  %v2645_v28 = vmul.f32 1.442695, %v2407_v54  ;;  %v2186_v14 = vadd.f32 %v8803_v41, %v11150_v47  ;;  %v11157_v47 = vld [vmem:[#allocation104_spill] sm:$0xff] }
 0x424   : > { %6436 = vpow2.f32 %v2645_v28  ;;  %v11155_v28 = vld [vmem:[#allocation102_spill] sm:$0xff] }
 0x426   : > { %v9055_v12 = vpop.f32.mrf.mxu1 }
 0x427   : > { %11139 = vst [vmem:[#allocation145_spill] sm:$0xff] %v9055_v12  ;;  %v9091_v45 = vpop.f32.mrf.mxu2 }
 0x429   : > { %6013 = vmatmul.msk.f32.gmra.mxu1 %vm11142_vm12, %v10945_v16 }
 0x42a   : > { %v9100_v35 = vpop.f32.mrf.mxu0 }
 0x42e   : > { %v9066_v61 = vpop.f32.mrf.mxu1 }
 0x42f   : > { %11143 = vst [vmem:[#allocation148_spill] sm:$0xff] %v9066_v61  ;;  %v3018_v61 = vld [vmem:[%s7423_s11 + $0x18] sm:$0xff]  ;;  %v9109_v18 = vpop.f32.mrf.mxu2 }
 0x430   : > { %3043 = vmatpush.msra.mxu2 %v3018_v61 }
 0x431   : > { %6014 = vmatmul.msk.f32.gmra.mxu1 %vm11146_vm11, %v10945_v16 }
 0x432   : > { %3044 = vmatpush.msra.mxu2 %v3017_v22  ;;  %v1347_v22 = vadd.f32 %v8394_v48, %v8379_v33  ;;  %v2411_v48 = vadd.f32 %v8912_v31, %v2186_v14 }
 0x434   : > { %v1613_v33 = vadd.f32 %v8766_v26, %v1347_v22  ;;  %v9125_v26 = vadd.f32 %v8891_v50, %v1618_v4  ;;  %v2647_v31 = vmul.f32 1.442695, %v2411_v48  ;;  %v11152_v22 = vld [vmem:[#allocation99_spill] sm:$0xff] }
 0x435   : > { %v1363_v6 = vadd.f32 %v8433_v11, %v11152_v22  ;;  %v2415_v11 = vadd.f32 %v8928_v34, %v2190_v3  ;;  %v11163_v22 = vld [vmem:[#allocation93_spill] sm:$0xff] }
 0x436   : > { %v9077_v12 = vpop.f32.mrf.mxu1  ;;  %6438 = vpow2.f32 %v2647_v31  ;;  %v11160_v31 = vld [vmem:[#allocation130_spill] sm:$0xff] }
 0x437   : > { %11147 = vst [vmem:[#allocation151_spill] sm:$0xff] %v9077_v12  ;;  %v3016_v12 = vld [vmem:[%s7423_s11 + $0x8] sm:$0xff]  ;;  %v1633_v34 = vadd.f32 %v8811_v30, %v1363_v6 }
 0x438   : > { %3045 = vmatpush.msra.mxu2 %v3016_v12  ;;  %v1965_v12 = vadd.f32 %v9019_v39, %v1658_v29  ;;  %v1355_v39 = vadd.f32 %v8419_v62, %v8405_v9  ;;  %v6437_v29 = vpop.eup %6436 }
 0x439   : > { %6015 = vmatmul.msk.f32.gmra.mxu1 %vm11148_vm13, %v10945_v16 }
 0x43a   : > { %3046 = vmatpush.msra.mxu2 %v3015_v23  ;;  %v2250_v59 = vadd.f32 %v2249_v25, %v1965_v12  ;;  %v9122_v25 = vadd.f32 %v8874_v52, %v1613_v33  ;;  %v9132_v23 = vpop.f32.mrf.mxu0  ;;  %v1623_v52 = vadd.f32 %v8785_v13, %v1355_v39  ;;  %v11156_v13 = vld [vmem:[#allocation101_spill] sm:$0xff] }
 0x43b   : > { %v1371_v14 = vadd.f32 %v11157_v47, %v11156_v13  ;;  %v11167_v47 = vld [vmem:[#allocation105_spill] sm:$0xff] }
 0x43c   : > { %v9153_v4 = vadd.f32 %v8904_v17, %v1623_v52  ;;  %v6439_v30 = vpop.eup %6438  ;;  %v11161_v52 = vld [vmem:[#allocation107_spill] sm:$0xff] }
 0x43e   : > { %v2470_v61 = vpop.f32.mrf.mxu1 }
 0x43f   : > { %v2471_v38 = vadd.f32 %v2470_v61, %v2246_v51  ;;  %v9113_v51 = vpop.f32.mrf.mxu3  ;;  %v1971_v61 = vadd.f32 %v9034_v63, %v1663_v58  ;;  %v11154_v63 = vld [vmem:[#allocation100_spill] sm:$0xff] }
 0x440   : > { %v1367_v12 = vadd.f32 %v11155_v28, %v11154_v63  ;;  %v11159_v58 = vld [vmem:[#allocation108_spill] sm:$0xff]  ;;  %v11165_v28 = vld [vmem:[#allocation77_spill] sm:$0xff] }
 0x441   : > { %v2533_v16 = vmul.f32 0.5, %v2471_v38  ;;  %v2254_v7 = vadd.f32 %v9064_v1, %v1971_v61  ;;  %v2649_v61 = vmul.f32 1.442695, %v2415_v11 }
 0x442   : > { %v9172_v44 = vpop.f32.mrf.mxu0 }
 0x443   : > { %v2549_v53 = vfloor.f32 %v2533_v16 }
 0x445   : > { %v2565_v43 = vmul.f32 2.0, %v2549_v53  ;;  %v9144_v53 = vpop.f32.mrf.mxu2 }
 0x446   : > { %v2474_v8 = vpop.f32.mrf.mxu1 }
 0x447   : > { %v2581_v16 = vsub.f32 %v2471_v38, %v2565_v43  ;;  %v2475_v49 = vadd.f32 %v2474_v8, %v2250_v59  ;;  %v11151_v38 = vld [vmem:[#allocation98_spill] sm:$0xff]  ;;  %v9150_v59 = vpop.f32.mrf.mxu3 }
 0x448   : > { %v1359_v50 = vadd.f32 %v8426_v32, %v11151_v38  ;;  %v11158_v8 = vld [vmem:[#allocation106_spill] sm:$0xff] }
 0x449   : > { %v2597_v41 = vmul.f32 2.0, %v2581_v16  ;;  %v2534_v54 = vmul.f32 0.5, %v2475_v49  ;;  %v1395_v16 = vadd.f32 %v11159_v58, %v11158_v8  ;;  %v11162_v38 = vld [vmem:[#allocation110_spill] sm:$0xff] }
 0x44a   : > { %v1628_v48 = vadd.f32 %v8801_v21, %v1359_v50  ;;  %v1643_v21 = vadd.f32 %v8835_v56, %v1371_v14  ;;  %v1399_v50 = vadd.f32 %v11162_v38, %v11161_v52 }
 0x44b   : > { %v2613_v9 = vsub.f32 1.0, %v2597_v41  ;;  %v2550_v62 = vfloor.f32 %v2534_v54  ;;  %v2854_v41 = vld [vmem:[%s7431_s30 + $0x8] sm:$0xff]  ;;  %v1638_v54 = vadd.f32 %v8825_v5, %v1367_v12  ;;  %v1673_v5 = vadd.f32 %v8923_v60, %v1395_v16  ;;  %v11170_v16 = vld [vmem:[#allocation39_spill] sm:$0xff]  ;;  %s11399_s30 = sld [smem:[#allocation158_spill]] }
 0x44c   : > { %2965 = vmatpush.msrb.mxu3 %v2854_v41  ;;  %v11164_v60 = vld [vmem:[#allocation60_spill] sm:$0xff]  ;;  %v9179_v12 = vadd.f32 %v11165_v28, %v1633_v34  ;;  %v9187_v13 = vadd.f32 %v8975_v20, %v1643_v21 }
 0x44d   : > { %v2677_v0 = vmul.f32 %v6437_v29, %v2613_v9  ;;  %v2566_v36 = vmul.f32 2.0, %v2550_v62  ;;  %2966 = vmatmul.f32.vlgmr.msrb.gmra.mxu3 %v8886_v2  ;;  %v1977_v9 = vadd.f32 %v9046_v40, %v1668_v19  ;;  %v9175_v40 = vadd.f32 %v8921_v55, %v1628_v48  ;;  %v11166_v55 = vld [vmem:[#allocation103_spill] sm:$0xff] }
 0x44e   : > { %v2478_v32 = vpop.f32.mrf.mxu1  ;;  %v1375_v14 = vadd.f32 %v11167_v47, %v11166_v55 }
 0x44f   : > { %v2693_v43 = vsel %vm2629_vm14, %v2677_v0, 0.0  ;;  %v2582_v33 = vsub.f32 %v2475_v49, %v2566_v36  ;;  %v2479_v1 = vadd.f32 %v2478_v32, %v2254_v7  ;;  %v2347_v49 = vadd.f32 %v8752_v24, %v11160_v31  ;;  %v11168_v32 = vld [vmem:[#allocation146_spill] sm:$0xff]  ;;  %v9193_v48 = vpop.f32.mrf.mxu3  ;;  %v11174_v31 = vld [vmem:[#allocation112_spill] sm:$0xff] }
 0x450   : > { %v6016_v39 = vclamps-f32 %v2693_v43, 0.999999  ;;  %v2194_v24 = vadd.f32 %v8827_v27, %v11163_v22  ;;  %v2258_v6 = vadd.f32 %v9080_v42, %v1977_v9  ;;  %v9181_v42 = vpop.f32.mrf.mxu2  ;;  %v9184_v36 = vadd.f32 %v8956_v10, %v1638_v54  ;;  %v11169_v43 = vld [vmem:[#allocation81_spill] sm:$0xff]  ;;  %v11172_v54 = vld [vmem:[#allocation75_spill] sm:$0xff] }
 0x451   : > { %v2598_v15 = vmul.f32 2.0, %v2582_v33  ;;  %v2535_v57 = vmul.f32 0.5, %v2479_v1  ;;  %vm2630_vm15 = vcmp.gt.f32.partialorder %v2347_v49, 0.5  ;;  %v1983_v19 = vadd.f32 %v11168_v32, %v1673_v5  ;;  %v11175_v9 = vld [vmem:[#allocation111_spill] sm:$0xff]  ;;  %v11178_v5 = vld [vmem:[#allocation44_spill] sm:$0xff]  ;;  %s11400_s5 = smov %s11399_s30  ;;  %s5677_s15 = scalar_lea.hbm %s11399_s30, %s6179_s26 }
 0x452   : > { %v2741_v17 = vadd.f32 1.0, %v6016_v39  ;;  %v2789_v46 = vsub.f32 1.0, %v6016_v39  ;;  %v2419_v3 = vadd.f32 %v11164_v60, %v2194_v24  ;;  %v1678_v33 = vadd.f32 %v11169_v43, %v1399_v50  ;;  %v11171_v39 = vld [vmem:[#allocation53_spill] sm:$0xff]  ;;  %v11184_v43 = vld [vmem:[#allocation115_spill] sm:$0xff]  ;;  %s5680_s3 = sshll.u32 %s5677_s15, 4  ;;  %s5681_s3 = int_to_ptr.hbm [resolvable:$true] %s5680_s3 }
 0x453   : > { %v2614_v62 = vsub.f32 1.0, %v2598_v15  ;;  %v2551_v29 = vfloor.f32 %v2535_v57  ;;  %v2351_v10 = vadd.f32 %v11171_v39, %v11170_v16  ;;  %v11173_v57 = vld [vmem:[#allocation109_spill] sm:$0xff]  ;;  %v2262_v50 = vadd.f32 %v9100_v35, %v1983_v19  ;;  %v11186_v16 = vld [vmem:[#allocation84_spill] sm:$0xff]  ;;  %s6973_s28 = sshra.s32 %s5681_s3, 4  ;;  %s6974_s28 = int_to_ptr.hbm [resolvable:$true] %s6973_s28 }
 0x454   : > { %6440 = vlog2.f32 %v2741_v17  ;;  %v2651_v41 = vmul.f32 1.442695, %v2419_v3  ;;  %v1403_v49 = vadd.f32 %v11174_v31, %v11173_v57  ;;  %v11180_v3 = vld [vmem:[#allocation113_spill] sm:$0xff]  ;;  %v11189_v57 = vld [vmem:[#allocation38_spill] sm:$0xff]  ;;  %s6975_s7 = scalar_lea.hbm %s6974_s28, 128  ;;  %p6980_p7 = scmp.lt.s32.totalorder %s6974_s28, %s11400_s5 }
 0x455   : > { %6442 = vlog2.f32 %v2789_v46  ;;  %v2678_v56 = vmul.f32 %v6439_v30, %v2614_v62  ;;  %v2567_v2 = vmul.f32 2.0, %v2551_v29  ;;  %2969 = vmatmul.f32.gmra.mxu3 %v11172_v54  ;;  %v11176_v62 = vld [vmem:[#allocation114_spill] sm:$0xff]  ;;  %vm2631_vm5 = vcmp.gt.f32.partialorder %v2351_v10, 0.5  ;;  %v11183_v35 = vld [vmem:[#allocation149_spill] sm:$0xff]  ;;  %v11187_v10 = vld [vmem:[#allocation87_spill] sm:$0xff]  ;;  %p6976_p5 = scmp.ne.s32.totalorder %s6974_s28, %s6975_s7 }
 0x456   : > { %6444 = vpow2.f32 %v2649_v61  ;;  %v2482_v63 = vpop.f32.mrf.mxu1  ;;  %v1407_v29 = vadd.f32 %v11176_v62, %v11175_v9  ;;  %v11177_v30 = vld [vmem:[#allocation94_spill] sm:$0xff]  ;;  %v1989_v19 = vadd.f32 %v11183_v35, %v1678_v33  ;;  %v1683_v39 = vadd.f32 %v11186_v16, %v1403_v49 }
 0x457   : > { %v2694_v27 = vsel %vm2630_vm15, %v2678_v56, 0.0  ;;  %v2583_v7 = vsub.f32 %v2479_v1, %v2567_v2  ;;  %v2483_v0 = vadd.f32 %v2482_v63, %v2258_v6  ;;  %v2198_v52 = vadd.f32 %v11178_v5, %v11177_v30  ;;  %v11179_v6 = vld [vmem:[#allocation80_spill] sm:$0xff]  ;;  %v9222_v62 = vpop.f32.mrf.mxu3  ;;  %v542_v16 = vld [vmem:[%s9241_s20 + $0x78] sm:$0xff]  ;;  %p6977_p9 = pnand %p6976_p5, %p7249_p6 }
 0x458   : > { %v6017_v11 = vclamps-f32 %v2694_v27, 0.999999  ;;  %v11181_v63 = vld [vmem:[#allocation116_spill] sm:$0xff]  ;;  %v9208_v27 = vpop.f32.mrf.mxu0  ;;  %v9216_v54 = vpop.f32.mrf.mxu2 }
 0x459   : > { %v2599_v1 = vmul.f32 2.0, %v2583_v7  ;;  %v2536_v8 = vmul.f32 0.5, %v2483_v0  ;;  %v2423_v56 = vadd.f32 %v11179_v6, %v2198_v52  ;;  %v1411_v28 = vadd.f32 %v11181_v63, %v11180_v3  ;;  %v11192_v52 = vld [vmem:[#allocation135_spill] sm:$0xff]  ;;  %v11195_v3 = vld [vmem:[#allocation68_spill] sm:$0xff]  ;;  %p6978_p3 = pneg %p6977_p9 }
 0x45a   : > { %v6441_v58 = vpop.eup %6440  ;;  %v2742_v34 = vadd.f32 1.0, %v6017_v11  ;;  %v2790_v20 = vsub.f32 1.0, %v6017_v11  ;;  %v11182_v11 = vld [vmem:[#allocation67_spill] sm:$0xff] }
 0x45b   : > { %v6443_v15 = vpop.eup %6442  ;;  %v2758_v61 = vmul.f32 0.6931472, %v6441_v58  ;;  %v2615_v17 = vsub.f32 1.0, %v2599_v1  ;;  %v2552_v46 = vfloor.f32 %v2536_v8  ;;  %v1648_v32 = vadd.f32 %v11182_v11, %v1375_v14  ;;  %v11185_v1 = vld [vmem:[#allocation118_spill] sm:$0xff] }
 0x45c   : > { %v6445_v21 = vpop.eup %6444  ;;  %v2806_v38 = vmul.f32 0.6931472, %v6443_v15  ;;  %6446 = vlog2.f32 %v2742_v34  ;;  %v1415_v8 = vadd.f32 %v11185_v1, %v11184_v43  ;;  %v2653_v14 = vmul.f32 1.442695, %v2423_v56 }
 0x45d   : > { %v2679_v22 = vmul.f32 %v6445_v21, %v2615_v17  ;;  %v2568_v24 = vmul.f32 2.0, %v2552_v46  ;;  %6448 = vlog2.f32 %v2790_v20  ;;  %v11190_v17 = vld [vmem:[#allocation73_spill] sm:$0xff]  ;;  %v11191_v21 = vld [vmem:[#allocation88_spill] sm:$0xff]  ;;  %v2266_v56 = vadd.f32 %v9132_v23, %v1989_v19 }
 0x45e   : > { %6450 = vpow2.f32 %v2651_v41  ;;  %v2486_v2 = vpop.f32.mrf.mxu1  ;;  %v2837_v60 = vsub.f32 %v2758_v61, %v2806_v38  ;;  %v1688_v41 = vadd.f32 %v11187_v10, %v1407_v29  ;;  %2972 = vmatmul.f32.gmra.mxu3 %v11190_v17  ;;  %v1693_v9 = vadd.f32 %v11191_v21, %v1411_v28  ;;  %v11200_v21 = vld [vmem:[#allocation96_spill] sm:$0xff] }
 0x45f   : > { %v2695_v7 = vsel %vm2631_vm5, %v2679_v22, 0.0  ;;  %v2584_v55 = vsub.f32 %v2483_v0, %v2568_v24  ;;  %v2487_v47 = vadd.f32 %v2486_v2, %v2262_v50  ;;  %v11188_v0 = vld [vmem:[#allocation43_spill] sm:$0xff]  ;;  %v1698_v38 = vadd.f32 %v11192_v52, %v1415_v8  ;;  %v11194_v22 = vld [vmem:[#allocation65_spill] sm:$0xff] }
 0x460   : > { %v6018_v58 = vclamps-f32 %v2695_v7, 0.999999  ;;  %3047 = vmatmul.f32.vlgmr.msra.gmra.mxu2 %v2837_v60  ;;  %v2355_v31 = vadd.f32 %v11189_v57, %v11188_v0  ;;  %v11193_v50 = vld [vmem:[#allocation95_spill] sm:$0xff]  ;;  %v1995_v8 = vadd.f32 %v9089_v37, %v1683_v39  ;;  %v9234_v23 = vadd.f32 %v9113_v51, %v1688_v41  ;;  %v11197_v41 = vld [vmem:[#allocation41_spill] sm:$0xff]  ;;  %v11199_v57 = vld [vmem:[#allocation74_spill] sm:$0xff]  ;;  %v9258_v17 = vpop.f32.mrf.mxu2 }
 0x461   : > { %v2600_v34 = vmul.f32 2.0, %v2584_v55  ;;  %v2537_v20 = vmul.f32 0.5, %v2487_v47  ;;  %v2202_v24 = vadd.f32 %v11194_v22, %v11193_v50  ;;  %v11196_v55 = vld [vmem:[#allocation89_spill] sm:$0xff]  ;;  %v9237_v19 = vadd.f32 %v9150_v59, %v1693_v9  ;;  %v11198_v59 = vld [vmem:[#allocation54_spill] sm:$0xff]  ;;  %v11201_v9 = vld [vmem:[#allocation71_spill] sm:$0xff] }
 0x462   : > { %v6447_v15 = vpop.eup %6446  ;;  %v2743_v61 = vadd.f32 1.0, %v6018_v58  ;;  %v2791_v33 = vsub.f32 1.0, %v6018_v58  ;;  %vm2632_vm6 = vcmp.gt.f32.partialorder %v2355_v31, 0.5  ;;  %v9230_v11 = vadd.f32 %v11196_v55, %v1648_v32  ;;  %v11202_v22 = vld [vmem:[#allocation72_spill] sm:$0xff]  ;;  %v11205_v55 = vld [vmem:[#allocation119_spill] sm:$0xff] }
 0x463   : > { %v6449_v46 = vpop.eup %6448  ;;  %v2616_v49 = vsub.f32 1.0, %v2600_v34  ;;  %v2553_v29 = vfloor.f32 %v2537_v20  ;;  %v2760_v30 = vmul.f32 0.6931472, %v6447_v15  ;;  %v2427_v63 = vadd.f32 %v11195_v3, %v2202_v24 }
 0x464   : > { %v6451_v5 = vpop.eup %6450  ;;  %v2808_v6 = vmul.f32 0.6931472, %v6449_v46  ;;  %6452 = vlog2.f32 %v2743_v61  ;;  %v9245_v32 = vadd.f32 %v9193_v48, %v1698_v38  ;;  %v9249_v39 = vand.u32 4294901760, %v542_v16 }
 0x465   : > { %v2680_v2 = vmul.f32 %v6451_v5, %v2616_v49  ;;  %v2569_v60 = vmul.f32 2.0, %v2553_v29  ;;  %6454 = vlog2.f32 %v2791_v33  ;;  %v2359_v34 = vadd.f32 %v11198_v59, %v11197_v41  ;;  %v9264_v5 = vpop.f32.mrf.mxu3 }
 0x466   : > { %6456 = vpow2.f32 %v2653_v14  ;;  %v2490_v28 = vpop.f32.mrf.mxu1  ;;  %v2838_v7 = vsub.f32 %v2760_v30, %v2808_v6  ;;  %v2655_v20 = vmul.f32 1.442695, %v2427_v63  ;;  %2975 = vmatmul.f32.gmra.mxu3 %v11199_v57  ;;  %v9256_v33 = vsub.f32 %v542_v16, %v9249_v39  ;;  %4284 = vmatpush.msrb.mxu1 %v9249_v39  ;;  %v11203_v63 = vld [vmem:[#allocation117_spill] sm:$0xff] }
 0x467   : > { %v2696_v35 = vsel %vm2632_vm6, %v2680_v2, 0.0  ;;  %v2585_v43 = vsub.f32 %v2487_v47, %v2569_v60  ;;  %v2491_v1 = vadd.f32 %v2490_v28, %v2266_v56  ;;  %v9247_v47 = vpop.f32.mrf.mxu0  ;;  %3289 = vmatpush.msra.mxu3 %v9249_v39  ;;  %v2206_v49 = vadd.f32 %v11201_v9, %v11200_v21  ;;  %v11204_v28 = vld [vmem:[#allocation120_spill] sm:$0xff] }
 0x468   : > { %v6019_v58 = vclamps-f32 %v2696_v35, 0.999999  ;;  %3050 = vmatmul.f32.gmra.mxu2 %v2838_v7  ;;  %v2270_v29 = vadd.f32 %v9172_v44, %v1995_v8  ;;  %v3707_v50 = vand.u32 4294901760, %v9256_v33  ;;  %3996 = vmatpush.msra.mxu0 %v9256_v33  ;;  %vm2633_vm7 = vcmp.gt.f32.partialorder %v2359_v34, 0.5  ;;  %v11206_v35 = vld [vmem:[#allocation122_spill] sm:$0xff]  ;;  %v11207_v8 = vld [vmem:[#allocation121_spill] sm:$0xff] }
 0x469   : > { %v2601_v10 = vmul.f32 2.0, %v2585_v43  ;;  %v2538_v37 = vmul.f32 0.5, %v2491_v1  ;;  %v2431_v24 = vadd.f32 %v11202_v22, %v2206_v49  ;;  %v1419_v7 = vadd.f32 %v11204_v28, %v11203_v63  ;;  %v11214_v63 = vld [vmem:[#allocation132_spill] sm:$0xff] }
 0x46a   : > { %v6453_v51 = vpop.eup %6452  ;;  %v2744_v15 = vadd.f32 1.0, %v6019_v58  ;;  %v2792_v0 = vsub.f32 1.0, %v6019_v58  ;;  %v3708_v3 = vsub.f32 %v9256_v33, %v3707_v50  ;;  %v1423_v43 = vadd.f32 %v11206_v35, %v11205_v55  ;;  %v11208_v58 = vld [vmem:[#allocation124_spill] sm:$0xff] }
 0x46b   : > { %v6455_v31 = vpop.eup %6454  ;;  %v2617_v14 = vsub.f32 1.0, %v2601_v10  ;;  %v2554_v61 = vfloor.f32 %v2538_v37  ;;  %v2762_v48 = vmul.f32 0.6931472, %v6453_v51  ;;  %v1427_v16 = vadd.f32 %v11208_v58, %v11207_v8  ;;  %v541_v37 = vld [vmem:[%s9241_s20 + $0x70] sm:$0xff] }
 0x46c   : > { %v6457_v46 = vpop.eup %6456  ;;  %v2810_v30 = vmul.f32 0.6931472, %v6455_v31  ;;  %6458 = vlog2.f32 %v2744_v15  ;;  %v9279_v59 = vand.u32 4294901760, %v541_v37  ;;  %v11210_v15 = vld [vmem:[#allocation59_spill] sm:$0xff]  ;;  %v2657_v57 = vmul.f32 1.442695, %v2431_v24 }
 0x46d   : > { %v2681_v52 = vmul.f32 %v6457_v46, %v2617_v14  ;;  %v2570_v38 = vmul.f32 2.0, %v2554_v61  ;;  %6460 = vlog2.f32 %v2792_v0  ;;  %v11211_v61 = vld [vmem:[#allocation76_spill] sm:$0xff]  ;;  %v2274_v24 = vadd.f32 %v9208_v27, %v9234_v23  ;;  %v2030_v23 = vpop.f32.mrf.mxu3 }
 0x46e   : > { %6462 = vpow2.f32 %v2655_v20  ;;  %v2494_v6 = vpop.f32.mrf.mxu1  ;;  %v2839_v56 = vsub.f32 %v2762_v48, %v2810_v30  ;;  %v11209_v20 = vld [vmem:[#allocation35_spill] sm:$0xff]  ;;  %2978 = vmatmul.f32.gmra.mxu3 %v11211_v61  ;;  %4286 = vmatpush.msrb.mxu1 %v9279_v59 }
 0x46f   : > { %v2697_v2 = vsel %vm2633_vm7, %v2681_v52, 0.0  ;;  %v2586_v44 = vsub.f32 %v2491_v1, %v2570_v38  ;;  %v2495_v60 = vadd.f32 %v2494_v6, %v2270_v29  ;;  %v3709_v1 = vand.u32 4294901760, %v3708_v3  ;;  %v9284_v46 = vpop.f32.mrf.mxu0  ;;  %3291 = vmatpush.msra.mxu3 %v9279_v59  ;;  %v11212_v52 = vld [vmem:[#allocation97_spill] sm:$0xff]  ;;  %v11213_v38 = vld [vmem:[#allocation52_spill] sm:$0xff]  ;;  %v9296_v3 = vpop.f32.mrf.mxu2 }
 0x470   : > { %v6020_v10 = vclamps-f32 %v2697_v2, 0.999999  ;;  %3053 = vmatmul.f32.gmra.mxu2 %v2839_v56  ;;  %v2363_v0 = vadd.f32 %v11210_v15, %v11209_v20  ;;  %v9288_v29 = vsub.f32 %v541_v37, %v9279_v59  ;;  %v2210_v22 = vadd.f32 %v11213_v38, %v11212_v52  ;;  %v11215_v37 = vld [vmem:[#allocation138_spill] sm:$0xff] }
 0x471   : > { %v2602_v51 = vmul.f32 2.0, %v2586_v44  ;;  %v2539_v41 = vmul.f32 0.5, %v2495_v60  ;;  %3710 = vmatpush.msrb.mxu2 %v3709_v1 }
 0x472   : > { %v6459_v34 = vpop.eup %6458  ;;  %v2745_v31 = vadd.f32 1.0, %v6020_v10  ;;  %v2793_v14 = vsub.f32 1.0, %v6020_v10  ;;  %v3713_v44 = vand.u32 4294901760, %v9288_v29  ;;  %3999 = vmatpush.msra.mxu0 %v9288_v29  ;;  %vm2634_vm10 = vcmp.gt.f32.partialorder %v2363_v0, 0.5  ;;  %v540_v0 = vld [vmem:[%s9241_s20 + $0x68] sm:$0xff] }
 0x473   : > { %v6461_v48 = vpop.eup %6460  ;;  %v2618_v21 = vsub.f32 1.0, %v2602_v51  ;;  %v2555_v9 = vfloor.f32 %v2539_v41  ;;  %v2764_v49 = vmul.f32 0.6931472, %v6459_v34  ;;  %v2435_v28 = vadd.f32 %v11214_v63, %v2210_v22  ;;  %v11216_v41 = vld [vmem:[#allocation141_spill] sm:$0xff]  ;;  %v11217_v34 = vld [vmem:[#allocation143_spill] sm:$0xff] }
 0x474   : > { %v6463_v30 = vpop.eup %6462  ;;  %v2812_v6 = vmul.f32 0.6931472, %v6461_v48  ;;  %6464 = vlog2.f32 %v2745_v31  ;;  %v3714_v10 = vsub.f32 %v9288_v29, %v3713_v44  ;;  %v1703_v51 = vadd.f32 %v11215_v37, %v1419_v7  ;;  %v11218_v48 = vld [vmem:[#allocation42_spill] sm:$0xff]  ;;  %v11220_v7 = vld [vmem:[#allocation64_spill] sm:$0xff] }
 0x475   : > { %v2682_v56 = vmul.f32 %v6463_v30, %v2618_v21  ;;  %v2571_v2 = vmul.f32 2.0, %v2555_v9  ;;  %6466 = vlog2.f32 %v2793_v14  ;;  %v1708_v1 = vadd.f32 %v11216_v41, %v1423_v43  ;;  %v11219_v21 = vld [vmem:[#allocation57_spill] sm:$0xff] }
 0x476   : > { %6468 = vpow2.f32 %v2657_v57  ;;  %v2498_v55 = vpop.f32.mrf.mxu1  ;;  %v2840_v27 = vsub.f32 %v2764_v49, %v2812_v6  ;;  %v1713_v20 = vadd.f32 %v11217_v34, %v1427_v16  ;;  %v3715_v14 = vand.u32 4294901760, %v3714_v10  ;;  %2981 = vmatmul.f32.gmra.mxu3 %v11220_v7  ;;  %v11223_v7 = vld [vmem:[#allocation47_spill] sm:$0xff] }
 0x477   : > { %v2698_v35 = vsel %vm2634_vm10, %v2682_v56, 0.0  ;;  %v2587_v8 = vsub.f32 %v2495_v60, %v2571_v2  ;;  %v2499_v58 = vadd.f32 %v2498_v55, %v2274_v24  ;;  %v9307_v61 = vand.u32 4294901760, %v540_v0  ;;  %v11221_v56 = vld [vmem:[#allocation56_spill] sm:$0xff]  ;;  %v9321_v55 = vpop.f32.mrf.mxu0 }
 0x478   : > { %v6021_v15 = vclamps-f32 %v2698_v35, 0.999999  ;;  %3056 = vmatmul.f32.gmra.mxu2 %v2840_v27  ;;  %v2367_v9 = vadd.f32 %v11219_v21, %v11218_v48  ;;  %v2659_v49 = vmul.f32 1.442695, %v2435_v28  ;;  %v2214_v2 = vadd.f32 %v11221_v56, %v9122_v25  ;;  %v11222_v25 = vld [vmem:[#allocation134_spill] sm:$0xff]  ;;  %v539_v48 = vld [vmem:[%s9241_s20 + $0x60] sm:$0xff]  ;;  %v9340_v21 = vpop.f32.mrf.mxu3 }
 0x479   : > { %v2603_v57 = vmul.f32 2.0, %v2587_v8  ;;  %v2540_v31 = vmul.f32 0.5, %v2499_v58  ;;  %3716 = vmatpush.msrb.mxu2 %v3715_v14  ;;  %3293 = vmatpush.msra.mxu3 %v9307_v61  ;;  %v9314_v24 = vsub.f32 %v540_v0, %v9307_v61  ;;  %v2278_v63 = vadd.f32 %v9247_v47, %v9237_v19  ;;  %v9329_v0 = vpop.f32.mrf.mxu2 }
 0x47a   : > { %v6465_v60 = vpop.eup %6464  ;;  %v2746_v30 = vadd.f32 1.0, %v6021_v15  ;;  %v2794_v52 = vsub.f32 1.0, %v6021_v15  ;;  %4288 = vmatpush.msrb.mxu1 %v9307_v61  ;;  %vm2635_vm8 = vcmp.gt.f32.partialorder %v2367_v9, 0.5  ;;  %v2439_v10 = vadd.f32 %v11222_v25, %v2214_v2  ;;  %v11226_v2 = vld [vmem:[#allocation78_spill] sm:$0xff] }
 0x47b   : > { %v6467_v43 = vpop.eup %6466  ;;  %v2619_v38 = vsub.f32 1.0, %v2603_v57  ;;  %v2556_v16 = vfloor.f32 %v2540_v31  ;;  %v2766_v22 = vmul.f32 0.6931472, %v6465_v60  ;;  %v10811_v8 = vand.u32 4294901760, %v9314_v24  ;;  %4002 = vmatpush.msra.mxu0 %v9314_v24 }
 0x47c   : > { %v6469_v6 = vpop.eup %6468  ;;  %v2814_v28 = vmul.f32 0.6931472, %v6467_v43  ;;  %6470 = vlog2.f32 %v2746_v30  ;;  %v9332_v57 = vadd.f32 %v9222_v62, %v1703_v51  ;;  %v9335_v31 = vadd.f32 %v9264_v5, %v1708_v1  ;;  %v11224_v43 = vld [vmem:[#allocation40_spill] sm:$0xff]  ;;  %v11225_v1 = vld [vmem:[#allocation82_spill] sm:$0xff] }
 0x47d   : > { %v2683_v27 = vmul.f32 %v6469_v6, %v2619_v38  ;;  %v2572_v35 = vmul.f32 2.0, %v2556_v16  ;;  %6472 = vlog2.f32 %v2794_v52  ;;  %v3720_v15 = vsub.f32 %v9314_v24, %v10811_v8 }
 0x47e   : > { %6474 = vpow2.f32 %v2659_v49  ;;  %v2502_v37 = vpop.f32.mrf.mxu1  ;;  %v2841_v19 = vsub.f32 %v2766_v22, %v2814_v28  ;;  %v9337_v14 = vadd.f32 %v2030_v23, %v1713_v20  ;;  %v9342_v30 = vand.u32 4294901760, %v539_v48  ;;  %2984 = vmatmul.f32.gmra.mxu3 %v11225_v1 }
 0x47f   : > { %v2699_v47 = vsel %vm2635_vm8, %v2683_v27, 0.0  ;;  %v2588_v41 = vsub.f32 %v2499_v58, %v2572_v35  ;;  %v2503_v34 = vadd.f32 %v2502_v37, %v2278_v63  ;;  %v3721_v49 = vand.u32 4294901760, %v3720_v15  ;;  %v11227_v37 = vld [vmem:[#allocation137_spill] sm:$0xff] }
 0x480   : > { %v6022_v60 = vclamps-f32 %v2699_v47, 0.999999  ;;  %3059 = vmatmul.f32.gmra.mxu2 %v2841_v19  ;;  %v2371_v62 = vadd.f32 %v11224_v43, %v11223_v7  ;;  %v2661_v51 = vmul.f32 1.442695, %v2439_v10  ;;  %3295 = vmatpush.msra.mxu3 %v9342_v30  ;;  %v9349_v6 = vsub.f32 %v539_v48, %v9342_v30  ;;  %v11228_v48 = vld [vmem:[#allocation123_spill] sm:$0xff] }
 0x481   : > { %v2604_v58 = vmul.f32 2.0, %v2588_v41  ;;  %v2541_v9 = vmul.f32 0.5, %v2503_v34  ;;  %3722 = vmatpush.msrb.mxu2 %v3721_v49  ;;  %v2218_v63 = vadd.f32 %v11226_v2, %v9125_v26  ;;  %v2282_v28 = vadd.f32 %v9284_v46, %v9245_v32  ;;  %4290 = vmatpush.msrb.mxu1 %v9342_v30  ;;  %v9359_v41 = vpop.f32.mrf.mxu0  ;;  %v11230_v49 = vld [vmem:[#allocation125_spill] sm:$0xff]  ;;  %v11232_v43 = vld [vmem:[#allocation127_spill] sm:$0xff]  ;;  %v11235_v2 = vld [vmem:[#allocation58_spill] sm:$0xff] }
 0x482   : > { %v6471_v52 = vpop.eup %6470  ;;  %v2747_v38 = vadd.f32 1.0, %v6022_v60  ;;  %v2795_v5 = vsub.f32 1.0, %v6022_v60  ;;  %v10810_v10 = vand.u32 4294901760, %v9349_v6  ;;  %4005 = vmatpush.msra.mxu0 %v9349_v6  ;;  %vm2636_vm9 = vcmp.gt.f32.partialorder %v2371_v62, 0.5  ;;  %v11233_v62 = vld [vmem:[#allocation129_spill] sm:$0xff] }
 0x483   : > { %v6473_v23 = vpop.eup %6472  ;;  %v2620_v20 = vsub.f32 1.0, %v2604_v58  ;;  %v2557_v16 = vfloor.f32 %v2541_v9  ;;  %v2768_v22 = vmul.f32 0.6931472, %v6471_v52  ;;  %v2443_v19 = vadd.f32 %v11227_v37, %v2218_v63  ;;  %v11229_v58 = vld [vmem:[#allocation126_spill] sm:$0xff]  ;;  %v11231_v52 = vld [vmem:[#allocation128_spill] sm:$0xff] }
 0x484   : > { %v6475_v56 = vpop.eup %6474  ;;  %v2816_v27 = vmul.f32 0.6931472, %v6473_v23  ;;  %6476 = vlog2.f32 %v2747_v38  ;;  %v3726_v60 = vsub.f32 %v9349_v6, %v10810_v10  ;;  %v1431_v9 = vadd.f32 %v11229_v58, %v11228_v48  ;;  %v11237_v58 = vld [vmem:[#allocation79_spill] sm:$0xff]  ;;  %v11260_v10 = vld [vmem:[#allocation140_spill] sm:$0xff] }
 0x485   : > { %v2684_v35 = vmul.f32 %v6475_v56, %v2620_v20  ;;  %v2573_v25 = vmul.f32 2.0, %v2557_v16  ;;  %6478 = vlog2.f32 %v2795_v5  ;;  %v1435_v7 = vadd.f32 %v11231_v52, %v11230_v49  ;;  %v538_v5 = vld [vmem:[%s9241_s20 + $0x58] sm:$0xff]  ;;  %v9373_v16 = vpop.f32.mrf.mxu2  ;;  %v11234_v56 = vld [vmem:[#allocation45_spill] sm:$0xff] }
 0x486   : > { %6480 = vpow2.f32 %v2661_v51  ;;  %v2506_v26 = vpop.f32.mrf.mxu1  ;;  %v2842_v47 = vsub.f32 %v2768_v22, %v2816_v27  ;;  %v1439_v51 = vadd.f32 %v11233_v62, %v11232_v43  ;;  %v9371_v20 = vand.u32 4294901760, %v538_v5 }
 0x487   : > { %v2700_v32 = vsel %vm2636_vm9, %v2684_v35, 0.0  ;;  %v2589_v46 = vsub.f32 %v2503_v34, %v2573_v25  ;;  %v2507_v15 = vadd.f32 %v2506_v26, %v2282_v28  ;;  %v3727_v34 = vand.u32 4294901760, %v3726_v60  ;;  %v11236_v25 = vld [vmem:[#allocation85_spill] sm:$0xff]  ;;  %v9378_v26 = vpop.f32.mrf.mxu3 }
 0x488   : > { %v6023_v38 = vclamps-f32 %v2700_v32, 0.999999  ;;  %3062 = vmatmul.f32.gmra.mxu2 %v2842_v47  ;;  %v2375_v63 = vadd.f32 %v11235_v2, %v11234_v56  ;;  %v2663_v28 = vmul.f32 1.442695, %v2443_v19  ;;  %2987 = vmatmul.f32.gmra.mxu3 %v11236_v25  ;;  %v9382_v60 = vsub.f32 %v538_v5, %v9371_v20  ;;  %v11238_v5 = vld [vmem:[#allocation139_spill] sm:$0xff] }
 0x489   : > { %v2605_v1 = vmul.f32 2.0, %v2589_v46  ;;  %v2542_v23 = vmul.f32 0.5, %v2507_v15  ;;  %3728 = vmatpush.msrb.mxu2 %v3727_v34  ;;  %3297 = vmatpush.msra.mxu3 %v9371_v20  ;;  %v2222_v19 = vadd.f32 %v11237_v58, %v9153_v4  ;;  %v2286_v49 = vadd.f32 %v9321_v55, %v9332_v57  ;;  %v11239_v56 = vld [vmem:[#allocation147_spill] sm:$0xff]  ;;  %v11241_v58 = vld [vmem:[#allocation36_spill] sm:$0xff] }
 0x48a   : > { %v6477_v22 = vpop.eup %6476  ;;  %v2748_v27 = vadd.f32 1.0, %v6023_v38  ;;  %v2796_v35 = vsub.f32 1.0, %v6023_v38  ;;  %4292 = vmatpush.msrb.mxu1 %v9371_v20  ;;  %v10809_v38 = vand.u32 4294901760, %v9382_v60  ;;  %4008 = vmatpush.msra.mxu0 %v9382_v60  ;;  %vm2637_vm0 = vcmp.gt.f32.partialorder %v2375_v63, 0.5  ;;  %v537_v63 = vld [vmem:[%s9241_s20 + $0x50] sm:$0xff] }
 0x48b   : > { %v6479_v37 = vpop.eup %6478  ;;  %v2621_v47 = vsub.f32 1.0, %v2605_v1  ;;  %v2558_v32 = vfloor.f32 %v2542_v23  ;;  %v2770_v46 = vmul.f32 0.6931472, %v6477_v22  ;;  %v2447_v1 = vadd.f32 %v11238_v5, %v2222_v19  ;;  %v11242_v19 = vld [vmem:[#allocation63_spill] sm:$0xff] }
 0x48c   : > { %v6481_v48 = vpop.eup %6480  ;;  %v2818_v52 = vmul.f32 0.6931472, %v6479_v37  ;;  %6482 = vlog2.f32 %v2748_v27  ;;  %v3732_v22 = vsub.f32 %v9382_v60, %v10809_v38  ;;  %v1718_v2 = vadd.f32 %v11239_v56, %v1431_v9  ;;  %v11240_v27 = vld [vmem:[#allocation150_spill] sm:$0xff] }
 0x48d   : > { %v2685_v43 = vmul.f32 %v6481_v48, %v2621_v47  ;;  %v2574_v62 = vmul.f32 2.0, %v2558_v32  ;;  %6484 = vlog2.f32 %v2796_v35  ;;  %v1723_v35 = vadd.f32 %v11240_v27, %v1435_v7  ;;  %v11243_v7 = vld [vmem:[#allocation131_spill] sm:$0xff] }
 0x48e   : > { %6486 = vpow2.f32 %v2663_v28  ;;  %v2510_v4 = vpop.f32.mrf.mxu1  ;;  %v2843_v23 = vsub.f32 %v2770_v46, %v2818_v52  ;;  %v1728_v25 = vadd.f32 %v9091_v45, %v1439_v51  ;;  %v9399_v28 = vpop.f32.mrf.mxu0  ;;  %v3733_v46 = vand.u32 4294901760, %v3732_v22 }
 0x48f   : > { %v2701_v34 = vsel %vm2637_vm0, %v2685_v43, 0.0  ;;  %v2590_v55 = vsub.f32 %v2507_v15, %v2574_v62  ;;  %v2511_v57 = vadd.f32 %v2510_v4, %v2286_v49  ;;  %v9401_v15 = vand.u32 4294901760, %v537_v63  ;;  %v9407_v4 = vpop.f32.mrf.mxu2  ;;  %v2048_v27 = vpop.f32.mrf.mxu3 }
 0x490   : > { %v6024_v37 = vclamps-f32 %v2701_v34, 0.999999  ;;  %3065 = vmatmul.f32.gmra.mxu2 %v2843_v23  ;;  %v2379_v49 = vadd.f32 %v11242_v19, %v11241_v58  ;;  %v2665_v52 = vmul.f32 1.442695, %v2447_v1  ;;  %2990 = vmatmul.f32.gmra.mxu3 %v11243_v7  ;;  %v2290_v22 = vadd.f32 %v9359_v41, %v9335_v31 }
 0x491   : > { %v2606_v47 = vmul.f32 2.0, %v2590_v55  ;;  %v2543_v32 = vmul.f32 0.5, %v2511_v57  ;;  %3734 = vmatpush.msrb.mxu2 %v3733_v46  ;;  %3299 = vmatpush.msra.mxu3 %v9401_v15  ;;  %v9410_v23 = vsub.f32 %v537_v63, %v9401_v15  ;;  %v11244_v55 = vld [vmem:[#allocation83_spill] sm:$0xff]  ;;  %v11245_v63 = vld [vmem:[#allocation142_spill] sm:$0xff]  ;;  %v9429_v7 = vadd.f32 %v2048_v27, %v1728_v25 }
 0x492   : > { %v6483_v48 = vpop.eup %6482  ;;  %v2749_v9 = vadd.f32 1.0, %v6024_v37  ;;  %v2797_v43 = vsub.f32 1.0, %v6024_v37  ;;  %v2226_v1 = vadd.f32 %v11244_v55, %v9175_v40  ;;  %4294 = vmatpush.msrb.mxu1 %v9401_v15  ;;  %vm2638_vm1 = vcmp.gt.f32.partialorder %v2379_v49, 0.5  ;;  %v11247_v55 = vld [vmem:[#allocation61_spill] sm:$0xff] }
 0x493   : > { %v6485_v45 = vpop.eup %6484  ;;  %v2622_v51 = vsub.f32 1.0, %v2606_v47  ;;  %v2559_v62 = vfloor.f32 %v2543_v32  ;;  %v2772_v5 = vmul.f32 0.6931472, %v6483_v48  ;;  %v10808_v32 = vand.u32 4294901760, %v9410_v23  ;;  %4011 = vmatpush.msra.mxu0 %v9410_v23 }
 0x494   : > { %v6487_v34 = vpop.eup %6486  ;;  %v2820_v56 = vmul.f32 0.6931472, %v6485_v45  ;;  %6488 = vlog2.f32 %v2749_v9  ;;  %v2451_v40 = vadd.f32 %v11245_v63, %v2226_v1  ;;  %v9424_v9 = vadd.f32 %v9340_v21, %v1718_v2 }
 0x495   : > { %v2686_v37 = vmul.f32 %v6487_v34, %v2622_v51  ;;  %v2575_v47 = vmul.f32 2.0, %v2559_v62  ;;  %6490 = vlog2.f32 %v2797_v43  ;;  %v3738_v19 = vsub.f32 %v9410_v23, %v10808_v32  ;;  %v11246_v34 = vld [vmem:[#allocation46_spill] sm:$0xff] }
 0x496   : > { %6492 = vpow2.f32 %v2665_v52  ;;  %v2514_v46 = vpop.f32.mrf.mxu1  ;;  %v2844_v48 = vsub.f32 %v2772_v5, %v2820_v56  ;;  %v9427_v43 = vadd.f32 %v9378_v26, %v1723_v35  ;;  %v536_v52 = vld [vmem:[%s9241_s20 + $0x48] sm:$0xff]  ;;  %v2383_v1 = vadd.f32 %v11247_v55, %v11246_v34  ;;  %v6772_v56 = vld [vmem:[#allocation2 + $0x20] sm:$0xff]  ;;  %v2297_v35 = vpop.f32.mrf.mxu0 }
 0x497   : > { %v2702_v31 = vsel %vm2638_vm1, %v2686_v37, 0.0  ;;  %v2591_v41 = vsub.f32 %v2511_v57, %v2575_v47  ;;  %v2515_v58 = vadd.f32 %v2514_v46, %v2290_v22  ;;  %v3739_v62 = vand.u32 4294901760, %v3738_v19  ;;  %v11248_v46 = vld [vmem:[#allocation86_spill] sm:$0xff]  ;;  %v11250_v55 = vld [vmem:[#allocation51_spill] sm:$0xff] }
 0x498   : > { %v6025_v49 = vclamps-f32 %v2702_v31, 0.999999  ;;  %3068 = vmatmul.f32.gmra.mxu2 %v2844_v48  ;;  %v9432_v57 = vand.u32 4294901760, %v536_v52  ;;  %v2667_v22 = vmul.f32 1.442695, %v2451_v40  ;;  %2993 = vmatmul.f32.gmra.mxu3 %v6772_v56  ;;  %v2230_v48 = vadd.f32 %v11248_v46, %v9179_v12  ;;  %v11249_v12 = vld [vmem:[#allocation144_spill] sm:$0xff] }
 0x499   : > { %v2607_v45 = vmul.f32 2.0, %v2591_v41  ;;  %v2544_v51 = vmul.f32 0.5, %v2515_v58  ;;  %3740 = vmatpush.msrb.mxu2 %v3739_v62  ;;  %v2294_v40 = vadd.f32 %v9399_v28, %v9337_v14  ;;  %vm2639_vm2 = vcmp.gt.f32.partialorder %v2383_v1, 0.5  ;;  %v11252_v56 = vld [vmem:[#allocation133_spill] sm:$0xff]  ;;  %v11254_v1 = vld [vmem:[#allocation48_spill] sm:$0xff] }
 0x49a   : > { %v6489_v5 = vpop.eup %6488  ;;  %v2750_v21 = vadd.f32 1.0, %v6025_v49  ;;  %v2798_v2 = vsub.f32 1.0, %v6025_v49  ;;  %3301 = vmatpush.msra.mxu3 %v9432_v57  ;;  %v9438_v47 = vsub.f32 %v536_v52, %v9432_v57  ;;  %4296 = vmatpush.msrb.mxu1 %v9432_v57  ;;  %v9445_v49 = vpop.f32.mrf.mxu2  ;;  %v2455_v52 = vadd.f32 %v11249_v12, %v2230_v48 }
 0x49b   : > { %v6491_v26 = vpop.eup %6490  ;;  %v2623_v25 = vsub.f32 1.0, %v2607_v45  ;;  %v2560_v27 = vfloor.f32 %v2544_v51  ;;  %v2774_v37 = vmul.f32 0.6931472, %v6489_v5  ;;  %v2242_v8 = vadd.f32 %v11260_v10, %v9230_v11  ;;  %v11261_v11 = vld [vmem:[#allocation151_spill] sm:$0xff] }
 0x49c   : > { %v6493_v63 = vpop.eup %6492  ;;  %v2822_v31 = vmul.f32 0.6931472, %v6491_v26  ;;  %6494 = vlog2.f32 %v2750_v21  ;;  %v10807_v45 = vand.u32 4294901760, %v9438_v47  ;;  %4014 = vmatpush.msra.mxu0 %v9438_v47  ;;  %v11251_v21 = vld [vmem:[#allocation62_spill] sm:$0xff]  ;;  %v2234_v26 = vadd.f32 %v11252_v56, %v9184_v36 }
 0x49d   : > { %v2687_v41 = vmul.f32 %v6493_v63, %v2623_v25  ;;  %v2576_v19 = vmul.f32 2.0, %v2560_v27  ;;  %6496 = vlog2.f32 %v2798_v2  ;;  %v2387_v2 = vadd.f32 %v11251_v21, %v11250_v55  ;;  %v11253_v25 = vld [vmem:[#allocation49_spill] sm:$0xff] }
 0x49e   : > { %6498 = vpow2.f32 %v2667_v22  ;;  %v2518_v51 = vpop.f32.mrf.mxu1  ;;  %v2845_v14 = vsub.f32 %v2774_v37, %v2822_v31  ;;  %v3744_v34 = vsub.f32 %v9438_v47, %v10807_v45  ;;  %v9459_v22 = vadd.f32 %v11254_v1, %v11253_v25  ;;  %v535_v37 = vld [vmem:[%s9241_s20 + $0x40] sm:$0xff]  ;;  %v6773_v55 = vld [vmem:[#allocation2 + $0x10] sm:$0xff] }
 0x49f   : > { %v2703_v28 = vsel %vm2639_vm2, %v2687_v41, 0.0  ;;  %v2592_v62 = vsub.f32 %v2515_v58, %v2576_v19  ;;  %v2519_v5 = vadd.f32 %v2518_v51, %v2294_v40  ;;  %v9462_v48 = vand.u32 4294901760, %v535_v37  ;;  %v11255_v41 = vld [vmem:[#allocation145_spill] sm:$0xff] }
 0x4a0   : > { %v6026_v27 = vclamps-f32 %v2703_v28, 0.999999  ;;  %3071 = vmatmul.f32.gmra.mxu2 %v2845_v14  ;;  %v3745_v46 = vand.u32 4294901760, %v3744_v34  ;;  %v2669_v31 = vmul.f32 1.442695, %v2455_v52  ;;  %v2459_v19 = vadd.f32 %v11255_v41, %v2234_v26  ;;  %2996 = vmatmul.f32.gmra.mxu3 %v6773_v55  ;;  %v2301_v34 = vpop.f32.mrf.mxu0  ;;  %v11257_v55 = vld [vmem:[#allocation37_spill] sm:$0xff] }
 0x4a1   : > { %v2608_v63 = vmul.f32 2.0, %v2592_v62  ;;  %v2545_v58 = vmul.f32 0.5, %v2519_v5  ;;  %3303 = vmatpush.msra.mxu3 %v9462_v48  ;;  %v9467_v14 = vsub.f32 %v535_v37, %v9462_v48  ;;  %vm2640_vm3 = vcmp.gt.f32.partialorder %v2387_v2, 0.5  ;;  %4298 = vmatpush.msrb.mxu1 %v9462_v48  ;;  %v11256_v37 = vld [vmem:[#allocation136_spill] sm:$0xff]  ;;  %v534_v2 = vld [vmem:[%s9241_s20 + $0x38] sm:$0xff] }
 0x4a2   : > { %v6495_v40 = vpop.eup %6494  ;;  %v2751_v12 = vadd.f32 1.0, %v6026_v27  ;;  %v2799_v51 = vsub.f32 1.0, %v6026_v27  ;;  %3746 = vmatpush.msrb.mxu2 %v3745_v46  ;;  %v2298_v52 = vadd.f32 %v2297_v35, %v9424_v9  ;;  %vm2641_vm4 = vcmp.gt.f32.partialorder %v9459_v22, 0.5 }
 0x4a3   : > { %v6497_v36 = vpop.eup %6496  ;;  %v2624_v21 = vsub.f32 1.0, %v2608_v63  ;;  %v2561_v56 = vfloor.f32 %v2545_v58  ;;  %v2776_v25 = vmul.f32 0.6931472, %v6495_v40  ;;  %v10803_v27 = vand.u32 4294901760, %v9467_v14  ;;  %4017 = vmatpush.msra.mxu0 %v9467_v14 }
 0x4a4   : > { %v6499_v28 = vpop.eup %6498  ;;  %v2824_v62 = vmul.f32 0.6931472, %v6497_v36  ;;  %6500 = vlog2.f32 %v2751_v12  ;;  %v2238_v63 = vadd.f32 %v11256_v37, %v9187_v13  ;;  %v2671_v9 = vmul.f32 1.442695, %v2459_v19  ;;  %v9477_v12 = vpop.f32.mrf.mxu2  ;;  %v11258_v36 = vld [vmem:[#allocation66_spill] sm:$0xff] }
 0x4a5   : > { %v2688_v26 = vmul.f32 %v6499_v28, %v2624_v21  ;;  %v2577_v1 = vmul.f32 2.0, %v2561_v56  ;;  %6502 = vlog2.f32 %v2799_v51  ;;  %v3750_v51 = vsub.f32 %v9467_v14, %v10803_v27 }
 0x4a6   : > { %6504 = vpow2.f32 %v2669_v31  ;;  %v2522_v35 = vpop.f32.mrf.mxu1  ;;  %v2846_v58 = vsub.f32 %v2776_v25, %v2824_v62  ;;  %v9484_v21 = vadd.f32 %v11258_v36, %v11257_v55  ;;  %v2302_v13 = vadd.f32 %v2301_v34, %v9427_v43  ;;  %v11259_v31 = vld [vmem:[#allocation148_spill] sm:$0xff]  ;;  %v533_v25 = vld [vmem:[%s9241_s20 + $0x30] sm:$0xff]  ;;  %v6774_v43 = vld [vmem:[#allocation2 + $0x38] sm:$0xff] }
 0x4a7   : > { %v2704_v46 = vsel %vm2640_vm3, %v2688_v26, 0.0  ;;  %v2593_v40 = vsub.f32 %v2519_v5, %v2577_v1  ;;  %v2523_v41 = vadd.f32 %v2522_v35, %v2298_v52  ;;  %v2463_v19 = vadd.f32 %v11259_v31, %v2238_v63  ;;  %v532_v5 = vld [vmem:[%s9241_s20 + $0x28] sm:$0xff] }
 0x4a8   : > { %v6027_v56 = vclamps-f32 %v2704_v46, 0.999999  ;;  %3074 = vmatmul.f32.gmra.mxu2 %v2846_v58  ;;  %v3751_v62 = vand.u32 4294901760, %v3750_v51  ;;  %v9491_v26 = vand.u32 4294901760, %v534_v2  ;;  %v9493_v27 = vand.u32 4294901760, %v533_v25  ;;  %2999 = vmatmul.f32.gmra.mxu3 %v6774_v43 }
 0x4a9   : > { %v2609_v28 = vmul.f32 2.0, %v2593_v40  ;;  %v2546_v52 = vmul.f32 0.5, %v2523_v41  ;;  %v9495_v55 = vand.u32 4294901760, %v532_v5  ;;  %vm2642_vm12 = vcmp.gt.f32.partialorder %v9484_v21, 0.5  ;;  %v529_v21 = vld [vmem:[%s9241_s20 + $0x10] sm:$0xff] }
 0x4aa   : > { %v6501_v1 = vpop.eup %6500  ;;  %v2752_v37 = vadd.f32 1.0, %v6027_v56  ;;  %v2800_v35 = vsub.f32 1.0, %v6027_v56  ;;  %3752 = vmatpush.msrb.mxu2 %v3751_v62  ;;  %3305 = vmatpush.msra.mxu3 %v9491_v26  ;;  %v9499_v40 = vsub.f32 %v534_v2, %v9491_v26  ;;  %v9502_v31 = vsub.f32 %v533_v25, %v9493_v27 }
 0x4ab   : > { %v6503_v34 = vpop.eup %6502  ;;  %v2625_v63 = vsub.f32 1.0, %v2609_v28  ;;  %v2562_v58 = vfloor.f32 %v2546_v52  ;;  %v2778_v46 = vmul.f32 0.6931472, %v6501_v1  ;;  %v9505_v56 = vsub.f32 %v532_v5, %v9495_v55  ;;  %4300 = vmatpush.msrb.mxu1 %v9491_v26 }
 0x4ac   : > { %v6505_v51 = vpop.eup %6504  ;;  %v2826_v36 = vmul.f32 0.6931472, %v6503_v34  ;;  %6506 = vlog2.f32 %v2752_v37  ;;  %v10805_v62 = vand.u32 4294901760, %v9499_v40  ;;  %3307 = vmatpush.msra.mxu3 %v9493_v27  ;;  %4020 = vmatpush.msra.mxu0 %v9499_v40  ;;  %v10804_v25 = vand.u32 4294901760, %v9502_v31 }
 0x4ad   : > { %v2689_v28 = vmul.f32 %v6505_v51, %v2625_v63  ;;  %v2578_v52 = vmul.f32 2.0, %v2562_v58  ;;  %6508 = vlog2.f32 %v2800_v35  ;;  %v10806_v5 = vand.u32 4294901760, %v9505_v56  ;;  %4302 = vmatpush.msrb.mxu1 %v9493_v27 }
 0x4ae   : > { %6510 = vpow2.f32 %v2671_v9  ;;  %v2526_v2 = vpop.f32.mrf.mxu1  ;;  %v2847_v1 = vsub.f32 %v2778_v46, %v2826_v36  ;;  %v3756_v34 = vsub.f32 %v9499_v40, %v10805_v62  ;;  %3309 = vmatpush.msra.mxu3 %v9495_v55  ;;  %4023 = vmatpush.msra.mxu0 %v9502_v31  ;;  %v2673_v9 = vmul.f32 1.442695, %v2463_v19  ;;  %v9529_v36 = vpop.f32.mrf.mxu2  ;;  %v6775_v62 = vld [vmem:[#allocation2 + $0x60] sm:$0xff] }
 0x4af   : > { %v2705_v37 = vsel %vm2641_vm4, %v2689_v28, 0.0  ;;  %v2594_v35 = vsub.f32 %v2523_v41, %v2578_v52  ;;  %v2527_v43 = vadd.f32 %v2526_v2, %v2302_v13  ;;  %v3762_v58 = vsub.f32 %v9502_v31, %v10804_v25  ;;  %v531_v41 = vld [vmem:[%s9241_s20 + $0x20] sm:$0xff]  ;;  %4304 = vmatpush.msrb.mxu1 %v9495_v55  ;;  %v2305_v13 = vpop.f32.mrf.mxu0 }
 0x4b0   : > { %v6028_v63 = vclamps-f32 %v2705_v37, 0.999999  ;;  %3077 = vmatmul.f32.gmra.mxu2 %v2847_v1  ;;  %v3768_v22 = vsub.f32 %v9505_v56, %v10806_v5  ;;  %v3757_v28 = vand.u32 4294901760, %v3756_v34  ;;  %v9531_v19 = vand.u32 4294901760, %v531_v41  ;;  %4026 = vmatpush.msra.mxu0 %v9505_v56 }
 0x4b1   : > { %v2610_v46 = vmul.f32 2.0, %v2594_v35  ;;  %v2547_v51 = vmul.f32 0.5, %v2527_v43  ;;  %v3763_v37 = vand.u32 4294901760, %v3762_v58  ;;  %3002 = vmatmul.f32.gmra.mxu3 %v6775_v62  ;;  %v2467_v10 = vadd.f32 %v11261_v11, %v2242_v8 }
 0x4b2   : > { %v6507_v52 = vpop.eup %6506  ;;  %v2753_v2 = vadd.f32 1.0, %v6028_v63  ;;  %v2801_v1 = vsub.f32 1.0, %v6028_v63  ;;  %v3769_v25 = vand.u32 4294901760, %v3768_v22  ;;  %3758 = vmatpush.msrb.mxu2 %v3757_v28  ;;  %3311 = vmatpush.msra.mxu3 %v9531_v19  ;;  %v9536_v35 = vsub.f32 %v531_v41, %v9531_v19  ;;  %v11263_v28 = vld [vmem:[#allocation69_spill] sm:$0xff] }
 0x4b3   : > { %v6509_v5 = vpop.eup %6508  ;;  %v2626_v45 = vsub.f32 1.0, %v2610_v46  ;;  %v2563_v32 = vfloor.f32 %v2547_v51  ;;  %v2780_v38 = vmul.f32 0.6931472, %v6507_v52  ;;  %v2306_v63 = vadd.f32 %v2305_v13, %v9429_v7  ;;  %4306 = vmatpush.msrb.mxu1 %v9531_v19 }
 0x4b4   : > { %v6511_v34 = vpop.eup %6510  ;;  %v2828_v58 = vmul.f32 0.6931472, %v6509_v5  ;;  %6512 = vlog2.f32 %v2753_v2  ;;  %3764 = vmatpush.msrb.mxu2 %v3763_v37  ;;  %v3773_v46 = vand.u32 4294901760, %v9536_v35  ;;  %4029 = vmatpush.msra.mxu0 %v9536_v35  ;;  %v11268_v29 = vand.u32 4294901760, %v9382_v60 }
 0x4b5   : > { %v2690_v62 = vmul.f32 %v6511_v34, %v2626_v45  ;;  %v2579_v22 = vmul.f32 2.0, %v2563_v32  ;;  %6514 = vlog2.f32 %v2801_v1  ;;  %v11262_v45 = vld [vmem:[#allocation50_spill] sm:$0xff]  ;;  %v11271_v60 = vand.u32 4294901760, %v9467_v14 }
 0x4b6   : > { %6516 = vpow2.f32 %v2673_v9  ;;  %v2530_v7 = vpop.f32.mrf.mxu1  ;;  %v2848_v5 = vsub.f32 %v2780_v38, %v2828_v58  ;;  %3770 = vmatpush.msrb.mxu2 %v3769_v25  ;;  %v3774_v32 = vsub.f32 %v9536_v35, %v3773_v46  ;;  %v2399_v52 = vadd.f32 %v11263_v28, %v11262_v45  ;;  %v530_v1 = vld [vmem:[%s9241_s20 + $0x18] sm:$0xff]  ;;  %v6776_v58 = vld [vmem:[#allocation2 + $0x70] sm:$0xff] }
 0x4b7   : > { %v2706_v41 = vsel %vm2642_vm12, %v2690_v62, 0.0  ;;  %v2595_v13 = vsub.f32 %v2527_v43, %v2579_v22  ;;  %v2531_v51 = vadd.f32 %v2530_v7, %v2306_v63  ;;  %v9553_v34 = vand.u32 4294901760, %v530_v1 }
 0x4b8   : > { %v6029_v2 = vclamps-f32 %v2706_v41, 0.999999  ;;  %3080 = vmatmul.f32.gmra.mxu2 %v2848_v5  ;;  %v3775_v8 = vand.u32 4294901760, %v3774_v32  ;;  %v2675_v43 = vmul.f32 1.442695, %v2467_v10  ;;  %v9555_v62 = vand.u32 4294901760, %v529_v21  ;;  %v9557_v5 = vpop.f32.mrf.mxu2 }
 0x4b9   : > { %v2611_v9 = vmul.f32 2.0, %v2595_v13  ;;  %v2548_v37 = vmul.f32 0.5, %v2531_v51  ;;  %3005 = vmatmul.f32.gmra.mxu3 %v6776_v58  ;;  %v9561_v13 = vsub.f32 %v530_v1, %v9553_v34  ;;  %4308 = vmatpush.msrb.mxu1 %v9553_v34  ;;  %vm2643_vm11 = vcmp.gt.f32.partialorder %v2399_v52, 0.5 }
 0x4ba   : > { %v6513_v38 = vpop.eup %6512  ;;  %v2754_v63 = vadd.f32 1.0, %v6029_v2  ;;  %v2802_v25 = vsub.f32 1.0, %v6029_v2  ;;  %3776 = vmatpush.msrb.mxu2 %v3775_v8  ;;  %3313 = vmatpush.msra.mxu3 %v9553_v34 }
 0x4bb   : > { %v6515_v22 = vpop.eup %6514  ;;  %v2627_v11 = vsub.f32 1.0, %v2611_v9  ;;  %v2564_v7 = vfloor.f32 %v2548_v37  ;;  %v2782_v41 = vmul.f32 0.6931472, %v6513_v38  ;;  %v10812_v2 = vand.u32 4294901760, %v9561_v13  ;;  %4032 = vmatpush.msra.mxu0 %v9561_v13  ;;  %4310 = vmatpush.msrb.mxu1 %v9555_v62 }
 0x4bc   : > { %v6517_v32 = vpop.eup %6516  ;;  %v2830_v10 = vmul.f32 0.6931472, %v6515_v22  ;;  %6518 = vlog2.f32 %v2754_v63  ;;  %3315 = vmatpush.msra.mxu3 %v9555_v62  ;;  %v11264_v22 = vld [vmem:[#allocation55_spill] sm:$0xff] }
 0x4bd   : > { %v2691_v45 = vmul.f32 %v6517_v32, %v2627_v11  ;;  %v2580_v28 = vmul.f32 2.0, %v2564_v7  ;;  %6520 = vlog2.f32 %v2802_v25  ;;  %v3780_v8 = vsub.f32 %v9561_v13, %v10812_v2  ;;  %v11265_v11 = vld [vmem:[#allocation70_spill] sm:$0xff]  ;;  %v528_v32 = vld [vmem:[%s9241_s20 + $0x8] sm:$0xff] }
 0x4be   : > { %6522 = vpow2.f32 %v2675_v43  ;;  %v2849_v9 = vsub.f32 %v2782_v41, %v2830_v10  ;;  %v2403_v52 = vadd.f32 %v11265_v11, %v11264_v22  ;;  %v6777_v41 = vld [vmem:[#allocation2 + $0x78] sm:$0xff] }
 0x4bf   : > { %v2707_v1 = vsel %vm2643_vm11, %v2691_v45, 0.0  ;;  %v2596_v37 = vsub.f32 %v2531_v51, %v2580_v28  ;;  %v3781_v25 = vand.u32 4294901760, %v3780_v8  ;;  %v9575_v28 = vsub.f32 %v529_v21, %v9555_v62  ;;  %v527_v8 = vld [vmem:[%s9241_s20] sm:$0xff]  ;;  %s6979_s20 = scalar_lea.hbm %s11400_s5, 2560 }
 0x4c0   : > { %v6030_v38 = vclamps-f32 %v2707_v1, 0.999999  ;;  %3083 = vmatmul.f32.gmra.mxu2 %v2849_v9  ;;  %v9577_v9 = vand.u32 4294901760, %v528_v32  ;;  %v9580_v22 = vpop.f32.mrf.mxu2  ;;  %vm2644_vm13 = vcmp.gt.f32.partialorder %v2403_v52, 0.5  ;;  %p6981_p8 = scmp.lt.s32.totalorder %s6979_s20, %s6975_s7 }
 0x4c1   : > { %v2612_v63 = vmul.f32 2.0, %v2596_v37  ;;  %3008 = vmatmul.f32.gmra.mxu3 %v6777_v41  ;;  %3782 = vmatpush.msrb.mxu2 %v3781_v25  ;;  %v9588_v25 = vand.u32 4294901760, %v527_v8 }
 0x4c2   : > { %v6519_v58 = vpop.eup %6518  ;;  %v2755_v43 = vadd.f32 1.0, %v6030_v38  ;;  %v2803_v7 = vsub.f32 1.0, %v6030_v38  ;;  %v3785_v38 = vand.u32 4294901760, %v9575_v28  ;;  %3317 = vmatpush.msra.mxu3 %v9577_v9  ;;  %4035 = vmatpush.msra.mxu0 %v9575_v28  ;;  %p6982_p13 = por %p6981_p8, %p6980_p7 }
 0x4c3   : > { %v6521_v10 = vpop.eup %6520  ;;  %v2628_v51 = vsub.f32 1.0, %v2612_v63  ;;  %v2784_v45 = vmul.f32 0.6931472, %v6519_v58  ;;  %v9585_v63 = vsub.f32 %v528_v32, %v9577_v9  ;;  %4312 = vmatpush.msrb.mxu1 %v9577_v9  ;;  %v9597_v41 = vsub.f32 %v527_v8, %v9588_v25 }
 0x4c4   : > { %v6523_v1 = vpop.eup %6522  ;;  %v2832_v37 = vmul.f32 0.6931472, %v6521_v10  ;;  %6524 = vlog2.f32 %v2755_v43  ;;  %v3786_v11 = vsub.f32 %v9575_v28, %v3785_v38  ;;  %3319 = vmatpush.msra.mxu3 %v9588_v25  ;;  %p6983_p1 = pnand %p6982_p13, %p6978_p3 }
 0x4c5   : > { %v2692_v2 = vmul.f32 %v6523_v1, %v2628_v51  ;;  %6526 = vlog2.f32 %v2803_v7  ;;  %v3791_v43 = vand.u32 4294901760, %v9585_v63  ;;  %4038 = vmatpush.msra.mxu0 %v9585_v63  ;;  %4314 = vmatpush.msrb.mxu1 %v9588_v25  ;;  %v6778_v1 = vld [vmem:[#allocation2 + $0x28] sm:$0xff] }
 0x4c6   : > { %v2850_v21 = vsub.f32 %v2784_v45, %v2832_v37  ;;  %v3787_v52 = vand.u32 4294901760, %v3786_v11  ;;  %4607 = vmatpush.msrb.mxu3 %v3707_v50  ;;  %v3797_v45 = vand.u32 4294901760, %v9597_v41  ;;  %v11266_v50 = vand.u32 4294901760, %v9314_v24 }
 0x4c7   : > { %v2708_v58 = vsel %vm2644_vm13, %v2692_v2, 0.0  ;;  %v3792_v2 = vsub.f32 %v9585_v63, %v3791_v43  ;;  %4041 = vmatpush.msra.mxu0 %v9597_v41  ;;  %v11269_v24 = vand.u32 4294901760, %v9410_v23 }
 0x4c8   : > { %v6031_v7 = vclamps-f32 %v2708_v58, 0.999999  ;;  %3086 = vmatmul.f32.gmra.mxu2 %v2850_v21  ;;  %4611 = vmatpush.msrb.mxu3 %v3713_v44  ;;  %v3798_v33 = vsub.f32 %v9597_v41, %v3797_v45 }
 0x4c9   : > { %3011 = vmatmul.f32.gmra.mxu3 %v6778_v1  ;;  %3788 = vmatpush.msrb.mxu2 %v3787_v52  ;;  %v3793_v21 = vand.u32 4294901760, %v3792_v2  ;;  %v9613_v1 = vpop.f32.mrf.mxu2 }
 0x4ca   : > { %v6525_v32 = vpop.eup %6524  ;;  %v2756_v10 = vadd.f32 1.0, %v6031_v7  ;;  %v2804_v51 = vsub.f32 1.0, %v6031_v7  ;;  %4615 = vmatpush.msrb.mxu3 %v11266_v50  ;;  %v3799_v7 = vand.u32 4294901760, %v3798_v33 }
 0x4cb   : > { %v6527_v37 = vpop.eup %6526  ;;  %v2786_v8 = vmul.f32 0.6931472, %v6525_v32  ;;  %3794 = vmatpush.msrb.mxu2 %v3793_v21  ;;  %v11267_v32 = vand.u32 4294901760, %v9349_v6 }
 0x4cc   : > { %v2834_v58 = vmul.f32 0.6931472, %v6527_v37  ;;  %6528 = vlog2.f32 %v2756_v10  ;;  %v11270_v10 = vand.u32 4294901760, %v9438_v47 }
 0x4cd   : > { %6530 = vlog2.f32 %v2804_v51  ;;  %4619 = vmatpush.msrb.mxu3 %v11267_v32  ;;  %3800 = vmatpush.msrb.mxu2 %v3799_v7 }
 0x4ce   : > { %v2851_v11 = vsub.f32 %v2786_v8, %v2834_v58 }
 0x4cf   : > { %4623 = vmatpush.msrb.mxu3 %v11268_v29  ;;  %4862 = vmatpush.msra.mxu2 %v9249_v39  ;;  %v11272_v39 = vand.u32 4294901760, %v9499_v40 }
 0x4d0   : > { %3089 = vmatmul.f32.gmra.mxu2 %v2851_v11  ;;  %v9636_v23 = vpop.f32.mrf.mxu3 }
 0x4d1   : > { %4627 = vmatpush.msrb.mxu3 %v11269_v24  ;;  %4864 = vmatpush.msra.mxu2 %v9279_v59  ;;  %v9628_v51 = vpop.f32.mrf.mxu2  ;;  %v11273_v59 = vand.u32 4294901760, %v9502_v31  ;;  %11274 = vst [vmem:[#allocation90_spill] sm:$0xff] %v9636_v23 }
 0x4d2   : > { %v6529_v44 = vpop.eup %6528 }
 0x4d3   : > { %v6531_v41 = vpop.eup %6530  ;;  %v2788_v52 = vmul.f32 0.6931472, %v6529_v44  ;;  %4631 = vmatpush.msrb.mxu3 %v11270_v10  ;;  %4866 = vmatpush.msra.mxu2 %v9307_v61  ;;  %v11275_v61 = vand.u32 4294901760, %v9505_v56 }
 0x4d4   : > { %v2836_v2 = vmul.f32 0.6931472, %v6531_v41 }
 0x4d5   : > { %4635 = vmatpush.msrb.mxu3 %v11271_v60  ;;  %4868 = vmatpush.msra.mxu2 %v9342_v30  ;;  %v11276_v30 = vand.u32 4294901760, %v9561_v13 }
 0x4d6   : > { %v2852_v6 = vsub.f32 %v2788_v52, %v2836_v2 }
 0x4d7   : > { %4639 = vmatpush.msrb.mxu3 %v11272_v39  ;;  %4870 = vmatpush.msra.mxu2 %v9371_v20 }
 0x4d8   : > { %3092 = vmatmul.f32.gmra.mxu2 %v2852_v6  ;;  %v9654_v47 = vpop.f32.mrf.mxu3 }
 0x4d9   : > { %4643 = vmatpush.msrb.mxu3 %v11273_v59  ;;  %4872 = vmatpush.msra.mxu2 %v9401_v15  ;;  %11277 = vst [vmem:[#allocation91_spill] sm:$0xff] %v9654_v47 }
 0x4db   : > { %4647 = vmatpush.msrb.mxu3 %v11275_v61  ;;  %4874 = vmatpush.msra.mxu2 %v9432_v57 }
 0x4dd   : > { %4651 = vmatpush.msrb.mxu3 %v3773_v46  ;;  %4876 = vmatpush.msra.mxu2 %v9462_v48 }
 0x4df   : > { %4655 = vmatpush.msrb.mxu3 %v11276_v30  ;;  %4878 = vmatpush.msra.mxu2 %v9491_v26  ;;  %v11278_v26 = vmov 1.0  }
 0x4e1   : > { %4659 = vmatpush.msrb.mxu3 %v3785_v38  ;;  %4880 = vmatpush.msra.mxu2 %v9493_v27  ;;  %v9671_v31 = vpop.f32.mrf.mxu3 }
 0x4e2   : > { %11280 = vst [vmem:[#allocation98_spill] sm:$0xff] %v9671_v31 }
 0x4e3   : > { %v3048_v20 = vpop.f32.mrf.mxu2  ;;  %4663 = vmatpush.msrb.mxu3 %v3791_v43  ;;  %4882 = vmatpush.msra.mxu2 %v9495_v55  ;;  %v11279_v55 = vmov 0.0  }
 0x4e4   : > { %v3049_v15 = vadd.f32 %v3048_v20, %v9109_v18 }
 0x4e5   : > { %4667 = vmatpush.msrb.mxu3 %v3797_v45  ;;  %4884 = vmatpush.msra.mxu2 %v9531_v19 }
 0x4e6   : > { %v3096_v57 = vmul.f32 0.5, %v3049_v15 }
 0x4e7   : > { %4886 = vmatpush.msra.mxu2 %v9553_v34 }
 0x4e8   : > { %6532 = vtanh.f32 %v3096_v57 }
 0x4e9   : > { %4888 = vmatpush.msra.mxu2 %v9555_v62 }
 0x4eb   : > { %v3051_v48 = vpop.f32.mrf.mxu2  ;;  %4890 = vmatpush.msra.mxu2 %v9577_v9 }
 0x4ec   : > { %v3052_v14 = vadd.f32 %v3051_v48, %v9144_v53 }
 0x4ed   : > { %4892 = vmatpush.msra.mxu2 %v9588_v25 }
 0x4ee   : > { %v9661_v18 = vpop.eup %6532  ;;  %v3097_v27 = vmul.f32 0.5, %v3052_v14 }
 0x4ef   : > { %vm3128_vm14 = vcmp.ne.f32.partialorder %v9661_v18, 0.0 }
 0x4f0   : > { %6534 = vtanh.f32 %v3097_v27  ;;  %6064 = vmatmul.msk.f32.vlgmr.msrb.gmra.mxu2 %vm3128_vm14, %v11278_v26  ;;  %v6032_v40 = vsel %vm3128_vm14, 1.0, %v11279_v55 }
 0x4f1   : > { %v3321_v53 = vsub.f32 %v6032_v40, %v6032_v40 }
 0x4f3   : > { %v3054_v56 = vpop.f32.mrf.mxu2  ;;  %4044 = vmatmul.f32.vlgmr.msra.gmra.mxu0 %v3321_v53  ;;  %v3322_v19 = vand.u32 4294901760, %v3321_v53 }
 0x4f4   : > { %v3055_v35 = vadd.f32 %v3054_v56, %v9181_v42  ;;  %v9684_v42 = vpop.f32.mrf.mxu3 }
 0x4f5   : > { %4318 = vmatmul.f32.vlgmr.msrb.gmra.mxu1 %v3322_v19  ;;  %v3323_v46 = vsub.f32 %v3321_v53, %v3322_v19  ;;  %11281 = vst [vmem:[#allocation99_spill] sm:$0xff] %v9684_v42 }
 0x4f6   : > { %v9675_v34 = vpop.eup %6534  ;;  %v3098_v62 = vmul.f32 0.5, %v3055_v35 }
 0x4f7   : > { %vm3129_vm15 = vcmp.ne.f32.partialorder %v9675_v34, 0.0  ;;  %v3324_v13 = vand.u32 4294901760, %v3323_v46 }
 0x4f8   : > { %6536 = vtanh.f32 %v3098_v62  ;;  %6065 = vmatmul.msk.f32.gmra.mxu2 %vm3129_vm15, %v11278_v26  ;;  %v6033_v28 = vsel %vm3129_vm15, 1.0, %v11279_v55 }
 0x4f9   : > { %3325 = vmatmul.f32.vlgmr.msra.gmra.mxu3 %v3324_v13  ;;  %v3329_v9 = vsub.f32 %v6033_v28, %v6033_v28 }
 0x4fb   : > { %v3057_v38 = vpop.f32.mrf.mxu2  ;;  %4049 = vmatmul.f32.gmra.mxu0 %v3329_v9  ;;  %v3330_v63 = vand.u32 4294901760, %v3329_v9 }
 0x4fc   : > { %v3058_v25 = vadd.f32 %v3057_v38, %v9216_v54  ;;  %v9697_v11 = vpop.f32.mrf.mxu3 }
 0x4fd   : > { %4324 = vmatmul.f32.gmra.mxu1 %v3330_v63  ;;  %v3331_v43 = vsub.f32 %v3329_v9, %v3330_v63  ;;  %11282 = vst [vmem:[#allocation92_spill] sm:$0xff] %v9697_v11 }
 0x4fe   : > { %v9687_v45 = vpop.eup %6536  ;;  %v3099_v37 = vmul.f32 0.5, %v3058_v25 }
 0x4ff   : > { %vm3130_vm5 = vcmp.ne.f32.partialorder %v9687_v45, 0.0  ;;  %v3332_v8 = vand.u32 4294901760, %v3331_v43 }
 0x500   : > { %6538 = vtanh.f32 %v3099_v37  ;;  %6066 = vmatmul.msk.f32.gmra.mxu2 %vm3130_vm5, %v11278_v26  ;;  %v6034_v21 = vsel %vm3130_vm5, 1.0, %v11279_v55 }
 0x501   : > { %3333 = vmatmul.f32.gmra.mxu3 %v3332_v8  ;;  %v3337_v58 = vsub.f32 %v6034_v21, %v6034_v21 }
 0x503   : > { %v3060_v54 = vpop.f32.mrf.mxu2  ;;  %4054 = vmatmul.f32.gmra.mxu0 %v3337_v58  ;;  %v3338_v33 = vand.u32 4294901760, %v3337_v58 }
 0x504   : > { %v3061_v50 = vadd.f32 %v3060_v54, %v9258_v17  ;;  %v9711_v39 = vpop.f32.mrf.mxu3 }
 0x505   : > { %4330 = vmatmul.f32.gmra.mxu1 %v3338_v33  ;;  %v3339_v7 = vsub.f32 %v3337_v58, %v3338_v33  ;;  %11283 = vst [vmem:[#allocation100_spill] sm:$0xff] %v9711_v39 }
 0x506   : > { %v9699_v32 = vpop.eup %6538  ;;  %v3100_v29 = vmul.f32 0.5, %v3061_v50 }
 0x507   : > { %vm3131_vm6 = vcmp.ne.f32.partialorder %v9699_v32, 0.0  ;;  %v3340_v44 = vand.u32 4294901760, %v3339_v7 }
 0x508   : > { %6540 = vtanh.f32 %v3100_v29  ;;  %6067 = vmatmul.msk.f32.gmra.mxu2 %vm3131_vm6, %v11278_v26  ;;  %v6035_v41 = vsel %vm3131_vm6, 1.0, %v11279_v55 }
 0x509   : > { %3341 = vmatmul.f32.gmra.mxu3 %v3340_v44  ;;  %v3345_v17 = vsub.f32 %v6035_v41, %v6035_v41 }
 0x50b   : > { %v3063_v52 = vpop.f32.mrf.mxu2  ;;  %4059 = vmatmul.f32.gmra.mxu0 %v3345_v17  ;;  %v3346_v24 = vand.u32 4294901760, %v3345_v17 }
 0x50c   : > { %v3064_v2 = vadd.f32 %v3063_v52, %v9296_v3  ;;  %v9730_v53 = vpop.f32.mrf.mxu3 }
 0x50d   : > { %4336 = vmatmul.f32.gmra.mxu1 %v3346_v24  ;;  %v3347_v10 = vsub.f32 %v3345_v17, %v3346_v24  ;;  %11284 = vst [vmem:[#allocation102_spill] sm:$0xff] %v9730_v53 }
 0x50e   : > { %v9709_v6 = vpop.eup %6540  ;;  %v3101_v60 = vmul.f32 0.5, %v3064_v2 }
 0x50f   : > { %vm3132_vm7 = vcmp.ne.f32.partialorder %v9709_v6, 0.0  ;;  %v3348_v59 = vand.u32 4294901760, %v3347_v10 }
 0x510   : > { %6542 = vtanh.f32 %v3101_v60  ;;  %6068 = vmatmul.msk.f32.gmra.mxu2 %vm3132_vm7, %v11278_v26  ;;  %v6036_v61 = vsel %vm3132_vm7, 1.0, %v11279_v55 }
 0x511   : > { %3349 = vmatmul.f32.gmra.mxu3 %v3348_v59  ;;  %v3353_v3 = vsub.f32 %v6036_v61, %v6036_v61 }
 0x513   : > { %v3066_v30 = vpop.f32.mrf.mxu2  ;;  %4064 = vmatmul.f32.gmra.mxu0 %v3353_v3  ;;  %v3354_v20 = vand.u32 4294901760, %v3353_v3 }
 0x514   : > { %v3067_v15 = vadd.f32 %v3066_v30, %v9329_v0 }
 0x515   : > { %4342 = vmatmul.f32.gmra.mxu1 %v3354_v20  ;;  %v3355_v57 = vsub.f32 %v3353_v3, %v3354_v20 }
 0x516   : > { %v9721_v48 = vpop.eup %6542  ;;  %v3102_v14 = vmul.f32 0.5, %v3067_v15 }
 0x517   : > { %vm3133_vm10 = vcmp.ne.f32.partialorder %v9721_v48, 0.0  ;;  %v3356_v27 = vand.u32 4294901760, %v3355_v57 }
 0x518   : > { %6544 = vtanh.f32 %v3102_v14  ;;  %6069 = vmatmul.msk.f32.gmra.mxu2 %vm3133_vm10, %v11278_v26  ;;  %v6037_v40 = vsel %vm3133_vm10, 1.0, %v11279_v55 }
 0x519   : > { %3357 = vmatmul.f32.gmra.mxu3 %v3356_v27  ;;  %v3361_v0 = vsub.f32 %v6037_v40, %v6037_v40 }
 0x51b   : > { %v3069_v56 = vpop.f32.mrf.mxu2  ;;  %4069 = vmatmul.f32.gmra.mxu0 %v3361_v0  ;;  %v3362_v19 = vand.u32 4294901760, %v3361_v0 }
 0x51c   : > { %v3070_v35 = vadd.f32 %v3069_v56, %v9373_v16  ;;  %v9742_v16 = vpop.f32.mrf.mxu3 }
 0x51d   : > { %4348 = vmatmul.f32.gmra.mxu1 %v3362_v19  ;;  %v3363_v46 = vsub.f32 %v3361_v0, %v3362_v19  ;;  %11285 = vst [vmem:[#allocation101_spill] sm:$0xff] %v9742_v16 }
 0x51e   : > { %v9733_v62 = vpop.eup %6544  ;;  %v3103_v13 = vmul.f32 0.5, %v3070_v35 }
 0x51f   : > { %vm3134_vm8 = vcmp.ne.f32.partialorder %v9733_v62, 0.0  ;;  %v3364_v28 = vand.u32 4294901760, %v3363_v46 }
 0x520   : > { %6546 = vtanh.f32 %v3103_v13  ;;  %6070 = vmatmul.msk.f32.gmra.mxu2 %vm3134_vm8, %v11278_v26  ;;  %v6038_v9 = vsel %vm3134_vm8, 1.0, %v11279_v55 }
 0x521   : > { %3365 = vmatmul.f32.gmra.mxu3 %v3364_v28  ;;  %v3369_v38 = vsub.f32 %v6038_v9, %v6038_v9 }
 0x523   : > { %v3072_v63 = vpop.f32.mrf.mxu2  ;;  %4074 = vmatmul.f32.gmra.mxu0 %v3369_v38  ;;  %v3370_v25 = vand.u32 4294901760, %v3369_v38 }
 0x524   : > { %v3073_v43 = vadd.f32 %v3072_v63, %v9407_v4  ;;  %v9755_v29 = vpop.f32.mrf.mxu3 }
 0x525   : > { %4354 = vmatmul.f32.gmra.mxu1 %v3370_v25  ;;  %v3371_v37 = vsub.f32 %v3369_v38, %v3370_v25  ;;  %11286 = vst [vmem:[#allocation104_spill] sm:$0xff] %v9755_v29 }
 0x526   : > { %v9745_v8 = vpop.eup %6546  ;;  %v3104_v21 = vmul.f32 0.5, %v3073_v43 }
 0x527   : > { %vm3135_vm9 = vcmp.ne.f32.partialorder %v9745_v8, 0.0  ;;  %v3372_v58 = vand.u32 4294901760, %v3371_v37 }
 0x528   : > { %6548 = vtanh.f32 %v3104_v21  ;;  %6071 = vmatmul.msk.f32.gmra.mxu2 %vm3135_vm9, %v11278_v26  ;;  %v6039_v54 = vsel %vm3135_vm9, 1.0, %v11279_v55 }
 0x529   : > { %3373 = vmatmul.f32.gmra.mxu3 %v3372_v58  ;;  %v3377_v33 = vsub.f32 %v6039_v54, %v6039_v54 }
 0x52b   : > { %v3075_v4 = vpop.f32.mrf.mxu2  ;;  %4079 = vmatmul.f32.gmra.mxu0 %v3377_v33  ;;  %v3378_v50 = vand.u32 4294901760, %v3377_v33 }
 0x52c   : > { %v3076_v7 = vadd.f32 %v3075_v4, %v9445_v49  ;;  %v9769_v30 = vpop.f32.mrf.mxu3 }
 0x52d   : > { %4360 = vmatmul.f32.gmra.mxu1 %v3378_v50  ;;  %v3379_v44 = vsub.f32 %v3377_v33, %v3378_v50  ;;  %11287 = vst [vmem:[#allocation106_spill] sm:$0xff] %v9769_v30 }
 0x52e   : > { %v9757_v41 = vpop.eup %6548  ;;  %v3105_v17 = vmul.f32 0.5, %v3076_v7 }
 0x52f   : > { %vm3136_vm0 = vcmp.ne.f32.partialorder %v9757_v41, 0.0  ;;  %v3380_v52 = vand.u32 4294901760, %v3379_v44 }
 0x530   : > { %6550 = vtanh.f32 %v3105_v17  ;;  %6072 = vmatmul.msk.f32.gmra.mxu2 %vm3136_vm0, %v11278_v26  ;;  %v6040_v24 = vsel %vm3136_vm0, 1.0, %v11279_v55 }
 0x531   : > { %3381 = vmatmul.f32.gmra.mxu3 %v3380_v52  ;;  %v3385_v49 = vsub.f32 %v6040_v24, %v6040_v24 }
 0x533   : > { %v3078_v2 = vpop.f32.mrf.mxu2  ;;  %4084 = vmatmul.f32.gmra.mxu0 %v3385_v49  ;;  %v3386_v10 = vand.u32 4294901760, %v3385_v49 }
 0x534   : > { %v3079_v60 = vadd.f32 %v3078_v2, %v9477_v12  ;;  %v9788_v46 = vpop.f32.mrf.mxu3 }
 0x535   : > { %4366 = vmatmul.f32.gmra.mxu1 %v3386_v10  ;;  %v3387_v59 = vsub.f32 %v3385_v49, %v3386_v10  ;;  %11288 = vst [vmem:[#allocation108_spill] sm:$0xff] %v9788_v46  ;;  %v3224_v49 = vand.u32 2147483647, %v9661_v18 }
 0x536   : > { %v9767_v61 = vpop.eup %6550  ;;  %v3106_v3 = vmul.f32 0.5, %v3079_v60 }
 0x537   : > { %vm3137_vm1 = vcmp.ne.f32.partialorder %v9767_v61, 0.0  ;;  %v3388_v20 = vand.u32 4294901760, %v3387_v59 }
 0x538   : > { %6552 = vtanh.f32 %v3106_v3  ;;  %6073 = vmatmul.msk.f32.gmra.mxu2 %vm3137_vm1, %v11278_v26  ;;  %v6041_v15 = vsel %vm3137_vm1, 1.0, %v11279_v55 }
 0x539   : > { %3389 = vmatmul.f32.gmra.mxu3 %v3388_v20  ;;  %v3393_v12 = vsub.f32 %v6041_v15, %v6041_v15  ;;  %v3240_v15 = vsel %vm3128_vm14, %v3224_v49, 1.0 }
 0x53b   : > { %v3081_v57 = vpop.f32.mrf.mxu2  ;;  %4089 = vmatmul.f32.gmra.mxu0 %v3393_v12  ;;  %v3394_v14 = vand.u32 4294901760, %v3393_v12 }
 0x53c   : > { %v3082_v27 = vadd.f32 %v3081_v57, %v9529_v36 }
 0x53d   : > { %4372 = vmatmul.f32.gmra.mxu1 %v3394_v14  ;;  %v3395_v40 = vsub.f32 %v3393_v12, %v3394_v14 }
 0x53e   : > { %v9779_v0 = vpop.eup %6552  ;;  %v3107_v56 = vmul.f32 0.5, %v3082_v27  ;;  %v3225_v27 = vand.u32 2147483647, %v9675_v34 }
 0x53f   : > { %vm3138_vm2 = vcmp.ne.f32.partialorder %v9779_v0, 0.0  ;;  %v3396_v19 = vand.u32 4294901760, %v3395_v40 }
 0x540   : > { %6554 = vtanh.f32 %v3107_v56  ;;  %6074 = vmatmul.msk.f32.gmra.mxu2 %vm3138_vm2, %v11278_v26  ;;  %v6042_v35 = vsel %vm3138_vm2, 1.0, %v11279_v55 }
 0x541   : > { %3397 = vmatmul.f32.gmra.mxu3 %v3396_v19  ;;  %v3401_v36 = vsub.f32 %v6042_v35, %v6042_v35 }
 0x543   : > { %v3084_v13 = vpop.f32.mrf.mxu2  ;;  %4094 = vmatmul.f32.gmra.mxu0 %v3401_v36  ;;  %v3402_v28 = vand.u32 4294901760, %v3401_v36 }
 0x544   : > { %v3085_v9 = vadd.f32 %v3084_v13, %v9557_v5  ;;  %v9800_v5 = vpop.f32.mrf.mxu3 }
 0x545   : > { %4378 = vmatmul.f32.gmra.mxu1 %v3402_v28  ;;  %v3403_v38 = vsub.f32 %v3401_v36, %v3402_v28  ;;  %11289 = vst [vmem:[#allocation130_spill] sm:$0xff] %v9800_v5  ;;  %v3241_v28 = vsel %vm3129_vm15, %v3225_v27, 1.0 }
 0x546   : > { %v9791_v63 = vpop.eup %6554  ;;  %v3108_v25 = vmul.f32 0.5, %v3085_v9 }
 0x547   : > { %vm3139_vm3 = vcmp.ne.f32.partialorder %v9791_v63, 0.0  ;;  %v3404_v43 = vand.u32 4294901760, %v3403_v38 }
 0x548   : > { %6556 = vtanh.f32 %v3108_v25  ;;  %6075 = vmatmul.msk.f32.gmra.mxu2 %vm3139_vm3, %v11278_v26  ;;  %v6043_v37 = vsel %vm3139_vm3, 1.0, %v11279_v55  ;;  %v3226_v25 = vand.u32 2147483647, %v9687_v45 }
 0x549   : > { %3405 = vmatmul.f32.gmra.mxu3 %v3404_v43  ;;  %v3409_v21 = vsub.f32 %v6043_v37, %v6043_v37 }
 0x54b   : > { %v3087_v58 = vpop.f32.mrf.mxu2  ;;  %4099 = vmatmul.f32.gmra.mxu0 %v3409_v21  ;;  %v3410_v54 = vand.u32 4294901760, %v3409_v21 }
 0x54c   : > { %v3088_v33 = vadd.f32 %v3087_v58, %v9580_v22  ;;  %v9814_v10 = vpop.f32.mrf.mxu3 }
 0x54d   : > { %4384 = vmatmul.f32.gmra.mxu1 %v3410_v54  ;;  %v3411_v4 = vsub.f32 %v3409_v21, %v3410_v54  ;;  %11290 = vst [vmem:[#allocation107_spill] sm:$0xff] %v9814_v10  ;;  %v3242_v54 = vsel %vm3130_vm5, %v3226_v25, 1.0 }
 0x54e   : > { %v9803_v50 = vpop.eup %6556  ;;  %v3109_v7 = vmul.f32 0.5, %v3088_v33 }
 0x54f   : > { %vm3140_vm4 = vcmp.ne.f32.partialorder %v9803_v50, 0.0  ;;  %v3412_v44 = vand.u32 4294901760, %v3411_v4 }
 0x550   : > { %6558 = vtanh.f32 %v3109_v7  ;;  %6076 = vmatmul.msk.f32.gmra.mxu2 %vm3140_vm4, %v11278_v26  ;;  %v6044_v17 = vsel %vm3140_vm4, 1.0, %v11279_v55 }
 0x551   : > { %3413 = vmatmul.f32.gmra.mxu3 %v3412_v44  ;;  %v3417_v52 = vsub.f32 %v6044_v17, %v6044_v17 }
 0x553   : > { %v3090_v22 = vpop.f32.mrf.mxu2  ;;  %4104 = vmatmul.f32.gmra.mxu0 %v3417_v52  ;;  %v3418_v24 = vand.u32 4294901760, %v3417_v52 }
 0x554   : > { %v3091_v2 = vadd.f32 %v3090_v22, %v9613_v1  ;;  %v9831_v36 = vpop.f32.mrf.mxu3 }
 0x555   : > { %4390 = vmatmul.f32.gmra.mxu1 %v3418_v24  ;;  %v3419_v60 = vsub.f32 %v3417_v52, %v3418_v24  ;;  %11291 = vst [vmem:[#allocation110_spill] sm:$0xff] %v9831_v36 }
 0x556   : > { %v9816_v59 = vpop.eup %6558  ;;  %v3110_v3 = vmul.f32 0.5, %v3091_v2  ;;  %v3227_v2 = vand.u32 2147483647, %v9699_v32 }
 0x557   : > { %vm10821_vm12 = vcmp.ne.f32.partialorder %v9816_v59, 0.0  ;;  %v3420_v20 = vand.u32 4294901760, %v3419_v60 }
 0x558   : > { %6560 = vtanh.f32 %v3110_v3  ;;  %6077 = vmatmul.msk.f32.gmra.mxu2 %vm10821_vm12, %v11278_v26  ;;  %v6045_v1 = vsel %vm10821_vm12, 1.0, %v11279_v55 }
 0x559   : > { %3421 = vmatmul.f32.gmra.mxu3 %v3420_v20  ;;  %v3425_v12 = vsub.f32 %v6045_v1, %v6045_v1  ;;  %6562 = vlog2.f32 %v3240_v15 }
 0x55b   : > { %v3093_v57 = vpop.f32.mrf.mxu2  ;;  %4109 = vmatmul.f32.gmra.mxu0 %v3425_v12  ;;  %v3426_v14 = vand.u32 4294901760, %v3425_v12 }
 0x55c   : > { %v3094_v40 = vadd.f32 %v3093_v57, %v9628_v51  ;;  %v9856_v17 = vpop.f32.mrf.mxu3 }
 0x55d   : > { %4396 = vmatmul.f32.gmra.mxu1 %v3426_v14  ;;  %v3427_v56 = vsub.f32 %v3425_v12, %v3426_v14  ;;  %11292 = vst [vmem:[#allocation93_spill] sm:$0xff] %v9856_v17  ;;  %v3243_v12 = vsel %vm3131_vm6, %v3227_v2, 1.0 }
 0x55e   : > { %v9829_v19 = vpop.eup %6560  ;;  %v3111_v35 = vmul.f32 0.5, %v3094_v40 }
 0x55f   : > { %vm10820_vm11 = vcmp.ne.f32.partialorder %v9829_v19, 0.0  ;;  %v3428_v13 = vand.u32 4294901760, %v3427_v56  ;;  %v6563_v9 = vpop.eup %6562 }
 0x560   : > { %6564 = vtanh.f32 %v3111_v35  ;;  %6078 = vmatmul.msk.f32.gmra.mxu2 %vm10820_vm11, %v11278_v26  ;;  %v6046_v51 = vsel %vm10820_vm11, 1.0, %v11279_v55  ;;  %v3257_v37 = vmul.f32 0.6931472, %v6563_v9 }
 0x561   : > { %3429 = vmatmul.f32.gmra.mxu3 %v3428_v13  ;;  %v3433_v38 = vsub.f32 %v6046_v51, %v6046_v51  ;;  %6566 = vlog2.f32 %v3241_v28  ;;  %v3228_v28 = vand.u32 2147483647, %v9709_v6 }
 0x562   : > { %v9848_v4 = vand.u32 4294901760, %v3257_v37  ;;  %6568 = vlog2.f32 %v3242_v54 }
 0x563   : > { %4114 = vmatmul.f32.gmra.mxu0 %v3433_v38  ;;  %v3434_v43 = vand.u32 4294901760, %v3433_v38  ;;  %6570 = vlog2.f32 %v3243_v12  ;;  %v3244_v25 = vsel %vm3132_vm7, %v3228_v28, 1.0 }
 0x564   : > { %v3449_v24 = vsub.f32 %v3257_v37, %v9848_v4  ;;  %v9865_v27 = vpop.f32.mrf.mxu3  ;;  %6572 = vlog2.f32 %v3244_v25 }
 0x565   : > { %4402 = vmatmul.f32.gmra.mxu1 %v3434_v43  ;;  %v3435_v21 = vsub.f32 %v3433_v38, %v3434_v43  ;;  %11293 = vst [vmem:[#allocation60_spill] sm:$0xff] %v9865_v27 }
 0x566   : > { %v9843_v58 = vpop.eup %6564  ;;  %v3450_v15 = vand.u32 4294901760, %v3449_v24 }
 0x567   : > { %vm10819_vm13 = vcmp.ne.f32.partialorder %v9843_v58, 0.0  ;;  %v3436_v33 = vand.u32 4294901760, %v3435_v21  ;;  %v6567_v7 = vpop.eup %6566 }
 0x568   : > { %6079 = vmatmul.msk.f32.gmra.mxu2 %vm10819_vm13, %v11278_v26  ;;  %v6047_v44 = vsel %vm10819_vm13, 1.0, %v11279_v55  ;;  %v3259_v49 = vmul.f32 0.6931472, %v6567_v7  ;;  %v6569_v3 = vpop.eup %6568  ;;  %v3451_v35 = vsub.f32 %v3449_v24, %v3450_v15 }
 0x569   : > { %3437 = vmatmul.f32.gmra.mxu3 %v3436_v33  ;;  %v3441_v52 = vsub.f32 %v6047_v44, %v6047_v44  ;;  %v3261_v40 = vmul.f32 0.6931472, %v6569_v3  ;;  %v6571_v43 = vpop.eup %6570  ;;  %v3229_v33 = vand.u32 2147483647, %v9721_v48 }
 0x56a   : > { %v9860_v1 = vand.u32 4294901760, %v3259_v49  ;;  %v3452_v51 = vand.u32 4294901760, %v3451_v35 }
 0x56b   : > { %4119 = vmatmul.f32.gmra.mxu0 %v3441_v52  ;;  %v3442_v22 = vand.u32 4294901760, %v3441_v52  ;;  %v9869_v9 = vand.u32 4294901760, %v3261_v40  ;;  %v3245_v2 = vsel %vm3133_vm10, %v3229_v33, 1.0 }
 0x56c   : > { %v3457_v13 = vsub.f32 %v3259_v49, %v9860_v1  ;;  %6574 = vlog2.f32 %v3245_v2 }
 0x56d   : > { %4408 = vmatmul.f32.gmra.mxu1 %v3442_v22  ;;  %v3443_v60 = vsub.f32 %v3441_v52, %v3442_v22  ;;  %v3465_v54 = vsub.f32 %v3261_v40, %v9869_v9  ;;  %v3263_v52 = vmul.f32 0.6931472, %v6571_v43 }
 0x56e   : > { %v3458_v38 = vand.u32 4294901760, %v3457_v13 }
 0x56f   : > { %v3444_v20 = vand.u32 4294901760, %v3443_v60  ;;  %v3466_v49 = vand.u32 4294901760, %v3465_v54 }
 0x570   : > { %3866 = vmatmul.f32.gmra.mxu2 %v9848_v4  ;;  %v4045_v57 = vpop.f32.mrf.mxu0  ;;  %v3459_v44 = vsub.f32 %v3457_v13, %v3458_v38 }
 0x571   : > { %3445 = vmatmul.f32.gmra.mxu3 %v3444_v20  ;;  %v9878_v20 = vand.u32 4294901760, %v3263_v52 }
 0x572   : > { %v4319_v14 = vpop.f32.mrf.mxu1  ;;  %v3460_v3 = vand.u32 4294901760, %v3459_v44 }
 0x573   : > { %v3803_v56 = vpop.f32.mrf.mxu2  ;;  %4124 = vmatmul.f32.gmra.mxu0 %v3449_v24  ;;  %v3473_v28 = vsub.f32 %v3263_v52, %v9878_v20 }
 0x575   : > { %4414 = vmatmul.f32.gmra.mxu1 %v3450_v15  ;;  %v6573_v15 = vpop.eup %6572 }
 0x576   : > { %v6575_v33 = vpop.eup %6574 }
 0x578   : > { %3870 = vmatmul.f32.gmra.mxu2 %v9860_v1  ;;  %v4050_v37 = vpop.f32.mrf.mxu0 }
 0x579   : > { %3453 = vmatmul.f32.gmra.mxu3 %v3452_v51  ;;  %v3265_v51 = vmul.f32 0.6931472, %v6573_v15 }
 0x57a   : > { %v4325_v21 = vpop.f32.mrf.mxu1 }
 0x57b   : > { %v3807_v7 = vpop.f32.mrf.mxu2  ;;  %4129 = vmatmul.f32.gmra.mxu0 %v3457_v13  ;;  %v3467_v13 = vsub.f32 %v3465_v54, %v3466_v49 }
 0x57c   : > { %v3326_v22 = vpop.f32.mrf.mxu3 }
 0x57d   : > { %v3804_v24 = vadd.f32 %v3803_v56, %v3326_v22  ;;  %4420 = vmatmul.f32.gmra.mxu1 %v3458_v38  ;;  %v3468_v43 = vand.u32 4294901760, %v3467_v13  ;;  %v3474_v22 = vand.u32 4294901760, %v3473_v28 }
 0x57f   : > { %v4046_v60 = vadd.f32 %v4045_v57, %v3804_v24  ;;  %v3230_v57 = vand.u32 2147483647, %v9733_v62  ;;  %v9885_v24 = vand.u32 4294901760, %v3265_v51 }
 0x580   : > { %3874 = vmatmul.f32.gmra.mxu2 %v9869_v9  ;;  %v4055_v12 = vpop.f32.mrf.mxu0 }
 0x581   : > { %3461 = vmatmul.f32.gmra.mxu3 %v3460_v3  ;;  %v9881_v40 = vadd.f32 %v4319_v14, %v4046_v60  ;;  %v3246_v14 = vsel %vm3134_vm8, %v3230_v57, 1.0  ;;  %v3267_v60 = vmul.f32 0.6931472, %v6575_v33  ;;  %v3231_v3 = vand.u32 2147483647, %v9745_v8 }
 0x582   : > { %v4331_v35 = vpop.f32.mrf.mxu1  ;;  %6576 = vlog2.f32 %v3246_v14 }
 0x583   : > { %v3811_v56 = vpop.f32.mrf.mxu2  ;;  %4134 = vmatmul.f32.gmra.mxu0 %v3465_v54  ;;  %v9894_v57 = vand.u32 4294901760, %v3267_v60 }
 0x584   : > { %v3334_v38 = vpop.f32.mrf.mxu3 }
 0x585   : > { %v3808_v25 = vadd.f32 %v3807_v7, %v3334_v38  ;;  %4426 = vmatmul.f32.gmra.mxu1 %v3466_v49  ;;  %v3475_v49 = vsub.f32 %v3473_v28, %v3474_v22  ;;  %v3489_v14 = vsub.f32 %v3267_v60, %v9894_v57 }
 0x587   : > { %v4051_v44 = vadd.f32 %v4050_v37, %v3808_v25  ;;  %v3481_v37 = vsub.f32 %v3265_v51, %v9885_v24  ;;  %v3476_v25 = vand.u32 4294901760, %v3475_v49 }
 0x588   : > { %3878 = vmatmul.f32.gmra.mxu2 %v9878_v20  ;;  %v4060_v54 = vpop.f32.mrf.mxu0  ;;  %v6577_v33 = vpop.eup %6576 }
 0x589   : > { %3469 = vmatmul.f32.gmra.mxu3 %v3468_v43  ;;  %v9890_v52 = vadd.f32 %v4325_v21, %v4051_v44  ;;  %v3482_v43 = vand.u32 4294901760, %v3481_v37  ;;  %v3247_v21 = vsel %vm3135_vm9, %v3231_v3, 1.0  ;;  %v3269_v49 = vmul.f32 0.6931472, %v6577_v33 }
 0x58a   : > { %v4337_v2 = vpop.f32.mrf.mxu1  ;;  %6578 = vlog2.f32 %v3247_v21  ;;  %v3490_v3 = vand.u32 4294901760, %v3489_v14 }
 0x58b   : > { %v3815_v7 = vpop.f32.mrf.mxu2  ;;  %4139 = vmatmul.f32.gmra.mxu0 %v3473_v28 }
 0x58c   : > { %v3342_v15 = vpop.f32.mrf.mxu3  ;;  %v3491_v33 = vsub.f32 %v3489_v14, %v3490_v3 }
 0x58d   : > { %v3812_v13 = vadd.f32 %v3811_v56, %v3342_v15  ;;  %4432 = vmatmul.f32.gmra.mxu1 %v3474_v22  ;;  %v3232_v56 = vand.u32 2147483647, %v9757_v41 }
 0x58f   : > { %v4056_v38 = vadd.f32 %v4055_v12, %v3812_v13  ;;  %v3483_v12 = vsub.f32 %v3481_v37, %v3482_v43  ;;  %v3248_v27 = vsel %vm3136_vm0, %v3232_v56, 1.0 }
 0x590   : > { %3882 = vmatmul.f32.gmra.mxu2 %v9885_v24  ;;  %v4065_v44 = vpop.f32.mrf.mxu0  ;;  %v6579_v17 = vpop.eup %6578  ;;  %6580 = vlog2.f32 %v3248_v27 }
 0x591   : > { %3477 = vmatmul.f32.gmra.mxu3 %v3476_v25  ;;  %v9899_v28 = vadd.f32 %v4331_v35, %v4056_v38  ;;  %v3484_v35 = vand.u32 4294901760, %v3483_v12  ;;  %v9905_v38 = vand.u32 4294901760, %v3269_v49 }
 0x592   : > { %v4343_v51 = vpop.f32.mrf.mxu1 }
 0x593   : > { %v3819_v22 = vpop.f32.mrf.mxu2  ;;  %4144 = vmatmul.f32.gmra.mxu0 %v3481_v37 }
 0x594   : > { %v3350_v15 = vpop.f32.mrf.mxu3 }
 0x595   : > { %v3816_v13 = vadd.f32 %v3815_v7, %v3350_v15  ;;  %4438 = vmatmul.f32.gmra.mxu1 %v3482_v43  ;;  %v3497_v43 = vsub.f32 %v3269_v49, %v9905_v38  ;;  %v3271_v15 = vmul.f32 0.6931472, %v6579_v17 }
 0x596   : > { %v6581_v36 = vpop.eup %6580 }
 0x597   : > { %v4061_v25 = vadd.f32 %v4060_v54, %v3816_v13  ;;  %v3233_v54 = vand.u32 2147483647, %v9767_v61  ;;  %v3492_v13 = vand.u32 4294901760, %v3491_v33  ;;  %v3498_v5 = vand.u32 4294901760, %v3497_v43 }
 0x598   : > { %3886 = vmatmul.f32.gmra.mxu2 %v9894_v57  ;;  %v4070_v60 = vpop.f32.mrf.mxu0  ;;  %v3273_v49 = vmul.f32 0.6931472, %v6581_v36 }
 0x599   : > { %3485 = vmatmul.f32.gmra.mxu3 %v3484_v35  ;;  %v9908_v21 = vadd.f32 %v4337_v2, %v4061_v25  ;;  %v9912_v35 = vand.u32 4294901760, %v3271_v15  ;;  %v3249_v27 = vsel %vm3137_vm1, %v3233_v54, 1.0  ;;  %v3234_v25 = vand.u32 2147483647, %v9779_v0 }
 0x59a   : > { %v4349_v37 = vpop.f32.mrf.mxu1  ;;  %6582 = vlog2.f32 %v3249_v27  ;;  %v9921_v54 = vand.u32 4294901760, %v3273_v49 }
 0x59b   : > { %v3823_v7 = vpop.f32.mrf.mxu2  ;;  %4149 = vmatmul.f32.gmra.mxu0 %v3489_v14 }
 0x59c   : > { %v3358_v56 = vpop.f32.mrf.mxu3  ;;  %v3513_v27 = vsub.f32 %v3273_v49, %v9921_v54 }
 0x59d   : > { %v3820_v12 = vadd.f32 %v3819_v22, %v3358_v56  ;;  %4444 = vmatmul.f32.gmra.mxu1 %v3490_v3  ;;  %v3499_v3 = vsub.f32 %v3497_v43, %v3498_v5 }
 0x59f   : > { %v4066_v10 = vadd.f32 %v4065_v44, %v3820_v12  ;;  %v3505_v44 = vsub.f32 %v3271_v15, %v9912_v35  ;;  %v3500_v46 = vand.u32 4294901760, %v3499_v3 }
 0x5a0   : > { %3890 = vmatmul.f32.gmra.mxu2 %v9905_v38  ;;  %v4075_v2 = vpop.f32.mrf.mxu0  ;;  %v6583_v36 = vpop.eup %6582 }
 0x5a1   : > { %3493 = vmatmul.f32.gmra.mxu3 %v3492_v13  ;;  %v9917_v14 = vadd.f32 %v4343_v51, %v4066_v10  ;;  %v3506_v13 = vand.u32 4294901760, %v3505_v44  ;;  %v3250_v10 = vsel %vm3138_vm2, %v3234_v25, 1.0  ;;  %v3275_v3 = vmul.f32 0.6931472, %v6583_v36 }
 0x5a2   : > { %v4355_v17 = vpop.f32.mrf.mxu1  ;;  %6584 = vlog2.f32 %v3250_v10  ;;  %v3514_v25 = vand.u32 4294901760, %v3513_v27 }
 0x5a3   : > { %v3827_v22 = vpop.f32.mrf.mxu2  ;;  %4154 = vmatmul.f32.gmra.mxu0 %v3497_v43 }
 0x5a4   : > { %v3366_v33 = vpop.f32.mrf.mxu3  ;;  %v3515_v36 = vsub.f32 %v3513_v27, %v3514_v25 }
 0x5a5   : > { %v3824_v56 = vadd.f32 %v3823_v7, %v3366_v33  ;;  %4450 = vmatmul.f32.gmra.mxu1 %v3498_v5  ;;  %v3235_v5 = vand.u32 2147483647, %v9791_v63 }
 0x5a7   : > { %v4071_v12 = vadd.f32 %v4070_v60, %v3824_v56  ;;  %v3507_v60 = vsub.f32 %v3505_v44, %v3506_v13  ;;  %v3251_v30 = vsel %vm3139_vm3, %v3235_v5, 1.0 }
 0x5a8   : > { %3894 = vmatmul.f32.gmra.mxu2 %v9912_v35  ;;  %v4080_v51 = vpop.f32.mrf.mxu0  ;;  %v6585_v29 = vpop.eup %6584  ;;  %6586 = vlog2.f32 %v3251_v30 }
 0x5a9   : > { %3501 = vmatmul.f32.gmra.mxu3 %v3500_v46  ;;  %v9926_v43 = vadd.f32 %v4349_v37, %v4071_v12  ;;  %v3508_v37 = vand.u32 4294901760, %v3507_v60  ;;  %v9932_v12 = vand.u32 4294901760, %v3275_v3 }
 0x5aa   : > { %v4361_v15 = vpop.f32.mrf.mxu1 }
 0x5ab   : > { %v3831_v7 = vpop.f32.mrf.mxu2  ;;  %4159 = vmatmul.f32.gmra.mxu0 %v3505_v44 }
 0x5ac   : > { %v3374_v33 = vpop.f32.mrf.mxu3 }
 0x5ad   : > { %v3828_v56 = vadd.f32 %v3827_v22, %v3374_v33  ;;  %4456 = vmatmul.f32.gmra.mxu1 %v3506_v13  ;;  %v3521_v13 = vsub.f32 %v3275_v3, %v9932_v12  ;;  %v3277_v33 = vmul.f32 0.6931472, %v6585_v29 }
 0x5ae   : > { %v6587_v16 = vpop.eup %6586 }
 0x5af   : > { %v4076_v46 = vadd.f32 %v4075_v2, %v3828_v56  ;;  %v3236_v2 = vand.u32 2147483647, %v9803_v50  ;;  %v3516_v56 = vand.u32 4294901760, %v3515_v36  ;;  %v3522_v39 = vand.u32 4294901760, %v3521_v13 }
 0x5b0   : > { %3898 = vmatmul.f32.gmra.mxu2 %v9921_v54  ;;  %v4085_v49 = vpop.f32.mrf.mxu0  ;;  %v3279_v3 = vmul.f32 0.6931472, %v6587_v16 }
 0x5b1   : > { %3509 = vmatmul.f32.gmra.mxu3 %v3508_v37  ;;  %v9935_v10 = vadd.f32 %v4355_v17, %v4076_v46  ;;  %v9939_v37 = vand.u32 4294901760, %v3277_v33  ;;  %v3252_v30 = vsel %vm3140_vm4, %v3236_v2, 1.0  ;;  %v3237_v46 = vand.u32 2147483647, %v9816_v59 }
 0x5b2   : > { %v4367_v44 = vpop.f32.mrf.mxu1  ;;  %6588 = vlog2.f32 %v3252_v30  ;;  %v9948_v2 = vand.u32 4294901760, %v3279_v3 }
 0x5b3   : > { %v3835_v22 = vpop.f32.mrf.mxu2  ;;  %4164 = vmatmul.f32.gmra.mxu0 %v3513_v27 }
 0x5b4   : > { %v3382_v5 = vpop.f32.mrf.mxu3  ;;  %11294 = vst [vmem:[#allocation77_spill] sm:$0xff] %v9948_v2  ;;  %v3537_v30 = vsub.f32 %v3279_v3, %v9948_v2 }
 0x5b5   : > { %v3832_v60 = vadd.f32 %v3831_v7, %v3382_v5  ;;  %4462 = vmatmul.f32.gmra.mxu1 %v3514_v25  ;;  %v3523_v25 = vsub.f32 %v3521_v13, %v3522_v39 }
 0x5b7   : > { %v4081_v53 = vadd.f32 %v4080_v51, %v3832_v60  ;;  %v3529_v51 = vsub.f32 %v3277_v33, %v9939_v37  ;;  %v3524_v11 = vand.u32 4294901760, %v3523_v25  ;;  %v3238_v25 = vand.u32 2147483647, %v9829_v19 }
 0x5b8   : > { %3902 = vmatmul.f32.gmra.mxu2 %v9932_v12  ;;  %v4090_v17 = vpop.f32.mrf.mxu0  ;;  %v6589_v16 = vpop.eup %6588 }
 0x5b9   : > { %3517 = vmatmul.f32.gmra.mxu3 %v3516_v56  ;;  %v9944_v27 = vadd.f32 %v4361_v15, %v4081_v53  ;;  %v3530_v56 = vand.u32 4294901760, %v3529_v51  ;;  %v3253_v53 = vsel %vm10821_vm12, %v3237_v46, 1.0  ;;  %v3538_v46 = vand.u32 4294901760, %v3537_v30 }
 0x5ba   : > { %v4373_v29 = vpop.f32.mrf.mxu1  ;;  %6590 = vlog2.f32 %v3253_v53  ;;  %vm10824_vm12 = vcmp.lt.f32.partialorder %v9687_v45, 0.0 }
 0x5bb   : > { %v3839_v7 = vpop.f32.mrf.mxu2  ;;  %4169 = vmatmul.f32.gmra.mxu0 %v3521_v13  ;;  %v3539_v53 = vsub.f32 %v3537_v30, %v3538_v46 }
 0x5bc   : > { %v3390_v36 = vpop.f32.mrf.mxu3 }
 0x5bd   : > { %v3836_v5 = vadd.f32 %v3835_v22, %v3390_v36  ;;  %4468 = vmatmul.f32.gmra.mxu1 %v3522_v39  ;;  %v3531_v22 = vsub.f32 %v3529_v51, %v3530_v56 }
 0x5bf   : > { %v4086_v60 = vadd.f32 %v4085_v49, %v3836_v5  ;;  %v3281_v49 = vmul.f32 0.6931472, %v6589_v16  ;;  %v3532_v31 = vand.u32 4294901760, %v3531_v22  ;;  %v3239_v16 = vand.u32 2147483647, %v9843_v58 }
 0x5c0   : > { %3906 = vmatmul.f32.gmra.mxu2 %v9939_v37  ;;  %v4095_v15 = vpop.f32.mrf.mxu0 }
 0x5c1   : > { %3525 = vmatmul.f32.gmra.mxu3 %v3524_v11  ;;  %v9953_v13 = vadd.f32 %v4367_v44, %v4086_v60  ;;  %v9957_v47 = vand.u32 4294901760, %v3281_v49  ;;  %v3254_v11 = vsel %vm10820_vm11, %v3238_v25, 1.0  ;;  %v6591_v44 = vpop.eup %6590  ;;  %v3540_v25 = vand.u32 4294901760, %v3539_v53 }
 0x5c2   : > { %v4379_v33 = vpop.f32.mrf.mxu1  ;;  %6592 = vlog2.f32 %v3254_v11  ;;  %vm10823_vm11 = vcmp.lt.f32.partialorder %v9675_v34, 0.0 }
 0x5c3   : > { %v3843_v39 = vpop.f32.mrf.mxu2  ;;  %4174 = vmatmul.f32.gmra.mxu0 %v3529_v51  ;;  %11295 = vst [vmem:[#allocation103_spill] sm:$0xff] %v9957_v47 }
 0x5c4   : > { %v3398_v36 = vpop.f32.mrf.mxu3 }
 0x5c5   : > { %v3840_v5 = vadd.f32 %v3839_v7, %v3398_v36  ;;  %4474 = vmatmul.f32.gmra.mxu1 %v3530_v56  ;;  %v3283_v56 = vmul.f32 0.6931472, %v6591_v44 }
 0x5c7   : > { %v4091_v42 = vadd.f32 %v4090_v17, %v3840_v5  ;;  %v3545_v17 = vsub.f32 %v3281_v49, %v9957_v47 }
 0x5c8   : > { %3910 = vmatmul.f32.gmra.mxu2 %v9948_v2  ;;  %v4100_v3 = vpop.f32.mrf.mxu0  ;;  %v9966_v2 = vand.u32 4294901760, %v3283_v56 }
 0x5c9   : > { %3533 = vmatmul.f32.gmra.mxu3 %v3532_v31  ;;  %v9962_v51 = vadd.f32 %v4373_v29, %v4091_v42  ;;  %v3546_v23 = vand.u32 4294901760, %v3545_v17  ;;  %v3255_v31 = vsel %vm10819_vm13, %v3239_v16, 1.0  ;;  %v6593_v42 = vpop.eup %6592  ;;  %vm10822_vm13 = vcmp.lt.f32.partialorder %v9661_v18, 0.0 }
 0x5ca   : > { %v4385_v60 = vpop.f32.mrf.mxu1  ;;  %11297 = vst [vmem:[#allocation146_spill] sm:$0xff] %v9966_v2  ;;  %6594 = vlog2.f32 %v3255_v31 }
 0x5cb   : > { %11296 = vst [vmem:[#allocation105_spill] sm:$0xff] %v9962_v51  ;;  %v3847_v7 = vpop.f32.mrf.mxu2  ;;  %4179 = vmatmul.f32.gmra.mxu0 %v3537_v30 }
 0x5cc   : > { %v3406_v22 = vpop.f32.mrf.mxu3 }
 0x5cd   : > { %v3844_v36 = vadd.f32 %v3843_v39, %v3406_v22  ;;  %4480 = vmatmul.f32.gmra.mxu1 %v3538_v46  ;;  %v3547_v39 = vsub.f32 %v3545_v17, %v3546_v23  ;;  %v3285_v46 = vmul.f32 0.6931472, %v6593_v42 }
 0x5cf   : > { %v4096_v5 = vadd.f32 %v4095_v15, %v3844_v36  ;;  %v3553_v15 = vsub.f32 %v3283_v56, %v9966_v2  ;;  %v3548_v16 = vand.u32 4294901760, %v3547_v39  ;;  %v9974_v51 = vand.u32 4294901760, %v3285_v46 }
 0x5d0   : > { %3914 = vmatmul.f32.gmra.mxu2 %v9957_v47  ;;  %v4105_v29 = vpop.f32.mrf.mxu0  ;;  %v6595_v47 = vpop.eup %6594 }
 0x5d1   : > { %3541 = vmatmul.f32.gmra.mxu3 %v3540_v25  ;;  %v9971_v30 = vadd.f32 %v4379_v33, %v4096_v5  ;;  %v3554_v36 = vand.u32 4294901760, %v3553_v15  ;;  %v3561_v31 = vsub.f32 %v3285_v46, %v9974_v51 }
 0x5d2   : > { %v4391_v49 = vpop.f32.mrf.mxu1 }
 0x5d3   : > { %v3851_v11 = vpop.f32.mrf.mxu2  ;;  %4184 = vmatmul.f32.gmra.mxu0 %v3545_v17  ;;  %v3555_v56 = vsub.f32 %v3553_v15, %v3554_v36 }
 0x5d4   : > { %v3414_v44 = vpop.f32.mrf.mxu3 }
 0x5d5   : > { %v3848_v53 = vadd.f32 %v3847_v7, %v3414_v44  ;;  %4486 = vmatmul.f32.gmra.mxu1 %v3546_v23  ;;  %v3287_v7 = vmul.f32 0.6931472, %v6595_v47  ;;  %v3556_v39 = vand.u32 4294901760, %v3555_v56  ;;  %v3562_v44 = vand.u32 4294901760, %v3561_v31 }
 0x5d7   : > { %v4101_v22 = vadd.f32 %v4100_v3, %v3848_v53  ;;  %v9980_v53 = vand.u32 4294901760, %v3287_v7 }
 0x5d8   : > { %3918 = vmatmul.f32.gmra.mxu2 %v9966_v2  ;;  %v4110_v33 = vpop.f32.mrf.mxu0 }
 0x5d9   : > { %3549 = vmatmul.f32.gmra.mxu3 %v3548_v16  ;;  %v9977_v25 = vadd.f32 %v4385_v60, %v4101_v22  ;;  %v3569_v47 = vsub.f32 %v3287_v7, %v9980_v53 }
 0x5da   : > { %v4397_v5 = vpop.f32.mrf.mxu1 }
 0x5db   : > { %v3855_v17 = vpop.f32.mrf.mxu2  ;;  %4189 = vmatmul.f32.gmra.mxu0 %v3553_v15  ;;  %v3563_v15 = vsub.f32 %v3561_v31, %v3562_v44  ;;  %v3570_v56 = vand.u32 4294901760, %v3569_v47 }
 0x5dc   : > { %v3422_v23 = vpop.f32.mrf.mxu3 }
 0x5dd   : > { %v3852_v3 = vadd.f32 %v3851_v11, %v3422_v23  ;;  %4492 = vmatmul.f32.gmra.mxu1 %v3554_v36  ;;  %v3564_v36 = vand.u32 4294901760, %v3563_v15 }
 0x5df   : > { %v4106_v42 = vadd.f32 %v4105_v29, %v3852_v3 }
 0x5e0   : > { %3922 = vmatmul.f32.gmra.mxu2 %v9974_v51  ;;  %v4115_v16 = vpop.f32.mrf.mxu0 }
 0x5e1   : > { %3557 = vmatmul.f32.gmra.mxu3 %v3556_v39  ;;  %v9983_v60 = vadd.f32 %v4391_v49, %v4106_v42  ;;  %v6048_v49 = vsel %vm10822_vm13, 1.0, %v11279_v55 }
 0x5e2   : > { %v4403_v22 = vpop.f32.mrf.mxu1  ;;  %v3577_v42 = vsub.f32 %v6048_v49, %v6048_v49 }
 0x5e3   : > { %v3859_v2 = vpop.f32.mrf.mxu2  ;;  %4194 = vmatmul.f32.gmra.mxu0 %v3561_v31 }
 0x5e4   : > { %v3430_v46 = vpop.f32.mrf.mxu3 }
 0x5e5   : > { %v3856_v11 = vadd.f32 %v3855_v17, %v3430_v46  ;;  %4498 = vmatmul.f32.gmra.mxu1 %v3562_v44  ;;  %v3571_v17 = vsub.f32 %v3569_v47, %v3570_v56  ;;  %v3578_v46 = vand.u32 4294901760, %v3577_v42 }
 0x5e7   : > { %v4111_v29 = vadd.f32 %v4110_v33, %v3856_v11  ;;  %v3572_v15 = vand.u32 4294901760, %v3571_v17 }
 0x5e8   : > { %3926 = vmatmul.f32.gmra.mxu2 %v9980_v53  ;;  %v4120_v23 = vpop.f32.mrf.mxu0 }
 0x5e9   : > { %3565 = vmatmul.f32.gmra.mxu3 %v3564_v36  ;;  %v9991_v3 = vadd.f32 %v4397_v5, %v4111_v29  ;;  %v6049_v5 = vsel %vm10823_vm11, 1.0, %v11279_v55  ;;  %v3579_v36 = vsub.f32 %v3577_v42, %v3578_v46 }
 0x5ea   : > { %v4409_v31 = vpop.f32.mrf.mxu1 }
 0x5eb   : > { %v3863_v7 = vpop.f32.mrf.mxu2  ;;  %4199 = vmatmul.f32.gmra.mxu0 %v3569_v47 }
 0x5ec   : > { %v3438_v39 = vpop.f32.mrf.mxu3 }
 0x5ed   : > { %v3860_v44 = vadd.f32 %v3859_v2, %v3438_v39  ;;  %4504 = vmatmul.f32.gmra.mxu1 %v3570_v56  ;;  %v3585_v56 = vsub.f32 %v6049_v5, %v6049_v5  ;;  %v3580_v39 = vand.u32 4294901760, %v3579_v36 }
 0x5ef   : > { %v4116_v33 = vadd.f32 %v4115_v16, %v3860_v44  ;;  %v3586_v44 = vand.u32 4294901760, %v3585_v56 }
 0x5f0   : > { %6080 = vmatmul.msk.f32.gmra.mxu2 %vm10822_vm13, %v11278_v26  ;;  %v4125_v11 = vpop.f32.mrf.mxu0  ;;  %vm10825_vm13 = vcmp.lt.f32.partialorder %v9699_v32, 0.0 }
 0x5f1   : > { %3573 = vmatmul.f32.gmra.mxu3 %v3572_v15  ;;  %v10000_v47 = vadd.f32 %v4403_v22, %v4116_v33  ;;  %v6050_v22 = vsel %vm10824_vm12, 1.0, %v11279_v55 }
 0x5f2   : > { %v4415_v29 = vpop.f32.mrf.mxu1  ;;  %v3593_v5 = vsub.f32 %v6050_v22, %v6050_v22 }
 0x5f3   : > { %11298 = vst [vmem:[#allocation81_spill] sm:$0xff] %v10000_v47  ;;  %v3867_v2 = vpop.f32.mrf.mxu2  ;;  %4204 = vmatmul.f32.gmra.mxu0 %v3577_v42 }
 0x5f4   : > { %v3446_v16 = vpop.f32.mrf.mxu3  ;;  %v3594_v47 = vand.u32 4294901760, %v3593_v5 }
 0x5f5   : > { %v3864_v49 = vadd.f32 %v3863_v7, %v3446_v16  ;;  %4510 = vmatmul.f32.gmra.mxu1 %v3578_v46  ;;  %v3587_v46 = vsub.f32 %v3585_v56, %v3586_v44 }
 0x5f7   : > { %v4121_v17 = vadd.f32 %v4120_v23, %v3864_v49  ;;  %v3588_v49 = vand.u32 4294901760, %v3587_v46 }
 0x5f8   : > { %6081 = vmatmul.msk.f32.gmra.mxu2 %vm10823_vm11, %v11278_v26  ;;  %v4130_v15 = vpop.f32.mrf.mxu0  ;;  %vm10826_vm11 = vcmp.lt.f32.partialorder %v9709_v6, 0.0 }
 0x5f9   : > { %3581 = vmatmul.f32.gmra.mxu3 %v3580_v39  ;;  %v10009_v42 = vadd.f32 %v4409_v31, %v4121_v17  ;;  %v6051_v31 = vsel %vm10825_vm13, 1.0, %v11279_v55 }
 0x5fa   : > { %v4421_v33 = vpop.f32.mrf.mxu1  ;;  %v3601_v22 = vsub.f32 %v6051_v31, %v6051_v31 }
 0x5fb   : > { %11299 = vst [vmem:[#allocation39_spill] sm:$0xff] %v10009_v42  ;;  %v3871_v7 = vpop.f32.mrf.mxu2  ;;  %4209 = vmatmul.f32.gmra.mxu0 %v3585_v56 }
 0x5fc   : > { %v3454_v23 = vpop.f32.mrf.mxu3  ;;  %v3602_v42 = vand.u32 4294901760, %v3601_v22 }
 0x5fd   : > { %v3868_v36 = vadd.f32 %v3867_v2, %v3454_v23  ;;  %4516 = vmatmul.f32.gmra.mxu1 %v3586_v44  ;;  %v3595_v44 = vsub.f32 %v3593_v5, %v3594_v47 }
 0x5ff   : > { %v4126_v16 = vadd.f32 %v4125_v11, %v3868_v36  ;;  %v3596_v36 = vand.u32 4294901760, %v3595_v44 }
 0x600   : > { %6082 = vmatmul.msk.f32.gmra.mxu2 %vm10824_vm12, %v11278_v26  ;;  %v4135_v39 = vpop.f32.mrf.mxu0  ;;  %vm10827_vm12 = vcmp.lt.f32.partialorder %v9721_v48, 0.0 }
 0x601   : > { %3589 = vmatmul.f32.gmra.mxu3 %v3588_v49  ;;  %v10018_v56 = vadd.f32 %v4415_v29, %v4126_v16  ;;  %v6052_v29 = vsel %vm10826_vm11, 1.0, %v11279_v55 }
 0x602   : > { %v4427_v17 = vpop.f32.mrf.mxu1  ;;  %v3609_v31 = vsub.f32 %v6052_v29, %v6052_v29 }
 0x603   : > { %11300 = vst [vmem:[#allocation53_spill] sm:$0xff] %v10018_v56  ;;  %v3875_v2 = vpop.f32.mrf.mxu2  ;;  %4214 = vmatmul.f32.gmra.mxu0 %v3593_v5 }
 0x604   : > { %v3462_v11 = vpop.f32.mrf.mxu3  ;;  %v3610_v56 = vand.u32 4294901760, %v3609_v31 }
 0x605   : > { %v3872_v46 = vadd.f32 %v3871_v7, %v3462_v11  ;;  %4522 = vmatmul.f32.gmra.mxu1 %v3594_v47  ;;  %v3603_v47 = vsub.f32 %v3601_v22, %v3602_v42 }
 0x607   : > { %v4131_v23 = vadd.f32 %v4130_v15, %v3872_v46  ;;  %v3604_v46 = vand.u32 4294901760, %v3603_v47 }
 0x608   : > { %6083 = vmatmul.msk.f32.gmra.mxu2 %vm10825_vm13, %v11278_v26  ;;  %v4140_v49 = vpop.f32.mrf.mxu0  ;;  %vm10828_vm13 = vcmp.lt.f32.partialorder %v9733_v62, 0.0 }
 0x609   : > { %3597 = vmatmul.f32.gmra.mxu3 %v3596_v36  ;;  %v10027_v5 = vadd.f32 %v4421_v33, %v4131_v23  ;;  %v6053_v33 = vsel %vm10827_vm12, 1.0, %v11279_v55 }
 0x60a   : > { %v4433_v16 = vpop.f32.mrf.mxu1  ;;  %v3617_v29 = vsub.f32 %v6053_v33, %v6053_v33 }
 0x60b   : > { %11301 = vst [vmem:[#allocation75_spill] sm:$0xff] %v10027_v5  ;;  %v3879_v7 = vpop.f32.mrf.mxu2  ;;  %4219 = vmatmul.f32.gmra.mxu0 %v3601_v22 }
 0x60c   : > { %v3470_v15 = vpop.f32.mrf.mxu3  ;;  %v3618_v5 = vand.u32 4294901760, %v3617_v29 }
 0x60d   : > { %v3876_v44 = vadd.f32 %v3875_v2, %v3470_v15  ;;  %4528 = vmatmul.f32.gmra.mxu1 %v3602_v42  ;;  %v3611_v42 = vsub.f32 %v3609_v31, %v3610_v56 }
 0x60f   : > { %v4136_v11 = vadd.f32 %v4135_v39, %v3876_v44  ;;  %v3612_v44 = vand.u32 4294901760, %v3611_v42 }
 0x610   : > { %6084 = vmatmul.msk.f32.gmra.mxu2 %vm10826_vm11, %v11278_v26  ;;  %v4145_v36 = vpop.f32.mrf.mxu0  ;;  %vm10829_vm11 = vcmp.lt.f32.partialorder %v9745_v8, 0.0 }
 0x611   : > { %3605 = vmatmul.f32.gmra.mxu3 %v3604_v46  ;;  %v10036_v22 = vadd.f32 %v4427_v17, %v4136_v11  ;;  %v6054_v17 = vsel %vm10828_vm13, 1.0, %v11279_v55 }
 0x612   : > { %v4439_v23 = vpop.f32.mrf.mxu1  ;;  %v3625_v33 = vsub.f32 %v6054_v17, %v6054_v17 }
 0x613   : > { %11302 = vst [vmem:[#allocation109_spill] sm:$0xff] %v10036_v22  ;;  %v3883_v2 = vpop.f32.mrf.mxu2  ;;  %4224 = vmatmul.f32.gmra.mxu0 %v3609_v31 }
 0x614   : > { %v3478_v39 = vpop.f32.mrf.mxu3  ;;  %v3626_v22 = vand.u32 4294901760, %v3625_v33 }
 0x615   : > { %v3880_v47 = vadd.f32 %v3879_v7, %v3478_v39  ;;  %4534 = vmatmul.f32.gmra.mxu1 %v3610_v56  ;;  %v3619_v56 = vsub.f32 %v3617_v29, %v3618_v5 }
 0x617   : > { %v4141_v15 = vadd.f32 %v4140_v49, %v3880_v47  ;;  %v3620_v47 = vand.u32 4294901760, %v3619_v56 }
 0x618   : > { %6085 = vmatmul.msk.f32.gmra.mxu2 %vm10827_vm12, %v11278_v26  ;;  %v4150_v46 = vpop.f32.mrf.mxu0  ;;  %vm10830_vm12 = vcmp.lt.f32.partialorder %v9757_v41, 0.0 }
 0x619   : > { %3613 = vmatmul.f32.gmra.mxu3 %v3612_v44  ;;  %v10045_v31 = vadd.f32 %v4433_v16, %v4141_v15  ;;  %v6055_v16 = vsel %vm10829_vm11, 1.0, %v11279_v55 }
 0x61a   : > { %v4445_v11 = vpop.f32.mrf.mxu1  ;;  %v3633_v17 = vsub.f32 %v6055_v16, %v6055_v16 }
 0x61b   : > { %11303 = vst [vmem:[#allocation112_spill] sm:$0xff] %v10045_v31  ;;  %v3887_v7 = vpop.f32.mrf.mxu2  ;;  %4229 = vmatmul.f32.gmra.mxu0 %v3617_v29 }
 0x61c   : > { %v3486_v49 = vpop.f32.mrf.mxu3  ;;  %v3634_v31 = vand.u32 4294901760, %v3633_v17 }
 0x61d   : > { %v3884_v42 = vadd.f32 %v3883_v2, %v3486_v49  ;;  %4540 = vmatmul.f32.gmra.mxu1 %v3618_v5  ;;  %v3627_v5 = vsub.f32 %v3625_v33, %v3626_v22 }
 0x61f   : > { %v4146_v39 = vadd.f32 %v4145_v36, %v3884_v42  ;;  %v3628_v42 = vand.u32 4294901760, %v3627_v5 }
 0x620   : > { %6086 = vmatmul.msk.f32.gmra.mxu2 %vm10828_vm13, %v11278_v26  ;;  %v4155_v44 = vpop.f32.mrf.mxu0  ;;  %vm10831_vm13 = vcmp.lt.f32.partialorder %v9767_v61, 0.0 }
 0x621   : > { %3621 = vmatmul.f32.gmra.mxu3 %v3620_v47  ;;  %v10054_v29 = vadd.f32 %v4439_v23, %v4146_v39  ;;  %v6056_v23 = vsel %vm10830_vm12, 1.0, %v11279_v55 }
 0x622   : > { %v4451_v15 = vpop.f32.mrf.mxu1  ;;  %v3641_v16 = vsub.f32 %v6056_v23, %v6056_v23 }
 0x623   : > { %11304 = vst [vmem:[#allocation111_spill] sm:$0xff] %v10054_v29  ;;  %v3891_v2 = vpop.f32.mrf.mxu2  ;;  %4234 = vmatmul.f32.gmra.mxu0 %v3625_v33 }
 0x624   : > { %v3494_v36 = vpop.f32.mrf.mxu3  ;;  %v3642_v29 = vand.u32 4294901760, %v3641_v16 }
 0x625   : > { %v3888_v56 = vadd.f32 %v3887_v7, %v3494_v36  ;;  %4546 = vmatmul.f32.gmra.mxu1 %v3626_v22  ;;  %v3635_v22 = vsub.f32 %v3633_v17, %v3634_v31 }
 0x627   : > { %v4151_v49 = vadd.f32 %v4150_v46, %v3888_v56  ;;  %v3636_v56 = vand.u32 4294901760, %v3635_v22 }
 0x628   : > { %6087 = vmatmul.msk.f32.gmra.mxu2 %vm10829_vm11, %v11278_v26  ;;  %v4160_v47 = vpop.f32.mrf.mxu0  ;;  %vm10832_vm11 = vcmp.lt.f32.partialorder %v9779_v0, 0.0 }
 0x629   : > { %3629 = vmatmul.f32.gmra.mxu3 %v3628_v42  ;;  %v10063_v33 = vadd.f32 %v4445_v11, %v4151_v49  ;;  %v6057_v11 = vsel %vm10831_vm13, 1.0, %v11279_v55 }
 0x62a   : > { %v4457_v39 = vpop.f32.mrf.mxu1  ;;  %v3649_v23 = vsub.f32 %v6057_v11, %v6057_v11 }
 0x62b   : > { %11305 = vst [vmem:[#allocation114_spill] sm:$0xff] %v10063_v33  ;;  %v3895_v7 = vpop.f32.mrf.mxu2  ;;  %4239 = vmatmul.f32.gmra.mxu0 %v3633_v17 }
 0x62c   : > { %v3502_v46 = vpop.f32.mrf.mxu3  ;;  %v3650_v33 = vand.u32 4294901760, %v3649_v23 }
 0x62d   : > { %v3892_v5 = vadd.f32 %v3891_v2, %v3502_v46  ;;  %4552 = vmatmul.f32.gmra.mxu1 %v3634_v31  ;;  %v3643_v31 = vsub.f32 %v3641_v16, %v3642_v29 }
 0x62f   : > { %v4156_v36 = vadd.f32 %v4155_v44, %v3892_v5  ;;  %v3644_v5 = vand.u32 4294901760, %v3643_v31 }
 0x630   : > { %6088 = vmatmul.msk.f32.gmra.mxu2 %vm10830_vm12, %v11278_v26  ;;  %v4165_v42 = vpop.f32.mrf.mxu0  ;;  %vm10833_vm12 = vcmp.lt.f32.partialorder %v9791_v63, 0.0 }
 0x631   : > { %3637 = vmatmul.f32.gmra.mxu3 %v3636_v56  ;;  %v10072_v17 = vadd.f32 %v4451_v15, %v4156_v36  ;;  %v6058_v15 = vsel %vm10832_vm11, 1.0, %v11279_v55 }
 0x632   : > { %v4463_v49 = vpop.f32.mrf.mxu1 }
 0x633   : > { %11306 = vst [vmem:[#allocation94_spill] sm:$0xff] %v10072_v17  ;;  %v3899_v2 = vpop.f32.mrf.mxu2  ;;  %4244 = vmatmul.f32.gmra.mxu0 %v3641_v16 }
 0x634   : > { %v3510_v44 = vpop.f32.mrf.mxu3 }
 0x635   : > { %v3896_v22 = vadd.f32 %v3895_v7, %v3510_v44  ;;  %4558 = vmatmul.f32.gmra.mxu1 %v3642_v29  ;;  %v3651_v29 = vsub.f32 %v3649_v23, %v3650_v33  ;;  %v3657_v7 = vsub.f32 %v6058_v15, %v6058_v15 }
 0x637   : > { %v4161_v46 = vadd.f32 %v4160_v47, %v3896_v22  ;;  %v3652_v22 = vand.u32 4294901760, %v3651_v29  ;;  %v3658_v17 = vand.u32 4294901760, %v3657_v7 }
 0x638   : > { %6089 = vmatmul.msk.f32.gmra.mxu2 %vm10831_vm13, %v11278_v26  ;;  %v4170_v16 = vpop.f32.mrf.mxu0  ;;  %vm10834_vm13 = vcmp.lt.f32.partialorder %v9803_v50, 0.0 }
 0x639   : > { %3645 = vmatmul.f32.gmra.mxu3 %v3644_v5  ;;  %v10081_v36 = vadd.f32 %v4457_v39, %v4161_v46  ;;  %v6059_v39 = vsel %vm10833_vm12, 1.0, %v11279_v55 }
 0x63a   : > { %v4469_v11 = vpop.f32.mrf.mxu1 }
 0x63b   : > { %11307 = vst [vmem:[#allocation44_spill] sm:$0xff] %v10081_v36  ;;  %v3903_v56 = vpop.f32.mrf.mxu2  ;;  %4249 = vmatmul.f32.gmra.mxu0 %v3649_v23 }
 0x63c   : > { %v3518_v47 = vpop.f32.mrf.mxu3 }
 0x63d   : > { %v3900_v31 = vadd.f32 %v3899_v2, %v3518_v47  ;;  %4564 = vmatmul.f32.gmra.mxu1 %v3650_v33  ;;  %v3659_v2 = vsub.f32 %v3657_v7, %v3658_v17  ;;  %v3665_v33 = vsub.f32 %v6059_v39, %v6059_v39 }
 0x63f   : > { %v4166_v44 = vadd.f32 %v4165_v42, %v3900_v31  ;;  %v3660_v31 = vand.u32 4294901760, %v3659_v2  ;;  %v3666_v36 = vand.u32 4294901760, %v3665_v33 }
 0x640   : > { %6090 = vmatmul.msk.f32.gmra.mxu2 %vm10832_vm11, %v11278_v26  ;;  %v4175_v5 = vpop.f32.mrf.mxu0  ;;  %vm3189_vm11 = vcmp.lt.f32.partialorder %v9816_v59, 0.0 }
 0x641   : > { %3653 = vmatmul.f32.gmra.mxu3 %v3652_v22  ;;  %v10090_v23 = vadd.f32 %v4463_v49, %v4166_v44  ;;  %v6060_v49 = vsel %vm10834_vm13, 1.0, %v11279_v55 }
 0x642   : > { %v4475_v29 = vpop.f32.mrf.mxu1 }
 0x643   : > { %11308 = vst [vmem:[#allocation80_spill] sm:$0xff] %v10090_v23  ;;  %v3907_v46 = vpop.f32.mrf.mxu2  ;;  %4254 = vmatmul.f32.gmra.mxu0 %v3657_v7 }
 0x644   : > { %v3526_v15 = vpop.f32.mrf.mxu3 }
 0x645   : > { %v3904_v42 = vadd.f32 %v3903_v56, %v3526_v15  ;;  %4570 = vmatmul.f32.gmra.mxu1 %v3658_v17  ;;  %v3667_v17 = vsub.f32 %v3665_v33, %v3666_v36  ;;  %v3673_v56 = vsub.f32 %v6060_v49, %v6060_v49 }
 0x647   : > { %v4171_v47 = vadd.f32 %v4170_v16, %v3904_v42  ;;  %v3668_v15 = vand.u32 4294901760, %v3667_v17  ;;  %v3674_v42 = vand.u32 4294901760, %v3673_v56 }
 0x648   : > { %6091 = vmatmul.msk.f32.gmra.mxu2 %vm10833_vm12, %v11278_v26  ;;  %v4180_v16 = vpop.f32.mrf.mxu0  ;;  %vm3190_vm12 = vcmp.lt.f32.partialorder %v9829_v19, 0.0 }
 0x649   : > { %3661 = vmatmul.f32.gmra.mxu3 %v3660_v31  ;;  %v10099_v7 = vadd.f32 %v4469_v11, %v4171_v47  ;;  %v6061_v11 = vsel %vm3189_vm11, 1.0, %v11279_v55 }
 0x64a   : > { %v4481_v23 = vpop.f32.mrf.mxu1  ;;  %v3681_v47 = vsub.f32 %v6061_v11, %v6061_v11 }
 0x64b   : > { %v3911_v44 = vpop.f32.mrf.mxu2  ;;  %4259 = vmatmul.f32.gmra.mxu0 %v3665_v33 }
 0x64c   : > { %v3534_v22 = vpop.f32.mrf.mxu3 }
 0x64d   : > { %v3908_v39 = vadd.f32 %v3907_v46, %v3534_v22  ;;  %4576 = vmatmul.f32.gmra.mxu1 %v3666_v36  ;;  %v3675_v36 = vsub.f32 %v3673_v56, %v3674_v42  ;;  %v3682_v22 = vand.u32 4294901760, %v3681_v47 }
 0x64f   : > { %v4176_v2 = vadd.f32 %v4175_v5, %v3908_v39  ;;  %v3676_v17 = vand.u32 4294901760, %v3675_v36 }
 0x650   : > { %6092 = vmatmul.msk.f32.gmra.mxu2 %vm10834_vm13, %v11278_v26  ;;  %v4185_v39 = vpop.f32.mrf.mxu0  ;;  %vm3191_vm13 = vcmp.lt.f32.partialorder %v9843_v58, 0.0 }
 0x651   : > { %3669 = vmatmul.f32.gmra.mxu3 %v3668_v15  ;;  %v10108_v33 = vadd.f32 %v4475_v29, %v4176_v2  ;;  %v6062_v29 = vsel %vm3190_vm12, 1.0, %v11279_v55  ;;  %v3683_v15 = vsub.f32 %v3681_v47, %v3682_v22 }
 0x652   : > { %v4487_v2 = vpop.f32.mrf.mxu1 }
 0x653   : > { %v3915_v46 = vpop.f32.mrf.mxu2  ;;  %4264 = vmatmul.f32.gmra.mxu0 %v3673_v56 }
 0x654   : > { %v3542_v31 = vpop.f32.mrf.mxu3 }
 0x655   : > { %v3912_v5 = vadd.f32 %v3911_v44, %v3542_v31  ;;  %4582 = vmatmul.f32.gmra.mxu1 %v3674_v42  ;;  %v3689_v42 = vsub.f32 %v6062_v29, %v6062_v29  ;;  %v3684_v31 = vand.u32 4294901760, %v3683_v15 }
 0x657   : > { %v4181_v49 = vadd.f32 %v4180_v16, %v3912_v5  ;;  %v3690_v5 = vand.u32 4294901760, %v3689_v42 }
 0x658   : > { %6093 = vmatmul.msk.f32.gmra.mxu2 %vm3189_vm11, %v11278_v26 }
 0x659   : > { %3677 = vmatmul.f32.gmra.mxu3 %v3676_v17  ;;  %v10117_v56 = vadd.f32 %v4481_v23, %v4181_v49  ;;  %v6063_v23 = vsel %vm3191_vm13, 1.0, %v11279_v55 }
 0x65a   : > { %v4493_v29 = vpop.f32.mrf.mxu1 }
 0x65b   : > { %11309 = vst [vmem:[#allocation113_spill] sm:$0xff] %v10117_v56  ;;  %v3919_v44 = vpop.f32.mrf.mxu2  ;;  %4269 = vmatmul.f32.gmra.mxu0 %v3681_v47  ;;  %v4190_v47 = vpop.f32.mrf.mxu0 }
 0x65c   : > { %v3550_v16 = vpop.f32.mrf.mxu3 }
 0x65d   : > { %v3916_v11 = vadd.f32 %v3915_v46, %v3550_v16  ;;  %4588 = vmatmul.f32.gmra.mxu1 %v3682_v22  ;;  %v3691_v46 = vsub.f32 %v3689_v42, %v3690_v5  ;;  %v3697_v22 = vsub.f32 %v6063_v23, %v6063_v23 }
 0x65f   : > { %v4186_v36 = vadd.f32 %v4185_v39, %v3916_v11  ;;  %v3692_v11 = vand.u32 4294901760, %v3691_v46  ;;  %v3698_v56 = vand.u32 4294901760, %v3697_v22 }
 0x660   : > { %6094 = vmatmul.msk.f32.gmra.mxu2 %vm3190_vm12, %v11278_v26 }
 0x661   : > { %3685 = vmatmul.f32.gmra.mxu3 %v3684_v31  ;;  %v10126_v49 = vadd.f32 %v4487_v2, %v4186_v36  ;;  %v3699_v36 = vsub.f32 %v3697_v22, %v3698_v56 }
 0x663   : > { %11310 = vst [vmem:[#allocation116_spill] sm:$0xff] %v10126_v49  ;;  %v3923_v17 = vpop.f32.mrf.mxu2  ;;  %4274 = vmatmul.f32.gmra.mxu0 %v3689_v42  ;;  %v4195_v31 = vpop.f32.mrf.mxu0 }
 0x664   : > { %v3558_v39 = vpop.f32.mrf.mxu3  ;;  %v4499_v49 = vpop.f32.mrf.mxu1 }
 0x665   : > { %v3920_v15 = vadd.f32 %v3919_v44, %v3558_v39  ;;  %4594 = vmatmul.f32.gmra.mxu1 %v3690_v5  ;;  %v3700_v5 = vand.u32 4294901760, %v3699_v36  ;;  %v5421_v36 = vld [vmem:[%s7429_s16 + $0x78] sm:$0xff] }
 0x666   : > { %5422 = vmatpush.msrb.mxu0 %v5421_v36 }
 0x667   : > { %v4191_v16 = vadd.f32 %v4190_v47, %v3920_v15 }
 0x668   : > { %6095 = vmatmul.msk.f32.gmra.mxu2 %vm3191_vm13, %v11278_v26 }
 0x669   : > { %3693 = vmatmul.f32.gmra.mxu3 %v3692_v11  ;;  %v10131_v55 = vadd.f32 %v4493_v29, %v4191_v16 }
 0x66b   : > { %v3927_v2 = vpop.f32.mrf.mxu2  ;;  %4279 = vmatmul.f32.gmra.mxu0 %v3697_v22  ;;  %v4200_v15 = vpop.f32.mrf.mxu0 }
 0x66c   : > { %v3566_v42 = vpop.f32.mrf.mxu3  ;;  %v4505_v16 = vpop.f32.mrf.mxu1 }
 0x66d   : > { %v3924_v23 = vadd.f32 %v3923_v17, %v3566_v42  ;;  %4600 = vmatmul.f32.gmra.mxu1 %v3698_v56 }
 0x66f   : > { %v4196_v44 = vadd.f32 %v4195_v31, %v3924_v23 }
 0x670   : > { %6128 = vmatmul.msk.f32.vlgmr.msra.gmra.mxu2 %vm3128_vm14, %v11278_v26 }
 0x671   : > { %3701 = vmatmul.f32.gmra.mxu3 %v3700_v5  ;;  %v10136_v47 = vadd.f32 %v4499_v49, %v4196_v44 }
 0x673   : > { %v3931_v46 = vpop.f32.mrf.mxu2 }
 0x674   : > { %v3574_v29 = vpop.f32.mrf.mxu3 }
 0x675   : > { %v3928_v39 = vadd.f32 %v3927_v2, %v3574_v29 }
 0x677   : > { %v4201_v22 = vadd.f32 %v4200_v15, %v3928_v39  ;;  %v5420_v15 = vld [vmem:[%s7429_s16 + $0x70] sm:$0xff] }
 0x678   : > { %6129 = vmatmul.msk.f32.gmra.mxu2 %vm3129_vm15, %v11278_v26  ;;  %5423 = vmatpush.msrb.mxu0 %v5420_v15 }
 0x679   : > { %6096 = vmatmul.msk.f32.vlgmr.msrb.gmra.mxu3 %vm3128_vm14, %v11278_v26  ;;  %v10144_v56 = vadd.f32 %v4505_v16, %v4201_v22  ;;  %vm11317_vm14 = vcmp.ne.f32.partialorder %v9816_v59, 0.0 }
 0x67b   : > { %v3935_v17 = vpop.f32.mrf.mxu2 }
 0x67c   : > { %v3582_v11 = vpop.f32.mrf.mxu3 }
 0x67d   : > { %v10146_v49 = vadd.f32 %v3931_v46, %v3582_v11 }
 0x680   : > { %6130 = vmatmul.msk.f32.gmra.mxu2 %vm3130_vm5, %v11278_v26 }
 0x681   : > { %6097 = vmatmul.msk.f32.gmra.mxu3 %vm3129_vm15, %v11278_v26  ;;  %vm11319_vm15 = vcmp.ne.f32.partialorder %v9829_v19, 0.0 }
 0x683   : > { %v3939_v2 = vpop.f32.mrf.mxu2 }
 0x684   : > { %v3590_v31 = vpop.f32.mrf.mxu3 }
 0x685   : > { %v10155_v42 = vadd.f32 %v3935_v17, %v3590_v31 }
 0x688   : > { %6131 = vmatmul.msk.f32.gmra.mxu2 %vm3131_vm6, %v11278_v26 }
 0x689   : > { %6098 = vmatmul.msk.f32.gmra.mxu3 %vm3130_vm5, %v11278_v26  ;;  %vm11320_vm5 = vmmov %vm11317_vm14 }
 0x68b   : > { %v3943_v23 = vpop.f32.mrf.mxu2 }
 0x68c   : > { %v3598_v44 = vpop.f32.mrf.mxu3 }
 0x68d   : > { %v10163_v5 = vadd.f32 %v3939_v2, %v3598_v44 }
 0x690   : > { %6132 = vmatmul.msk.f32.gmra.mxu2 %vm3132_vm7, %v11278_v26 }
 0x691   : > { %6099 = vmatmul.msk.f32.gmra.mxu3 %vm3131_vm6, %v11278_v26  ;;  %vm11322_vm6 = vcmp.ne.f32.partialorder %v9843_v58, 0.0 }
 0x693   : > { %v3947_v46 = vpop.f32.mrf.mxu2 }
 0x694   : > { %v3606_v29 = vpop.f32.mrf.mxu3 }
 0x695   : > { %v10171_v39 = vadd.f32 %v3943_v23, %v3606_v29 }
 0x698   : > { %6133 = vmatmul.msk.f32.gmra.mxu2 %vm3133_vm10, %v11278_v26 }
 0x699   : > { %6100 = vmatmul.msk.f32.gmra.mxu3 %vm3132_vm7, %v11278_v26  ;;  %vm11323_vm7 = vmmov %vm11319_vm15 }
 0x69b   : > { %v3951_v22 = vpop.f32.mrf.mxu2 }
 0x69c   : > { %v3614_v16 = vpop.f32.mrf.mxu3 }
 0x69d   : > { %v10180_v17 = vadd.f32 %v3947_v46, %v3614_v16  ;;  %v5419_v46 = vld [vmem:[%s7429_s16 + $0x68] sm:$0xff] }
 0x69e   : > { %5424 = vmatpush.msrb.mxu0 %v5419_v46 }
 0x6a0   : > { %6134 = vmatmul.msk.f32.gmra.mxu2 %vm3134_vm8, %v11278_v26 }
 0x6a1   : > { %6101 = vmatmul.msk.f32.gmra.mxu3 %vm3133_vm10, %v11278_v26  ;;  %vm11325_vm10 = vmmov %vm11322_vm6 }
 0x6a3   : > { %v3955_v11 = vpop.f32.mrf.mxu2 }
 0x6a4   : > { %v3622_v36 = vpop.f32.mrf.mxu3 }
 0x6a5   : > { %v10188_v2 = vadd.f32 %v3951_v22, %v3622_v36 }
 0x6a8   : > { %6135 = vmatmul.msk.f32.gmra.mxu2 %vm3135_vm9, %v11278_v26 }
 0x6a9   : > { %6102 = vmatmul.msk.f32.gmra.mxu3 %vm3134_vm8, %v11278_v26  ;;  %vm11332_vm8 = vcmp.lt.f32.partialorder %v9661_v18, 0.0 }
 0x6ab   : > { %v3959_v31 = vpop.f32.mrf.mxu2 }
 0x6ac   : > { %v3630_v23 = vpop.f32.mrf.mxu3 }
 0x6ad   : > { %v10196_v44 = vadd.f32 %v3955_v11, %v3630_v23 }
 0x6af   : > { %11311 = vst [vmem:[#allocation67_spill] sm:$0xff] %v10196_v44 }
 0x6b0   : > { %6136 = vmatmul.msk.f32.gmra.mxu2 %vm3136_vm0, %v11278_v26 }
 0x6b1   : > { %6103 = vmatmul.msk.f32.gmra.mxu3 %vm3135_vm9, %v11278_v26  ;;  %vm11334_vm9 = vcmp.lt.f32.partialorder %v9675_v34, 0.0  ;;  %v11342_v34 = vld [vmem:[#allocation109_spill] sm:$0xff] }
 0x6b3   : > { %v3963_v29 = vpop.f32.mrf.mxu2 }
 0x6b4   : > { %v3638_v15 = vpop.f32.mrf.mxu3 }
 0x6b5   : > { %v10205_v22 = vadd.f32 %v3959_v31, %v3638_v15  ;;  %v5418_v15 = vld [vmem:[%s7429_s16 + $0x60] sm:$0xff] }
 0x6b6   : > { %5425 = vmatpush.msrb.mxu0 %v5418_v15 }
 0x6b7   : > { %11312 = vst [vmem:[#allocation149_spill] sm:$0xff] %v10205_v22 }
 0x6b8   : > { %6137 = vmatmul.msk.f32.gmra.mxu2 %vm3137_vm1, %v11278_v26 }
 0x6b9   : > { %6104 = vmatmul.msk.f32.gmra.mxu3 %vm3136_vm0, %v11278_v26  ;;  %vm11335_vm0 = vmmov %vm11332_vm8 }
 0x6bb   : > { %v3967_v16 = vpop.f32.mrf.mxu2 }
 0x6bc   : > { %v3646_v11 = vpop.f32.mrf.mxu3 }
 0x6bd   : > { %v10213_v36 = vadd.f32 %v3963_v29, %v3646_v11 }
 0x6bf   : > { %11313 = vst [vmem:[#allocation115_spill] sm:$0xff] %v10213_v36 }
 0x6c0   : > { %6138 = vmatmul.msk.f32.gmra.mxu2 %vm3138_vm2, %v11278_v26 }
 0x6c1   : > { %6105 = vmatmul.msk.f32.gmra.mxu3 %vm3137_vm1, %v11278_v26  ;;  %vm11337_vm1 = vcmp.lt.f32.partialorder %v9687_v45, 0.0 }
 0x6c3   : > { %v3971_v31 = vpop.f32.mrf.mxu2 }
 0x6c4   : > { %v3654_v23 = vpop.f32.mrf.mxu3 }
 0x6c5   : > { %v10221_v46 = vadd.f32 %v3967_v16, %v3654_v23 }
 0x6c7   : > { %11314 = vst [vmem:[#allocation118_spill] sm:$0xff] %v10221_v46 }
 0x6c8   : > { %6139 = vmatmul.msk.f32.gmra.mxu2 %vm3139_vm3, %v11278_v26 }
 0x6c9   : > { %6106 = vmatmul.msk.f32.gmra.mxu3 %vm3138_vm2, %v11278_v26  ;;  %vm11338_vm2 = vmmov %vm11334_vm9 }
 0x6cb   : > { %v3975_v29 = vpop.f32.mrf.mxu2 }
 0x6cc   : > { %v3662_v11 = vpop.f32.mrf.mxu3 }
 0x6cd   : > { %v10230_v36 = vadd.f32 %v3971_v31, %v3662_v11 }
 0x6cf   : > { %11315 = vst [vmem:[#allocation84_spill] sm:$0xff] %v10230_v36 }
 0x6d0   : > { %6140 = vmatmul.msk.f32.gmra.mxu2 %vm3140_vm4, %v11278_v26 }
 0x6d1   : > { %6107 = vmatmul.msk.f32.gmra.mxu3 %vm3139_vm3, %v11278_v26  ;;  %vm11340_vm3 = vcmp.lt.f32.partialorder %v9699_v32, 0.0 }
 0x6d3   : > { %v3979_v16 = vpop.f32.mrf.mxu2 }
 0x6d4   : > { %v3670_v23 = vpop.f32.mrf.mxu3 }
 0x6d5   : > { %v10238_v15 = vadd.f32 %v3975_v29, %v3670_v23  ;;  %v5417_v29 = vld [vmem:[%s7429_s16 + $0x58] sm:$0xff] }
 0x6d6   : > { %5426 = vmatpush.msrb.mxu0 %v5417_v29 }
 0x6d7   : > { %11316 = vst [vmem:[#allocation87_spill] sm:$0xff] %v10238_v15 }
 0x6d8   : > { %6141 = vmatmul.msk.f32.gmra.mxu2 %vm11317_vm14, %v11278_v26  ;;  %vm11343_vm14 = vcmp.lt.f32.partialorder %v9709_v6, 0.0  ;;  %v11351_v6 = vld [vmem:[#allocation114_spill] sm:$0xff] }
 0x6d9   : > { %6108 = vmatmul.msk.f32.gmra.mxu3 %vm3140_vm4, %v11278_v26  ;;  %vm11341_vm4 = vmmov %vm11337_vm1 }
 0x6db   : > { %v3983_v31 = vpop.f32.mrf.mxu2 }
 0x6dc   : > { %v3678_v11 = vpop.f32.mrf.mxu3 }
 0x6dd   : > { %v10246_v36 = vadd.f32 %v3979_v16, %v3678_v11 }
 0x6df   : > { %11318 = vst [vmem:[#allocation43_spill] sm:$0xff] %v10246_v36 }
 0x6e0   : > { %6142 = vmatmul.msk.f32.gmra.mxu2 %vm11319_vm15, %v11278_v26  ;;  %vm11344_vm15 = vmmov %vm11340_vm3 }
 0x6e1   : > { %6109 = vmatmul.msk.f32.gmra.mxu3 %vm11320_vm5, %v11278_v26  ;;  %vm11346_vm5 = vcmp.lt.f32.partialorder %v9721_v48, 0.0 }
 0x6e3   : > { %v3987_v23 = vpop.f32.mrf.mxu2 }
 0x6e4   : > { %v3686_v15 = vpop.f32.mrf.mxu3 }
 0x6e5   : > { %v10255_v46 = vadd.f32 %v3983_v31, %v3686_v15 }
 0x6e7   : > { %11321 = vst [vmem:[#allocation38_spill] sm:$0xff] %v10255_v46  ;;  %v5416_v46 = vld [vmem:[%s7429_s16 + $0x50] sm:$0xff] }
 0x6e8   : > { %6143 = vmatmul.msk.f32.gmra.mxu2 %vm11322_vm6, %v11278_v26  ;;  %5427 = vmatpush.msrb.mxu0 %v5416_v46  ;;  %vm11347_vm6 = vmmov %vm11343_vm14 }
 0x6e9   : > { %6110 = vmatmul.msk.f32.gmra.mxu3 %vm11323_vm7, %v11278_v26  ;;  %vm11349_vm7 = vcmp.lt.f32.partialorder %v9733_v62, 0.0 }
 0x6eb   : > { %v3991_v16 = vpop.f32.mrf.mxu2 }
 0x6ec   : > { %v3694_v11 = vpop.f32.mrf.mxu3 }
 0x6ed   : > { %v10263_v36 = vadd.f32 %v3987_v23, %v3694_v11 }
 0x6ef   : > { %11324 = vst [vmem:[#allocation73_spill] sm:$0xff] %v10263_v36 }
 0x6f0   : > { %4958 = vmatmul.f32.gmra.mxu2 %v9848_v4 }
 0x6f1   : > { %6111 = vmatmul.msk.f32.gmra.mxu3 %vm11325_vm10, %v11278_v26  ;;  %vm11350_vm10 = vmmov %vm11346_vm5 }
 0x6f3   : > { %v4895_v15 = vpop.f32.mrf.mxu2 }
 0x6f4   : > { %v3702_v31 = vpop.f32.mrf.mxu3 }
 0x6f5   : > { %v10269_v29 = vadd.f32 %v3991_v16, %v3702_v31 }
 0x6f7   : > { %11326 = vst [vmem:[#allocation88_spill] sm:$0xff] %v10269_v29 }
 0x6f8   : > { %4962 = vmatmul.f32.gmra.mxu2 %v9860_v1 }
 0x6f9   : > { %4733 = vmatmul.f32.gmra.mxu3 %v9848_v4 }
 0x6fb   : > { %v4899_v22 = vpop.f32.mrf.mxu2 }
 0x6fc   : > { %v4670_v44 = vpop.f32.mrf.mxu3 }
 0x6fd   : > { %v4671_v23 = vadd.f32 %v4670_v44, %v9881_v40 }
 0x6ff   : > { %v10275_v11 = vadd.f32 %v4895_v15, %v4671_v23 }
 0x700   : > { %4966 = vmatmul.f32.gmra.mxu2 %v9869_v9 }
 0x701   : > { %4737 = vmatmul.f32.gmra.mxu3 %v9860_v1  ;;  %v5415_v1 = vld [vmem:[%s7429_s16 + $0x48] sm:$0xff] }
 0x702   : > { %5428 = vmatpush.msrb.mxu0 %v5415_v1 }
 0x703   : > { %v4903_v36 = vpop.f32.mrf.mxu2 }
 0x704   : > { %v4674_v16 = vpop.f32.mrf.mxu3 }
 0x705   : > { %v4675_v31 = vadd.f32 %v4674_v16, %v9890_v52 }
 0x707   : > { %v10280_v29 = vadd.f32 %v4899_v22, %v4675_v31 }
 0x708   : > { %4970 = vmatmul.f32.gmra.mxu2 %v9878_v20 }
 0x709   : > { %4741 = vmatmul.f32.gmra.mxu3 %v9869_v9 }
 0x70b   : > { %v4907_v4 = vpop.f32.mrf.mxu2 }
 0x70c   : > { %v4678_v46 = vpop.f32.mrf.mxu3 }
 0x70d   : > { %v4679_v40 = vadd.f32 %v4678_v46, %v9899_v28 }
 0x70f   : > { %v10285_v44 = vadd.f32 %v4903_v36, %v4679_v40 }
 0x710   : > { %4974 = vmatmul.f32.gmra.mxu2 %v9885_v24 }
 0x711   : > { %4745 = vmatmul.f32.gmra.mxu3 %v9878_v20 }
 0x713   : > { %v4911_v15 = vpop.f32.mrf.mxu2 }
 0x714   : > { %v4682_v52 = vpop.f32.mrf.mxu3 }
 0x715   : > { %v4683_v22 = vadd.f32 %v4682_v52, %v9908_v21 }
 0x717   : > { %v10291_v23 = vadd.f32 %v4907_v4, %v4683_v22 }
 0x718   : > { %4978 = vmatmul.f32.gmra.mxu2 %v9894_v57 }
 0x719   : > { %4749 = vmatmul.f32.gmra.mxu3 %v9885_v24  ;;  %v5414_v24 = vld [vmem:[%s7429_s16 + $0x40] sm:$0xff] }
 0x71a   : > { %5429 = vmatpush.msrb.mxu0 %v5414_v24 }
 0x71b   : > { %v4915_v9 = vpop.f32.mrf.mxu2 }
 0x71c   : > { %v4686_v28 = vpop.f32.mrf.mxu3 }
 0x71d   : > { %v4687_v36 = vadd.f32 %v4686_v28, %v9917_v14 }
 0x71f   : > { %v10296_v16 = vadd.f32 %v4911_v15, %v4687_v36  ;;  %v11327_v36 = vld [vmem:[#allocation105_spill] sm:$0xff] }
 0x720   : > { %4982 = vmatmul.f32.gmra.mxu2 %v9905_v38 }
 0x721   : > { %4753 = vmatmul.f32.gmra.mxu3 %v9894_v57 }
 0x723   : > { %v4919_v20 = vpop.f32.mrf.mxu2 }
 0x724   : > { %v4690_v31 = vpop.f32.mrf.mxu3 }
 0x725   : > { %v4691_v21 = vadd.f32 %v4690_v31, %v9926_v43 }
 0x727   : > { %v10301_v4 = vadd.f32 %v4915_v9, %v4691_v21 }
 0x728   : > { %4986 = vmatmul.f32.gmra.mxu2 %v9912_v35 }
 0x729   : > { %4757 = vmatmul.f32.gmra.mxu3 %v9905_v38 }
 0x72b   : > { %v4923_v46 = vpop.f32.mrf.mxu2 }
 0x72c   : > { %v4694_v14 = vpop.f32.mrf.mxu3 }
 0x72d   : > { %v4695_v40 = vadd.f32 %v4694_v14, %v9935_v10 }
 0x72f   : > { %v10307_v1 = vadd.f32 %v4919_v20, %v4695_v40 }
 0x730   : > { %4990 = vmatmul.f32.gmra.mxu2 %v9921_v54 }
 0x731   : > { %4761 = vmatmul.f32.gmra.mxu3 %v9912_v35  ;;  %v5413_v35 = vld [vmem:[%s7429_s16 + $0x38] sm:$0xff] }
 0x732   : > { %5430 = vmatpush.msrb.mxu0 %v5413_v35 }
 0x733   : > { %v4927_v57 = vpop.f32.mrf.mxu2 }
 0x734   : > { %v4698_v43 = vpop.f32.mrf.mxu3 }
 0x735   : > { %v4699_v15 = vadd.f32 %v4698_v43, %v9944_v27 }
 0x737   : > { %v10312_v52 = vadd.f32 %v4923_v46, %v4699_v15  ;;  %v11330_v15 = vld [vmem:[#allocation146_spill] sm:$0xff] }
 0x738   : > { %4994 = vmatmul.f32.gmra.mxu2 %v9932_v12 }
 0x739   : > { %4765 = vmatmul.f32.gmra.mxu3 %v9921_v54  ;;  %v11328_v54 = vld [vmem:[#allocation77_spill] sm:$0xff] }
 0x73b   : > { %v4931_v38 = vpop.f32.mrf.mxu2 }
 0x73c   : > { %v4702_v22 = vpop.f32.mrf.mxu3 }
 0x73d   : > { %v4703_v10 = vadd.f32 %v4702_v22, %v9953_v13 }
 0x73f   : > { %v10317_v9 = vadd.f32 %v4927_v57, %v4703_v10 }
 0x740   : > { %4998 = vmatmul.f32.gmra.mxu2 %v9939_v37 }
 0x741   : > { %4769 = vmatmul.f32.gmra.mxu3 %v9932_v12  ;;  %v11329_v12 = vld [vmem:[#allocation103_spill] sm:$0xff] }
 0x743   : > { %v4935_v28 = vpop.f32.mrf.mxu2 }
 0x744   : > { %v4706_v27 = vpop.f32.mrf.mxu3 }
 0x745   : > { %v4707_v20 = vadd.f32 %v4706_v27, %v11327_v36 }
 0x747   : > { %v10323_v31 = vadd.f32 %v4931_v38, %v4707_v20 }
 0x748   : > { %5002 = vmatmul.f32.gmra.mxu2 %v11328_v54 }
 0x749   : > { %4773 = vmatmul.f32.gmra.mxu3 %v9939_v37  ;;  %v5412_v37 = vld [vmem:[%s7429_s16 + $0x30] sm:$0xff] }
 0x74a   : > { %5431 = vmatpush.msrb.mxu0 %v5412_v37 }
 0x74b   : > { %v4939_v13 = vpop.f32.mrf.mxu2 }
 0x74c   : > { %v4710_v21 = vpop.f32.mrf.mxu3 }
 0x74d   : > { %v4711_v24 = vadd.f32 %v4710_v21, %v9971_v30 }
 0x74f   : > { %v10328_v46 = vadd.f32 %v4935_v28, %v4711_v24 }
 0x750   : > { %5006 = vmatmul.f32.gmra.mxu2 %v11329_v12 }
 0x751   : > { %4777 = vmatmul.f32.gmra.mxu3 %v11328_v54 }
 0x753   : > { %v4943_v14 = vpop.f32.mrf.mxu2 }
 0x754   : > { %v4714_v40 = vpop.f32.mrf.mxu3 }
 0x755   : > { %v4715_v57 = vadd.f32 %v4714_v40, %v9977_v25 }
 0x757   : > { %v10333_v43 = vadd.f32 %v4939_v13, %v4715_v57 }
 0x758   : > { %5010 = vmatmul.f32.gmra.mxu2 %v11330_v15 }
 0x759   : > { %4781 = vmatmul.f32.gmra.mxu3 %v11329_v12  ;;  %v11333_v12 = vld [vmem:[#allocation39_spill] sm:$0xff] }
 0x75b   : > { %v4947_v38 = vpop.f32.mrf.mxu2 }
 0x75c   : > { %v4718_v30 = vpop.f32.mrf.mxu3 }
 0x75d   : > { %v4719_v22 = vadd.f32 %v4718_v30, %v9983_v60  ;;  %v11331_v60 = vld [vmem:[#allocation81_spill] sm:$0xff] }
 0x75f   : > { %v10339_v10 = vadd.f32 %v4943_v14, %v4719_v22  ;;  %v11339_v22 = vld [vmem:[#allocation75_spill] sm:$0xff] }
 0x760   : > { %5014 = vmatmul.f32.gmra.mxu2 %v9974_v51 }
 0x761   : > { %4785 = vmatmul.f32.gmra.mxu3 %v11330_v15 }
 0x763   : > { %v4951_v25 = vpop.f32.mrf.mxu2 }
 0x764   : > { %v4722_v35 = vpop.f32.mrf.mxu3 }
 0x765   : > { %v4723_v28 = vadd.f32 %v4722_v35, %v9991_v3  ;;  %v5411_v3 = vld [vmem:[%s7429_s16 + $0x28] sm:$0xff] }
 0x766   : > { %5432 = vmatpush.msrb.mxu0 %v5411_v3 }
 0x767   : > { %v10344_v27 = vadd.f32 %v4947_v38, %v4723_v28  ;;  %v5410_v28 = vld [vmem:[%s7429_s16 + $0x20] sm:$0xff] }
 0x768   : > { %5018 = vmatmul.f32.gmra.mxu2 %v9980_v53  ;;  %5433 = vmatpush.msrb.mxu0 %v5410_v28 }
 0x769   : > { %4789 = vmatmul.f32.gmra.mxu3 %v9974_v51 }
 0x76b   : > { %v4955_v36 = vpop.f32.mrf.mxu2 }
 0x76c   : > { %v4726_v20 = vpop.f32.mrf.mxu3 }
 0x76d   : > { %v4727_v54 = vadd.f32 %v4726_v20, %v11331_v60 }
 0x76f   : > { %v10349_v13 = vadd.f32 %v4951_v25, %v4727_v54 }
 0x770   : > { %6144 = vmatmul.msk.f32.gmra.mxu2 %vm11332_vm8, %v11278_v26  ;;  %vm11352_vm8 = vcmp.lt.f32.partialorder %v9745_v8, 0.0  ;;  %v11360_v8 = vld [vmem:[#allocation80_spill] sm:$0xff] }
 0x771   : > { %4793 = vmatmul.f32.gmra.mxu3 %v9980_v53  ;;  %v11336_v53 = vld [vmem:[#allocation53_spill] sm:$0xff] }
 0x773   : > { %v4959_v21 = vpop.f32.mrf.mxu2 }
 0x774   : > { %v4730_v24 = vpop.f32.mrf.mxu3 }
 0x775   : > { %v4731_v14 = vadd.f32 %v4730_v24, %v11333_v12 }
 0x777   : > { %v10357_v40 = vadd.f32 %v4955_v36, %v4731_v14 }
 0x778   : > { %6145 = vmatmul.msk.f32.gmra.mxu2 %vm11334_vm9, %v11278_v26  ;;  %vm11353_vm9 = vmmov %vm11349_vm7 }
 0x779   : > { %6112 = vmatmul.msk.f32.gmra.mxu3 %vm11335_vm0, %v11278_v26  ;;  %vm11355_vm0 = vcmp.lt.f32.partialorder %v9757_v41, 0.0 }
 0x77b   : > { %v4963_v51 = vpop.f32.mrf.mxu2 }
 0x77c   : > { %v4734_v57 = vpop.f32.mrf.mxu3 }
 0x77d   : > { %v4735_v15 = vadd.f32 %v4734_v57, %v11336_v53 }
 0x77f   : > { %v10366_v37 = vadd.f32 %v4959_v21, %v4735_v15  ;;  %v11345_v21 = vld [vmem:[#allocation112_spill] sm:$0xff]  ;;  %v5409_v15 = vld [vmem:[%s7429_s16 + $0x18] sm:$0xff] }
 0x780   : > { %6146 = vmatmul.msk.f32.gmra.mxu2 %vm11337_vm1, %v11278_v26  ;;  %5434 = vmatpush.msrb.mxu0 %v5409_v15  ;;  %vm11356_vm1 = vmmov %vm11352_vm8 }
 0x781   : > { %6113 = vmatmul.msk.f32.gmra.mxu3 %vm11338_vm2, %v11278_v26  ;;  %vm11358_vm2 = vcmp.lt.f32.partialorder %v9767_v61, 0.0 }
 0x783   : > { %v4967_v38 = vpop.f32.mrf.mxu2 }
 0x784   : > { %v4738_v30 = vpop.f32.mrf.mxu3 }
 0x785   : > { %v4739_v25 = vadd.f32 %v4738_v30, %v11339_v22 }
 0x787   : > { %v10375_v18 = vadd.f32 %v4963_v51, %v4739_v25  ;;  %v11348_v51 = vld [vmem:[#allocation111_spill] sm:$0xff] }
 0x788   : > { %6147 = vmatmul.msk.f32.gmra.mxu2 %vm11340_vm3, %v11278_v26  ;;  %vm11359_vm3 = vmmov %vm11355_vm0 }
 0x789   : > { %6114 = vmatmul.msk.f32.gmra.mxu3 %vm11341_vm4, %v11278_v26  ;;  %vm11361_vm4 = vcmp.lt.f32.partialorder %v9779_v0, 0.0  ;;  %v11367_v0 = vld [vmem:[#allocation113_spill] sm:$0xff] }
 0x78b   : > { %v4971_v35 = vpop.f32.mrf.mxu2 }
 0x78c   : > { %v4742_v36 = vpop.f32.mrf.mxu3 }
 0x78d   : > { %v4743_v20 = vadd.f32 %v4742_v36, %v11342_v34 }
 0x78f   : > { %v10385_v60 = vadd.f32 %v4967_v38, %v4743_v20 }
 0x790   : > { %6148 = vmatmul.msk.f32.gmra.mxu2 %vm11343_vm14, %v11278_v26  ;;  %vm11362_vm14 = vmmov %vm11358_vm2 }
 0x791   : > { %6115 = vmatmul.msk.f32.gmra.mxu3 %vm11344_vm15, %v11278_v26  ;;  %vm11363_vm15 = vcmp.lt.f32.partialorder %v9791_v63, 0.0  ;;  %v4511_v63 = vpop.f32.mrf.mxu1 }
 0x793   : > { %v4975_v54 = vpop.f32.mrf.mxu2 }
 0x794   : > { %v4746_v45 = vpop.f32.mrf.mxu3 }
 0x795   : > { %v4747_v3 = vadd.f32 %v4746_v45, %v11345_v21 }
 0x797   : > { %v10394_v24 = vadd.f32 %v4971_v35, %v4747_v3  ;;  %v11354_v35 = vld [vmem:[#allocation94_spill] sm:$0xff]  ;;  %v5408_v3 = vld [vmem:[%s7429_s16 + $0x10] sm:$0xff] }
 0x798   : > { %6149 = vmatmul.msk.f32.gmra.mxu2 %vm11346_vm5, %v11278_v26  ;;  %5435 = vmatpush.msrb.mxu0 %v5408_v3  ;;  %vm11364_vm5 = vmmov %vm11361_vm4 }
 0x799   : > { %6116 = vmatmul.msk.f32.gmra.mxu3 %vm11347_vm6, %v11278_v26  ;;  %vm11365_vm6 = vcmp.lt.f32.partialorder %v9803_v50, 0.0 }
 0x79b   : > { %v4979_v12 = vpop.f32.mrf.mxu2 }
 0x79c   : > { %v4750_v14 = vpop.f32.mrf.mxu3 }
 0x79d   : > { %v4751_v57 = vadd.f32 %v4750_v14, %v11348_v51 }
 0x79f   : > { %v10403_v32 = vadd.f32 %v4975_v54, %v4751_v57  ;;  %v11357_v54 = vld [vmem:[#allocation44_spill] sm:$0xff] }
 0x7a0   : > { %6150 = vmatmul.msk.f32.gmra.mxu2 %vm11349_vm7, %v11278_v26  ;;  %vm11366_vm7 = vmmov %vm11363_vm15 }
 0x7a1   : > { %6117 = vmatmul.msk.f32.gmra.mxu3 %vm11350_vm10, %v11278_v26  ;;  %vm11368_vm10 = vmmov %vm11365_vm6 }
 0x7a3   : > { %v4983_v53 = vpop.f32.mrf.mxu2 }
 0x7a4   : > { %v4754_v38 = vpop.f32.mrf.mxu3 }
 0x7a5   : > { %v4755_v30 = vadd.f32 %v4754_v38, %v11351_v6 }
 0x7a7   : > { %v10413_v22 = vadd.f32 %v4979_v12, %v4755_v30 }
 0x7a8   : > { %6151 = vmatmul.msk.f32.gmra.mxu2 %vm11352_vm8, %v11278_v26  ;;  %vm5185_vm8 = vcmp.gt.f32.partialorder %v10291_v23, 0.5 }
 0x7a9   : > { %6118 = vmatmul.msk.f32.gmra.mxu3 %vm11353_vm9, %v11278_v26  ;;  %vm5186_vm9 = vcmp.gt.f32.partialorder %v10296_v16, 0.5 }
 0x7ab   : > { %v4987_v25 = vpop.f32.mrf.mxu2 }
 0x7ac   : > { %v4758_v48 = vpop.f32.mrf.mxu3 }
 0x7ad   : > { %v4759_v28 = vadd.f32 %v4758_v48, %v11354_v35 }
 0x7af   : > { %v10422_v36 = vadd.f32 %v4983_v53, %v4759_v28 }
 0x7b0   : > { %6152 = vmatmul.msk.f32.gmra.mxu2 %vm11355_vm0, %v11278_v26  ;;  %vm5187_vm0 = vcmp.gt.f32.partialorder %v10301_v4, 0.5 }
 0x7b1   : > { %6119 = vmatmul.msk.f32.gmra.mxu3 %vm11356_vm1, %v11278_v26  ;;  %vm5188_vm1 = vcmp.gt.f32.partialorder %v10307_v1, 0.5 }
 0x7b3   : > { %v4991_v34 = vpop.f32.mrf.mxu2 }
 0x7b4   : > { %v4762_v20 = vpop.f32.mrf.mxu3 }
 0x7b5   : > { %v4763_v45 = vadd.f32 %v4762_v20, %v11357_v54  ;;  %v11369_v54 = vld [vmem:[#allocation116_spill] sm:$0xff] }
 0x7b7   : > { %v10431_v62 = vadd.f32 %v4987_v25, %v4763_v45  ;;  %v5407_v25 = vld [vmem:[%s7429_s16 + $0x8] sm:$0xff] }
 0x7b8   : > { %6153 = vmatmul.msk.f32.gmra.mxu2 %vm11358_vm2, %v11278_v26  ;;  %5436 = vmatpush.msrb.mxu0 %v5407_v25  ;;  %vm5189_vm2 = vcmp.gt.f32.partialorder %v10312_v52, 0.5 }
 0x7b9   : > { %6120 = vmatmul.msk.f32.gmra.mxu3 %vm11359_vm3, %v11278_v26  ;;  %vm5190_vm3 = vcmp.gt.f32.partialorder %v10317_v9, 0.5 }
 0x7bb   : > { %v4995_v21 = vpop.f32.mrf.mxu2 }
 0x7bc   : > { %v4766_v12 = vpop.f32.mrf.mxu3 }
 0x7bd   : > { %v4767_v14 = vadd.f32 %v4766_v12, %v11360_v8 }
 0x7bf   : > { %v10441_v51 = vadd.f32 %v4991_v34, %v4767_v14  ;;  %v4205_v34 = vpop.f32.mrf.mxu0  ;;  %v4517_v14 = vpop.f32.mrf.mxu1 }
 0x7c0   : > { %6154 = vmatmul.msk.f32.gmra.mxu2 %vm11361_vm4, %v11278_v26  ;;  %v4206_v19 = vadd.f32 %v4205_v34, %v10146_v49  ;;  %vm5191_vm4 = vcmp.gt.f32.partialorder %v10323_v31, 0.5 }
 0x7c1   : > { %6121 = vmatmul.msk.f32.gmra.mxu3 %vm11362_vm14, %v11278_v26  ;;  %vm5192_vm14 = vcmp.gt.f32.partialorder %v10328_v46, 0.5 }
 0x7c3   : > { %v4999_v57 = vpop.f32.mrf.mxu2 }
 0x7c4   : > { %v4770_v41 = vpop.f32.mrf.mxu3 }
 0x7c5   : > { %v4771_v53 = vadd.f32 %v4770_v41, %v10099_v7 }
 0x7c7   : > { %v10450_v15 = vadd.f32 %v4995_v21, %v4771_v53  ;;  %v4210_v3 = vpop.f32.mrf.mxu0 }
 0x7c8   : > { %6155 = vmatmul.msk.f32.gmra.mxu2 %vm11363_vm15, %v11278_v26  ;;  %vm5193_vm15 = vcmp.gt.f32.partialorder %v10333_v43, 0.5 }
 0x7c9   : > { %6122 = vmatmul.msk.f32.gmra.mxu3 %vm11364_vm5, %v11278_v26  ;;  %vm5194_vm5 = vcmp.gt.f32.partialorder %v10339_v10, 0.5 }
 0x7cb   : > { %v5003_v38 = vpop.f32.mrf.mxu2 }
 0x7cc   : > { %v4774_v6 = vpop.f32.mrf.mxu3 }
 0x7cd   : > { %v4775_v30 = vadd.f32 %v4774_v6, %v10108_v33 }
 0x7cf   : > { %v10459_v61 = vadd.f32 %v4999_v57, %v4775_v30  ;;  %v4215_v59 = vpop.f32.mrf.mxu0 }
 0x7d0   : > { %6156 = vmatmul.msk.f32.gmra.mxu2 %vm11365_vm6, %v11278_v26  ;;  %vm5195_vm6 = vcmp.gt.f32.partialorder %v10344_v27, 0.5 }
 0x7d1   : > { %6123 = vmatmul.msk.f32.gmra.mxu3 %vm11366_vm7, %v11278_v26  ;;  %vm5196_vm7 = vcmp.gt.f32.partialorder %v10349_v13, 0.5 }
 0x7d3   : > { %v5007_v7 = vpop.f32.mrf.mxu2 }
 0x7d4   : > { %v4778_v48 = vpop.f32.mrf.mxu3 }
 0x7d5   : > { %v4779_v35 = vadd.f32 %v4778_v48, %v11367_v0 }
 0x7d7   : > { %v10469_v28 = vadd.f32 %v5003_v38, %v4779_v35  ;;  %v4220_v48 = vpop.f32.mrf.mxu0  ;;  %v5406_v35 = vld [vmem:[%s7429_s16] sm:$0xff] }
 0x7d8   : > { %6157 = vmatmul.msk.f32.gmra.mxu2 %vm3189_vm11, %v11278_v26  ;;  %5437 = vmatpush.msrb.mxu0 %v5406_v35 }
 0x7d9   : > { %6124 = vmatmul.msk.f32.gmra.mxu3 %vm11368_vm10, %v11278_v26  ;;  %vm5197_vm10 = vcmp.gt.f32.partialorder %v10357_v40, 0.5 }
 0x7db   : > { %v5011_v33 = vpop.f32.mrf.mxu2 }
 0x7dc   : > { %v4782_v20 = vpop.f32.mrf.mxu3 }
 0x7dd   : > { %v4783_v45 = vadd.f32 %v4782_v20, %v11369_v54  ;;  %v4512_v20 = vadd.f32 %v4511_v63, %v4206_v19  ;;  %v4216_v63 = vadd.f32 %v4215_v59, %v10163_v5  ;;  %v4221_v5 = vadd.f32 %v4220_v48, %v10171_v39 }
 0x7df   : > { %v10478_v21 = vadd.f32 %v5007_v7, %v4783_v45 }
 0x7e0   : > { %6158 = vmatmul.msk.f32.gmra.mxu2 %vm3190_vm12, %v11278_v26 }
 0x7e1   : > { %6125 = vmatmul.msk.f32.gmra.mxu3 %vm3189_vm11, %v11278_v26  ;;  %vm5183_vm11 = vcmp.gt.f32.partialorder %v10280_v29, 0.5 }
 0x7e3   : > { %v5015_v12 = vpop.f32.mrf.mxu2 }
 0x7e4   : > { %v4786_v8 = vpop.f32.mrf.mxu3 }
 0x7e5   : > { %v4787_v50 = vadd.f32 %v4786_v8, %v10131_v55  ;;  %v4523_v55 = vpop.f32.mrf.mxu1 }
 0x7e7   : > { %v10487_v57 = vadd.f32 %v5011_v33, %v4787_v50  ;;  %v5198_v50 = vmul.f32 1.442695, %v10366_v37 }
 0x7e8   : > { %6159 = vmatmul.msk.f32.gmra.mxu2 %vm3191_vm13, %v11278_v26 }
 0x7e9   : > { %6126 = vmatmul.msk.f32.gmra.mxu3 %vm3190_vm12, %v11278_v26  ;;  %6596 = vpow2.f32 %v5198_v50  ;;  %vm5182_vm12 = vcmp.gt.f32.partialorder %v10275_v11, 0.5 }
 0x7eb   : > { %v5019_v41 = vpop.f32.mrf.mxu2 }
 0x7ec   : > { %v4790_v53 = vpop.f32.mrf.mxu3 }
 0x7ed   : > { %v4791_v38 = vadd.f32 %v4790_v53, %v10136_v47  ;;  %v4529_v33 = vpop.f32.mrf.mxu1 }
 0x7ef   : > { %v10496_v6 = vadd.f32 %v5015_v12, %v4791_v38  ;;  %v4211_v12 = vadd.f32 %v4210_v3, %v10155_v42 }
 0x7f1   : > { %6127 = vmatmul.msk.f32.gmra.mxu3 %vm3191_vm13, %v11278_v26  ;;  %v4225_v26 = vpop.f32.mrf.mxu0  ;;  %v4518_v38 = vadd.f32 %v4517_v14, %v4211_v12  ;;  %v4524_v14 = vadd.f32 %v4523_v55, %v4216_v63  ;;  %v5202_v55 = vmul.f32 1.442695, %v10385_v60  ;;  %vm5184_vm13 = vcmp.gt.f32.partialorder %v10285_v44, 0.5 }
 0x7f2   : > { %v4226_v60 = vadd.f32 %v4225_v26, %v10180_v17 }
 0x7f3   : > { %v5023_v30 = vpop.f32.mrf.mxu2 }
 0x7f4   : > { %v4794_v7 = vpop.f32.mrf.mxu3 }
 0x7f5   : > { %v4795_v25 = vadd.f32 %v4794_v7, %v10144_v56  ;;  %v10508_v49 = vpop.f32.mrf.mxu1 }
 0x7f7   : > { %v10503_v0 = vadd.f32 %v5019_v41, %v4795_v25 }
 0x7f9   : > { %v10511_v3 = vpop.f32.mrf.mxu0 }
 0x7fb   : > { %v5027_v47 = vpop.f32.mrf.mxu2 }
 0x7fc   : > { %v4798_v54 = vpop.f32.mrf.mxu3 }
 0x7fd   : > { %v4799_v45 = vadd.f32 %v4798_v54, %v4512_v20  ;;  %v10514_v50 = vpop.f32.mrf.mxu1 }
 0x7ff   : > { %v5024_v58 = vadd.f32 %v5023_v30, %v4799_v45  ;;  %v5200_v30 = vmul.f32 1.442695, %v10375_v18  ;;  %v6597_v45 = vpop.eup %6596 }
 0x801   : > { %v5086_v8 = vmul.f32 0.5, %v5024_v58  ;;  %6598 = vpow2.f32 %v5200_v30 }
 0x803   : > { %v5102_v56 = vfloor.f32 %v5086_v8  ;;  %v5031_v53 = vpop.f32.mrf.mxu2 }
 0x804   : > { %v4802_v34 = vpop.f32.mrf.mxu3 }
 0x805   : > { %v5118_v41 = vmul.f32 2.0, %v5102_v56  ;;  %v4803_v7 = vadd.f32 %v4802_v34, %v4518_v38 }
 0x807   : > { %v5134_v25 = vsub.f32 %v5024_v58, %v5118_v41  ;;  %v5028_v19 = vadd.f32 %v5027_v47, %v4803_v7 }
 0x809   : > { %v5150_v35 = vmul.f32 2.0, %v5134_v25  ;;  %v5087_v42 = vmul.f32 0.5, %v5028_v19 }
 0x80b   : > { %v5166_v37 = vsub.f32 1.0, %v5150_v35  ;;  %v5103_v20 = vfloor.f32 %v5087_v42  ;;  %v5035_v54 = vpop.f32.mrf.mxu2 }
 0x80c   : > { %v4806_v12 = vpop.f32.mrf.mxu3 }
 0x80d   : > { %v5230_v8 = vmul.f32 %v6597_v45, %v5166_v37  ;;  %v5119_v56 = vmul.f32 2.0, %v5103_v20  ;;  %v4807_v38 = vadd.f32 %v4806_v12, %v4524_v14  ;;  %v4530_v37 = vadd.f32 %v4529_v33, %v4221_v5  ;;  %v6599_v20 = vpop.eup %6598  ;;  %v10519_v14 = vpop.f32.mrf.mxu0 }
 0x80e   : > { %v10523_v12 = vpop.f32.mrf.mxu1  ;;  %v5204_v5 = vmul.f32 1.442695, %v10394_v24 }
 0x80f   : > { %v5246_v59 = vsel %vm5182_vm12, %v5230_v8, 0.0  ;;  %v5135_v47 = vsub.f32 %v5028_v19, %v5119_v56  ;;  %v5032_v58 = vadd.f32 %v5031_v53, %v4807_v38 }
 0x810   : > { %v6160_v18 = vclamps-f32 %v5246_v59, 0.999999 }
 0x811   : > { %v5151_v34 = vmul.f32 2.0, %v5135_v47  ;;  %v5088_v41 = vmul.f32 0.5, %v5032_v58 }
 0x812   : > { %v5294_v7 = vadd.f32 1.0, %v6160_v18  ;;  %v5342_v63 = vsub.f32 1.0, %v6160_v18 }
 0x813   : > { %v5167_v25 = vsub.f32 1.0, %v5151_v34  ;;  %v5104_v35 = vfloor.f32 %v5088_v41  ;;  %v5039_v42 = vpop.f32.mrf.mxu2 }
 0x814   : > { %6600 = vlog2.f32 %v5294_v7  ;;  %v4810_v11 = vpop.f32.mrf.mxu3 }
 0x815   : > { %6602 = vlog2.f32 %v5342_v63  ;;  %v5231_v39 = vmul.f32 %v6599_v20, %v5167_v25  ;;  %v5120_v48 = vmul.f32 2.0, %v5104_v35  ;;  %v4811_v53 = vadd.f32 %v4810_v11, %v4530_v37  ;;  %v10527_v35 = vpop.f32.mrf.mxu0 }
 0x816   : > { %6604 = vpow2.f32 %v5202_v55  ;;  %v4536_v55 = vadd.f32 %v10508_v49, %v4226_v60  ;;  %v4231_v37 = vadd.f32 %v10511_v3, %v10188_v2 }
 0x817   : > { %v5247_v19 = vsel %vm5183_vm11, %v5231_v39, 0.0  ;;  %v5136_v30 = vsub.f32 %v5032_v58, %v5120_v48  ;;  %v5036_v45 = vadd.f32 %v5035_v54, %v4811_v53 }
 0x818   : > { %v6161_v33 = vclamps-f32 %v5247_v19, 0.999999  ;;  %v10532_v19 = vpop.f32.mrf.mxu1  ;;  %v4542_v2 = vadd.f32 %v10514_v50, %v4231_v37 }
 0x819   : > { %v5152_v8 = vmul.f32 2.0, %v5136_v30  ;;  %v5089_v56 = vmul.f32 0.5, %v5036_v45  ;;  %v5206_v30 = vmul.f32 1.442695, %v10403_v32 }
 0x81a   : > { %v6601_v38 = vpop.eup %6600  ;;  %v5295_v59 = vadd.f32 1.0, %v6161_v33  ;;  %v5343_v47 = vsub.f32 1.0, %v6161_v33 }
 0x81b   : > { %v6603_v18 = vpop.eup %6602  ;;  %v5168_v34 = vsub.f32 1.0, %v5152_v8  ;;  %v5105_v41 = vfloor.f32 %v5089_v56  ;;  %v5043_v29 = vpop.f32.mrf.mxu2  ;;  %v5311_v17 = vmul.f32 0.6931472, %v6601_v38 }
 0x81c   : > { %v6605_v26 = vpop.eup %6604  ;;  %v4814_v58 = vpop.f32.mrf.mxu3  ;;  %v5359_v54 = vmul.f32 0.6931472, %v6603_v18  ;;  %6606 = vlog2.f32 %v5295_v59 }
 0x81d   : > { %v5232_v7 = vmul.f32 %v6605_v26, %v5168_v34  ;;  %v5121_v63 = vmul.f32 2.0, %v5105_v41  ;;  %v4815_v25 = vadd.f32 %v4814_v58, %v4536_v55  ;;  %6608 = vlog2.f32 %v5343_v47  ;;  %v11370_v41 = vld [vmem:[#allocation67_spill] sm:$0xff]  ;;  %v4245_v50 = vpop.f32.mrf.mxu0 }
 0x81e   : > { %6610 = vpow2.f32 %v5204_v5  ;;  %v5390_v24 = vsub.f32 %v5311_v17, %v5359_v54  ;;  %v4236_v55 = vadd.f32 %v10519_v14, %v11370_v41 }
 0x81f   : > { %v5248_v20 = vsel %vm5184_vm13, %v5232_v7, 0.0  ;;  %v5137_v49 = vsub.f32 %v5036_v45, %v5121_v63  ;;  %v5040_v11 = vadd.f32 %v5039_v42, %v4815_v25 }
 0x820   : > { %v6162_v39 = vclamps-f32 %v5248_v20, 0.999999  ;;  %5438 = vmatmul.f32.vlgmr.msrb.gmra.mxu0 %v5390_v24  ;;  %v5208_v24 = vmul.f32 1.442695, %v10413_v22 }
 0x821   : > { %v5153_v48 = vmul.f32 2.0, %v5137_v49  ;;  %v5090_v53 = vmul.f32 0.5, %v5040_v11 }
 0x822   : > { %v6607_v60 = vpop.eup %6606  ;;  %v5296_v33 = vadd.f32 1.0, %v6162_v39  ;;  %v5344_v8 = vsub.f32 1.0, %v6162_v39 }
 0x823   : > { %v6609_v44 = vpop.eup %6608  ;;  %v5169_v56 = vsub.f32 1.0, %v5153_v48  ;;  %v5106_v38 = vfloor.f32 %v5090_v53  ;;  %v5047_v5 = vpop.f32.mrf.mxu2  ;;  %v5313_v3 = vmul.f32 0.6931472, %v6607_v60  ;;  %v4548_v53 = vadd.f32 %v10523_v12, %v4236_v55 }
 0x824   : > { %v6611_v45 = vpop.eup %6610  ;;  %v4818_v42 = vpop.f32.mrf.mxu3  ;;  %v5361_v59 = vmul.f32 0.6931472, %v6609_v44  ;;  %6612 = vlog2.f32 %v5296_v33 }
 0x825   : > { %v5233_v47 = vmul.f32 %v6611_v45, %v5169_v56  ;;  %v5122_v18 = vmul.f32 2.0, %v5106_v38  ;;  %v4819_v34 = vadd.f32 %v4818_v42, %v4542_v2  ;;  %6614 = vlog2.f32 %v5344_v8  ;;  %v11371_v56 = vld [vmem:[#allocation149_spill] sm:$0xff] }
 0x826   : > { %6616 = vpow2.f32 %v5206_v30  ;;  %v5391_v32 = vsub.f32 %v5313_v3, %v5361_v59  ;;  %v4241_v38 = vadd.f32 %v10527_v35, %v11371_v56 }
 0x827   : > { %v5249_v17 = vsel %vm5185_vm8, %v5233_v47, 0.0  ;;  %v5138_v26 = vsub.f32 %v5040_v11, %v5122_v18  ;;  %v5044_v58 = vadd.f32 %v5043_v29, %v4819_v34  ;;  %v4559_v11 = vpop.f32.mrf.mxu1  ;;  %v4250_v18 = vpop.f32.mrf.mxu0  ;;  %v5210_v34 = vmul.f32 1.442695, %v10422_v36 }
 0x828   : > { %v6163_v54 = vclamps-f32 %v5249_v17, 0.999999  ;;  %5441 = vmatmul.f32.gmra.mxu0 %v5391_v32 }
 0x829   : > { %v5154_v7 = vmul.f32 2.0, %v5138_v26  ;;  %v5091_v63 = vmul.f32 0.5, %v5044_v58 }
 0x82a   : > { %v6613_v25 = vpop.eup %6612  ;;  %v5297_v37 = vadd.f32 1.0, %v6163_v54  ;;  %v5345_v20 = vsub.f32 1.0, %v6163_v54  ;;  %v4554_v54 = vadd.f32 %v10532_v19, %v4241_v38 }
 0x82b   : > { %v6615_v49 = vpop.eup %6614  ;;  %v5170_v23 = vsub.f32 1.0, %v5154_v7  ;;  %v5107_v39 = vfloor.f32 %v5091_v63  ;;  %v5051_v48 = vpop.f32.mrf.mxu2  ;;  %v5315_v14 = vmul.f32 0.6931472, %v6613_v25 }
 0x82c   : > { %v6617_v60 = vpop.eup %6616  ;;  %v4822_v29 = vpop.f32.mrf.mxu3  ;;  %v5363_v30 = vmul.f32 0.6931472, %v6615_v49  ;;  %6618 = vlog2.f32 %v5297_v37 }
 0x82d   : > { %v5234_v33 = vmul.f32 %v6617_v60, %v5170_v23  ;;  %v5123_v8 = vmul.f32 2.0, %v5107_v39  ;;  %v4823_v44 = vadd.f32 %v4822_v29, %v4548_v53  ;;  %6620 = vlog2.f32 %v5345_v20  ;;  %v11372_v20 = vld [vmem:[#allocation115_spill] sm:$0xff] }
 0x82e   : > { %6622 = vpow2.f32 %v5208_v24  ;;  %v5392_v22 = vsub.f32 %v5315_v14, %v5363_v30  ;;  %v4246_v49 = vadd.f32 %v4245_v50, %v11372_v20  ;;  %v5212_v30 = vmul.f32 1.442695, %v10431_v62 }
 0x82f   : > { %v5250_v2 = vsel %vm5186_vm9, %v5234_v33, 0.0  ;;  %v5139_v3 = vsub.f32 %v5044_v58, %v5123_v8  ;;  %v5048_v12 = vadd.f32 %v5047_v5, %v4823_v44  ;;  %v4565_v37 = vpop.f32.mrf.mxu1  ;;  %v4255_v50 = vpop.f32.mrf.mxu0 }
 0x830   : > { %v6164_v45 = vclamps-f32 %v5250_v2, 0.999999  ;;  %5444 = vmatmul.f32.gmra.mxu0 %v5392_v22  ;;  %v4560_v38 = vadd.f32 %v4559_v11, %v4246_v49 }
 0x831   : > { %v5155_v42 = vmul.f32 2.0, %v5139_v3  ;;  %v5092_v59 = vmul.f32 0.5, %v5048_v12 }
 0x832   : > { %v6619_v47 = vpop.eup %6618  ;;  %v5298_v32 = vadd.f32 1.0, %v6164_v45  ;;  %v5346_v41 = vsub.f32 1.0, %v6164_v45 }
 0x833   : > { %v6621_v55 = vpop.eup %6620  ;;  %v5171_v16 = vsub.f32 1.0, %v5155_v42  ;;  %v5108_v17 = vfloor.f32 %v5092_v59  ;;  %v5055_v26 = vpop.f32.mrf.mxu2  ;;  %v5317_v35 = vmul.f32 0.6931472, %v6619_v47  ;;  %v11373_v47 = vld [vmem:[#allocation118_spill] sm:$0xff] }
 0x834   : > { %v6623_v7 = vpop.eup %6622  ;;  %v4826_v58 = vpop.f32.mrf.mxu3  ;;  %v5365_v5 = vmul.f32 0.6931472, %v6621_v55  ;;  %6624 = vlog2.f32 %v5298_v32 }
 0x835   : > { %v5235_v63 = vmul.f32 %v6623_v7, %v5171_v16  ;;  %v5124_v25 = vmul.f32 2.0, %v5108_v17  ;;  %v4827_v24 = vadd.f32 %v4826_v58, %v4554_v54  ;;  %6626 = vlog2.f32 %v5346_v41 }
 0x836   : > { %6628 = vpow2.f32 %v5210_v34  ;;  %v5393_v36 = vsub.f32 %v5317_v35, %v5365_v5  ;;  %v4251_v34 = vadd.f32 %v4250_v18, %v11373_v47  ;;  %v5214_v7 = vmul.f32 1.442695, %v10441_v51 }
 0x837   : > { %v5251_v23 = vsel %vm5187_vm0, %v5235_v63, 0.0  ;;  %v5140_v39 = vsub.f32 %v5048_v12, %v5124_v25  ;;  %v5052_v53 = vadd.f32 %v5051_v48, %v4827_v24  ;;  %v4571_v11 = vpop.f32.mrf.mxu1 }
 0x838   : > { %v6165_v19 = vclamps-f32 %v5251_v23, 0.999999  ;;  %5447 = vmatmul.f32.gmra.mxu0 %v5393_v36  ;;  %v4566_v24 = vadd.f32 %v4565_v37, %v4251_v34 }
 0x839   : > { %v5156_v14 = vmul.f32 2.0, %v5140_v39  ;;  %v5093_v60 = vmul.f32 0.5, %v5052_v53 }
 0x83a   : > { %v6625_v29 = vpop.eup %6624  ;;  %v5299_v33 = vadd.f32 1.0, %v6165_v19  ;;  %v5347_v8 = vsub.f32 1.0, %v6165_v19  ;;  %v4260_v19 = vpop.f32.mrf.mxu0 }
 0x83b   : > { %v6627_v44 = vpop.eup %6626  ;;  %v5172_v22 = vsub.f32 1.0, %v5156_v14  ;;  %v5109_v56 = vfloor.f32 %v5093_v60  ;;  %v5059_v4 = vpop.f32.mrf.mxu2  ;;  %v5319_v2 = vmul.f32 0.6931472, %v6625_v29  ;;  %v11374_v14 = vld [vmem:[#allocation84_spill] sm:$0xff] }
 0x83c   : > { %v6629_v3 = vpop.eup %6628  ;;  %v4830_v45 = vpop.f32.mrf.mxu3  ;;  %v5367_v12 = vmul.f32 0.6931472, %v6627_v44  ;;  %6630 = vlog2.f32 %v5299_v33  ;;  %v4256_v60 = vadd.f32 %v4255_v50, %v11374_v14  ;;  %v11376_v14 = vld [vmem:[#allocation43_spill] sm:$0xff] }
 0x83d   : > { %v5236_v48 = vmul.f32 %v6629_v3, %v5172_v22  ;;  %v5125_v42 = vmul.f32 2.0, %v5109_v56  ;;  %v4831_v59 = vadd.f32 %v4830_v45, %v4560_v38  ;;  %6632 = vlog2.f32 %v5347_v8 }
 0x83e   : > { %6634 = vpow2.f32 %v5212_v30  ;;  %v5394_v62 = vsub.f32 %v5319_v2, %v5367_v12  ;;  %v5216_v38 = vmul.f32 1.442695, %v10450_v15 }
 0x83f   : > { %v5252_v32 = vsel %vm5188_vm1, %v5236_v48, 0.0  ;;  %v5141_v41 = vsub.f32 %v5052_v53, %v5125_v42  ;;  %v5056_v55 = vadd.f32 %v5055_v26, %v4831_v59  ;;  %v4577_v56 = vpop.f32.mrf.mxu1  ;;  %v4572_v48 = vadd.f32 %v4571_v11, %v4256_v60 }
 0x840   : > { %v6166_v16 = vclamps-f32 %v5252_v32, 0.999999  ;;  %5450 = vmatmul.f32.gmra.mxu0 %v5394_v62 }
 0x841   : > { %v5157_v17 = vmul.f32 2.0, %v5141_v41  ;;  %v5094_v54 = vmul.f32 0.5, %v5056_v55  ;;  %v11375_v41 = vld [vmem:[#allocation87_spill] sm:$0xff] }
 0x842   : > { %v6631_v35 = vpop.eup %6630  ;;  %v5300_v58 = vadd.f32 1.0, %v6166_v16  ;;  %v5348_v5 = vsub.f32 1.0, %v6166_v16  ;;  %v4265_v11 = vpop.f32.mrf.mxu0 }
 0x843   : > { %v6633_v63 = vpop.eup %6632  ;;  %v5173_v25 = vsub.f32 1.0, %v5157_v17  ;;  %v5110_v1 = vfloor.f32 %v5094_v54  ;;  %v5321_v36 = vmul.f32 0.6931472, %v6631_v35  ;;  %v5063_v18 = vpop.f32.mrf.mxu2  ;;  %v4266_v60 = vadd.f32 %v4265_v11, %v11376_v14 }
 0x844   : > { %v6635_v20 = vpop.eup %6634  ;;  %v4834_v49 = vpop.f32.mrf.mxu3  ;;  %v5369_v23 = vmul.f32 0.6931472, %v6633_v63  ;;  %6636 = vlog2.f32 %v5300_v58  ;;  %v5218_v63 = vmul.f32 1.442695, %v10459_v61 }
 0x845   : > { %v5237_v26 = vmul.f32 %v6635_v20, %v5173_v25  ;;  %v5126_v39 = vmul.f32 2.0, %v5110_v1  ;;  %v4835_v53 = vadd.f32 %v4834_v49, %v4566_v24  ;;  %6638 = vlog2.f32 %v5348_v5 }
 0x846   : > { %6640 = vpow2.f32 %v5214_v7  ;;  %v5395_v51 = vsub.f32 %v5321_v36, %v5369_v23 }
 0x847   : > { %v5253_v29 = vsel %vm5189_vm2, %v5237_v26, 0.0  ;;  %v5142_v30 = vsub.f32 %v5056_v55, %v5126_v39  ;;  %v5060_v37 = vadd.f32 %v5059_v4, %v4835_v53  ;;  %v4261_v55 = vadd.f32 %v4260_v19, %v11375_v41  ;;  %v4583_v26 = vpop.f32.mrf.mxu1 }
 0x848   : > { %v6167_v33 = vclamps-f32 %v5253_v29, 0.999999  ;;  %5453 = vmatmul.f32.gmra.mxu0 %v5395_v51 }
 0x849   : > { %v5158_v8 = vmul.f32 2.0, %v5142_v30  ;;  %v5095_v44 = vmul.f32 0.5, %v5060_v37  ;;  %v4578_v20 = vadd.f32 %v4577_v56, %v4261_v55 }
 0x84a   : > { %v6637_v22 = vpop.eup %6636  ;;  %v5301_v2 = vadd.f32 1.0, %v6167_v33  ;;  %v5349_v3 = vsub.f32 1.0, %v6167_v33 }
 0x84b   : > { %v6639_v45 = vpop.eup %6638  ;;  %v5174_v12 = vsub.f32 1.0, %v5158_v8  ;;  %v5111_v52 = vfloor.f32 %v5095_v44  ;;  %v5323_v42 = vmul.f32 0.6931472, %v6637_v22  ;;  %v5067_v32 = vpop.f32.mrf.mxu2 }
 0x84c   : > { %v6641_v59 = vpop.eup %6640  ;;  %v4838_v50 = vpop.f32.mrf.mxu3  ;;  %v5371_v62 = vmul.f32 0.6931472, %v6639_v45  ;;  %6642 = vlog2.f32 %v5301_v2  ;;  %v5220_v2 = vmul.f32 1.442695, %v10469_v28 }
 0x84d   : > { %v5238_v4 = vmul.f32 %v6641_v59, %v5174_v12  ;;  %v5127_v47 = vmul.f32 2.0, %v5111_v52  ;;  %v4839_v34 = vadd.f32 %v4838_v50, %v4572_v48  ;;  %6644 = vlog2.f32 %v5349_v3 }
 0x84e   : > { %6646 = vpow2.f32 %v5216_v38  ;;  %v5396_v15 = vsub.f32 %v5323_v42, %v5371_v62  ;;  %v4270_v38 = vpop.f32.mrf.mxu0  ;;  %v4584_v48 = vadd.f32 %v4583_v26, %v4266_v60 }
 0x84f   : > { %v5254_v16 = vsel %vm5190_vm3, %v5238_v4, 0.0  ;;  %v5143_v17 = vsub.f32 %v5060_v37, %v5127_v47  ;;  %v5064_v54 = vadd.f32 %v5063_v18, %v4839_v34 }
 0x850   : > { %v6168_v35 = vclamps-f32 %v5254_v16, 0.999999  ;;  %5456 = vmatmul.f32.gmra.mxu0 %v5396_v15  ;;  %v11377_v15 = vld [vmem:[#allocation38_spill] sm:$0xff] }
 0x851   : > { %v5159_v7 = vmul.f32 2.0, %v5143_v17  ;;  %v5096_v58 = vmul.f32 0.5, %v5064_v54  ;;  %v4271_v41 = vadd.f32 %v4270_v38, %v11377_v15 }
 0x852   : > { %v6643_v5 = vpop.eup %6642  ;;  %v5302_v25 = vadd.f32 1.0, %v6168_v35  ;;  %v5350_v1 = vsub.f32 1.0, %v6168_v35 }
 0x853   : > { %v6645_v24 = vpop.eup %6644  ;;  %v5175_v9 = vsub.f32 1.0, %v5159_v7  ;;  %v5112_v36 = vfloor.f32 %v5096_v58  ;;  %v5325_v49 = vmul.f32 0.6931472, %v6643_v5  ;;  %v5071_v8 = vpop.f32.mrf.mxu2  ;;  %v5222_v58 = vmul.f32 1.442695, %v10478_v21 }
 0x854   : > { %v6647_v23 = vpop.eup %6646  ;;  %v4842_v39 = vpop.f32.mrf.mxu3  ;;  %v5373_v53 = vmul.f32 0.6931472, %v6645_v24  ;;  %6648 = vlog2.f32 %v5302_v25 }
 0x855   : > { %v5239_v18 = vmul.f32 %v6647_v23, %v5175_v9  ;;  %v5128_v19 = vmul.f32 2.0, %v5112_v36  ;;  %v4843_v51 = vadd.f32 %v4842_v39, %v4578_v20  ;;  %6650 = vlog2.f32 %v5350_v1 }
 0x856   : > { %6652 = vpow2.f32 %v5218_v63  ;;  %v5397_v61 = vsub.f32 %v5325_v49, %v5373_v53  ;;  %v4275_v49 = vpop.f32.mrf.mxu0 }
 0x857   : > { %v5255_v29 = vsel %vm5191_vm4, %v5239_v18, 0.0  ;;  %v5144_v30 = vsub.f32 %v5064_v54, %v5128_v19  ;;  %v5068_v37 = vadd.f32 %v5067_v32, %v4843_v51  ;;  %v4589_v32 = vpop.f32.mrf.mxu1  ;;  %v11378_v19 = vld [vmem:[#allocation73_spill] sm:$0xff] }
 0x858   : > { %v6169_v33 = vclamps-f32 %v5255_v29, 0.999999  ;;  %5459 = vmatmul.f32.gmra.mxu0 %v5397_v61  ;;  %v4590_v9 = vadd.f32 %v4589_v32, %v4271_v41  ;;  %v4276_v51 = vadd.f32 %v4275_v49, %v11378_v19  ;;  %v5228_v19 = vmul.f32 1.442695, %v10503_v0 }
 0x859   : > { %v5160_v44 = vmul.f32 2.0, %v5144_v30  ;;  %v5097_v22 = vmul.f32 0.5, %v5068_v37 }
 0x85a   : > { %v6649_v56 = vpop.eup %6648  ;;  %v5303_v3 = vadd.f32 1.0, %v6169_v33  ;;  %v5351_v45 = vsub.f32 1.0, %v6169_v33 }
 0x85b   : > { %v6651_v12 = vpop.eup %6650  ;;  %v5176_v31 = vsub.f32 1.0, %v5160_v44  ;;  %v5113_v52 = vfloor.f32 %v5097_v22  ;;  %v5327_v42 = vmul.f32 0.6931472, %v6649_v56  ;;  %v5075_v5 = vpop.f32.mrf.mxu2  ;;  %v5224_v44 = vmul.f32 1.442695, %v10487_v57 }
 0x85c   : > { %v6653_v59 = vpop.eup %6652  ;;  %v4846_v50 = vpop.f32.mrf.mxu3  ;;  %v5375_v62 = vmul.f32 0.6931472, %v6651_v12  ;;  %6654 = vlog2.f32 %v5303_v3 }
 0x85d   : > { %v5240_v4 = vmul.f32 %v6653_v59, %v5176_v31  ;;  %v5129_v47 = vmul.f32 2.0, %v5113_v52  ;;  %v4847_v34 = vadd.f32 %v4846_v50, %v4584_v48  ;;  %6656 = vlog2.f32 %v5351_v45 }
 0x85e   : > { %6658 = vpow2.f32 %v5220_v2  ;;  %v5398_v28 = vsub.f32 %v5327_v42, %v5375_v62  ;;  %v4280_v62 = vpop.f32.mrf.mxu0 }
 0x85f   : > { %v5256_v55 = vsel %vm5192_vm14, %v5240_v4, 0.0  ;;  %v5145_v16 = vsub.f32 %v5068_v37, %v5129_v47  ;;  %v5072_v17 = vadd.f32 %v5071_v8, %v4847_v34  ;;  %v4595_v29 = vpop.f32.mrf.mxu1  ;;  %v11379_v4 = vld [vmem:[#allocation88_spill] sm:$0xff] }
 0x860   : > { %v6170_v54 = vclamps-f32 %v5256_v55, 0.999999  ;;  %5462 = vmatmul.f32.gmra.mxu0 %v5398_v28  ;;  %v4596_v3 = vadd.f32 %v4595_v29, %v4276_v51  ;;  %v4281_v47 = vadd.f32 %v4280_v62, %v11379_v4 }
 0x861   : > { %v5161_v11 = vmul.f32 2.0, %v5145_v16  ;;  %v5098_v35 = vmul.f32 0.5, %v5072_v17 }
 0x862   : > { %v6655_v7 = vpop.eup %6654  ;;  %v5304_v63 = vadd.f32 1.0, %v6170_v54  ;;  %v5352_v25 = vsub.f32 1.0, %v6170_v54  ;;  %v5226_v54 = vmul.f32 1.442695, %v10496_v6 }
 0x863   : > { %v6657_v1 = vpop.eup %6656  ;;  %v5177_v24 = vsub.f32 1.0, %v5161_v11  ;;  %v5114_v46 = vfloor.f32 %v5098_v35  ;;  %v5329_v36 = vmul.f32 0.6931472, %v6655_v7  ;;  %v5079_v31 = vpop.f32.mrf.mxu2 }
 0x864   : > { %v6659_v20 = vpop.eup %6658  ;;  %v4850_v23 = vpop.f32.mrf.mxu3  ;;  %v5377_v26 = vmul.f32 0.6931472, %v6657_v1  ;;  %6660 = vlog2.f32 %v5304_v63 }
 0x865   : > { %v5241_v39 = vmul.f32 %v6659_v20, %v5177_v24  ;;  %v5130_v53 = vmul.f32 2.0, %v5114_v46  ;;  %v4851_v18 = vadd.f32 %v4850_v23, %v4590_v9  ;;  %6662 = vlog2.f32 %v5352_v25 }
 0x866   : > { %6664 = vpow2.f32 %v5222_v58  ;;  %v5399_v21 = vsub.f32 %v5329_v36, %v5377_v26 }
 0x867   : > { %v5257_v61 = vsel %vm5193_vm15, %v5241_v39, 0.0  ;;  %v5146_v14 = vsub.f32 %v5072_v17, %v5130_v53  ;;  %v5076_v60 = vadd.f32 %v5075_v5, %v4851_v18  ;;  %v4601_v17 = vpop.f32.mrf.mxu1 }
 0x868   : > { %v6171_v30 = vclamps-f32 %v5257_v61, 0.999999  ;;  %5465 = vmatmul.f32.gmra.mxu0 %v5399_v21  ;;  %v4602_v5 = vadd.f32 %v4601_v17, %v4281_v47 }
 0x869   : > { %v5162_v37 = vmul.f32 2.0, %v5146_v14  ;;  %v5099_v33 = vmul.f32 0.5, %v5076_v60 }
 0x86a   : > { %v6661_v8 = vpop.eup %6660  ;;  %v5305_v22 = vadd.f32 1.0, %v6171_v30  ;;  %v5353_v56 = vsub.f32 1.0, %v6171_v30 }
 0x86b   : > { %v6663_v38 = vpop.eup %6662  ;;  %v5178_v2 = vsub.f32 1.0, %v5162_v37  ;;  %v5115_v43 = vfloor.f32 %v5099_v33  ;;  %v5331_v45 = vmul.f32 0.6931472, %v6661_v8  ;;  %v5083_v20 = vpop.f32.mrf.mxu2 }
 0x86c   : > { %v6665_v12 = vpop.eup %6664  ;;  %v4854_v52 = vpop.f32.mrf.mxu3  ;;  %v5379_v48 = vmul.f32 0.6931472, %v6663_v38  ;;  %6666 = vlog2.f32 %v5305_v22 }
 0x86d   : > { %v5242_v42 = vmul.f32 %v6665_v12, %v5178_v2  ;;  %v5131_v59 = vmul.f32 2.0, %v5115_v43  ;;  %v4855_v50 = vadd.f32 %v4854_v52, %v4596_v3  ;;  %6668 = vlog2.f32 %v5353_v56 }
 0x86e   : > { %6670 = vpow2.f32 %v5224_v44  ;;  %v5400_v57 = vsub.f32 %v5331_v45, %v5379_v48 }
 0x86f   : > { %v5258_v34 = vsel %vm5194_vm5, %v5242_v42, 0.0  ;;  %v5147_v32 = vsub.f32 %v5076_v60, %v5131_v59  ;;  %v5080_v28 = vadd.f32 %v5079_v31, %v4855_v50 }
 0x870   : > { %v6172_v15 = vclamps-f32 %v5258_v34, 0.999999  ;;  %5468 = vmatmul.f32.gmra.mxu0 %v5400_v57 }
 0x871   : > { %v5163_v41 = vmul.f32 2.0, %v5147_v32  ;;  %v5100_v55 = vmul.f32 0.5, %v5080_v28 }
 0x872   : > { %v6667_v16 = vpop.eup %6666  ;;  %v5306_v11 = vadd.f32 1.0, %v6172_v15  ;;  %v5354_v35 = vsub.f32 1.0, %v6172_v15 }
 0x873   : > { %v6669_v7 = vpop.eup %6668  ;;  %v5179_v58 = vsub.f32 1.0, %v5163_v41  ;;  %v5116_v10 = vfloor.f32 %v5100_v55  ;;  %v5333_v63 = vmul.f32 0.6931472, %v6667_v16 }
 0x874   : > { %v6671_v25 = vpop.eup %6670  ;;  %v4858_v1 = vpop.f32.mrf.mxu3  ;;  %v5381_v24 = vmul.f32 0.6931472, %v6669_v7  ;;  %6672 = vlog2.f32 %v5306_v11 }
 0x875   : > { %v5243_v46 = vmul.f32 %v6671_v25, %v5179_v58  ;;  %v5132_v9 = vmul.f32 2.0, %v5116_v10  ;;  %v4859_v36 = vadd.f32 %v4858_v1, %v4602_v5  ;;  %6674 = vlog2.f32 %v5354_v35  ;;  %v11381_v5 = vld [vmem:[#allocation91_spill] sm:$0xff] }
 0x876   : > { %6676 = vpow2.f32 %v5226_v54  ;;  %v5401_v6 = vsub.f32 %v5333_v63, %v5381_v24  ;;  %v11380_v54 = vld [vmem:[#allocation90_spill] sm:$0xff] }
 0x877   : > { %v5259_v49 = vsel %vm5195_vm6, %v5243_v46, 0.0  ;;  %v5148_v23 = vsub.f32 %v5080_v28, %v5132_v9  ;;  %v5084_v26 = vadd.f32 %v5083_v20, %v4859_v36  ;;  %v11382_v20 = vld [vmem:[#allocation98_spill] sm:$0xff] }
 0x878   : > { %v6173_v39 = vclamps-f32 %v5259_v49, 0.999999  ;;  %5471 = vmatmul.f32.gmra.mxu0 %v5401_v6 }
 0x879   : > { %v5164_v53 = vmul.f32 2.0, %v5148_v23  ;;  %v5101_v18 = vmul.f32 0.5, %v5084_v26 }
 0x87a   : > { %v6673_v21 = vpop.eup %6672  ;;  %v5307_v51 = vadd.f32 1.0, %v6173_v39  ;;  %v5355_v61 = vsub.f32 1.0, %v6173_v39 }
 0x87b   : > { %v6675_v14 = vpop.eup %6674  ;;  %v5180_v60 = vsub.f32 1.0, %v5164_v53  ;;  %v5117_v29 = vfloor.f32 %v5101_v18  ;;  %v5335_v30 = vmul.f32 0.6931472, %v6673_v21 }
 0x87c   : > { %v6677_v27 = vpop.eup %6676  ;;  %v5383_v37 = vmul.f32 0.6931472, %v6675_v14  ;;  %6678 = vlog2.f32 %v5307_v51  ;;  %v11383_v51 = vld [vmem:[#allocation99_spill] sm:$0xff] }
 0x87d   : > { %v5244_v33 = vmul.f32 %v6677_v27, %v5180_v60  ;;  %v5133_v8 = vmul.f32 2.0, %v5117_v29  ;;  %6680 = vlog2.f32 %v5355_v61 }
 0x87e   : > { %6682 = vpow2.f32 %v5228_v19  ;;  %v5402_v44 = vsub.f32 %v5335_v30, %v5383_v37 }
 0x87f   : > { %v5260_v22 = vsel %vm5196_vm7, %v5244_v33, 0.0  ;;  %v5149_v56 = vsub.f32 %v5084_v26, %v5133_v8 }
 0x880   : > { %v6174_v38 = vclamps-f32 %v5260_v22, 0.999999  ;;  %5474 = vmatmul.f32.gmra.mxu0 %v5402_v44  ;;  %v11384_v22 = vld [vmem:[#allocation92_spill] sm:$0xff] }
 0x881   : > { %v5165_v0 = vmul.f32 2.0, %v5149_v56 }
 0x882   : > { %v6679_v2 = vpop.eup %6678  ;;  %v5308_v43 = vadd.f32 1.0, %v6174_v38  ;;  %v5356_v3 = vsub.f32 1.0, %v6174_v38 }
 0x883   : > { %v6681_v45 = vpop.eup %6680  ;;  %v5181_v12 = vsub.f32 1.0, %v5165_v0  ;;  %v5337_v31 = vmul.f32 0.6931472, %v6679_v2 }
 0x884   : > { %v6683_v52 = vpop.eup %6682  ;;  %v5385_v48 = vmul.f32 0.6931472, %v6681_v45  ;;  %6684 = vlog2.f32 %v5308_v43 }
 0x885   : > { %v5245_v42 = vmul.f32 %v6683_v52, %v5181_v12  ;;  %6686 = vlog2.f32 %v5356_v3 }
 0x886   : > { %v5403_v13 = vsub.f32 %v5337_v31, %v5385_v48  ;;  %v11385_v48 = vld [vmem:[#allocation100_spill] sm:$0xff] }
 0x887   : > { %v5261_v59 = vsel %vm5197_vm10, %v5245_v42, 0.0 }
 0x888   : > { %v6175_v50 = vclamps-f32 %v5261_v59, 0.999999  ;;  %5477 = vmatmul.f32.gmra.mxu0 %v5403_v13 }
 0x88a   : > { %v6685_v62 = vpop.eup %6684  ;;  %v5309_v57 = vadd.f32 1.0, %v6175_v50  ;;  %v5357_v4 = vsub.f32 1.0, %v6175_v50 }
 0x88b   : > { %v6687_v47 = vpop.eup %6686  ;;  %v5339_v34 = vmul.f32 0.6931472, %v6685_v62 }
 0x88c   : > { %v5387_v32 = vmul.f32 0.6931472, %v6687_v47  ;;  %6688 = vlog2.f32 %v5309_v57 }
 0x88d   : > { %6690 = vlog2.f32 %v5357_v4 }
 0x88e   : > { %v5404_v28 = vsub.f32 %v5339_v34, %v5387_v32 }
 0x890   : > { %5480 = vmatmul.f32.gmra.mxu0 %v5404_v28  ;;  %v11386_v28 = vld [vmem:[#allocation102_spill] sm:$0xff] }
 0x892   : > { %v6689_v15 = vpop.eup %6688 }
 0x893   : > { %v6691_v41 = vpop.eup %6690  ;;  %v5341_v55 = vmul.f32 0.6931472, %v6689_v15 }
 0x894   : > { %v5389_v16 = vmul.f32 0.6931472, %v6691_v41 }
 0x896   : > { %v5405_v17 = vsub.f32 %v5341_v55, %v5389_v16 }
 0x898   : > { %5483 = vmatmul.f32.gmra.mxu0 %v5405_v17 }
 0x89d   : > { %v5439_v40 = vpop.f32.mrf.mxu0 }
 0x89e   : > { %v5440_v11 = vadd.f32 %v5439_v40, %v11380_v54 }
 0x8a0   : > { %vm5487_vm12 = vcmp.ge.f32.partialorder %v5440_v11, 0.0  ;;  %v5503_v35 = vsub.f32 0.0, %v5440_v11  ;;  %5647 = vst [vmem:[#allocation2 + $0x30] sm:$0xff] %v5440_v11 }
 0x8a2   : > { %v5519_v7 = vsel %vm5487_vm12, %v5503_v35, %v5440_v11 }
 0x8a3   : > { %v5535_v58 = vmul.f32 1.442695, %v5519_v7 }
 0x8a5   : > { %6692 = vpow2.f32 %v5535_v58  ;;  %v5442_v10 = vpop.f32.mrf.mxu0  ;;  %v11387_v58 = vld [vmem:[#allocation101_spill] sm:$0xff] }
 0x8a6   : > { %v5443_v63 = vadd.f32 %v5442_v10, %v11381_v5 }
 0x8a8   : > { %vm5488_vm11 = vcmp.ge.f32.partialorder %v5443_v63, 0.0  ;;  %v5504_v25 = vsub.f32 0.0, %v5443_v63  ;;  %5648 = vst [vmem:[#allocation2] sm:$0xff] %v5443_v63 }
 0x8aa   : > { %v5520_v1 = vsel %vm5488_vm11, %v5504_v25, %v5443_v63 }
 0x8ab   : > { %v6693_v24 = vpop.eup %6692  ;;  %v5537_v46 = vmul.f32 1.442695, %v5520_v1 }
 0x8ac   : > { %v5567_v9 = vadd.f32 1.0, %v6693_v24 }
 0x8ad   : > { %6694 = vpow2.f32 %v5537_v46  ;;  %v5445_v36 = vpop.f32.mrf.mxu0 }
 0x8ae   : > { %6696 = vrcp.f32 %v5567_v9  ;;  %v5446_v6 = vadd.f32 %v5445_v36, %v11382_v20 }
 0x8b0   : > { %vm5489_vm13 = vcmp.ge.f32.partialorder %v5446_v6, 0.0  ;;  %v5505_v49 = vsub.f32 0.0, %v5446_v6  ;;  %5649 = vst [vmem:[#allocation2 + $0x58] sm:$0xff] %v5446_v6 }
 0x8b2   : > { %v5521_v23 = vsel %vm5489_vm13, %v5505_v49, %v5446_v6  ;;  %v11388_v6 = vld [vmem:[#allocation104_spill] sm:$0xff] }
 0x8b3   : > { %v6695_v26 = vpop.eup %6694  ;;  %v5539_v39 = vmul.f32 1.442695, %v5521_v23 }
 0x8b4   : > { %v6697_v53 = vpop.eup %6696  ;;  %v5568_v18 = vadd.f32 1.0, %v6695_v26 }
 0x8b5   : > { %v5599_v21 = vmul.f32 %v6697_v53, %v6693_v24  ;;  %6698 = vpow2.f32 %v5539_v39  ;;  %v5448_v19 = vpop.f32.mrf.mxu0 }
 0x8b6   : > { %6700 = vrcp.f32 %v5568_v18  ;;  %v5449_v61 = vadd.f32 %v5448_v19, %v11383_v51 }
 0x8b7   : > { %v5615_v14 = vsel %vm5487_vm12, %v6697_v53, %v5599_v21 }
 0x8b8   : > { %5631 = vst [vmem:[%s7445_s21] sm:$0xff] %v5615_v14  ;;  %vm5490_vm8 = vcmp.ge.f32.partialorder %v5449_v61, 0.0  ;;  %v5506_v60 = vsub.f32 0.0, %v5449_v61  ;;  %v11389_v14 = vld [vmem:[#allocation106_spill] sm:$0xff] }
 0x8b9   : > { %5650 = vst [vmem:[#allocation2 + $0x18] sm:$0xff] %v5449_v61 }
 0x8ba   : > { %v5522_v29 = vsel %vm5490_vm8, %v5506_v60, %v5449_v61 }
 0x8bb   : > { %v6699_v30 = vpop.eup %6698  ;;  %v5541_v27 = vmul.f32 1.442695, %v5522_v29 }
 0x8bc   : > { %v6701_v37 = vpop.eup %6700  ;;  %v5569_v33 = vadd.f32 1.0, %v6699_v30 }
 0x8bd   : > { %v5600_v8 = vmul.f32 %v6701_v37, %v6695_v26  ;;  %6702 = vpow2.f32 %v5541_v27  ;;  %v5451_v44 = vpop.f32.mrf.mxu0 }
 0x8be   : > { %6704 = vrcp.f32 %v5569_v33  ;;  %v5452_v56 = vadd.f32 %v5451_v44, %v11384_v22 }
 0x8bf   : > { %v5616_v38 = vsel %vm5488_vm11, %v6701_v37, %v5600_v8 }
 0x8c0   : > { %5632 = vst [vmem:[%s7445_s21 + $0x8] sm:$0xff] %v5616_v38  ;;  %vm5491_vm9 = vcmp.ge.f32.partialorder %v5452_v56, 0.0  ;;  %v5507_v0 = vsub.f32 0.0, %v5452_v56  ;;  %v11390_v38 = vld [vmem:[#allocation108_spill] sm:$0xff] }
 0x8c1   : > { %5651 = vst [vmem:[#allocation2 + $0x50] sm:$0xff] %v5452_v56 }
 0x8c2   : > { %v5523_v2 = vsel %vm5491_vm9, %v5507_v0, %v5452_v56 }
 0x8c3   : > { %v6703_v43 = vpop.eup %6702  ;;  %v5543_v3 = vmul.f32 1.442695, %v5523_v2 }
 0x8c4   : > { %v6705_v45 = vpop.eup %6704  ;;  %v5570_v12 = vadd.f32 1.0, %v6703_v43 }
 0x8c5   : > { %v5601_v31 = vmul.f32 %v6705_v45, %v6699_v30  ;;  %6706 = vpow2.f32 %v5543_v3  ;;  %v5454_v52 = vpop.f32.mrf.mxu0 }
 0x8c6   : > { %6708 = vrcp.f32 %v5570_v12  ;;  %v5455_v42 = vadd.f32 %v5454_v52, %v11385_v48 }
 0x8c7   : > { %v5617_v13 = vsel %vm5489_vm13, %v6705_v45, %v5601_v31 }
 0x8c8   : > { %5633 = vst [vmem:[%s7445_s21 + $0x10] sm:$0xff] %v5617_v13  ;;  %vm5492_vm0 = vcmp.ge.f32.partialorder %v5455_v42, 0.0  ;;  %v5508_v59 = vsub.f32 0.0, %v5455_v42  ;;  %v11391_v13 = vld [vmem:[#allocation130_spill] sm:$0xff] }
 0x8c9   : > { %5652 = vst [vmem:[#allocation2 + $0x68] sm:$0xff] %v5455_v42 }
 0x8ca   : > { %v5524_v50 = vsel %vm5492_vm0, %v5508_v59, %v5455_v42 }
 0x8cb   : > { %v6707_v62 = vpop.eup %6706  ;;  %v5545_v57 = vmul.f32 1.442695, %v5524_v50 }
 0x8cc   : > { %v6709_v4 = vpop.eup %6708  ;;  %v5571_v47 = vadd.f32 1.0, %v6707_v62 }
 0x8cd   : > { %v5602_v34 = vmul.f32 %v6709_v4, %v6703_v43  ;;  %6710 = vpow2.f32 %v5545_v57  ;;  %v5457_v32 = vpop.f32.mrf.mxu0 }
 0x8ce   : > { %6712 = vrcp.f32 %v5571_v47  ;;  %v5458_v15 = vadd.f32 %v5457_v32, %v11386_v28 }
 0x8cf   : > { %v5618_v41 = vsel %vm5490_vm8, %v6709_v4, %v5602_v34 }
 0x8d0   : > { %5634 = vst [vmem:[%s7445_s21 + $0x18] sm:$0xff] %v5618_v41  ;;  %vm5493_vm1 = vcmp.ge.f32.partialorder %v5458_v15, 0.0  ;;  %v5509_v55 = vsub.f32 0.0, %v5458_v15  ;;  %v11392_v41 = vld [vmem:[#allocation107_spill] sm:$0xff] }
 0x8d1   : > { %5653 = vst [vmem:[#allocation2 + $0x8] sm:$0xff] %v5458_v15 }
 0x8d2   : > { %v5525_v16 = vsel %vm5493_vm1, %v5509_v55, %v5458_v15 }
 0x8d3   : > { %v6711_v17 = vpop.eup %6710  ;;  %v5547_v40 = vmul.f32 1.442695, %v5525_v16 }
 0x8d4   : > { %v6713_v54 = vpop.eup %6712  ;;  %v5572_v11 = vadd.f32 1.0, %v6711_v17 }
 0x8d5   : > { %v5603_v35 = vmul.f32 %v6713_v54, %v6707_v62  ;;  %6714 = vpow2.f32 %v5547_v40  ;;  %v5460_v7 = vpop.f32.mrf.mxu0 }
 0x8d6   : > { %6716 = vrcp.f32 %v5572_v11  ;;  %v5461_v10 = vadd.f32 %v5460_v7, %v11387_v58 }
 0x8d7   : > { %v5619_v5 = vsel %vm5491_vm9, %v6713_v54, %v5603_v35 }
 0x8d8   : > { %5635 = vst [vmem:[%s7445_s21 + $0x20] sm:$0xff] %v5619_v5  ;;  %vm5494_vm2 = vcmp.ge.f32.partialorder %v5461_v10, 0.0  ;;  %v5510_v63 = vsub.f32 0.0, %v5461_v10  ;;  %v11393_v5 = vld [vmem:[#allocation110_spill] sm:$0xff] }
 0x8d9   : > { %5654 = vst [vmem:[#allocation2 + $0x48] sm:$0xff] %v5461_v10 }
 0x8da   : > { %v5526_v25 = vsel %vm5494_vm2, %v5510_v63, %v5461_v10 }
 0x8db   : > { %v6715_v1 = vpop.eup %6714  ;;  %v5549_v24 = vmul.f32 1.442695, %v5526_v25 }
 0x8dc   : > { %v6717_v46 = vpop.eup %6716  ;;  %v5573_v9 = vadd.f32 1.0, %v6715_v1 }
 0x8dd   : > { %v5604_v36 = vmul.f32 %v6717_v46, %v6711_v17  ;;  %6718 = vpow2.f32 %v5549_v24  ;;  %v5463_v20 = vpop.f32.mrf.mxu0 }
 0x8de   : > { %6720 = vrcp.f32 %v5573_v9  ;;  %v5464_v49 = vadd.f32 %v5463_v20, %v11388_v6 }
 0x8df   : > { %v5620_v23 = vsel %vm5492_vm0, %v6717_v46, %v5604_v36 }
 0x8e0   : > { %5636 = vst [vmem:[%s7445_s21 + $0x28] sm:$0xff] %v5620_v23  ;;  %vm5495_vm3 = vcmp.ge.f32.partialorder %v5464_v49, 0.0  ;;  %v5511_v26 = vsub.f32 0.0, %v5464_v49  ;;  %v11394_v23 = vld [vmem:[#allocation93_spill] sm:$0xff] }
 0x8e1   : > { %5655 = vst [vmem:[#allocation2 + $0x40] sm:$0xff] %v5464_v49 }
 0x8e2   : > { %v5527_v39 = vsel %vm5495_vm3, %v5511_v26, %v5464_v49 }
 0x8e3   : > { %v6719_v53 = vpop.eup %6718  ;;  %v5551_v18 = vmul.f32 1.442695, %v5527_v39 }
 0x8e4   : > { %v6721_v21 = vpop.eup %6720  ;;  %v5574_v19 = vadd.f32 1.0, %v6719_v53 }
 0x8e5   : > { %v5605_v51 = vmul.f32 %v6721_v21, %v6715_v1  ;;  %6722 = vpow2.f32 %v5551_v18  ;;  %v5466_v61 = vpop.f32.mrf.mxu0 }
 0x8e6   : > { %6724 = vrcp.f32 %v5574_v19  ;;  %v5467_v60 = vadd.f32 %v5466_v61, %v11389_v14 }
 0x8e7   : > { %v5621_v29 = vsel %vm5493_vm1, %v6721_v21, %v5605_v51 }
 0x8e8   : > { %5637 = vst [vmem:[%s7445_s21 + $0x30] sm:$0xff] %v5621_v29  ;;  %vm5496_vm4 = vcmp.ge.f32.partialorder %v5467_v60, 0.0  ;;  %v5512_v30 = vsub.f32 0.0, %v5467_v60  ;;  %v11396_v29 = vld [vmem:[#allocation60_spill] sm:$0xff] }
 0x8e9   : > { %5656 = vst [vmem:[#allocation2 + $0x20] sm:$0xff] %v5467_v60 }
 0x8ea   : > { %v5528_v27 = vsel %vm5496_vm4, %v5512_v30, %v5467_v60 }
 0x8eb   : > { %v6723_v37 = vpop.eup %6722  ;;  %v5553_v33 = vmul.f32 1.442695, %v5528_v27 }
 0x8ec   : > { %v6725_v8 = vpop.eup %6724  ;;  %v5575_v44 = vadd.f32 1.0, %v6723_v37 }
 0x8ed   : > { %v5606_v22 = vmul.f32 %v6725_v8, %v6719_v53  ;;  %6726 = vpow2.f32 %v5553_v33  ;;  %v5469_v56 = vpop.f32.mrf.mxu0 }
 0x8ee   : > { %6728 = vrcp.f32 %v5575_v44  ;;  %v5470_v0 = vadd.f32 %v5469_v56, %v11390_v38 }
 0x8ef   : > { %v5622_v2 = vsel %vm5494_vm2, %v6725_v8, %v5606_v22 }
 0x8f0   : > { %5638 = vst [vmem:[%s7445_s21 + $0x38] sm:$0xff] %v5622_v2  ;;  %vm5497_vm14 = vcmp.ge.f32.partialorder %v5470_v0, 0.0  ;;  %v5513_v43 = vsub.f32 0.0, %v5470_v0 }
 0x8f1   : > { %5657 = vst [vmem:[#allocation2 + $0x10] sm:$0xff] %v5470_v0 }
 0x8f2   : > { %v5529_v3 = vsel %vm5497_vm14, %v5513_v43, %v5470_v0 }
 0x8f3   : > { %v6727_v45 = vpop.eup %6726  ;;  %v5555_v12 = vmul.f32 1.442695, %v5529_v3 }
 0x8f4   : > { %v6729_v31 = vpop.eup %6728  ;;  %v5576_v52 = vadd.f32 1.0, %v6727_v45 }
 0x8f5   : > { %v5607_v48 = vmul.f32 %v6729_v31, %v6723_v37  ;;  %6730 = vpow2.f32 %v5555_v12  ;;  %v5472_v42 = vpop.f32.mrf.mxu0 }
 0x8f6   : > { %6732 = vrcp.f32 %v5576_v52  ;;  %v5473_v59 = vadd.f32 %v5472_v42, %v11391_v13 }
 0x8f7   : > { %v5623_v50 = vsel %vm5495_vm3, %v6729_v31, %v5607_v48 }
 0x8f8   : > { %5639 = vst [vmem:[%s7445_s21 + $0x40] sm:$0xff] %v5623_v50  ;;  %vm5498_vm15 = vcmp.ge.f32.partialorder %v5473_v59, 0.0  ;;  %v5514_v62 = vsub.f32 0.0, %v5473_v59 }
 0x8f9   : > { %5658 = vst [vmem:[#allocation2 + $0x38] sm:$0xff] %v5473_v59 }
 0x8fa   : > { %v5530_v57 = vsel %vm5498_vm15, %v5514_v62, %v5473_v59 }
 0x8fb   : > { %v6731_v4 = vpop.eup %6730  ;;  %v5557_v47 = vmul.f32 1.442695, %v5530_v57 }
 0x8fc   : > { %v6733_v34 = vpop.eup %6732  ;;  %v5577_v32 = vadd.f32 1.0, %v6731_v4 }
 0x8fd   : > { %v5608_v28 = vmul.f32 %v6733_v34, %v6727_v45  ;;  %6734 = vpow2.f32 %v5557_v47  ;;  %v5475_v15 = vpop.f32.mrf.mxu0 }
 0x8fe   : > { %6736 = vrcp.f32 %v5577_v32  ;;  %v5476_v55 = vadd.f32 %v5475_v15, %v11392_v41 }
 0x8ff   : > { %v5624_v16 = vsel %vm5496_vm4, %v6733_v34, %v5608_v28 }
 0x900   : > { %5640 = vst [vmem:[%s7445_s21 + $0x48] sm:$0xff] %v5624_v16  ;;  %vm5499_vm5 = vcmp.ge.f32.partialorder %v5476_v55, 0.0  ;;  %v5515_v17 = vsub.f32 0.0, %v5476_v55 }
 0x901   : > { %5659 = vst [vmem:[#allocation2 + $0x60] sm:$0xff] %v5476_v55 }
 0x902   : > { %v5531_v40 = vsel %vm5499_vm5, %v5515_v17, %v5476_v55 }
 0x903   : > { %v6735_v54 = vpop.eup %6734  ;;  %v5559_v11 = vmul.f32 1.442695, %v5531_v40 }
 0x904   : > { %v6737_v35 = vpop.eup %6736  ;;  %v5578_v7 = vadd.f32 1.0, %v6735_v54 }
 0x905   : > { %v5609_v58 = vmul.f32 %v6737_v35, %v6731_v4  ;;  %6738 = vpow2.f32 %v5559_v11  ;;  %v5478_v10 = vpop.f32.mrf.mxu0 }
 0x906   : > { %6740 = vrcp.f32 %v5578_v7  ;;  %v5479_v63 = vadd.f32 %v5478_v10, %v11393_v5 }
 0x907   : > { %v5625_v25 = vsel %vm5497_vm14, %v6737_v35, %v5609_v58 }
 0x908   : > { %5641 = vst [vmem:[%s7445_s21 + $0x50] sm:$0xff] %v5625_v25  ;;  %vm5500_vm6 = vcmp.ge.f32.partialorder %v5479_v63, 0.0  ;;  %v5516_v1 = vsub.f32 0.0, %v5479_v63 }
 0x909   : > { %5660 = vst [vmem:[#allocation2 + $0x70] sm:$0xff] %v5479_v63 }
 0x90a   : > { %v5532_v24 = vsel %vm5500_vm6, %v5516_v1, %v5479_v63 }
 0x90b   : > { %v6739_v46 = vpop.eup %6738  ;;  %v5561_v9 = vmul.f32 1.442695, %v5532_v24 }
 0x90c   : > { %v6741_v36 = vpop.eup %6740  ;;  %v5579_v20 = vadd.f32 1.0, %v6739_v46 }
 0x90d   : > { %v5610_v6 = vmul.f32 %v6741_v36, %v6735_v54  ;;  %6742 = vpow2.f32 %v5561_v9  ;;  %v5481_v49 = vpop.f32.mrf.mxu0 }
 0x90e   : > { %6744 = vrcp.f32 %v5579_v20  ;;  %v5482_v26 = vadd.f32 %v5481_v49, %v11394_v23 }
 0x90f   : > { %v5626_v39 = vsel %vm5498_vm15, %v6741_v36, %v5610_v6 }
 0x910   : > { %5642 = vst [vmem:[%s7445_s21 + $0x58] sm:$0xff] %v5626_v39  ;;  %vm5501_vm7 = vcmp.ge.f32.partialorder %v5482_v26, 0.0  ;;  %v5517_v53 = vsub.f32 0.0, %v5482_v26 }
 0x911   : > { %5661 = vst [vmem:[#allocation2 + $0x78] sm:$0xff] %v5482_v26 }
 0x912   : > { %v5533_v18 = vsel %vm5501_vm7, %v5517_v53, %v5482_v26 }
 0x913   : > { %v6743_v21 = vpop.eup %6742  ;;  %v5563_v19 = vmul.f32 1.442695, %v5533_v18 }
 0x914   : > { %v6745_v51 = vpop.eup %6744  ;;  %v5580_v61 = vadd.f32 1.0, %v6743_v21 }
 0x915   : > { %v5611_v14 = vmul.f32 %v6745_v51, %v6739_v46  ;;  %6746 = vpow2.f32 %v5563_v19  ;;  %v5484_v60 = vpop.f32.mrf.mxu0 }
 0x916   : > { %6748 = vrcp.f32 %v5580_v61  ;;  %v5485_v30 = vadd.f32 %v5484_v60, %v11396_v29 }
 0x917   : > { %v5627_v27 = vsel %vm5499_vm5, %v6745_v51, %v5611_v14 }
 0x918   : > { %5643 = vst [vmem:[%s7445_s21 + $0x60] sm:$0xff] %v5627_v27  ;;  %vm5502_vm10 = vcmp.ge.f32.partialorder %v5485_v30, 0.0  ;;  %v5518_v37 = vsub.f32 0.0, %v5485_v30 }
 0x919   : > { %5662 = vst [vmem:[#allocation2 + $0x28] sm:$0xff] %v5485_v30 }
 0x91a   : > { %v5534_v33 = vsel %vm5502_vm10, %v5518_v37, %v5485_v30 }
 0x91b   : > { %v6747_v8 = vpop.eup %6746  ;;  %v5565_v44 = vmul.f32 1.442695, %v5534_v33 }
 0x91c   : > { %v6749_v22 = vpop.eup %6748  ;;  %v5581_v56 = vadd.f32 1.0, %v6747_v8 }
 0x91d   : > { %v5612_v38 = vmul.f32 %v6749_v22, %v6743_v21  ;;  %6750 = vpow2.f32 %v5565_v44 }
 0x91e   : > { %6752 = vrcp.f32 %v5581_v56 }
 0x91f   : > { %v5628_v0 = vsel %vm5500_vm6, %v6749_v22, %v5612_v38 }
 0x920   : > { %5644 = vst [vmem:[%s7445_s21 + $0x68] sm:$0xff] %v5628_v0 }
 0x923   : > { %v6751_v2 = vpop.eup %6750 }
 0x924   : > { %v6753_v43 = vpop.eup %6752  ;;  %v5582_v3 = vadd.f32 1.0, %v6751_v2 }
 0x925   : > { %v5613_v45 = vmul.f32 %v6753_v43, %v6747_v8 }
 0x926   : > { %6754 = vrcp.f32 %v5582_v3 }
 0x927   : > { %v5629_v12 = vsel %vm5501_vm7, %v6753_v43, %v5613_v45 }
 0x928   : > { %5645 = vst [vmem:[%s7445_s21 + $0x70] sm:$0xff] %v5629_v12 }
 0x92c   : > { %v6755_v31 = vpop.eup %6754 }
 0x92d   : > { %v5614_v52 = vmul.f32 %v6755_v31, %v6751_v2 }
 0x92f   : > { %v5630_v48 = vsel %vm5502_vm10, %v6755_v31, %v5614_v52 }
 0x930   : > { %5646 = vst [vmem:[%s7445_s21 + $0x78] sm:$0xff] %v5630_v48 }
 0x931   : > { %6986 = shalt.err (!%p6983_p1)
}
 0x932   : > { %s7127_s14 = smov 128   ;;  %s7128_s21 = smov 8  }
 0x933   : > { %6218 = dma.vmem_to_hbm [thread:$0]  (%p7249_p6), %s5679_s25, 2048, %s5681_s3, %s5664_s6, %s7127_s14, %s7127_s14, %s7128_s21  }
 0x934 PF: > { %s11402_s24 = sld [smem:[#allocation20_spill]]  ;;  %p6249_p2 = scmp.ge.s32.totalorder %s7117_s10, 2 }
 0x936   : > { %p6241_p12 = pnand %p6249_p2, %p7255_p10 }
 0x938   : > { %p6242_p0 = pneg %p6241_p12 }
 0x93a   : > { %s5695_s4 = sand.u32 1, %s11402_s24  }
 0x93b   : > { %s5696_s11 = scalar_lea.sflag [#allocation5], %s5695_s4 }
 0x93c   : > { %7060 = dma.done.wait (%p6242_p0), %s5696_s11, 2048  }
 0x93d   : > { %7062 = vsyncadd (%p6242_p0), %s5696_s11, 4294965248  ;;  %s29_s10 = sadd.s32 1, %s7117_s10   ;;  %s11405_s21 = sld [smem:[#allocation21_spill]] }
 0x93e   : > { %p10661_p11 = scmp.ge.s32.totalorder %s29_s10, 22   ;;  %s11406_s24 = sld [smem:[#allocation22_spill]] }
 0x93f   : > { %s11407_s25 = sld [smem:[#allocation23_spill]]  ;;  %s11412_s22 = smov %s7073_s23 }
 0x940   : > { %s11408_s16 = sld [smem:[#allocation33_spill]]  ;;  %s11413_s23 = smov %s7379_s19 }
 0x941   : > { %s11409_s27 = sld [smem:[#allocation24_spill]]  ;;  %s11415_s28 = smov %s7097_s29 }
 0x942   : > { %s11410_s12 = sld [smem:[#allocation32_spill]]  ;;  %s11416_s29 = smov %s7376_s18 }
 0x943   : > { %s11417_s30 = smov %s7109_s8  ;;  %s11418_s7 = smov %s7113_s9 }
 0x944   : > { %s11420_s9 = smov %s11426_s13  ;;  %28 = sbr.rel (!%p10661_p11) target bundleno = 23 (0x17), region = 140 }
 0x946   : > { %s11414_s26 = smov %s11408_s16 }
 0x948   : > { %s11419_s8 = smov %s11410_s12 }
 0x949   :  { %5702 = vsyncpa [#allocation4], 1 }
 0x94a   :  { %5704 = vsyncpa [#allocation4 + $0x1], 1 }
 0x94b   :  { %5705 = vsyncpa [#allocation7], 1 }
 0x94c   :  { %5706 = vsyncpa [#allocation10], 1 }
 0x94d   :  { %5708 = vsyncpa [#allocation10 + $0x1], 1 }
 0x94e   :  { %5709 = vsyncpa [#allocation13], 1 }
 0x94f   :  { %5711 = vsyncpa [#allocation13 + $0x1], 1 }
 0x950   :  { %5712 = vsyncpa [#allocation5], 1 }
 0x951   :  { %5714 = vsyncpa [#allocation5 + $0x1], 1 }

</bundles_post_ra>
